<compile_context>
chip_gen: v7x
topology: tpu7x:2x2x1
jax: 0.10.0
libtpu: 0.0.40
codegen_flags: <defaults>
</compile_context>

<pallas_src>
import functools

import jax
import jax.numpy as jnp
from jax.experimental import pallas as pl
from jax.experimental.pallas import tpu as pltpu


def _bmm(a, b):
    """Batched matmul over leading (head) axis: (H,P,Q) x (H,Q,R) -> (H,P,R), f32 acc."""
    return jax.lax.dot_general(
        a, b, (((2,), (1,)), ((0,), (0,))), preferred_element_type=jnp.float32)


def _bmm_nt(a, b):
    """Batched matmul, rhs transposed: (H,P,Q) x (H,R,Q) -> (H,P,R), f32 acc."""
    return jax.lax.dot_general(
        a, b, (((2,), (2,)), ((0,), (0,))), preferred_element_type=jnp.float32)


def _mha_kernel(q_ref, k_ref, v_ref,
                wq_ref, wk_ref, wv_ref, wfc_ref,
                gamma_ref, beta_ref,
                out_ref, attn_ref,
                kh_ref, vh_ref,
                *, eps, compute_dtype):
    n_head = wq_ref.shape[0]

    # ---- K / V projections: once per batch element (first query tile), ----
    # ---- head-major into VMEM scratch, reused across all query tiles.  ----
    @pl.when(pl.program_id(1) == 0)
    def _():
        xk = k_ref[0].astype(compute_dtype)                      # (Lk, M)
        xv = v_ref[0].astype(compute_dtype)
        xk_b = jnp.broadcast_to(xk[None], (n_head,) + xk.shape)  # (H, Lk, M)
        xv_b = jnp.broadcast_to(xv[None], (n_head,) + xv.shape)
        kh_ref[...] = _bmm(xk_b, wk_ref[...]).astype(compute_dtype)  # (H, Lk, dk)
        vh_ref[...] = _bmm(xv_b, wv_ref[...]).astype(compute_dtype)  # (H, Lk, dv)

    # ---- Q projection for this query tile (scale 1/temperature folded into wq). ----
    xq_res = q_ref[0]                                            # (TQ, M) f32 residual
    xq = xq_res.astype(compute_dtype)
    xq_b = jnp.broadcast_to(xq[None], (n_head,) + xq.shape)      # (H, TQ, M)
    qh = _bmm(xq_b, wq_ref[...]).astype(compute_dtype)           # (H, TQ, dk)

    # ---- scaled dot-product attention (batched over heads) ----
    # TODO(synk): mask path and train-mode dropout not implemented (mask=None, eval mode).
    s = _bmm_nt(qh, kh_ref[...])                                 # (H, TQ, Lk) f32
    m = jnp.max(s, axis=-1, keepdims=True)
    e = jnp.exp(s - m)
    denom = jnp.sum(e, axis=-1, keepdims=True)
    attn = e * pl.reciprocal(denom, approx=True)                 # (H, TQ, Lk) f32

    attn_ref[0] = attn.astype(attn_ref.dtype)

    ctx = _bmm(attn.astype(compute_dtype), vh_ref[...])          # (H, TQ, dv) f32

    # ---- output projection: per-head matmul then sum over heads (no concat). ----
    proj_h = _bmm(ctx.astype(compute_dtype), wfc_ref[...])       # (H, TQ, M) f32
    proj = jnp.sum(proj_h, axis=0)                               # (TQ, M)

    # ---- residual + LayerNorm (f32) ----
    y = proj + xq_res
    mean = jnp.mean(y, axis=-1, keepdims=True)
    var = jnp.mean(jnp.square(y - mean), axis=-1, keepdims=True)
    y = (y - mean) * jax.lax.rsqrt(var + eps)
    out_ref[0] = (y * gamma_ref[...] + beta_ref[...]).astype(out_ref.dtype)


def multi_head_attention(q, k, v, params, *, n_head, d_k, d_v, eps=1e-6,
                         compute_dtype=jnp.bfloat16, q_tile=128):
    """q, k, v: (B, L, d_model) float32.

    Returns (out (B, Lq, d_model) f32, attn (B, n_head, Lq, Lk) f32).
    """
    B, Lq, d_model = q.shape
    Lk = k.shape[1]

    tq = min(q_tile, Lq)
    assert Lq % tq == 0, "Lq must be divisible by the query tile"
    nq = Lq // tq

    temperature = float(d_k) ** 0.5

    # PyTorch Linear stores weight as (out, in); kernel consumes head-major
    # (H, in, out) blocks.  Fold the 1/temperature softmax scale into wq.
    wq = (params["w_qs"].T / temperature).reshape(d_model, n_head, d_k)
    wq = jnp.transpose(wq, (1, 0, 2)).astype(compute_dtype)               # (H, M, dk)
    wk = jnp.transpose(params["w_ks"].T.reshape(d_model, n_head, d_k),
                       (1, 0, 2)).astype(compute_dtype)                   # (H, M, dk)
    wv = jnp.transpose(params["w_vs"].T.reshape(d_model, n_head, d_v),
                       (1, 0, 2)).astype(compute_dtype)                   # (H, M, dv)
    wfc = params["fc"].T.reshape(n_head, d_v, d_model).astype(compute_dtype)  # (H, dv, M)
    gamma = params["ln_gamma"].reshape(1, d_model).astype(jnp.float32)
    beta = params["ln_beta"].reshape(1, d_model).astype(jnp.float32)

    kernel = functools.partial(_mha_kernel, eps=eps, compute_dtype=compute_dtype)

    out_shape = (
        jax.ShapeDtypeStruct((B, Lq, d_model), q.dtype),
        jax.ShapeDtypeStruct((B, n_head, Lq, Lk), jnp.float32),
    )

    grid_spec = pltpu.PrefetchScalarGridSpec(
        num_scalar_prefetch=0,
        grid=(B, nq),
        in_specs=[
            pl.BlockSpec((1, tq, d_model), lambda b, qi: (b, qi, 0)),   # q tile
            pl.BlockSpec((1, Lk, d_model), lambda b, qi: (b, 0, 0)),    # k (resident per b)
            pl.BlockSpec((1, Lk, d_model), lambda b, qi: (b, 0, 0)),    # v (resident per b)
            pl.BlockSpec((n_head, d_model, d_k), lambda b, qi: (0, 0, 0)),
            pl.BlockSpec((n_head, d_model, d_k), lambda b, qi: (0, 0, 0)),
            pl.BlockSpec((n_head, d_model, d_v), lambda b, qi: (0, 0, 0)),
            pl.BlockSpec((n_head, d_v, d_model), lambda b, qi: (0, 0, 0)),
            pl.BlockSpec((1, d_model), lambda b, qi: (0, 0)),
            pl.BlockSpec((1, d_model), lambda b, qi: (0, 0)),
        ],
        out_specs=[
            pl.BlockSpec((1, tq, d_model), lambda b, qi: (b, qi, 0)),
            pl.BlockSpec((1, n_head, tq, Lk), lambda b, qi: (b, 0, qi, 0)),
        ],
        scratch_shapes=[
            pltpu.VMEM((n_head, Lk, d_k), compute_dtype),   # head-major K projection
            pltpu.VMEM((n_head, Lk, d_v), compute_dtype),   # head-major V projection
        ],
    )

    return pl.pallas_call(
        kernel,
        out_shape=out_shape,
        grid_spec=grid_spec,
        compiler_params=pltpu.CompilerParams(
            dimension_semantics=("parallel", "arbitrary")),
    )(q, k, v, wq, wk, wv, wfc, gamma, beta)


def _reference(q, k, v, params, *, n_head, d_k, d_v, eps=1e-6):
    """Pure-JAX f32 reference mirroring the PyTorch forward (eval mode)."""
    B, Lq, d_model = q.shape
    Lk = k.shape[1]
    Q = (q @ params["w_qs"].T).reshape(B, Lq, n_head, d_k).transpose(0, 2, 1, 3)
    K = (k @ params["w_ks"].T).reshape(B, Lk, n_head, d_k).transpose(0, 2, 1, 3)
    V = (v @ params["w_vs"].T).reshape(B, Lk, n_head, d_v).transpose(0, 2, 1, 3)
    attn = jax.nn.softmax((Q / (d_k ** 0.5)) @ jnp.swapaxes(K, -1, -2), axis=-1)
    o = (attn @ V).transpose(0, 2, 1, 3).reshape(B, Lq, n_head * d_v)
    o = o @ params["fc"].T + q
    mean = o.mean(-1, keepdims=True)
    var = ((o - mean) ** 2).mean(-1, keepdims=True)
    o = (o - mean) * jax.lax.rsqrt(var + eps)
    o = o * params["ln_gamma"] + params["ln_beta"]
    return o, attn


if __name__ == "__main__":
    # Small but lane-dense shapes (d_model, n_head*d_k multiples of 128).
    B, L, d_model = 2, 256, 128
    n_head, d_k, d_v = 4, 32, 32

    key = jax.random.PRNGKey(0)
    ks = jax.random.split(key, 8)
    scale = 0.1
    params = {
        "w_qs": scale * jax.random.normal(ks[0], (n_head * d_k, d_model), jnp.float32),
        "w_ks": scale * jax.random.normal(ks[1], (n_head * d_k, d_model), jnp.float32),
        "w_vs": scale * jax.random.normal(ks[2], (n_head * d_v, d_model), jnp.float32),
        "fc":   scale * jax.random.normal(ks[3], (d_model, n_head * d_v), jnp.float32),
        "ln_gamma": jnp.ones((d_model,), jnp.float32),
        "ln_beta": jnp.zeros((d_model,), jnp.float32),
    }

    q = jax.random.normal(ks[4], (B, L, d_model), jnp.float32)
    k = jax.random.normal(ks[5], (B, L, d_model), jnp.float32)
    v = jax.random.normal(ks[6], (B, L, d_model), jnp.float32)

    out, attn = multi_head_attention(q, k, v, params, n_head=n_head, d_k=d_k, d_v=d_v)
    jax.block_until_ready((out, attn))

    ref_out, ref_attn = _reference(q, k, v, params, n_head=n_head, d_k=d_k, d_v=d_v)

    # bf16 MXU inputs (f32 accumulation) -> relaxed tolerances vs. the f32 reference.
    assert jnp.allclose(out, ref_out, atol=2e-2, rtol=2e-2), \
        float(jnp.max(jnp.abs(out - ref_out)))
    assert jnp.allclose(attn, ref_attn, atol=1e-2, rtol=1e-2), \
        float(jnp.max(jnp.abs(attn - ref_attn)))

    print("KERNEL_OK")
</pallas_src>

<mosaic_0001>
module attributes {stable_mosaic.version = 11 : i64} {
  func.func @_mha_kernel(%arg0: i32, %arg1: i32, %arg2: memref<1x128x128xf32, #tpu.memory_space<vmem>>, %arg3: memref<1x256x128xf32, #tpu.memory_space<vmem>>, %arg4: memref<1x256x128xf32, #tpu.memory_space<vmem>>, %arg5: memref<4x128x32xbf16, #tpu.memory_space<vmem>>, %arg6: memref<4x128x32xbf16, #tpu.memory_space<vmem>>, %arg7: memref<4x128x32xbf16, #tpu.memory_space<vmem>>, %arg8: memref<4x32x128xbf16, #tpu.memory_space<vmem>>, %arg9: memref<1x128xf32, #tpu.memory_space<vmem>>, %arg10: memref<1x128xf32, #tpu.memory_space<vmem>>, %arg11: memref<1x128x128xf32, #tpu.memory_space<vmem>>, %arg12: memref<1x4x128x256xf32, #tpu.memory_space<vmem>>, %arg13: memref<4x256x32xbf16, #tpu.memory_space<vmem>>, %arg14: memref<4x256x32xbf16, #tpu.memory_space<vmem>>) attributes {dimension_semantics = [#tpu.dimension_semantics<parallel>, #tpu.dimension_semantics<arbitrary>], iteration_bounds = array<i64: 2, 2>, scalar_prefetch = 0 : i64, scratch_operands = 2 : i64, tpu.core_type = #tpu.core_type<tc>, window_params = [{transform_indices = @transform_0, window_bounds = array<i64: 1, 128, 128>}, {transform_indices = @transform_1, window_bounds = array<i64: 1, 256, 128>}, {transform_indices = @transform_2, window_bounds = array<i64: 1, 256, 128>}, {pipeline_mode = #tpu.pipeline_mode<synchronous>, transform_indices = @transform_3, window_bounds = array<i64: 4, 128, 32>}, {pipeline_mode = #tpu.pipeline_mode<synchronous>, transform_indices = @transform_4, window_bounds = array<i64: 4, 128, 32>}, {pipeline_mode = #tpu.pipeline_mode<synchronous>, transform_indices = @transform_5, window_bounds = array<i64: 4, 128, 32>}, {pipeline_mode = #tpu.pipeline_mode<synchronous>, transform_indices = @transform_6, window_bounds = array<i64: 4, 32, 128>}, {pipeline_mode = #tpu.pipeline_mode<synchronous>, transform_indices = @transform_7, window_bounds = array<i64: 1, 128>}, {pipeline_mode = #tpu.pipeline_mode<synchronous>, transform_indices = @transform_8, window_bounds = array<i64: 1, 128>}, {transform_indices = @transform_9, window_bounds = array<i64: 1, 128, 128>}, {transform_indices = @transform_10, window_bounds = array<i64: 1, 4, 128, 256>}]} {
    %c0_i32 = arith.constant 0 : i32
    %0 = arith.cmpi eq, %arg1, %c0_i32 : i32
    %1 = arith.extui %0 : i1 to i32
    %c0_i32_0 = arith.constant 0 : i32
    %2 = arith.cmpi ne, %1, %c0_i32_0 : i32
    scf.if %2 {
      %c0_37 = arith.constant 0 : index
      %c0_38 = arith.constant 0 : index
      %c0_39 = arith.constant 0 : index
      %62 = vector.load %arg3[%c0_37, %c0_38, %c0_39] : memref<1x256x128xf32, #tpu.memory_space<vmem>>, vector<1x256x128xf32>
      %63 = vector.shape_cast %62 : vector<1x256x128xf32> to vector<256x128xf32>
      %64 = arith.truncf %63 : vector<256x128xf32> to vector<256x128xbf16>
      %c0_40 = arith.constant 0 : index
      %c0_41 = arith.constant 0 : index
      %c0_42 = arith.constant 0 : index
      %65 = vector.load %arg4[%c0_40, %c0_41, %c0_42] : memref<1x256x128xf32, #tpu.memory_space<vmem>>, vector<1x256x128xf32>
      %66 = vector.shape_cast %65 : vector<1x256x128xf32> to vector<256x128xf32>
      %67 = arith.truncf %66 : vector<256x128xf32> to vector<256x128xbf16>
      %68 = vector.shape_cast %64 : vector<256x128xbf16> to vector<1x256x128xbf16>
      %69 = vector.shape_cast %68 : vector<1x256x128xbf16> to vector<1x256x128xbf16>
      %70 = vector.broadcast %69 : vector<1x256x128xbf16> to vector<4x256x128xbf16>
      %71 = vector.shape_cast %67 : vector<256x128xbf16> to vector<1x256x128xbf16>
      %72 = vector.shape_cast %71 : vector<1x256x128xbf16> to vector<1x256x128xbf16>
      %73 = vector.broadcast %72 : vector<1x256x128xbf16> to vector<4x256x128xbf16>
      %c0_43 = arith.constant 0 : index
      %c0_44 = arith.constant 0 : index
      %c0_45 = arith.constant 0 : index
      %74 = vector.load %arg6[%c0_43, %c0_44, %c0_45] : memref<4x128x32xbf16, #tpu.memory_space<vmem>>, vector<4x128x32xbf16>
      %cst_46 = arith.constant dense<0.000000e+00> : vector<4x256x32xf32>
      %75 = tpu.matmul %70, %74, %cst_46 {dimension_numbers = #tpu.dot_dimension_numbers<[2], [1], [1], [2], [0, 0, 0, 1, 1, 2], [0], [0]>} : vector<4x256x128xbf16>, vector<4x128x32xbf16>, vector<4x256x32xf32> -> vector<4x256x32xf32>
      %76 = arith.truncf %75 : vector<4x256x32xf32> to vector<4x256x32xbf16>
      %c0_47 = arith.constant 0 : index
      %c0_48 = arith.constant 0 : index
      %c0_49 = arith.constant 0 : index
      %77 = vector.load %arg13[%c0_47, %c0_48, %c0_49] : memref<4x256x32xbf16, #tpu.memory_space<vmem>>, vector<4x256x32xbf16>
      tpu.vector_store %arg13[%c0_47, %c0_48, %c0_49], %76 {strides = array<i32>} : memref<4x256x32xbf16, #tpu.memory_space<vmem>>, vector<4x256x32xbf16>,
      %c0_50 = arith.constant 0 : index
      %c0_51 = arith.constant 0 : index
      %c0_52 = arith.constant 0 : index
      %78 = vector.load %arg7[%c0_50, %c0_51, %c0_52] : memref<4x128x32xbf16, #tpu.memory_space<vmem>>, vector<4x128x32xbf16>
      %cst_53 = arith.constant dense<0.000000e+00> : vector<4x256x32xf32>
      %79 = tpu.matmul %73, %78, %cst_53 {dimension_numbers = #tpu.dot_dimension_numbers<[2], [1], [1], [2], [0, 0, 0, 1, 1, 2], [0], [0]>} : vector<4x256x128xbf16>, vector<4x128x32xbf16>, vector<4x256x32xf32> -> vector<4x256x32xf32>
      %80 = arith.truncf %79 : vector<4x256x32xf32> to vector<4x256x32xbf16>
      %c0_54 = arith.constant 0 : index
      %c0_55 = arith.constant 0 : index
      %c0_56 = arith.constant 0 : index
      %81 = vector.load %arg14[%c0_54, %c0_55, %c0_56] : memref<4x256x32xbf16, #tpu.memory_space<vmem>>, vector<4x256x32xbf16>
      tpu.vector_store %arg14[%c0_54, %c0_55, %c0_56], %80 {strides = array<i32>} : memref<4x256x32xbf16, #tpu.memory_space<vmem>>, vector<4x256x32xbf16>,
    } else {
    }
    %c0 = arith.constant 0 : index
    %c0_1 = arith.constant 0 : index
    %c0_2 = arith.constant 0 : index
    %3 = vector.load %arg2[%c0, %c0_1, %c0_2] : memref<1x128x128xf32, #tpu.memory_space<vmem>>, vector<1x128x128xf32>
    %4 = vector.shape_cast %3 : vector<1x128x128xf32> to vector<128x128xf32>
    %5 = arith.truncf %4 : vector<128x128xf32> to vector<128x128xbf16>
    %6 = vector.shape_cast %5 : vector<128x128xbf16> to vector<1x128x128xbf16>
    %7 = vector.shape_cast %6 : vector<1x128x128xbf16> to vector<1x128x128xbf16>
    %8 = vector.broadcast %7 : vector<1x128x128xbf16> to vector<4x128x128xbf16>
    %c0_3 = arith.constant 0 : index
    %c0_4 = arith.constant 0 : index
    %c0_5 = arith.constant 0 : index
    %9 = vector.load %arg5[%c0_3, %c0_4, %c0_5] : memref<4x128x32xbf16, #tpu.memory_space<vmem>>, vector<4x128x32xbf16>
    %cst = arith.constant dense<0.000000e+00> : vector<4x128x32xf32>
    %10 = tpu.matmul %8, %9, %cst {dimension_numbers = #tpu.dot_dimension_numbers<[2], [1], [1], [2], [0, 0, 0, 1, 1, 2], [0], [0]>} : vector<4x128x128xbf16>, vector<4x128x32xbf16>, vector<4x128x32xf32> -> vector<4x128x32xf32>
    %11 = arith.truncf %10 : vector<4x128x32xf32> to vector<4x128x32xbf16>
    %c0_6 = arith.constant 0 : index
    %c0_7 = arith.constant 0 : index
    %c0_8 = arith.constant 0 : index
    %12 = vector.load %arg13[%c0_6, %c0_7, %c0_8] : memref<4x256x32xbf16, #tpu.memory_space<vmem>>, vector<4x256x32xbf16>
    %cst_9 = arith.constant dense<0.000000e+00> : vector<4x128x256xf32>
    %13 = tpu.matmul %11, %12, %cst_9 {dimension_numbers = #tpu.dot_dimension_numbers<[2], [2], [1], [1], [0, 0, 0, 1, 1, 1], [0], [0]>} : vector<4x128x32xbf16>, vector<4x256x32xbf16>, vector<4x128x256xf32> -> vector<4x128x256xf32>
    %cst_10 = arith.constant dense<0xFF800000> : vector<4x128xf32>
    %14 = vector.multi_reduction <maximumf>, %13, %cst_10 [2] : vector<4x128x256xf32> to vector<4x128xf32>
    %15 = vector.shape_cast %14 : vector<4x128xf32> to vector<4x128x1xf32>
    %16 = vector.broadcast %15 : vector<4x128x1xf32> to vector<4x128x256xf32>
    %17 = arith.subf %13, %16 : vector<4x128x256xf32>
    %18 = math.exp %17 : vector<4x128x256xf32>
    %cst_11 = arith.constant dense<0.000000e+00> : vector<4x128xf32>
    %19 = vector.multi_reduction <add>, %18, %cst_11 [2] : vector<4x128x256xf32> to vector<4x128xf32>
    %20 = vector.shape_cast %19 : vector<4x128xf32> to vector<4x128x1xf32>
    %21 = tpu.reciprocal %20 {approx = true} : vector<4x128x1xf32> -> vector<4x128x1xf32>
    %22 = vector.broadcast %21 : vector<4x128x1xf32> to vector<4x128x256xf32>
    %23 = arith.mulf %18, %22 : vector<4x128x256xf32>
    %c0_12 = arith.constant 0 : index
    %c0_13 = arith.constant 0 : index
    %c0_14 = arith.constant 0 : index
    %c0_15 = arith.constant 0 : index
    %24 = vector.load %arg12[%c0_12, %c0_13, %c0_14, %c0_15] : memref<1x4x128x256xf32, #tpu.memory_space<vmem>>, vector<1x4x128x256xf32>
    %25 = vector.shape_cast %24 : vector<1x4x128x256xf32> to vector<4x128x256xf32>
    %26 = vector.shape_cast %23 : vector<4x128x256xf32> to vector<1x4x128x256xf32>
    tpu.vector_store %arg12[%c0_12, %c0_13, %c0_14, %c0_15], %26 {strides = array<i32>} : memref<1x4x128x256xf32, #tpu.memory_space<vmem>>, vector<1x4x128x256xf32>,
    %27 = arith.truncf %23 : vector<4x128x256xf32> to vector<4x128x256xbf16>
    %c0_16 = arith.constant 0 : index
    %c0_17 = arith.constant 0 : index
    %c0_18 = arith.constant 0 : index
    %28 = vector.load %arg14[%c0_16, %c0_17, %c0_18] : memref<4x256x32xbf16, #tpu.memory_space<vmem>>, vector<4x256x32xbf16>
    %cst_19 = arith.constant dense<0.000000e+00> : vector<4x128x32xf32>
    %29 = tpu.matmul %27, %28, %cst_19 {dimension_numbers = #tpu.dot_dimension_numbers<[2], [1], [1], [2], [0, 0, 0, 1, 1, 2], [0], [0]>} : vector<4x128x256xbf16>, vector<4x256x32xbf16>, vector<4x128x32xf32> -> vector<4x128x32xf32>
    %30 = arith.truncf %29 : vector<4x128x32xf32> to vector<4x128x32xbf16>
    %c0_20 = arith.constant 0 : index
    %c0_21 = arith.constant 0 : index
    %c0_22 = arith.constant 0 : index
    %31 = vector.load %arg8[%c0_20, %c0_21, %c0_22] : memref<4x32x128xbf16, #tpu.memory_space<vmem>>, vector<4x32x128xbf16>
    %cst_23 = arith.constant dense<0.000000e+00> : vector<4x128x128xf32>
    %32 = tpu.matmul %30, %31, %cst_23 {dimension_numbers = #tpu.dot_dimension_numbers<[2], [1], [1], [2], [0, 0, 0, 1, 1, 2], [0], [0]>} : vector<4x128x32xbf16>, vector<4x32x128xbf16>, vector<4x128x128xf32> -> vector<4x128x128xf32>
    %cst_24 = arith.constant dense<0.000000e+00> : vector<128x128xf32>
    %33 = vector.multi_reduction <add>, %32, %cst_24 [0] : vector<4x128x128xf32> to vector<128x128xf32>
    %34 = arith.addf %33, %4 : vector<128x128xf32>
    %cst_25 = arith.constant dense<0.000000e+00> : vector<128xf32>
    %35 = vector.multi_reduction <add>, %34, %cst_25 [1] : vector<128x128xf32> to vector<128xf32>
    %36 = vector.shape_cast %35 : vector<128xf32> to vector<128x1xf32>
    %cst_26 = arith.constant 1.280000e+02 : f32
    %37 = vector.broadcast %cst_26 : f32 to vector<128x1xf32>
    %38 = arith.divf %36, %37 : vector<128x1xf32>
    %39 = vector.broadcast %38 : vector<128x1xf32> to vector<128x128xf32>
    %40 = arith.subf %34, %39 : vector<128x128xf32>
    %41 = arith.mulf %40, %40 : vector<128x128xf32>
    %cst_27 = arith.constant dense<0.000000e+00> : vector<128xf32>
    %42 = vector.multi_reduction <add>, %41, %cst_27 [1] : vector<128x128xf32> to vector<128xf32>
    %43 = vector.shape_cast %42 : vector<128xf32> to vector<128x1xf32>
    %cst_28 = arith.constant 1.280000e+02 : f32
    %44 = vector.broadcast %cst_28 : f32 to vector<128x1xf32>
    %45 = arith.divf %43, %44 : vector<128x1xf32>
    %46 = vector.broadcast %38 : vector<128x1xf32> to vector<128x128xf32>
    %47 = arith.subf %34, %46 : vector<128x128xf32>
    %cst_29 = arith.constant 9.99999997E-7 : f32
    %48 = vector.broadcast %cst_29 : f32 to vector<128x1xf32>
    %49 = arith.addf %45, %48 : vector<128x1xf32>
    %50 = math.rsqrt %49 : vector<128x1xf32>
    %51 = vector.broadcast %50 : vector<128x1xf32> to vector<128x128xf32>
    %52 = arith.mulf %47, %51 : vector<128x128xf32>
    %c0_30 = arith.constant 0 : index
    %c0_31 = arith.constant 0 : index
    %53 = vector.load %arg9[%c0_30, %c0_31] : memref<1x128xf32, #tpu.memory_space<vmem>>, vector<1x128xf32>
    %54 = vector.broadcast %53 : vector<1x128xf32> to vector<128x128xf32>
    %55 = arith.mulf %52, %54 : vector<128x128xf32>
    %c0_32 = arith.constant 0 : index
    %c0_33 = arith.constant 0 : index
    %56 = vector.load %arg10[%c0_32, %c0_33] : memref<1x128xf32, #tpu.memory_space<vmem>>, vector<1x128xf32>
    %57 = vector.broadcast %56 : vector<1x128xf32> to vector<128x128xf32>
    %58 = arith.addf %55, %57 : vector<128x128xf32>
    %c0_34 = arith.constant 0 : index
    %c0_35 = arith.constant 0 : index
    %c0_36 = arith.constant 0 : index
    %59 = vector.load %arg11[%c0_34, %c0_35, %c0_36] : memref<1x128x128xf32, #tpu.memory_space<vmem>>, vector<1x128x128xf32>
    %60 = vector.shape_cast %59 : vector<1x128x128xf32> to vector<128x128xf32>
    %61 = vector.shape_cast %58 : vector<128x128xf32> to vector<1x128x128xf32>
    tpu.vector_store %arg11[%c0_34, %c0_35, %c0_36], %61 {strides = array<i32>} : memref<1x128x128xf32, #tpu.memory_space<vmem>>, vector<1x128x128xf32>,
    return
  }
  func.func @transform_0(%arg0: i32, %arg1: i32) -> (i32, i32, i32) {
    %c0_i32 = arith.constant 0 : i32
    %c0_i32_0 = arith.constant 0 : i32
    return %arg0, %arg1, %c0_i32 : i32, i32, i32
  }
  func.func @transform_1(%arg0: i32, %arg1: i32) -> (i32, i32, i32) {
    %c0_i32 = arith.constant 0 : i32
    %c0_i32_0 = arith.constant 0 : i32
    %c0_i32_1 = arith.constant 0 : i32
    return %arg0, %c0_i32, %c0_i32_0 : i32, i32, i32
  }
  func.func @transform_2(%arg0: i32, %arg1: i32) -> (i32, i32, i32) {
    %c0_i32 = arith.constant 0 : i32
    %c0_i32_0 = arith.constant 0 : i32
    %c0_i32_1 = arith.constant 0 : i32
    return %arg0, %c0_i32, %c0_i32_0 : i32, i32, i32
  }
  func.func @transform_3(%arg0: i32, %arg1: i32) -> (i32, i32, i32) {
    %c0_i32 = arith.constant 0 : i32
    %c0_i32_0 = arith.constant 0 : i32
    %c0_i32_1 = arith.constant 0 : i32
    %c0_i32_2 = arith.constant 0 : i32
    return %c0_i32, %c0_i32_0, %c0_i32_1 : i32, i32, i32
  }
  func.func @transform_4(%arg0: i32, %arg1: i32) -> (i32, i32, i32) {
    %c0_i32 = arith.constant 0 : i32
    %c0_i32_0 = arith.constant 0 : i32
    %c0_i32_1 = arith.constant 0 : i32
    %c0_i32_2 = arith.constant 0 : i32
    return %c0_i32, %c0_i32_0, %c0_i32_1 : i32, i32, i32
  }
  func.func @transform_5(%arg0: i32, %arg1: i32) -> (i32, i32, i32) {
    %c0_i32 = arith.constant 0 : i32
    %c0_i32_0 = arith.constant 0 : i32
    %c0_i32_1 = arith.constant 0 : i32
    %c0_i32_2 = arith.constant 0 : i32
    return %c0_i32, %c0_i32_0, %c0_i32_1 : i32, i32, i32
  }
  func.func @transform_6(%arg0: i32, %arg1: i32) -> (i32, i32, i32) {
    %c0_i32 = arith.constant 0 : i32
    %c0_i32_0 = arith.constant 0 : i32
    %c0_i32_1 = arith.constant 0 : i32
    %c0_i32_2 = arith.constant 0 : i32
    return %c0_i32, %c0_i32_0, %c0_i32_1 : i32, i32, i32
  }
  func.func @transform_7(%arg0: i32, %arg1: i32) -> (i32, i32) {
    %c0_i32 = arith.constant 0 : i32
    %c0_i32_0 = arith.constant 0 : i32
    %c0_i32_1 = arith.constant 0 : i32
    return %c0_i32, %c0_i32_0 : i32, i32
  }
  func.func @transform_8(%arg0: i32, %arg1: i32) -> (i32, i32) {
    %c0_i32 = arith.constant 0 : i32
    %c0_i32_0 = arith.constant 0 : i32
    %c0_i32_1 = arith.constant 0 : i32
    return %c0_i32, %c0_i32_0 : i32, i32
  }
  func.func @transform_9(%arg0: i32, %arg1: i32) -> (i32, i32, i32) {
    %c0_i32 = arith.constant 0 : i32
    %c0_i32_0 = arith.constant 0 : i32
    return %arg0, %arg1, %c0_i32 : i32, i32, i32
  }
  func.func @transform_10(%arg0: i32, %arg1: i32) -> (i32, i32, i32, i32) {
    %c0_i32 = arith.constant 0 : i32
    %c0_i32_0 = arith.constant 0 : i32
    %c0_i32_1 = arith.constant 0 : i32
    return %arg0, %c0_i32, %arg1, %c0_i32_0 : i32, i32, i32, i32
  }
}

</mosaic_0001>

<bundles_post_ra>
// kernel: tpu_custom_call.1
= control target key start
LH: loop header
LB: loop body
LE: loop exit
PB: predicated region body
PF: predicated region fallthrough
CT: control target
= control target key end

     0   :  { %s12495_s0 = inlined_call_operand.hbm [shape: f32[2,256,128], index: 0, kind: input, shape index: {}]   ;;  %s12496_s1 = inlined_call_operand.hbm [shape: f32[2,256,128], index: 1, kind: input, shape index: {}]   ;;  %s12497_s2 = inlined_call_operand.hbm [shape: f32[2,256,128], index: 2, kind: input, shape index: {}]   ;;  %s12498_s3 = inlined_call_operand.vmem [shape: bf16[4,128,32], index: 3, kind: input, shape index: {}]   ;;  %s12499_s4 = inlined_call_operand.vmem [shape: bf16[4,128,32], index: 4, kind: input, shape index: {}]   ;;  %s12500_s5 = inlined_call_operand.vmem [shape: bf16[4,128,32], index: 5, kind: input, shape index: {}]   ;;  %s12501_s6 = inlined_call_operand.hbm [shape: bf16[4,32,128], index: 6, kind: input, shape index: {}]   ;;  %s12502_s7 = inlined_call_operand.hbm [shape: f32[1,128], index: 7, kind: input, shape index: {}]   ;;  %s12503_s8 = inlined_call_operand.hbm [shape: f32[1,128], index: 8, kind: input, shape index: {}]   ;;  %s12504_s9 = inlined_call_operand.hbm [shape: f32[2,256,128], index: 9, kind: output, shape index: {0}]   ;;  %s12505_s10 = inlined_call_operand.hbm [shape: f32[2,4,256,256], index: 10, kind: output, shape index: {1}]  }
   0x1   :  { %12683 = sst [smem:[#allocation127_spill]] %s12495_s0 }
   0x2   :  { %12684 = sst [smem:[#allocation128_spill]] %s12496_s1 }
   0x3   :  { %12685 = sst [smem:[#allocation129_spill]] %s12498_s3 }
   0x4   :  { %12686 = sst [smem:[#allocation130_spill]] %s12499_s4 }
   0x5   :  { %12687 = sst [smem:[#allocation131_spill]] %s12500_s5 }
   0x6   :  { %12688 = sst [smem:[#allocation132_spill]] %s12501_s6 }
   0x7   :  { %12689 = sst [smem:[#allocation133_spill]] %s12502_s7 }
   0x8   :  { %12690 = sst [smem:[#allocation134_spill]] %s12503_s8 }
   0x9   :  { %12691 = sst [smem:[#allocation135_spill]] %s12504_s9 }
   0xa   :  { %12692 = sst [smem:[#allocation136_spill]] %s12505_s10 }
   0xb   :  { %16 = vsyncpa [#allocation5], 0 }
   0xc   :  { %18 = vsyncpa [#allocation5 + $0x1], 0 }
   0xd   :  { %19 = vsyncpa [#allocation8], 0 }
   0xe   :  { %21 = vsyncpa [#allocation8 + $0x1], 0 }
   0xf   :  { %22 = vsyncpa [#allocation11], 0 }
  0x10   :  { %23 = vsyncpa [#allocation14], 0 }
  0x11   :  { %24 = vsyncpa [#allocation6], 0 }
  0x12   :  { %26 = vsyncpa [#allocation6 + $0x1], 0 }
  0x13   :  { %27 = vsyncpa [#allocation17], 0 }
  0x14   :  { %29 = vsyncpa [#allocation17 + $0x1], 0  ;;  %s9598_s13 = smov 0   ;;  %s9600_s14 = smov 0  }
  0x15   :  { %s9602_s15 = smov 0   ;;  %s9604_s16 = smov 0  }
  0x16   :  { %s9606_s17 = smov 0   ;;  %s9608_s18 = smov 0  }
  0x17   :  { %s9610_s19 = smov 0   ;;  %s9612_s20 = smov 0  }
  0x18   :  { %s9614_s21 = smov 0   ;;  %s9616_s22 = smov 0  }
  0x19   :  { %s9618_s23 = smov 0  }
  0x1a LB: > { %12693 = sst [smem:[#allocation26_spill]] %s9486_s14  ;;  %s9652_s24 = sadd.s32 4294967295, %s9522_s23   ;;  %s9522_s23 = sphi %s9618_s23, %s35_s23   ;;  %s9518_s22 = sphi %s9616_s22, %s13054_s22   ;;  %s9514_s21 = sphi %s9614_s21, %s13047_s21   ;;  %s9510_s20 = sphi %s9612_s20, %s13053_s20   ;;  %s9506_s19 = sphi %s9610_s19, %s13046_s19   ;;  %s9502_s18 = sphi %s9608_s18, %s13052_s18   ;;  %s9498_s17 = sphi %s9606_s17, %s13051_s17   ;;  %s9494_s16 = sphi %s9604_s16, %s13050_s16   ;;  %s9490_s15 = sphi %s9602_s15, %s13049_s15   ;;  %s9486_s14 = sphi %s9600_s14, %s13048_s14   ;;  %s9482_s13 = sphi %s9598_s13, %s13045_s13  }
  0x1b   : > { %12694 = sst [smem:[#allocation27_spill]] %s9494_s16  ;;  %s6946_s25 = sadd.s32 4294967294, %s9522_s23  }
  0x1c   : > { %12695 = sst [smem:[#allocation28_spill]] %s9506_s19  ;;  %p69_p0 = scmp.ne.s32.totalorder %s9498_s17, %s9494_s16 }
  0x1d   : > { %12696 = sst [smem:[#allocation29_spill]] %s9510_s20  ;;  %p12511_p1 = scmp.eq.s32.totalorder %s9652_s24, 0 }
  0x1e   : > { %12697 = sst [smem:[#allocation30_spill]] %s9514_s21  ;;  %p95_p2 = scmp.ne.s32.totalorder %s9486_s14, %s9482_s13 }
  0x1f   : > { %p9662_p4 = por %p12511_p1, %p69_p0  ;;  %p279_p5 = scmp.eq.s32.totalorder %s6946_s25, 3 }
  0x20   : > { %p9668_p6 = por %p95_p2, %p12511_p1  ;;  %p6947_p7 = scmp.ge.s32.totalorder %s9522_s23, 1 }
  0x21   : > { %s12698_s26 = scalar_select %p9662_p4, 1, 0 }
  0x22   : > { %s12700_s27 = scalar_select %p9668_p6, 1, 0 }
  0x23   : > { %12699 = sst [smem:[#allocation31_spill]] %s12698_s26  ;;  %p9673_p8 = por %p279_p5, %p69_p0 }
  0x24   : > { %12701 = sst [smem:[#allocation32_spill]] %s12700_s27  ;;  %p314_p9 = scmp.lt.s32.totalorder %s9522_s23, 5 }
  0x25   : > { %s12702_s28 = scalar_select %p9673_p8, 1, 0 }
  0x26   : > { %p9678_p10 = pnand %p6947_p7, %p314_p9  ;;  %s9524_s30 = smov [#allocation10]  }
  0x27   : > { %12703 = sst [smem:[#allocation33_spill]] %s12702_s28  ;;  %s335_s11 = sshll.u32 %s9524_s30, 4  ;;  %s336_s11 = int_to_ptr.vmem [resolvable:$true] %s335_s11 }
  0x28   : > { %s12704_s29 = scalar_select %p9678_p10, 1, 0 }
  0x29   : > { %p8536_p11 = pneg %p9678_p10  ;;  %s12707_s6 = sld [smem:[#allocation132_spill]] }
  0x2a   : > { %12705 = sst [smem:[#allocation34_spill]] %s12704_s29 }
  0x2b   : > { %p9686_p12 = pnand %p8536_p11, %p12511_p1 }
  0x2d   : > { %s12706_s12 = scalar_select %p9686_p12, 1, 0 }
  0x2e   : > { %p9699_p0 = pneg %p9686_p12 }
  0x2f   : > { %s9210_s16 = scalar_lea.hbm %s12707_s6, 1024 }
  0x30   : > { %p9211_p13 = scmp.ne.s32.totalorder %s12707_s6, %s9210_s16  ;;  %p9217_p7 = scmp.lt.u32.totalorder %s9210_s16, %s12707_s6 }
  0x32   : > { %p9213_p2 = pnand %p9699_p0, %p9211_p13 }
  0x34   : > { %p9214_p5 = pneg %p9213_p2 }
  0x36   : > { %p9219_p9 = pnand %p9217_p7, %p9214_p5 }
  0x38   : > { %9222 = shalt.err (!%p9219_p9)
}
  0x39   : > { %s9223_s28 = scalar_lea.vmem %s336_s11, 1024  ;;  %p9231_p8 = scmp.lt.s32.totalorder %s336_s11, %s336_s11 }
  0x3a   : > { %p9224_p11 = scmp.ne.s32.totalorder %s336_s11, %s9223_s28  ;;  %p9232_p6 = scmp.lt.s32.totalorder %s9223_s28, %s9223_s28 }
  0x3c   : > { %p9226_p1 = pnand %p9224_p11, %p9699_p0  ;;  %p9233_p4 = por %p9232_p6, %p9231_p8 }
  0x3e   : > { %p9227_p3 = pneg %p9226_p1 }
  0x40   : > { %p9234_p10 = pnand %p9233_p4, %p9227_p3 }
  0x42   : > { %9237 = shalt.err (!%p9234_p10)
}
  0x43   : > { %s9525_s9 = smov 64   ;;  %s9526_s3 = smov 4  }
  0x44   : > { %8539 = dma.hbm_to_vmem [thread:$0]  (!%p9686_p12), %s12707_s6, 1024, %s336_s11, [#allocation11], %s9525_s9, %s9525_s9, %s9526_s3  }
  0x45   : > { %p12524_p1 = scmp.eq.s32.totalorder %s9522_s23, 0  ;;  %p89_p3 = scmp.ne.s32.totalorder %s9490_s15, %s9486_s14 }
  0x46   : > { %p12523_p4 = scmp.lt.s32.totalorder %s9522_s23, 4  ;;  %s394_s25 = sand.u32 1, %s9522_s23  }
  0x47   : > { %p91_p6 = por %p89_p3, %p12524_p1  ;;  %s396_s28 = sand.u32 1, %s9490_s15  }
  0x48   : > { %s9724_s13 = sshll.u32 %s396_s28, 8  ;;  %s7153_s5 = sshll.u32 %s9518_s22, 12 }
  0x49   : > { %s12709_s1 = sld [smem:[#allocation128_spill]]  ;;  %s398_s11 = scalar_lea.vmem [#allocation7], %s9724_s13 }
  0x4a   : > { %s405_s9 = sshll.u32 %s398_s11, 4  ;;  %p9735_p8 = pnand %p12523_p4, %p91_p6  ;;  %s9739_s9 = int_to_ptr.vmem [resolvable:$true] %s405_s9 }
  0x4b   : > { %s9744_s4 = scalar_lea.hbm %s12497_s2, %s7153_s5  ;;  %s9746_s19 = scalar_lea.sflag [#allocation8], %s394_s25 }
  0x4c   : > { %s12710_s3 = scalar_select %p9735_p8, 1, 0 }
  0x4d   : > { %p12528_p13 = pneg %p9735_p8 }
  0x4f   : > { %s9730_s27 = scalar_lea.hbm %s12709_s1, %s7153_s5  ;;  %s9243_s6 = scalar_lea.hbm %s12709_s1, 8192 }
  0x50   : > { %s9238_s28 = scalar_lea.hbm %s9730_s27, 4096  ;;  %p9244_p7 = scmp.lt.u32.totalorder %s9730_s27, %s12709_s1 }
  0x51   : > { %p9239_p10 = scmp.ne.s32.totalorder %s9730_s27, %s9238_s28  ;;  %p9245_p9 = scmp.lt.u32.totalorder %s9243_s6, %s9238_s28 }
  0x52   : > { %p9247_p3 = scmp.lt.u32.totalorder %s9238_s28, %s9730_s27 }
  0x53   : > { %p9241_p2 = pnand %p12528_p13, %p9239_p10  ;;  %p9246_p11 = por %p9245_p9, %p9244_p7 }
  0x55   : > { %p9242_p5 = pneg %p9241_p2  ;;  %p9248_p6 = por %p9247_p3, %p9246_p11 }
  0x57   : > { %p9249_p4 = pnand %p9248_p6, %p9242_p5 }
  0x59   : > { %9252 = shalt.err (!%p9249_p4)
}
  0x5a   : > { %s9253_s5 = scalar_lea.vmem %s9739_s9, 4096  ;;  %s9527_s20 = smov [#allocation7]  }
  0x5b   : > { %p9254_p10 = scmp.ne.s32.totalorder %s9739_s9, %s9253_s5  ;;  %s9258_s25 = sshll.u32 %s9527_s20, 4  ;;  %s9259_s25 = int_to_ptr.vmem [resolvable:$false] %s9258_s25 }
  0x5c   : > { %s9260_s14 = scalar_lea.vmem %s9259_s25, 8192  ;;  %p9261_p12 = scmp.lt.s32.totalorder %s9739_s9, %s9259_s25 }
  0x5d   : > { %p9256_p2 = pnand %p9254_p10, %p12528_p13  ;;  %p9262_p7 = scmp.lt.s32.totalorder %s9260_s14, %s9253_s5 }
  0x5f   : > { %p9257_p1 = pneg %p9256_p2  ;;  %p9263_p9 = por %p9262_p7, %p9261_p12 }
  0x61   : > { %p9264_p11 = pnand %p9263_p9, %p9257_p1 }
  0x63   : > { %9267 = shalt.err (!%p9264_p11)
}
  0x64   : > { %s12531_s6 = smov 128   ;;  %s12533_s26 = smov 8  }
  0x65   : > { %8552 = dma.hbm_to_vmem [thread:$0]  (!%p9735_p8), %s9730_s27, 4096, %s9739_s9, %s9746_s19, %s12531_s6, %s12531_s6, %s12533_s26  }
  0x66   : > { %s419_s10 = scalar_lea.vmem [#allocation9], %s9724_s13  ;;  %s9530_s28 = smov [#allocation12]  }
  0x67   : > { %s426_s16 = sshll.u32 %s419_s10, 4  ;;  %s349_s11 = sshll.u32 %s9530_s28, 4  ;;  %s9778_s16 = int_to_ptr.vmem [resolvable:$true] %s426_s16  ;;  %s350_s11 = int_to_ptr.vmem [resolvable:$true] %s349_s11 }
  0x68   : > { %s12711_s7 = sld [smem:[#allocation133_spill]] }
  0x6e   : > { %s9268_s25 = scalar_lea.hbm %s12711_s7, 16 }
  0x6f   : > { %p9269_p12 = scmp.ne.s32.totalorder %s12711_s7, %s9268_s25  ;;  %p9275_p5 = scmp.lt.u32.totalorder %s9268_s25, %s12711_s7 }
  0x71   : > { %p9271_p1 = pnand %p9269_p12, %p9699_p0 }
  0x73   : > { %p9272_p4 = pneg %p9271_p1 }
  0x75   : > { %p9277_p3 = pnand %p9275_p5, %p9272_p4 }
  0x77   : > { %9280 = shalt.err (!%p9277_p3)
}
  0x78   : > { %s9281_s13 = scalar_lea.vmem %s350_s11, 16  ;;  %s9288_s9 = scalar_lea.vmem %s350_s11, 32 }
  0x79   : > { %p9282_p6 = scmp.ne.s32.totalorder %s350_s11, %s9281_s13  ;;  %p9289_p7 = scmp.lt.s32.totalorder %s350_s11, %s350_s11 }
  0x7a   : > { %p9290_p9 = scmp.lt.s32.totalorder %s9288_s9, %s9281_s13 }
  0x7b   : > { %p9284_p10 = pnand %p9282_p6, %p9699_p0 }
  0x7c   : > { %p9291_p11 = por %p9290_p9, %p9289_p7 }
  0x7d   : > { %p9285_p2 = pneg %p9284_p10 }
  0x7f   : > { %p9292_p13 = pnand %p9291_p11, %p9285_p2 }
  0x81   : > { %9295 = shalt.err (!%p9292_p13)
}
  0x82   : > { %p12712_p12 = scmp.ne.s32.totalorder %s12706_s12, 0  ;;  %s9531_s29 = smov [#allocation13]  }
  0x83   : > { %s360_s28 = sshll.u32 %s9531_s29, 4  ;;  %s12713_s8 = sld [smem:[#allocation134_spill]]  ;;  %s361_s28 = int_to_ptr.vmem [resolvable:$true] %s360_s28 }
  0x84   : > { %8542 = dma.hbm_to_vmem [thread:$0]  (!%p12712_p12), %s12711_s7, 16, %s350_s11, [#allocation11]  }
  0x89   : > { %s9296_s25 = scalar_lea.hbm %s12713_s8, 16 }
  0x8a   : > { %p9297_p1 = scmp.ne.s32.totalorder %s12713_s8, %s9296_s25  ;;  %p9303_p5 = scmp.lt.u32.totalorder %s9296_s25, %s12713_s8 }
  0x8c   : > { %p9299_p13 = pnand %p9297_p1, %p9699_p0 }
  0x8e   : > { %p9300_p4 = pneg %p9299_p13 }
  0x90   : > { %p9305_p3 = pnand %p9303_p5, %p9300_p4 }
  0x92   : > { %9308 = shalt.err (!%p9305_p3)
}
  0x93   : > { %s9309_s11 = scalar_lea.vmem %s361_s28, 16  ;;  %s9316_s1 = scalar_lea.vmem %s361_s28, 32 }
  0x94   : > { %p9310_p6 = scmp.ne.s32.totalorder %s361_s28, %s9309_s11  ;;  %p9317_p7 = scmp.lt.s32.totalorder %s361_s28, %s361_s28 }
  0x95   : > { %p9318_p9 = scmp.lt.s32.totalorder %s9316_s1, %s9309_s11 }
  0x96   : > { %p9312_p10 = pnand %p9310_p6, %p9699_p0 }
  0x97   : > { %p9319_p11 = por %p9318_p9, %p9317_p7 }
  0x98   : > { %p9313_p2 = pneg %p9312_p10 }
  0x9a   : > { %p9320_p8 = pnand %p9319_p11, %p9313_p2 }
  0x9c   : > { %9323 = shalt.err (!%p9320_p8)
}
  0x9d   : > { %8545 = dma.hbm_to_vmem [thread:$0]  (!%p12712_p12), %s12713_s8, 16, %s361_s28, [#allocation14]  }
  0x9e   : > { %s44_s30 = sadd.s32 1, %s9514_s21  ;;  %s56_s12 = sadd.s32 1, %s9502_s18 }
  0x9f   : > { %p45_p0 = scmp.ge.s32.totalorder %s44_s30, 2  ;;  %p63_p8 = scmp.ne.s32.totalorder %s9502_s18, %s9498_s17 }
  0xa0   : > { %s12535_s5 = sand.u32 1, %s9502_s18   ;;  %s6953_s20 = sshll.u32 %s9514_s21, 4 }
  0xa1   : > { %s13056_s30 = smov (%p45_p0, %s44_s30), 0  ;;  %s12715_s25 = sadd.s32 1, %s9518_s22 }
  0xa2   : > { %12714 = sst [smem:[#allocation35_spill]] %s13056_s30  ;;  %s13058_s25 = smov (!%p45_p0, %s12715_s25), %s9518_s22 }
  0xa3   : > { %s52_s14 = ssub.s32 %s9514_s21, %s13056_s30  ;;  %p12716_p1 = scmp.eq.s32.totalorder %s9522_s23, 0 }
  0xa4   : > { %p49_p12 = scmp.ge.s32.totalorder %s13058_s25, 2  ;;  %p12718_p4 = scmp.eq.s32.totalorder %s9652_s24, 3 }
  0xa5   : > { %p9831_p13 = por %p12716_p1, %p63_p8  ;;  %s6952_s13 = sshll.u32 %s12535_s5, 7 }
  0xa6   : > { %p9837_p5 = por %p12718_p4, %p63_p8  ;;  %s13060_s25 = smov (%p49_p12, %s13058_s25), 0 }
  0xa7   : > { %s6954_s9 = sshll.u32 %s9518_s22, 5  ;;  %s51_s11 = ssub.s32 %s9518_s22, %s13060_s25 }
  0xa8   : > { %s12719_s28 = scalar_select %p9837_p5, 1, 0 }
  0xa9   : > { %s381_s1 = sadd.s32 %s6954_s9, %s6953_s20  ;;  %s53_s10 = sor.u32 %s52_s14, %s51_s11 }
  0xaa   : > { %12720 = sst [smem:[#allocation36_spill]] %s12719_s28  ;;  %p80_p3 = scmp.eq.s32.totalorder %s51_s11, 0 }
  0xab   : > { %p54_p6 = scmp.eq.s32.totalorder %s53_s10, 0  ;;  %s6955_s29 = sshll.u32 %s381_s1, 7 }
  0xac   : > { %s12721_s6 = sadd.s32 1, %s9490_s15  ;;  %s12722_s0 = sld [smem:[#allocation127_spill]] }
  0xad   : > { %s9851_s26 = scalar_select %p80_p3, %s9490_s15, %s12721_s6  }
  0xae   : > { %s9854_s7 = scalar_select %p54_p6, %s9502_s18, %s56_s12  }
  0xaf   : > { %s375_s21 = scalar_lea.vmem [#allocation4], %s6952_s13  ;;  %p12723_p10 = scmp.lt.s32.totalorder %s9522_s23, 4 }
  0xb0   : > { %s384_s28 = sshll.u32 %s375_s21, 4  ;;  %s9324_s14 = scalar_lea.hbm %s9744_s4, 4096  ;;  %s9861_s28 = int_to_ptr.vmem [resolvable:$true] %s384_s28 }
  0xb1   : > { %p9867_p2 = pnand %p12723_p10, %p9831_p13  ;;  %p9325_p7 = scmp.ne.s32.totalorder %s9744_s4, %s9324_s14 }
  0xb2   : > { %s9859_s30 = scalar_lea.hbm %s12722_s0, %s6955_s29  ;;  %p12725_p9 = scmp.ne.s32.totalorder %s12710_s3, 0 }
  0xb3   : > { %s9329_s12 = scalar_lea.hbm %s12497_s2, 8192  ;;  %p9330_p1 = scmp.lt.u32.totalorder %s9744_s4, %s12497_s2 }
  0xb4   : > { %p12726_p11 = pneg %p12725_p9  ;;  %p9331_p12 = scmp.lt.u32.totalorder %s9329_s12, %s9324_s14 }
  0xb5   : > { %p9333_p13 = scmp.lt.u32.totalorder %s9324_s14, %s9744_s4 }
  0xb6   : > { %p9327_p0 = pnand %p9325_p7, %p12726_p11  ;;  %p9332_p4 = por %p9331_p12, %p9330_p1 }
  0xb8   : > { %p9328_p8 = pneg %p9327_p0  ;;  %p9334_p3 = por %p9333_p13, %p9332_p4 }
  0xba   : > { %p9335_p6 = pnand %p9334_p3, %p9328_p8 }
  0xbc   : > { %9338 = shalt.err (!%p9335_p6)
}
  0xbd   : > { %s9339_s27 = scalar_lea.vmem %s9778_s16, 4096  ;;  %p12727_p7 = pmov %p12726_p11 }
  0xbe   : > { %p9340_p10 = scmp.ne.s32.totalorder %s9778_s16, %s9339_s27  ;;  %s9532_s13 = smov [#allocation9]  }
  0xbf   : > { %s9344_s9 = sshll.u32 %s9532_s13, 4  ;;  %s9345_s9 = int_to_ptr.vmem [resolvable:$false] %s9344_s9 }
  0xc0   : > { %p9342_p11 = pnand %p9340_p10, %p12727_p7  ;;  %s9346_s11 = scalar_lea.vmem %s9345_s9, 8192 }
  0xc1   : > { %p9347_p5 = scmp.lt.s32.totalorder %s9778_s16, %s9345_s9  ;;  %p9348_p1 = scmp.lt.s32.totalorder %s9346_s11, %s9339_s27 }
  0xc2   : > { %p9343_p0 = pneg %p9342_p11 }
  0xc3   : > { %p9349_p12 = por %p9348_p1, %p9347_p5 }
  0xc5   : > { %p9350_p4 = pnand %p9349_p12, %p9343_p0 }
  0xc7   : > { %9353 = shalt.err (!%p9350_p4)
}
  0xc8   : > { %s12728_s1 = smov 8   ;;  %s12729_s10 = smov 128  }
  0xc9   : > { %8555 = dma.hbm_to_vmem [thread:$0]  (!%p12725_p9), %s9744_s4, 4096, %s9778_s16, %s9746_s19, %s12729_s10, %s12729_s10, %s12728_s1  }
  0xca   : > { %s12730_s29 = sand.u32 1, %s9502_s18   ;;  %s9354_s6 = scalar_lea.hbm %s9859_s30, 2048 }
  0xcb   : > { %s9900_s14 = scalar_lea.sflag [#allocation5], %s12730_s29  ;;  %p9355_p5 = scmp.ne.s32.totalorder %s9859_s30, %s9354_s6 }
  0xcc   : > { %p9356_p8 = pneg %p9867_p2  ;;  %s9359_s12 = scalar_lea.hbm %s12722_s0, 8192 }
  0xcd   : > { %p9360_p6 = scmp.lt.u32.totalorder %s9859_s30, %s12722_s0  ;;  %p9361_p9 = scmp.lt.u32.totalorder %s9359_s12, %s9354_s6 }
  0xce   : > { %p9357_p13 = pnand %p9356_p8, %p9355_p5  ;;  %p9363_p7 = scmp.lt.u32.totalorder %s9354_s6, %s9859_s30 }
  0xcf   : > { %p9362_p10 = por %p9361_p9, %p9360_p6 }
  0xd0   : > { %p9358_p3 = pneg %p9357_p13 }
  0xd1   : > { %p9364_p11 = por %p9363_p7, %p9362_p10 }
  0xd3   : > { %p9365_p0 = pnand %p9364_p11, %p9358_p3 }
  0xd5   : > { %9368 = shalt.err (!%p9365_p0)
}
  0xd6   : > { %s9369_s4 = scalar_lea.vmem %s9861_s28, 2048  ;;  %s9533_s19 = smov [#allocation4]  }
  0xd7   : > { %p9370_p1 = scmp.ne.s32.totalorder %s9861_s28, %s9369_s4  ;;  %s9374_s16 = sshll.u32 %s9533_s19, 4  ;;  %s9375_s16 = int_to_ptr.vmem [resolvable:$false] %s9374_s16 }
  0xd8   : > { %s9376_s27 = scalar_lea.vmem %s9375_s16, 4096  ;;  %p9377_p5 = scmp.lt.s32.totalorder %s9861_s28, %s9375_s16 }
  0xd9   : > { %p9372_p12 = pnand %p9370_p1, %p9356_p8  ;;  %p9378_p13 = scmp.lt.s32.totalorder %s9376_s27, %s9369_s4 }
  0xdb   : > { %p9373_p4 = pneg %p9372_p12  ;;  %p9379_p6 = por %p9378_p13, %p9377_p5 }
  0xdd   : > { %p9380_p9 = pnand %p9379_p6, %p9373_p4 }
  0xdf   : > { %9383 = shalt.err (!%p9380_p9)
}
  0xe0   : > { %8549 = dma.hbm_to_vmem [thread:$0]  (!%p9867_p2), %s9859_s30, 2048, %s9861_s28, %s9900_s14, %s12729_s10, %s12729_s10, %s12728_s1  }
  0xe1   : > { %s12731_s13 = sld [smem:[#allocation34_spill]] }
  0xe7   : > { %p12732_p8 = scmp.ne.s32.totalorder %s12731_s13, 0 }
  0xe9   : > { %438 = sbr.rel (%p12732_p8) target bundleno = 2597 (0xa25), region = 56 }
  0xf0   : > { %s12733_s9 = sld [smem:[#allocation31_spill]]  ;;  %s9934_s11 = sand.u32 1, %s9498_s17  }
  0xf1   : > { %s6963_s29 = sshll.u32 %s9934_s11, 7  ;;  %s441_s6 = scalar_lea.sflag [#allocation5], %s9934_s11 }
  0xf2   : > { %s9938_s3 = scalar_lea.vmem [#allocation4], %s6963_s29 }
  0xf6   : > { %p12734_p3 = scmp.ne.s32.totalorder %s12733_s9, 0 }
  0xf8   : > { %9457 = dma.done.wait (%p12734_p3), %s441_s6, 2048  }
  0xf9   : > { %9459 = vsyncadd (%p12734_p3), %s441_s6, 4294965248  ;;  %s12735_s30 = sld [smem:[#allocation26_spill]]  ;;  %s12736_s28 = sld [smem:[#allocation32_spill]] }
  0xfa   : > { %s449_s20 = sand.u32 1, %s9652_s24  }
  0xfb   : > { %s450_s14 = scalar_lea.sflag [#allocation8], %s449_s20 }
  0xff   : > { %s451_s1 = sand.u32 1, %s12735_s30   ;;  %p12737_p2 = scmp.ne.s32.totalorder %s12736_s28, 0 }
 0x100   : > { %s6964_s10 = sshll.u32 %s451_s1, 8 }
 0x101   : > { %s9946_s8 = scalar_lea.vmem [#allocation7], %s6964_s10 }
 0x102   : > { %9461 = dma.done.wait (%p12737_p2), %s450_s14, 8192  }
 0x103   : > { %9463 = vsyncadd (%p12737_p2), %s450_s14, 4294959104  ;;  %s9952_s12 = scalar_lea.vmem [#allocation9], %s6964_s10  ;;  %p12738_p10 = scmp.eq.s32.totalorder %s9652_s24, 0 }
 0x105   : > { %9465 = dma.done.wait (%p12738_p10), [#allocation11], 1040   ;;  %p12739_p7 = pmov %p12738_p10 }
 0x107   : > { %9467 = vsyncadd (%p12739_p7), [#allocation11], 4294966256  ;;  %p12740_p11 = pmov %p12739_p7 }
 0x108   : > { %p12741_p0 = pmov %p12739_p7 }
 0x109   : > { %9469 = dma.done.wait (%p12740_p11), [#allocation14], 16  }
 0x10a   : > { %9471 = vsyncadd (%p12741_p0), [#allocation14], 4294967280  ;;  %s6970_s5 = sshll.u32 %s9934_s11, 10  ;;  %s9963_s21 = scalar_lea.vmem [#allocation15], %s6963_s29 }
 0x10b   : > { %s9965_s4 = scalar_lea.vmem [#allocation16], %s6970_s5  ;;  %s12742_s19 = sld [smem:[#allocation28_spill]] }
 0x111   : > { %p6971_p1 = scmp.ne.s32.totalorder %s12742_s19, 0 }
 0x112   : > { %s12743_s13 = sld [smem:[#allocation130_spill]] (!%p6971_p1)  ;;  %v534_v11 = vld [vmem:[%s9946_s8] sm:$0xff] (!%p6971_p1)  ;;  %v535_v12 = vld [vmem:[%s9946_s8 + $0x8] sm:$0xff] (!%p6971_p1)  ;;  %v536_v19 = vld [vmem:[%s9946_s8 + $0x10] sm:$0xff] (!%p6971_p1)  ;;  %s12745_s14 = sld [smem:[#allocation131_spill]] (!%p6971_p1)  ;;  %vm1594_vm0 = vcmask (!%p6971_p1), 261120  }
 0x113   : > { %533 = sbr.rel (%p6971_p1) target bundleno = 780 (0x30c), region = 84  ;;  %v10006_v14 = vpack.c.bf16 (!%p6971_p1), %v535_v12, %v534_v11  ;;  %v537_v20 = vld [vmem:[%s9946_s8 + $0x18] sm:$0xff] (!%p6971_p1)  ;;  %v538_v23 = vld [vmem:[%s9946_s8 + $0x20] sm:$0xff] (!%p6971_p1)  ;;  %v539_v24 = vld [vmem:[%s9946_s8 + $0x28] sm:$0xff] (!%p6971_p1) }
 0x114   : > { %v10032_v25 = vpack.c.bf16 (!%p6971_p1), %v537_v20, %v536_v19  ;;  %v10034_v26 = vpack.c.bf16 (!%p6971_p1), %v539_v24, %v538_v23  ;;  %v540_v27 = vld [vmem:[%s9946_s8 + $0x30] sm:$0xff] (!%p6971_p1)  ;;  %v541_v30 = vld [vmem:[%s9946_s8 + $0x38] sm:$0xff] (!%p6971_p1)  ;;  %v542_v31 = vld [vmem:[%s9946_s8 + $0x40] sm:$0xff] (!%p6971_p1) }
 0x115   : > { %7852 = vmatprep.mubr.bf16.mxu0 (!%p6971_p1), %v10006_v14  ;;  %7900 = vmatprep.mubr.bf16.mxu1 (!%p6971_p1), %v10006_v14  ;;  %v543_v32 = vld [vmem:[%s9946_s8 + $0x48] sm:$0xff] (!%p6971_p1)  ;;  %v10056_v35 = vpack.c.bf16 (!%p6971_p1), %v541_v30, %v540_v27  ;;  %v544_v37 = vld [vmem:[%s9946_s8 + $0x50] sm:$0xff] (!%p6971_p1)  ;;  %v545_v38 = vld [vmem:[%s9946_s8 + $0x58] sm:$0xff] (!%p6971_p1) }
 0x116   : > { %v10058_v36 = vpack.c.bf16 (!%p6971_p1), %v543_v32, %v542_v31  ;;  %v546_v41 = vld [vmem:[%s9946_s8 + $0x60] sm:$0xff] (!%p6971_p1)  ;;  %v547_v42 = vld [vmem:[%s9946_s8 + $0x68] sm:$0xff] (!%p6971_p1)  ;;  %v10077_v44 = vpack.c.bf16 (!%p6971_p1), %v545_v38, %v544_v37  ;;  %v548_v47 = vld [vmem:[%s9946_s8 + $0x70] sm:$0xff] (!%p6971_p1) }
 0x117   : > { %v10082_v46 = vpack.c.bf16 (!%p6971_p1), %v547_v42, %v546_v41  ;;  %v549_v48 = vld [vmem:[%s9946_s8 + $0x78] sm:$0xff] (!%p6971_p1)  ;;  %v550_v51 = vld [vmem:[%s9946_s8 + $0x80] sm:$0xff] (!%p6971_p1)  ;;  %v551_v52 = vld [vmem:[%s9946_s8 + $0x88] sm:$0xff] (!%p6971_p1) }
 0x118   : > { %s12744_s9 = smov (!%p6971_p1), %s12743_s13  ;;  %v8674_v0 = vld [vmem:[%s12743_s13] sm:$0xff] (!%p6971_p1)   ;;  %v10101_v54 = vpack.c.bf16 (!%p6971_p1), %v549_v48, %v548_v47  ;;  %v10106_v56 = vpack.c.bf16 (!%p6971_p1), %v551_v52, %v550_v51  ;;  %v552_v59 = vld [vmem:[%s9946_s8 + $0x90] sm:$0xff] (!%p6971_p1)  ;;  %v553_v60 = vld [vmem:[%s9946_s8 + $0x98] sm:$0xff] (!%p6971_p1)  ;;  %s12746_s5 = smov (!%p6971_p1), %s12745_s14 }
 0x119   : > { %v8675_v1 = vld [vmem:[%s12744_s9 + $0x40] sm:$0xff] (!%p6971_p1)   ;;  %7836 = vmatprep.subr.bf16.mxu0 (!%p6971_p1), %v8674_v0  ;;  %v8676_v2 = vld [vmem:[%s12744_s9 + $0x8] sm:$0xff] (!%p6971_p1)   ;;  %v8678_v4 = vld [vmem:[%s12744_s9 + $0x10] sm:$0xff] (!%p6971_p1)  }
 0x11a   : > { %7884 = vmatprep.subr.bf16.mxu1 %v8675_v1  ;;  %7837 = vmatpush3.bf16.msra.mxu0 %v8674_v0  ;;  %v8677_v3 = vld [vmem:[%s12744_s9 + $0x48] sm:$0xff]   ;;  %v8679_v5 = vld [vmem:[%s12744_s9 + $0x50] sm:$0xff]   ;;  %v8680_v6 = vld [vmem:[%s12744_s9 + $0x18] sm:$0xff]   ;;  %v10125_v0 = vpack.c.bf16 %v553_v60, %v552_v59 }
 0x11b   : > { %7885 = vmatpush3.bf16.msra.mxu1 %v8675_v1  ;;  %7838 = vmatprep.subr.bf16.mxu0 %v8676_v2  ;;  %v8681_v7 = vld [vmem:[%s12744_s9 + $0x58] sm:$0xff]   ;;  %v8682_v8 = vld [vmem:[%s12744_s9 + $0x20] sm:$0xff]   ;;  %v8684_v10 = vld [vmem:[%s12744_s9 + $0x28] sm:$0xff]  }
 0x11c   : > { %7886 = vmatprep.subr.bf16.mxu1 %v8677_v3  ;;  %v8683_v9 = vld [vmem:[%s12744_s9 + $0x60] sm:$0xff]   ;;  %v8685_v13 = vld [vmem:[%s12744_s9 + $0x68] sm:$0xff]   ;;  %v8686_v15 = vld [vmem:[%s12744_s9 + $0x30] sm:$0xff]  }
 0x11d   : > { %v8687_v16 = vld [vmem:[%s12744_s9 + $0x70] sm:$0xff]   ;;  %v8688_v17 = vld [vmem:[%s12744_s9 + $0x38] sm:$0xff]   ;;  %v8690_v21 = vld [vmem:[%s12744_s9 + $0x80] sm:$0xff]  }
 0x11e   : > { %7839 = vmatpush3.bf16.msra.mxu0 %v8676_v2  ;;  %v8689_v18 = vld [vmem:[%s12744_s9 + $0x78] sm:$0xff]   ;;  %v8691_v22 = vld [vmem:[%s12744_s9 + $0xc0] sm:$0xff]   ;;  %v8692_v28 = vld [vmem:[%s12744_s9 + $0x88] sm:$0xff]  }
 0x11f   : > { %7887 = vmatpush3.bf16.msra.mxu1 %v8677_v3  ;;  %7840 = vmatprep.subr.bf16.mxu0 %v8678_v4  ;;  %v8693_v29 = vld [vmem:[%s12744_s9 + $0xc8] sm:$0xff]   ;;  %v8694_v33 = vld [vmem:[%s12744_s9 + $0x90] sm:$0xff]   ;;  %v8696_v39 = vld [vmem:[%s12744_s9 + $0x98] sm:$0xff]  }
 0x120   : > { %7888 = vmatprep.subr.bf16.mxu1 %v8679_v5  ;;  %v8695_v34 = vld [vmem:[%s12744_s9 + $0xd0] sm:$0xff]   ;;  %v8697_v40 = vld [vmem:[%s12744_s9 + $0xd8] sm:$0xff]   ;;  %v8698_v43 = vld [vmem:[%s12744_s9 + $0xa0] sm:$0xff]  }
 0x121   : > { %v8699_v45 = vld [vmem:[%s12744_s9 + $0xe0] sm:$0xff]   ;;  %v8700_v49 = vld [vmem:[%s12744_s9 + $0xa8] sm:$0xff]   ;;  %v8702_v53 = vld [vmem:[%s12744_s9 + $0xb0] sm:$0xff]  }
 0x122   : > { %7841 = vmatpush3.bf16.msra.mxu0 %v8678_v4  ;;  %v8701_v50 = vld [vmem:[%s12744_s9 + $0xe8] sm:$0xff]   ;;  %v8703_v55 = vld [vmem:[%s12744_s9 + $0xf0] sm:$0xff]   ;;  %v8704_v57 = vld [vmem:[%s12744_s9 + $0xb8] sm:$0xff]  }
 0x123   : > { %7889 = vmatpush3.bf16.msra.mxu1 %v8679_v5  ;;  %7842 = vmatprep.subr.bf16.mxu0 %v8680_v6  ;;  %v8705_v58 = vld [vmem:[%s12744_s9 + $0xf8] sm:$0xff]   ;;  %v554_v61 = vld [vmem:[%s9946_s8 + $0xa0] sm:$0xff]  ;;  %v555_v62 = vld [vmem:[%s9946_s8 + $0xa8] sm:$0xff] }
 0x124   : > { %7890 = vmatprep.subr.bf16.mxu1 %v8681_v7  ;;  %v8706_v63 = vld [vmem:[%s12745_s14] sm:$0xff]   ;;  %v10130_v2 = vpack.c.bf16 %v555_v62, %v554_v61  ;;  %v556_v3 = vld [vmem:[%s9946_s8 + $0xb0] sm:$0xff]  ;;  %v557_v4 = vld [vmem:[%s9946_s8 + $0xb8] sm:$0xff] }
 0x125   : > { %v8707_v1 = vld [vmem:[%s12746_s5 + $0x40] sm:$0xff]   ;;  %v563_v12 = vld [vmem:[%s9946_s8 + $0xe8] sm:$0xff]  ;;  %v8713_v23 = vld [vmem:[%s12746_s5 + $0x58] sm:$0xff]  }
 0x126   : > { %7843 = vmatpush3.bf16.msra.mxu0 %v8680_v6  ;;  %v558_v5 = vld [vmem:[%s9946_s8 + $0xc0] sm:$0xff]  ;;  %v559_v6 = vld [vmem:[%s9946_s8 + $0xc8] sm:$0xff]  ;;  %v8720_v30 = vld [vmem:[%s12746_s5 + $0x38] sm:$0xff]  }
 0x127   : > { %7891 = vmatpush3.bf16.msra.mxu1 %v8681_v7  ;;  %7844 = vmatprep.subr.bf16.mxu0 %v8682_v8  ;;  %v10140_v7 = vpack.c.bf16 %v557_v4, %v556_v3  ;;  %v562_v11 = vld [vmem:[%s9946_s8 + $0xe0] sm:$0xff]  ;;  %v8708_v19 = vld [vmem:[%s12746_s5 + $0x8] sm:$0xff]   ;;  %v8721_v31 = vld [vmem:[%s12746_s5 + $0x78] sm:$0xff]  }
 0x128   : > { %7892 = vmatprep.subr.bf16.mxu1 %v8683_v9  ;;  %v8709_v20 = vld [vmem:[%s12746_s5 + $0x48] sm:$0xff]   ;;  %v8714_v24 = vld [vmem:[%s12746_s5 + $0x20] sm:$0xff]   ;;  %v584_v37 = vld [vmem:[%s9952_s12 + $0x10] sm:$0xff] }
 0x129   : > { %v8717_v27 = vld [vmem:[%s12746_s5 + $0x68] sm:$0xff]   ;;  %v8722_v32 = vld [vmem:[%s12746_s5 + $0x80] sm:$0xff]   ;;  %v585_v38 = vld [vmem:[%s9952_s12 + $0x18] sm:$0xff] }
 0x12a   : > { %7845 = vmatpush3.bf16.msra.mxu0 %v8682_v8  ;;  %v10142_v8 = vpack.c.bf16 %v559_v6, %v558_v5  ;;  %v10256_v41 = vpack.c.bf16 %v585_v38, %v584_v37  ;;  %v590_v47 = vld [vmem:[%s9952_s12 + $0x40] sm:$0xff]  ;;  %v591_v48 = vld [vmem:[%s9952_s12 + $0x48] sm:$0xff]  ;;  %v8734_v5 = vld [vmem:[%s12746_s5 + $0xb0] sm:$0xff]  }
 0x12b   : > { %7893 = vmatpush3.bf16.msra.mxu1 %v8683_v9  ;;  %7846 = vmatprep.subr.bf16.mxu0 %v8684_v10  ;;  %v560_v9 = vld [vmem:[%s9946_s8 + $0xd0] sm:$0xff]  ;;  %v10282_v52 = vpack.c.bf16 %v591_v48, %v590_v47  ;;  %v8730_v59 = vld [vmem:[%s12746_s5 + $0xa0] sm:$0xff]   ;;  %v599_v4 = vld [vmem:[%s9952_s12 + $0x88] sm:$0xff] }
 0x12c   : > { %7894 = vmatprep.subr.bf16.mxu1 %v8685_v13  ;;  %v8731_v61 = vld [vmem:[%s12746_s5 + $0xe0] sm:$0xff]  }
 0x12d   : > { %v598_v3 = vld [vmem:[%s9952_s12 + $0x80] sm:$0xff] }
 0x12e   : > { %7847 = vmatpush3.bf16.msra.mxu0 %v8684_v10  ;;  %v561_v10 = vld [vmem:[%s9946_s8 + $0xd8] sm:$0xff] }
 0x12f   : > { %7895 = vmatpush3.bf16.msra.mxu1 %v8685_v13  ;;  %7848 = vmatprep.subr.bf16.mxu0 %v8686_v15  ;;  %v10152_v13 = vpack.c.bf16 %v561_v10, %v560_v9  ;;  %v8736_v9 = vld [vmem:[%s12746_s5 + $0xb8] sm:$0xff]  }
 0x130   : > { %7896 = vmatprep.subr.bf16.mxu1 %v8687_v16  ;;  %v8737_v10 = vld [vmem:[%s12746_s5 + $0xf8] sm:$0xff]  }
 0x132   : > { %7849 = vmatpush3.bf16.msra.mxu0 %v8686_v15  ;;  %v10154_v15 = vpack.c.bf16 %v563_v12, %v562_v11  ;;  %v600_v11 = vld [vmem:[%s9952_s12 + $0x90] sm:$0xff]  ;;  %v601_v12 = vld [vmem:[%s9952_s12 + $0x98] sm:$0xff] }
 0x133   : > { %7897 = vmatpush3.bf16.msra.mxu1 %v8687_v16  ;;  %7850 = vmatprep.subr.bf16.mxu0 %v8688_v17  ;;  %v564_v16 = vld [vmem:[%s9946_s8 + $0xf0] sm:$0xff] }
 0x134   : > { %7898 = vmatprep.subr.bf16.mxu1 %v8689_v18 }
 0x136   : > { %7851 = vmatpush3.bf16.msra.mxu0 %v8688_v17  ;;  %v565_v17 = vld [vmem:[%s9946_s8 + $0xf8] sm:$0xff] }
 0x137   : > { %7899 = vmatpush3.bf16.msra.mxu1 %v8689_v18  ;;  %7932 = vmatprep.subr.bf16.mxu0 %v8690_v21  ;;  %v10162_v18 = vpack.c.bf16 %v565_v17, %v564_v16  ;;  %v10346_v16 = vpack.c.bf16 %v601_v12, %v600_v11 }
 0x138   : > { %7980 = vmatprep.subr.bf16.mxu1 %v8691_v22 }
 0x139   : > { %7853 = vmatmul.mubr.bf16.vlgmr.msra.gmra.mrb[0].mxu0 %v10032_v25 }
 0x13a   : > { %7901 = vmatmul.mubr.bf16.vlgmr.msra.gmra.mrb[0].mxu1 %v10032_v25  ;;  %7933 = vmatpush3.bf16.msra.mxu0 %v8690_v21  ;;  %v8711_v21 = vld [vmem:[%s12746_s5 + $0x50] sm:$0xff]  }
 0x13b   : > { %7981 = vmatpush3.bf16.msra.mxu1 %v8691_v22  ;;  %7856 = vmatprep.mubr.bf16.mxu0 %v10034_v26  ;;  %v8712_v22 = vld [vmem:[%s12746_s5 + $0x18] sm:$0xff]  }
 0x13c   : > { %7904 = vmatprep.mubr.bf16.mxu1 %v10034_v26  ;;  %7934 = vmatprep.subr.bf16.mxu0 %v8692_v28 }
 0x13d   : > { %7982 = vmatprep.subr.bf16.mxu1 %v8693_v29 }
 0x13e   : > { %7935 = vmatpush3.bf16.msra.mxu0 %v8692_v28  ;;  %v8718_v28 = vld [vmem:[%s12746_s5 + $0x30] sm:$0xff]  }
 0x13f   : > { %7983 = vmatpush3.bf16.msra.mxu1 %v8693_v29  ;;  %7936 = vmatprep.subr.bf16.mxu0 %v8694_v33  ;;  %v8719_v29 = vld [vmem:[%s12746_s5 + $0x70] sm:$0xff]  }
 0x140   : > { %7984 = vmatprep.subr.bf16.mxu1 %v8695_v34 }
 0x141   : > { %7857 = vmatmul.mubr.bf16.gmra.mrb[4].mxu0 %v10056_v35 }
 0x142   : > { %7905 = vmatmul.mubr.bf16.gmra.mrb[4].mxu1 %v10056_v35  ;;  %7860 = vmatprep.mubr.bf16.mxu0 %v10058_v36 }
 0x143   : > { %7908 = vmatprep.mubr.bf16.mxu1 %v10058_v36  ;;  %7937 = vmatpush3.bf16.msra.mxu0 %v8694_v33  ;;  %v8723_v33 = vld [vmem:[%s12746_s5 + $0xc0] sm:$0xff]  }
 0x144   : > { %7985 = vmatpush3.bf16.msra.mxu1 %v8695_v34  ;;  %7938 = vmatprep.subr.bf16.mxu0 %v8696_v39  ;;  %v582_v34 = vld [vmem:[%s9952_s12] sm:$0xff] }
 0x145   : > { %7986 = vmatprep.subr.bf16.mxu1 %v8697_v40 }
 0x147   : > { %7939 = vmatpush3.bf16.msra.mxu0 %v8696_v39  ;;  %v586_v39 = vld [vmem:[%s9952_s12 + $0x20] sm:$0xff] }
 0x148   : > { %7987 = vmatpush3.bf16.msra.mxu1 %v8697_v40  ;;  %7940 = vmatprep.subr.bf16.mxu0 %v8698_v43  ;;  %v587_v40 = vld [vmem:[%s9952_s12 + $0x28] sm:$0xff] }
 0x149   : > { %7861 = vmatmul.mubr.bf16.gmra.mrb[8].mxu0 %v10077_v44  ;;  %7988 = vmatprep.subr.bf16.mxu1 %v8699_v45  ;;  %v10258_v42 = vpack.c.bf16 %v587_v40, %v586_v39 }
 0x14a   : > { %7909 = vmatmul.mubr.bf16.gmra.mrb[8].mxu1 %v10077_v44  ;;  %7864 = vmatprep.mubr.bf16.mxu0 %v10082_v46 }
 0x14b   : > { %7912 = vmatprep.mubr.bf16.mxu1 %v10082_v46  ;;  %7941 = vmatpush3.bf16.msra.mxu0 %v8698_v43  ;;  %v8724_v43 = vld [vmem:[%s12746_s5 + $0x88] sm:$0xff]  }
 0x14c   : > { %7989 = vmatpush3.bf16.msra.mxu1 %v8699_v45  ;;  %7942 = vmatprep.subr.bf16.mxu0 %v8700_v49  ;;  %v588_v45 = vld [vmem:[%s9952_s12 + $0x30] sm:$0xff] }
 0x14d   : > { %7990 = vmatprep.subr.bf16.mxu1 %v8701_v50 }
 0x14f   : > { %7943 = vmatpush3.bf16.msra.mxu0 %v8700_v49  ;;  %v8726_v49 = vld [vmem:[%s12746_s5 + $0x90] sm:$0xff]  }
 0x150   : > { %7991 = vmatpush3.bf16.msra.mxu1 %v8701_v50  ;;  %7944 = vmatprep.subr.bf16.mxu0 %v8702_v53  ;;  %v8727_v50 = vld [vmem:[%s12746_s5 + $0xd0] sm:$0xff]  }
 0x151   : > { %7865 = vmatmul.mubr.bf16.gmra.mrb[12].mxu0 %v10101_v54  ;;  %7992 = vmatprep.subr.bf16.mxu1 %v8703_v55 }
 0x152   : > { %7913 = vmatmul.mubr.bf16.gmra.mrb[12].mxu1 %v10101_v54  ;;  %7868 = vmatprep.mubr.bf16.mxu0 %v10106_v56 }
 0x153   : > { %7916 = vmatprep.mubr.bf16.mxu1 %v10106_v56  ;;  %7945 = vmatpush3.bf16.msra.mxu0 %v8702_v53  ;;  %v8728_v53 = vld [vmem:[%s12746_s5 + $0x98] sm:$0xff]  }
 0x154   : > { %7993 = vmatpush3.bf16.msra.mxu1 %v8703_v55  ;;  %7946 = vmatprep.subr.bf16.mxu0 %v8704_v57  ;;  %v592_v55 = vld [vmem:[%s9952_s12 + $0x50] sm:$0xff] }
 0x155   : > { %7994 = vmatprep.subr.bf16.mxu1 %v8705_v58 }
 0x157   : > { %7947 = vmatpush3.bf16.msra.mxu0 %v8704_v57  ;;  %v594_v57 = vld [vmem:[%s9952_s12 + $0x60] sm:$0xff] }
 0x158   : > { %7995 = vmatpush3.bf16.msra.mxu1 %v8705_v58  ;;  %8028 = vmatprep.subr.bf16.mxu0 %v8706_v63  ;;  %v595_v58 = vld [vmem:[%s9952_s12 + $0x68] sm:$0xff] }
 0x159   : > { %7869 = vmatmul.mubr.bf16.gmra.mrb[16].mxu0 %v10125_v0  ;;  %8076 = vmatprep.subr.bf16.mxu1 %v8707_v1  ;;  %v10306_v62 = vpack.c.bf16 %v595_v58, %v594_v57 }
 0x15a   : > { %7917 = vmatmul.mubr.bf16.gmra.mrb[16].mxu1 %v10125_v0  ;;  %7872 = vmatprep.mubr.bf16.mxu0 %v10130_v2 }
 0x15b   : > { %7920 = vmatprep.mubr.bf16.mxu1 %v10130_v2 }
 0x161   : > { %7873 = vmatmul.mubr.bf16.gmra.mrb[20].mxu0 %v10140_v7 }
 0x162   : > { %7921 = vmatmul.mubr.bf16.gmra.mrb[20].mxu1 %v10140_v7  ;;  %7876 = vmatprep.mubr.bf16.mxu0 %v10142_v8 }
 0x163   : > { %7924 = vmatprep.mubr.bf16.mxu1 %v10142_v8 }
 0x169   : > { %7877 = vmatmul.mubr.bf16.gmra.mrb[24].mxu0 %v10152_v13 }
 0x16a   : > { %7925 = vmatmul.mubr.bf16.gmra.mrb[24].mxu1 %v10152_v13  ;;  %7880 = vmatprep.mubr.bf16.mxu0 %v10154_v15 }
 0x16b   : > { %7928 = vmatprep.mubr.bf16.mxu1 %v10154_v15 }
 0x171   : > { %7881 = vmatmul.mubr.bf16.gmra.mrb[28].mxu0 %v10162_v18 }
 0x172   : > { %7929 = vmatmul.mubr.bf16.gmra.mrb[28].mxu1 %v10162_v18  ;;  %7948 = vmatprep.mubr.bf16.mxu0 %v10006_v14 }
 0x173   : > { %7996 = vmatprep.mubr.bf16.mxu1 %v10006_v14  ;;  %v8710_v14 = vld [vmem:[%s12746_s5 + $0x10] sm:$0xff]  }
 0x179   : > { %7949 = vmatmul.mubr.bf16.vlgmr.msra.gmra.mrb[32].mxu0 %v10032_v25 }
 0x17a   : > { %7997 = vmatmul.mubr.bf16.vlgmr.msra.gmra.mrb[32].mxu1 %v10032_v25  ;;  %8029 = vmatpush3.bf16.msra.mxu0 %v8706_v63  ;;  %v8715_v25 = vld [vmem:[%s12746_s5 + $0x60] sm:$0xff]   ;;  %v8732_v63 = vld [vmem:[%s12746_s5 + $0xa8] sm:$0xff]  }
 0x17b   : > { %8077 = vmatpush3.bf16.msra.mxu1 %v8707_v1  ;;  %7952 = vmatprep.mubr.bf16.mxu0 %v10034_v26  ;;  %v596_v1 = vld [vmem:[%s9952_s12 + $0x70] sm:$0xff] }
 0x17c   : > { %8000 = vmatprep.mubr.bf16.mxu1 %v10034_v26  ;;  %8030 = vmatprep.subr.bf16.mxu0 %v8708_v19  ;;  %v8716_v26 = vld [vmem:[%s12746_s5 + $0x28] sm:$0xff]  }
 0x17d   : > { %8078 = vmatprep.subr.bf16.mxu1 %v8709_v20 }
 0x17e   : > { %8031 = vmatpush3.bf16.msra.mxu0 %v8708_v19  ;;  %v605_v19 = vld [vmem:[%s9952_s12 + $0xb8] sm:$0xff] }
 0x17f   : > { %8079 = vmatpush3.bf16.msra.mxu1 %v8709_v20  ;;  %8032 = vmatprep.subr.bf16.mxu0 %v8710_v14  ;;  %v606_v20 = vld [vmem:[%s9952_s12 + $0xc0] sm:$0xff] }
 0x180   : > { %8080 = vmatprep.subr.bf16.mxu1 %v8711_v21 }
 0x181   : > { %7953 = vmatmul.mubr.bf16.gmra.mrb[36].mxu0 %v10056_v35 }
 0x182   : > { %8001 = vmatmul.mubr.bf16.gmra.mrb[36].mxu1 %v10056_v35  ;;  %7956 = vmatprep.mubr.bf16.mxu0 %v10058_v36  ;;  %v583_v35 = vld [vmem:[%s9952_s12 + $0x8] sm:$0xff] }
 0x183   : > { %8004 = vmatprep.mubr.bf16.mxu1 %v10058_v36  ;;  %8033 = vmatpush3.bf16.msra.mxu0 %v8710_v14  ;;  %v10246_v36 = vpack.c.bf16 %v583_v35, %v582_v34  ;;  %v607_v14 = vld [vmem:[%s9952_s12 + $0xc8] sm:$0xff] }
 0x184   : > { %8081 = vmatpush3.bf16.msra.mxu1 %v8711_v21  ;;  %8034 = vmatprep.subr.bf16.mxu0 %v8712_v22 }
 0x185   : > { %8082 = vmatprep.subr.bf16.mxu1 %v8713_v23 }
 0x187   : > { %8035 = vmatpush3.bf16.msra.mxu0 %v8712_v22  ;;  %v10360_v22 = vpack.c.bf16 %v607_v14, %v606_v20 }
 0x188   : > { %8083 = vmatpush3.bf16.msra.mxu1 %v8713_v23  ;;  %8036 = vmatprep.subr.bf16.mxu0 %v8714_v24  ;;  %v608_v23 = vld [vmem:[%s9952_s12 + $0xd0] sm:$0xff] }
 0x189   : > { %7957 = vmatmul.mubr.bf16.gmra.mrb[40].mxu0 %v10077_v44  ;;  %8084 = vmatprep.subr.bf16.mxu1 %v8715_v25 }
 0x18a   : > { %8005 = vmatmul.mubr.bf16.gmra.mrb[40].mxu1 %v10077_v44  ;;  %7960 = vmatprep.mubr.bf16.mxu0 %v10082_v46  ;;  %v8725_v44 = vld [vmem:[%s12746_s5 + $0xc8] sm:$0xff]  }
 0x18b   : > { %8008 = vmatprep.mubr.bf16.mxu1 %v10082_v46  ;;  %8037 = vmatpush3.bf16.msra.mxu0 %v8714_v24  ;;  %v589_v46 = vld [vmem:[%s9952_s12 + $0x38] sm:$0xff] }
 0x18c   : > { %8085 = vmatpush3.bf16.msra.mxu1 %v8715_v25  ;;  %8038 = vmatprep.subr.bf16.mxu0 %v8716_v26  ;;  %v10280_v51 = vpack.c.bf16 %v589_v46, %v588_v45  ;;  %v609_v24 = vld [vmem:[%s9952_s12 + $0xd8] sm:$0xff]  ;;  %v610_v25 = vld [vmem:[%s9952_s12 + $0xe0] sm:$0xff] }
 0x18d   : > { %8086 = vmatprep.subr.bf16.mxu1 %v8717_v27 }
 0x18f   : > { %8039 = vmatpush3.bf16.msra.mxu0 %v8716_v26  ;;  %v611_v26 = vld [vmem:[%s9952_s12 + $0xe8] sm:$0xff] }
 0x190   : > { %8087 = vmatpush3.bf16.msra.mxu1 %v8717_v27  ;;  %8040 = vmatprep.subr.bf16.mxu0 %v8718_v28  ;;  %v10370_v27 = vpack.c.bf16 %v609_v24, %v608_v23 }
 0x191   : > { %7961 = vmatmul.mubr.bf16.gmra.mrb[44].mxu0 %v10101_v54  ;;  %8088 = vmatprep.subr.bf16.mxu1 %v8719_v29 }
 0x192   : > { %8009 = vmatmul.mubr.bf16.gmra.mrb[44].mxu1 %v10101_v54  ;;  %7964 = vmatprep.mubr.bf16.mxu0 %v10106_v56  ;;  %v8729_v54 = vld [vmem:[%s12746_s5 + $0xd8] sm:$0xff]  }
 0x193   : > { %8012 = vmatprep.mubr.bf16.mxu1 %v10106_v56  ;;  %8041 = vmatpush3.bf16.msra.mxu0 %v8718_v28  ;;  %v593_v56 = vld [vmem:[%s9952_s12 + $0x58] sm:$0xff]  ;;  %v10372_v28 = vpack.c.bf16 %v611_v26, %v610_v25 }
 0x194   : > { %8089 = vmatpush3.bf16.msra.mxu1 %v8719_v29  ;;  %8042 = vmatprep.subr.bf16.mxu0 %v8720_v30  ;;  %v10301_v60 = vpack.c.bf16 %v593_v56, %v592_v55  ;;  %v612_v29 = vld [vmem:[%s9952_s12 + $0xf0] sm:$0xff] }
 0x195   : > { %8090 = vmatprep.subr.bf16.mxu1 %v8721_v31 }
 0x197   : > { %8043 = vmatpush3.bf16.msra.mxu0 %v8720_v30  ;;  %v613_v30 = vld [vmem:[%s9952_s12 + $0xf8] sm:$0xff] }
 0x198   : > { %8091 = vmatpush3.bf16.msra.mxu1 %v8721_v31  ;;  %8124 = vmatprep.subr.bf16.mxu0 %v8722_v32  ;;  %v10380_v31 = vpack.c.bf16 %v613_v30, %v612_v29 }
 0x199   : > { %7965 = vmatmul.mubr.bf16.gmra.mrb[48].mxu0 %v10125_v0  ;;  %8172 = vmatprep.subr.bf16.mxu1 %v8723_v33 }
 0x19a   : > { %8013 = vmatmul.mubr.bf16.gmra.mrb[48].mxu1 %v10125_v0  ;;  %7968 = vmatprep.mubr.bf16.mxu0 %v10130_v2  ;;  %v8733_v0 = vld [vmem:[%s12746_s5 + $0xe8] sm:$0xff]  }
 0x19b   : > { %8016 = vmatprep.mubr.bf16.mxu1 %v10130_v2  ;;  %v597_v2 = vld [vmem:[%s9952_s12 + $0x78] sm:$0xff] }
 0x19c   : > { %v10325_v6 = vpack.c.bf16 %v597_v2, %v596_v1 }
 0x1a1   : > { %7969 = vmatmul.mubr.bf16.gmra.mrb[52].mxu0 %v10140_v7 }
 0x1a2   : > { %8017 = vmatmul.mubr.bf16.gmra.mrb[52].mxu1 %v10140_v7  ;;  %7972 = vmatprep.mubr.bf16.mxu0 %v10142_v8  ;;  %v8735_v7 = vld [vmem:[%s12746_s5 + $0xf0] sm:$0xff]  }
 0x1a3   : > { %8020 = vmatprep.mubr.bf16.mxu1 %v10142_v8  ;;  %v10330_v8 = vpack.c.bf16 %v599_v4, %v598_v3 }
 0x1a9   : > { %7973 = vmatmul.mubr.bf16.gmra.mrb[56].mxu0 %v10152_v13 }
 0x1aa   : > { %8021 = vmatmul.mubr.bf16.gmra.mrb[56].mxu1 %v10152_v13  ;;  %7976 = vmatprep.mubr.bf16.mxu0 %v10154_v15  ;;  %v602_v13 = vld [vmem:[%s9952_s12 + $0xa0] sm:$0xff] }
 0x1ab   : > { %8024 = vmatprep.mubr.bf16.mxu1 %v10154_v15  ;;  %v603_v15 = vld [vmem:[%s9952_s12 + $0xa8] sm:$0xff] }
 0x1ac   : > { %v10348_v17 = vpack.c.bf16 %v603_v15, %v602_v13 }
 0x1b1   : > { %7977 = vmatmul.mubr.bf16.gmra.mrb[60].mxu0 %v10162_v18 }
 0x1b2   : > { %8025 = vmatmul.mubr.bf16.gmra.mrb[60].mxu1 %v10162_v18  ;;  %8044 = vmatprep.mubr.bf16.mxu0 %v10246_v36  ;;  %v604_v18 = vld [vmem:[%s9952_s12 + $0xb0] sm:$0xff] }
 0x1b3   : > { %8092 = vmatprep.mubr.bf16.mxu1 %v10246_v36  ;;  %v10358_v21 = vpack.c.bf16 %v605_v19, %v604_v18 }
 0x1b9   : > { %8045 = vmatmul.mubr.bf16.vlgmr.msra.gmra.mrb[64].mxu0 %v10256_v41 }
 0x1ba   : > { %8093 = vmatmul.mubr.bf16.vlgmr.msra.gmra.mrb[64].mxu1 %v10256_v41  ;;  %8125 = vmatpush3.bf16.msra.mxu0 %v8722_v32 }
 0x1bb   : > { %8173 = vmatpush3.bf16.msra.mxu1 %v8723_v33  ;;  %8048 = vmatprep.mubr.bf16.mxu0 %v10258_v42 }
 0x1bc   : > { %8096 = vmatprep.mubr.bf16.mxu1 %v10258_v42  ;;  %8126 = vmatprep.subr.bf16.mxu0 %v8724_v43 }
 0x1bd   : > { %8174 = vmatprep.subr.bf16.mxu1 %v8725_v44 }
 0x1be   : > { %8127 = vmatpush3.bf16.msra.mxu0 %v8724_v43 }
 0x1bf   : > { %8175 = vmatpush3.bf16.msra.mxu1 %v8725_v44  ;;  %8128 = vmatprep.subr.bf16.mxu0 %v8726_v49 }
 0x1c0   : > { %8176 = vmatprep.subr.bf16.mxu1 %v8727_v50 }
 0x1c1   : > { %8049 = vmatmul.mubr.bf16.gmra.mrb[68].mxu0 %v10280_v51 }
 0x1c2   : > { %8097 = vmatmul.mubr.bf16.gmra.mrb[68].mxu1 %v10280_v51  ;;  %8052 = vmatprep.mubr.bf16.mxu0 %v10282_v52 }
 0x1c3   : > { %8100 = vmatprep.mubr.bf16.mxu1 %v10282_v52  ;;  %8129 = vmatpush3.bf16.msra.mxu0 %v8726_v49 }
 0x1c4   : > { %8177 = vmatpush3.bf16.msra.mxu1 %v8727_v50  ;;  %8130 = vmatprep.subr.bf16.mxu0 %v8728_v53 }
 0x1c5   : > { %8178 = vmatprep.subr.bf16.mxu1 %v8729_v54 }
 0x1c7   : > { %8131 = vmatpush3.bf16.msra.mxu0 %v8728_v53 }
 0x1c8   : > { %8179 = vmatpush3.bf16.msra.mxu1 %v8729_v54  ;;  %8132 = vmatprep.subr.bf16.mxu0 %v8730_v59 }
 0x1c9   : > { %8053 = vmatmul.mubr.bf16.gmra.mrb[72].mxu0 %v10301_v60  ;;  %8180 = vmatprep.subr.bf16.mxu1 %v8731_v61 }
 0x1ca   : > { %8101 = vmatmul.mubr.bf16.gmra.mrb[72].mxu1 %v10301_v60  ;;  %8056 = vmatprep.mubr.bf16.mxu0 %v10306_v62 }
 0x1cb   : > { %8104 = vmatprep.mubr.bf16.mxu1 %v10306_v62  ;;  %8133 = vmatpush3.bf16.msra.mxu0 %v8730_v59 }
 0x1cc   : > { %8181 = vmatpush3.bf16.msra.mxu1 %v8731_v61  ;;  %8134 = vmatprep.subr.bf16.mxu0 %v8732_v63 }
 0x1cd   : > { %8182 = vmatprep.subr.bf16.mxu1 %v8733_v0 }
 0x1cf   : > { %8135 = vmatpush3.bf16.msra.mxu0 %v8732_v63 }
 0x1d0   : > { %8183 = vmatpush3.bf16.msra.mxu1 %v8733_v0  ;;  %8136 = vmatprep.subr.bf16.mxu0 %v8734_v5 }
 0x1d1   : > { %8057 = vmatmul.mubr.bf16.gmra.mrb[76].mxu0 %v10325_v6  ;;  %8184 = vmatprep.subr.bf16.mxu1 %v8735_v7 }
 0x1d2   : > { %8105 = vmatmul.mubr.bf16.gmra.mrb[76].mxu1 %v10325_v6  ;;  %8060 = vmatprep.mubr.bf16.mxu0 %v10330_v8 }
 0x1d3   : > { %8108 = vmatprep.mubr.bf16.mxu1 %v10330_v8  ;;  %8137 = vmatpush3.bf16.msra.mxu0 %v8734_v5 }
 0x1d4   : > { %8185 = vmatpush3.bf16.msra.mxu1 %v8735_v7  ;;  %8138 = vmatprep.subr.bf16.mxu0 %v8736_v9 }
 0x1d5   : > { %8186 = vmatprep.subr.bf16.mxu1 %v8737_v10 }
 0x1d7   : > { %8139 = vmatpush3.bf16.msra.mxu0 %v8736_v9 }
 0x1d8   : > { %8187 = vmatpush3.bf16.msra.mxu1 %v8737_v10 }
 0x1d9   : > { %8061 = vmatmul.mubr.bf16.gmra.mrb[80].mxu0 %v10346_v16 }
 0x1da   : > { %8109 = vmatmul.mubr.bf16.gmra.mrb[80].mxu1 %v10346_v16  ;;  %8064 = vmatprep.mubr.bf16.mxu0 %v10348_v17 }
 0x1db   : > { %8112 = vmatprep.mubr.bf16.mxu1 %v10348_v17 }
 0x1e1   : > { %8065 = vmatmul.mubr.bf16.gmra.mrb[84].mxu0 %v10358_v21 }
 0x1e2   : > { %8113 = vmatmul.mubr.bf16.gmra.mrb[84].mxu1 %v10358_v21  ;;  %8068 = vmatprep.mubr.bf16.mxu0 %v10360_v22 }
 0x1e3   : > { %8116 = vmatprep.mubr.bf16.mxu1 %v10360_v22 }
 0x1e9   : > { %8069 = vmatmul.mubr.bf16.gmra.mrb[88].mxu0 %v10370_v27 }
 0x1ea   : > { %8117 = vmatmul.mubr.bf16.gmra.mrb[88].mxu1 %v10370_v27  ;;  %8072 = vmatprep.mubr.bf16.mxu0 %v10372_v28 }
 0x1eb   : > { %8120 = vmatprep.mubr.bf16.mxu1 %v10372_v28 }
 0x1f1   : > { %8073 = vmatmul.mubr.bf16.gmra.mrb[92].mxu0 %v10380_v31 }
 0x1f2   : > { %8121 = vmatmul.mubr.bf16.gmra.mrb[92].mxu1 %v10380_v31  ;;  %8140 = vmatprep.mubr.bf16.mxu0 %v10246_v36 }
 0x1f3   : > { %8188 = vmatprep.mubr.bf16.mxu1 %v10246_v36 }
 0x1f9   : > { %8141 = vmatmul.mubr.bf16.vlgmr.msra.gmra.mrb[96].mxu0 %v10256_v41 }
 0x1fa   : > { %8189 = vmatmul.mubr.bf16.vlgmr.msra.gmra.mrb[96].mxu1 %v10256_v41  ;;  %8144 = vmatprep.mubr.bf16.mxu0 %v10258_v42 }
 0x1fb   : > { %8192 = vmatprep.mubr.bf16.mxu1 %v10258_v42 }
 0x201   : > { %8145 = vmatmul.mubr.bf16.gmra.mrb[100].mxu0 %v10280_v51 }
 0x202   : > { %8193 = vmatmul.mubr.bf16.gmra.mrb[100].mxu1 %v10280_v51  ;;  %8148 = vmatprep.mubr.bf16.mxu0 %v10282_v52 }
 0x203   : > { %8196 = vmatprep.mubr.bf16.mxu1 %v10282_v52 }
 0x209   : > { %8149 = vmatmul.mubr.bf16.gmra.mrb[104].mxu0 %v10301_v60 }
 0x20a   : > { %8197 = vmatmul.mubr.bf16.gmra.mrb[104].mxu1 %v10301_v60  ;;  %8152 = vmatprep.mubr.bf16.mxu0 %v10306_v62 }
 0x20b   : > { %8200 = vmatprep.mubr.bf16.mxu1 %v10306_v62 }
 0x20c   : > { %v7854_v32 = vpop.f32.mrb[0].mxu0 }
 0x20d   : > { %v7902_v33 = vpop.f32.mrb[0].mxu1  ;;  %v776_v34 = vpop.f32.mrb[1].mxu0 }
 0x20e   : > { %v985_v35 = vpop.f32.mrb[1].mxu1  ;;  %v7855_v36 = vpop.f32.mrb[2].mxu0 }
 0x20f   : > { %v1531_v37 = vpack.c.bf16 %v7855_v36, %v7854_v32  ;;  %v7903_v38 = vpop.f32.mrb[2].mxu1  ;;  %v779_v39 = vpop.f32.mrb[3].mxu0 }
 0x210   : > { %v1547_v40 = vpack.c.bf16 %v7903_v38, %v7902_v33  ;;  %v1530_v41 = vpack.c.bf16 %v779_v39, %v776_v34  ;;  %v988_v42 = vpop.f32.mrb[3].mxu1 }
 0x211   : > { %1596 = vst.msk [vmem:[#allocation2 + $0x8] sm:$0xff] %vm1594_vm0, %v1531_v37  ;;  %v1546_v43 = vpack.c.bf16 %v988_v42, %v985_v35  ;;  %8153 = vmatmul.mubr.bf16.gmra.mrb[108].mxu0 %v10325_v6 }
 0x212   : > { %1612 = vst.msk [vmem:[#allocation2 + $0x88] sm:$0xff] %vm1594_vm0, %v1547_v40  ;;  %1595 = vst.msk [vmem:[#allocation2] sm:$0xff] %vm1594_vm0, %v1530_v41  ;;  %8201 = vmatmul.mubr.bf16.gmra.mrb[108].mxu1 %v10325_v6  ;;  %8156 = vmatprep.mubr.bf16.mxu0 %v10330_v8 }
 0x213   : > { %1611 = vst.msk [vmem:[#allocation2 + $0x80] sm:$0xff] %vm1594_vm0, %v1546_v43  ;;  %8204 = vmatprep.mubr.bf16.mxu1 %v10330_v8 }
 0x214   : > { %v7858_v44 = vpop.f32.mrb[4].mxu0 }
 0x215   : > { %v7906_v45 = vpop.f32.mrb[4].mxu1  ;;  %v792_v46 = vpop.f32.mrb[5].mxu0 }
 0x216   : > { %v1001_v47 = vpop.f32.mrb[5].mxu1  ;;  %v7859_v48 = vpop.f32.mrb[6].mxu0 }
 0x217   : > { %v1533_v49 = vpack.c.bf16 %v7859_v48, %v7858_v44  ;;  %v7907_v50 = vpop.f32.mrb[6].mxu1  ;;  %v795_v51 = vpop.f32.mrb[7].mxu0 }
 0x218   : > { %v1549_v52 = vpack.c.bf16 %v7907_v50, %v7906_v45  ;;  %v1532_v53 = vpack.c.bf16 %v795_v51, %v792_v46  ;;  %v1004_v54 = vpop.f32.mrb[7].mxu1 }
 0x219   : > { %1598 = vst.msk [vmem:[#allocation2 + $0x18] sm:$0xff] %vm1594_vm0, %v1533_v49  ;;  %v1548_v55 = vpack.c.bf16 %v1004_v54, %v1001_v47  ;;  %8157 = vmatmul.mubr.bf16.gmra.mrb[112].mxu0 %v10346_v16 }
 0x21a   : > { %1614 = vst.msk [vmem:[#allocation2 + $0x98] sm:$0xff] %vm1594_vm0, %v1549_v52  ;;  %1597 = vst.msk [vmem:[#allocation2 + $0x10] sm:$0xff] %vm1594_vm0, %v1532_v53  ;;  %8205 = vmatmul.mubr.bf16.gmra.mrb[112].mxu1 %v10346_v16  ;;  %8160 = vmatprep.mubr.bf16.mxu0 %v10348_v17 }
 0x21b   : > { %1613 = vst.msk [vmem:[#allocation2 + $0x90] sm:$0xff] %vm1594_vm0, %v1548_v55  ;;  %8208 = vmatprep.mubr.bf16.mxu1 %v10348_v17 }
 0x21c   : > { %v7862_v56 = vpop.f32.mrb[8].mxu0 }
 0x21d   : > { %v7910_v57 = vpop.f32.mrb[8].mxu1  ;;  %v808_v58 = vpop.f32.mrb[9].mxu0 }
 0x21e   : > { %v1017_v59 = vpop.f32.mrb[9].mxu1  ;;  %v7863_v60 = vpop.f32.mrb[10].mxu0 }
 0x21f   : > { %v1535_v61 = vpack.c.bf16 %v7863_v60, %v7862_v56  ;;  %v7911_v62 = vpop.f32.mrb[10].mxu1  ;;  %v811_v63 = vpop.f32.mrb[11].mxu0 }
 0x220   : > { %v1551_v0 = vpack.c.bf16 %v7911_v62, %v7910_v57  ;;  %v1534_v1 = vpack.c.bf16 %v811_v63, %v808_v58  ;;  %v1020_v2 = vpop.f32.mrb[11].mxu1 }
 0x221   : > { %1600 = vst.msk [vmem:[#allocation2 + $0x28] sm:$0xff] %vm1594_vm0, %v1535_v61  ;;  %v1550_v3 = vpack.c.bf16 %v1020_v2, %v1017_v59  ;;  %8161 = vmatmul.mubr.bf16.gmra.mrb[116].mxu0 %v10358_v21 }
 0x222   : > { %1616 = vst.msk [vmem:[#allocation2 + $0xa8] sm:$0xff] %vm1594_vm0, %v1551_v0  ;;  %1599 = vst.msk [vmem:[#allocation2 + $0x20] sm:$0xff] %vm1594_vm0, %v1534_v1  ;;  %8209 = vmatmul.mubr.bf16.gmra.mrb[116].mxu1 %v10358_v21  ;;  %8164 = vmatprep.mubr.bf16.mxu0 %v10360_v22 }
 0x223   : > { %1615 = vst.msk [vmem:[#allocation2 + $0xa0] sm:$0xff] %vm1594_vm0, %v1550_v3  ;;  %8212 = vmatprep.mubr.bf16.mxu1 %v10360_v22 }
 0x224   : > { %v7866_v4 = vpop.f32.mrb[12].mxu0 }
 0x225   : > { %v7914_v5 = vpop.f32.mrb[12].mxu1  ;;  %v824_v6 = vpop.f32.mrb[13].mxu0 }
 0x226   : > { %v1033_v7 = vpop.f32.mrb[13].mxu1  ;;  %v7867_v8 = vpop.f32.mrb[14].mxu0 }
 0x227   : > { %v1537_v9 = vpack.c.bf16 %v7867_v8, %v7866_v4  ;;  %v7915_v10 = vpop.f32.mrb[14].mxu1  ;;  %v827_v11 = vpop.f32.mrb[15].mxu0 }
 0x228   : > { %v1553_v12 = vpack.c.bf16 %v7915_v10, %v7914_v5  ;;  %v1536_v13 = vpack.c.bf16 %v827_v11, %v824_v6  ;;  %v1036_v15 = vpop.f32.mrb[15].mxu1 }
 0x229   : > { %1602 = vst.msk [vmem:[#allocation2 + $0x38] sm:$0xff] %vm1594_vm0, %v1537_v9  ;;  %v1552_v16 = vpack.c.bf16 %v1036_v15, %v1033_v7  ;;  %8165 = vmatmul.mubr.bf16.gmra.mrb[120].mxu0 %v10370_v27 }
 0x22a   : > { %1618 = vst.msk [vmem:[#allocation2 + $0xb8] sm:$0xff] %vm1594_vm0, %v1553_v12  ;;  %1601 = vst.msk [vmem:[#allocation2 + $0x30] sm:$0xff] %vm1594_vm0, %v1536_v13  ;;  %8213 = vmatmul.mubr.bf16.gmra.mrb[120].mxu1 %v10370_v27  ;;  %8168 = vmatprep.mubr.bf16.mxu0 %v10372_v28 }
 0x22b   : > { %1617 = vst.msk [vmem:[#allocation2 + $0xb0] sm:$0xff] %vm1594_vm0, %v1552_v16  ;;  %8216 = vmatprep.mubr.bf16.mxu1 %v10372_v28 }
 0x22c   : > { %v7870_v17 = vpop.f32.mrb[16].mxu0 }
 0x22d   : > { %v7918_v18 = vpop.f32.mrb[16].mxu1  ;;  %v840_v19 = vpop.f32.mrb[17].mxu0 }
 0x22e   : > { %v1049_v20 = vpop.f32.mrb[17].mxu1  ;;  %v7871_v14 = vpop.f32.mrb[18].mxu0 }
 0x22f   : > { %v1539_v21 = vpack.c.bf16 %v7871_v14, %v7870_v17  ;;  %v7919_v22 = vpop.f32.mrb[18].mxu1  ;;  %v843_v23 = vpop.f32.mrb[19].mxu0 }
 0x230   : > { %v1555_v24 = vpack.c.bf16 %v7919_v22, %v7918_v18  ;;  %v1538_v25 = vpack.c.bf16 %v843_v23, %v840_v19  ;;  %v1052_v26 = vpop.f32.mrb[19].mxu1 }
 0x231   : > { %1604 = vst.msk [vmem:[#allocation2 + $0x48] sm:$0xff] %vm1594_vm0, %v1539_v21  ;;  %v1554_v27 = vpack.c.bf16 %v1052_v26, %v1049_v20  ;;  %8169 = vmatmul.mubr.bf16.gmra.mrb[124].mxu0 %v10380_v31 }
 0x232   : > { %1620 = vst.msk [vmem:[#allocation2 + $0xc8] sm:$0xff] %vm1594_vm0, %v1555_v24  ;;  %1603 = vst.msk [vmem:[#allocation2 + $0x40] sm:$0xff] %vm1594_vm0, %v1538_v25  ;;  %8217 = vmatmul.mubr.bf16.gmra.mrb[124].mxu1 %v10380_v31 }
 0x233   : > { %1619 = vst.msk [vmem:[#allocation2 + $0xc0] sm:$0xff] %vm1594_vm0, %v1554_v27 }
 0x234   : > { %v7874_v28 = vpop.f32.mrb[20].mxu0 }
 0x235   : > { %v7922_v29 = vpop.f32.mrb[20].mxu1  ;;  %v856_v30 = vpop.f32.mrb[21].mxu0 }
 0x236   : > { %v1065_v32 = vpop.f32.mrb[21].mxu1  ;;  %v7875_v33 = vpop.f32.mrb[22].mxu0 }
 0x237   : > { %v1541_v34 = vpack.c.bf16 %v7875_v33, %v7874_v28  ;;  %v7923_v35 = vpop.f32.mrb[22].mxu1  ;;  %v859_v36 = vpop.f32.mrb[23].mxu0 }
 0x238   : > { %v1557_v37 = vpack.c.bf16 %v7923_v35, %v7922_v29  ;;  %v1540_v38 = vpack.c.bf16 %v859_v36, %v856_v30  ;;  %v1068_v39 = vpop.f32.mrb[23].mxu1 }
 0x239   : > { %1606 = vst.msk [vmem:[#allocation2 + $0x58] sm:$0xff] %vm1594_vm0, %v1541_v34  ;;  %v1556_v40 = vpack.c.bf16 %v1068_v39, %v1065_v32 }
 0x23a   : > { %1622 = vst.msk [vmem:[#allocation2 + $0xd8] sm:$0xff] %vm1594_vm0, %v1557_v37  ;;  %1605 = vst.msk [vmem:[#allocation2 + $0x50] sm:$0xff] %vm1594_vm0, %v1540_v38 }
 0x23b   : > { %1621 = vst.msk [vmem:[#allocation2 + $0xd0] sm:$0xff] %vm1594_vm0, %v1556_v40 }
 0x23c   : > { %v7878_v31 = vpop.f32.mrb[24].mxu0 }
 0x23d   : > { %v7926_v41 = vpop.f32.mrb[24].mxu1  ;;  %v872_v42 = vpop.f32.mrb[25].mxu0 }
 0x23e   : > { %v1081_v43 = vpop.f32.mrb[25].mxu1  ;;  %v7879_v44 = vpop.f32.mrb[26].mxu0 }
 0x23f   : > { %v1543_v45 = vpack.c.bf16 %v7879_v44, %v7878_v31  ;;  %v7927_v46 = vpop.f32.mrb[26].mxu1  ;;  %v875_v47 = vpop.f32.mrb[27].mxu0 }
 0x240   : > { %v1559_v48 = vpack.c.bf16 %v7927_v46, %v7926_v41  ;;  %v1542_v49 = vpack.c.bf16 %v875_v47, %v872_v42  ;;  %v1084_v50 = vpop.f32.mrb[27].mxu1 }
 0x241   : > { %1608 = vst.msk [vmem:[#allocation2 + $0x68] sm:$0xff] %vm1594_vm0, %v1543_v45  ;;  %v1558_v51 = vpack.c.bf16 %v1084_v50, %v1081_v43 }
 0x242   : > { %1624 = vst.msk [vmem:[#allocation2 + $0xe8] sm:$0xff] %vm1594_vm0, %v1559_v48  ;;  %1607 = vst.msk [vmem:[#allocation2 + $0x60] sm:$0xff] %vm1594_vm0, %v1542_v49 }
 0x243   : > { %1623 = vst.msk [vmem:[#allocation2 + $0xe0] sm:$0xff] %vm1594_vm0, %v1558_v51 }
 0x244   : > { %v7882_v52 = vpop.f32.mrb[28].mxu0 }
 0x245   : > { %v7930_v53 = vpop.f32.mrb[28].mxu1  ;;  %v888_v54 = vpop.f32.mrb[29].mxu0 }
 0x246   : > { %v1097_v55 = vpop.f32.mrb[29].mxu1  ;;  %v7883_v56 = vpop.f32.mrb[30].mxu0 }
 0x247   : > { %v1545_v57 = vpack.c.bf16 %v7883_v56, %v7882_v52  ;;  %v7931_v58 = vpop.f32.mrb[30].mxu1  ;;  %v891_v59 = vpop.f32.mrb[31].mxu0 }
 0x248   : > { %v1561_v60 = vpack.c.bf16 %v7931_v58, %v7930_v53  ;;  %v1544_v61 = vpack.c.bf16 %v891_v59, %v888_v54  ;;  %v1100_v62 = vpop.f32.mrb[31].mxu1 }
 0x249   : > { %1610 = vst.msk [vmem:[#allocation2 + $0x78] sm:$0xff] %vm1594_vm0, %v1545_v57  ;;  %v1560_v63 = vpack.c.bf16 %v1100_v62, %v1097_v55 }
 0x24a   : > { %1626 = vst.msk [vmem:[#allocation2 + $0xf8] sm:$0xff] %vm1594_vm0, %v1561_v60  ;;  %1609 = vst.msk [vmem:[#allocation2 + $0x70] sm:$0xff] %vm1594_vm0, %v1544_v61 }
 0x24b   : > { %1625 = vst.msk [vmem:[#allocation2 + $0xf0] sm:$0xff] %vm1594_vm0, %v1560_v63 }
 0x24c   : > { %v7950_v0 = vpop.f32.mrb[32].mxu0 }
 0x24d   : > { %v7998_v1 = vpop.f32.mrb[32].mxu1  ;;  %v1194_v2 = vpop.f32.mrb[33].mxu0 }
 0x24e   : > { %v1403_v3 = vpop.f32.mrb[33].mxu1  ;;  %v7951_v4 = vpop.f32.mrb[34].mxu0 }
 0x24f   : > { %v1563_v5 = vpack.c.bf16 %v7951_v4, %v7950_v0  ;;  %v7999_v6 = vpop.f32.mrb[34].mxu1  ;;  %v1197_v7 = vpop.f32.mrb[35].mxu0 }
 0x250   : > { %v1579_v8 = vpack.c.bf16 %v7999_v6, %v7998_v1  ;;  %v1562_v9 = vpack.c.bf16 %v1197_v7, %v1194_v2  ;;  %v1406_v10 = vpop.f32.mrb[35].mxu1 }
 0x251   : > { %1628 = vst.msk [vmem:[#allocation2 + $0x108] sm:$0xff] %vm1594_vm0, %v1563_v5  ;;  %v1578_v11 = vpack.c.bf16 %v1406_v10, %v1403_v3 }
 0x252   : > { %1644 = vst.msk [vmem:[#allocation2 + $0x188] sm:$0xff] %vm1594_vm0, %v1579_v8  ;;  %1627 = vst.msk [vmem:[#allocation2 + $0x100] sm:$0xff] %vm1594_vm0, %v1562_v9 }
 0x253   : > { %1643 = vst.msk [vmem:[#allocation2 + $0x180] sm:$0xff] %vm1594_vm0, %v1578_v11 }
 0x254   : > { %v7954_v12 = vpop.f32.mrb[36].mxu0 }
 0x255   : > { %v8002_v13 = vpop.f32.mrb[36].mxu1  ;;  %v1210_v15 = vpop.f32.mrb[37].mxu0 }
 0x256   : > { %v1419_v16 = vpop.f32.mrb[37].mxu1  ;;  %v7955_v17 = vpop.f32.mrb[38].mxu0 }
 0x257   : > { %v1565_v18 = vpack.c.bf16 %v7955_v17, %v7954_v12  ;;  %v8003_v19 = vpop.f32.mrb[38].mxu1  ;;  %v1213_v20 = vpop.f32.mrb[39].mxu0 }
 0x258   : > { %v1581_v14 = vpack.c.bf16 %v8003_v19, %v8002_v13  ;;  %v1564_v21 = vpack.c.bf16 %v1213_v20, %v1210_v15  ;;  %v1422_v22 = vpop.f32.mrb[39].mxu1 }
 0x259   : > { %1630 = vst.msk [vmem:[#allocation2 + $0x118] sm:$0xff] %vm1594_vm0, %v1565_v18  ;;  %v1580_v23 = vpack.c.bf16 %v1422_v22, %v1419_v16 }
 0x25a   : > { %1646 = vst.msk [vmem:[#allocation2 + $0x198] sm:$0xff] %vm1594_vm0, %v1581_v14  ;;  %1629 = vst.msk [vmem:[#allocation2 + $0x110] sm:$0xff] %vm1594_vm0, %v1564_v21 }
 0x25b   : > { %1645 = vst.msk [vmem:[#allocation2 + $0x190] sm:$0xff] %vm1594_vm0, %v1580_v23 }
 0x25c   : > { %v7958_v24 = vpop.f32.mrb[40].mxu0 }
 0x25d   : > { %v8006_v25 = vpop.f32.mrb[40].mxu1  ;;  %v1226_v26 = vpop.f32.mrb[41].mxu0 }
 0x25e   : > { %v1435_v27 = vpop.f32.mrb[41].mxu1  ;;  %v7959_v28 = vpop.f32.mrb[42].mxu0 }
 0x25f   : > { %v1567_v29 = vpack.c.bf16 %v7959_v28, %v7958_v24  ;;  %v8007_v30 = vpop.f32.mrb[42].mxu1  ;;  %v1229_v32 = vpop.f32.mrb[43].mxu0 }
 0x260   : > { %v1583_v33 = vpack.c.bf16 %v8007_v30, %v8006_v25  ;;  %v1566_v34 = vpack.c.bf16 %v1229_v32, %v1226_v26  ;;  %v1438_v35 = vpop.f32.mrb[43].mxu1 }
 0x261   : > { %1632 = vst.msk [vmem:[#allocation2 + $0x128] sm:$0xff] %vm1594_vm0, %v1567_v29  ;;  %v1582_v36 = vpack.c.bf16 %v1438_v35, %v1435_v27 }
 0x262   : > { %1648 = vst.msk [vmem:[#allocation2 + $0x1a8] sm:$0xff] %vm1594_vm0, %v1583_v33  ;;  %1631 = vst.msk [vmem:[#allocation2 + $0x120] sm:$0xff] %vm1594_vm0, %v1566_v34 }
 0x263   : > { %1647 = vst.msk [vmem:[#allocation2 + $0x1a0] sm:$0xff] %vm1594_vm0, %v1582_v36 }
 0x264   : > { %v7962_v37 = vpop.f32.mrb[44].mxu0 }
 0x265   : > { %v8010_v38 = vpop.f32.mrb[44].mxu1  ;;  %v1242_v39 = vpop.f32.mrb[45].mxu0 }
 0x266   : > { %v1451_v40 = vpop.f32.mrb[45].mxu1  ;;  %v7963_v31 = vpop.f32.mrb[46].mxu0 }
 0x267   : > { %v1569_v41 = vpack.c.bf16 %v7963_v31, %v7962_v37  ;;  %v8011_v42 = vpop.f32.mrb[46].mxu1  ;;  %v1245_v43 = vpop.f32.mrb[47].mxu0 }
 0x268   : > { %v1585_v44 = vpack.c.bf16 %v8011_v42, %v8010_v38  ;;  %v1568_v45 = vpack.c.bf16 %v1245_v43, %v1242_v39  ;;  %v1454_v46 = vpop.f32.mrb[47].mxu1 }
 0x269   : > { %1634 = vst.msk [vmem:[#allocation2 + $0x138] sm:$0xff] %vm1594_vm0, %v1569_v41  ;;  %v1584_v47 = vpack.c.bf16 %v1454_v46, %v1451_v40 }
 0x26a   : > { %1650 = vst.msk [vmem:[#allocation2 + $0x1b8] sm:$0xff] %vm1594_vm0, %v1585_v44  ;;  %1633 = vst.msk [vmem:[#allocation2 + $0x130] sm:$0xff] %vm1594_vm0, %v1568_v45 }
 0x26b   : > { %1649 = vst.msk [vmem:[#allocation2 + $0x1b0] sm:$0xff] %vm1594_vm0, %v1584_v47 }
 0x26c   : > { %v7966_v48 = vpop.f32.mrb[48].mxu0 }
 0x26d   : > { %v8014_v49 = vpop.f32.mrb[48].mxu1  ;;  %v1258_v50 = vpop.f32.mrb[49].mxu0 }
 0x26e   : > { %v1467_v51 = vpop.f32.mrb[49].mxu1  ;;  %v7967_v52 = vpop.f32.mrb[50].mxu0 }
 0x26f   : > { %v1571_v53 = vpack.c.bf16 %v7967_v52, %v7966_v48  ;;  %v8015_v54 = vpop.f32.mrb[50].mxu1  ;;  %v1261_v55 = vpop.f32.mrb[51].mxu0 }
 0x270   : > { %v1587_v56 = vpack.c.bf16 %v8015_v54, %v8014_v49  ;;  %v1570_v57 = vpack.c.bf16 %v1261_v55, %v1258_v50  ;;  %v1470_v58 = vpop.f32.mrb[51].mxu1 }
 0x271   : > { %1636 = vst.msk [vmem:[#allocation2 + $0x148] sm:$0xff] %vm1594_vm0, %v1571_v53  ;;  %v1586_v59 = vpack.c.bf16 %v1470_v58, %v1467_v51 }
 0x272   : > { %1652 = vst.msk [vmem:[#allocation2 + $0x1c8] sm:$0xff] %vm1594_vm0, %v1587_v56  ;;  %1635 = vst.msk [vmem:[#allocation2 + $0x140] sm:$0xff] %vm1594_vm0, %v1570_v57 }
 0x273   : > { %1651 = vst.msk [vmem:[#allocation2 + $0x1c0] sm:$0xff] %vm1594_vm0, %v1586_v59 }
 0x274   : > { %v7970_v60 = vpop.f32.mrb[52].mxu0 }
 0x275   : > { %v8018_v61 = vpop.f32.mrb[52].mxu1  ;;  %v1274_v62 = vpop.f32.mrb[53].mxu0 }
 0x276   : > { %v1483_v63 = vpop.f32.mrb[53].mxu1  ;;  %v7971_v0 = vpop.f32.mrb[54].mxu0 }
 0x277   : > { %v1573_v1 = vpack.c.bf16 %v7971_v0, %v7970_v60  ;;  %v8019_v2 = vpop.f32.mrb[54].mxu1  ;;  %v1277_v3 = vpop.f32.mrb[55].mxu0 }
 0x278   : > { %v1589_v4 = vpack.c.bf16 %v8019_v2, %v8018_v61  ;;  %v1572_v5 = vpack.c.bf16 %v1277_v3, %v1274_v62  ;;  %v1486_v6 = vpop.f32.mrb[55].mxu1 }
 0x279   : > { %1638 = vst.msk [vmem:[#allocation2 + $0x158] sm:$0xff] %vm1594_vm0, %v1573_v1  ;;  %v1588_v7 = vpack.c.bf16 %v1486_v6, %v1483_v63 }
 0x27a   : > { %1654 = vst.msk [vmem:[#allocation2 + $0x1d8] sm:$0xff] %vm1594_vm0, %v1589_v4  ;;  %1637 = vst.msk [vmem:[#allocation2 + $0x150] sm:$0xff] %vm1594_vm0, %v1572_v5 }
 0x27b   : > { %1653 = vst.msk [vmem:[#allocation2 + $0x1d0] sm:$0xff] %vm1594_vm0, %v1588_v7 }
 0x27c   : > { %v7974_v8 = vpop.f32.mrb[56].mxu0 }
 0x27d   : > { %v8022_v9 = vpop.f32.mrb[56].mxu1  ;;  %v1290_v10 = vpop.f32.mrb[57].mxu0 }
 0x27e   : > { %v1499_v11 = vpop.f32.mrb[57].mxu1  ;;  %v7975_v12 = vpop.f32.mrb[58].mxu0 }
 0x27f   : > { %v1575_v13 = vpack.c.bf16 %v7975_v12, %v7974_v8  ;;  %v8023_v15 = vpop.f32.mrb[58].mxu1  ;;  %v1293_v16 = vpop.f32.mrb[59].mxu0 }
 0x280   : > { %v1591_v17 = vpack.c.bf16 %v8023_v15, %v8022_v9  ;;  %v1574_v18 = vpack.c.bf16 %v1293_v16, %v1290_v10  ;;  %v1502_v19 = vpop.f32.mrb[59].mxu1 }
 0x281   : > { %1640 = vst.msk [vmem:[#allocation2 + $0x168] sm:$0xff] %vm1594_vm0, %v1575_v13  ;;  %v1590_v20 = vpack.c.bf16 %v1502_v19, %v1499_v11 }
 0x282   : > { %1656 = vst.msk [vmem:[#allocation2 + $0x1e8] sm:$0xff] %vm1594_vm0, %v1591_v17  ;;  %1639 = vst.msk [vmem:[#allocation2 + $0x160] sm:$0xff] %vm1594_vm0, %v1574_v18 }
 0x283   : > { %1655 = vst.msk [vmem:[#allocation2 + $0x1e0] sm:$0xff] %vm1594_vm0, %v1590_v20 }
 0x284   : > { %v7978_v14 = vpop.f32.mrb[60].mxu0 }
 0x285   : > { %v8026_v21 = vpop.f32.mrb[60].mxu1  ;;  %v1306_v22 = vpop.f32.mrb[61].mxu0 }
 0x286   : > { %v1515_v23 = vpop.f32.mrb[61].mxu1  ;;  %v7979_v24 = vpop.f32.mrb[62].mxu0 }
 0x287   : > { %v1577_v25 = vpack.c.bf16 %v7979_v24, %v7978_v14  ;;  %v8027_v26 = vpop.f32.mrb[62].mxu1  ;;  %v1309_v27 = vpop.f32.mrb[63].mxu0 }
 0x288   : > { %v1593_v28 = vpack.c.bf16 %v8027_v26, %v8026_v21  ;;  %v1576_v29 = vpack.c.bf16 %v1309_v27, %v1306_v22  ;;  %v1518_v30 = vpop.f32.mrb[63].mxu1 }
 0x289   : > { %1642 = vst.msk [vmem:[#allocation2 + $0x178] sm:$0xff] %vm1594_vm0, %v1577_v25  ;;  %v1592_v32 = vpack.c.bf16 %v1518_v30, %v1515_v23 }
 0x28a   : > { %1658 = vst.msk [vmem:[#allocation2 + $0x1f8] sm:$0xff] %vm1594_vm0, %v1593_v28  ;;  %1641 = vst.msk [vmem:[#allocation2 + $0x170] sm:$0xff] %vm1594_vm0, %v1576_v29 }
 0x28b   : > { %1657 = vst.msk [vmem:[#allocation2 + $0x1f0] sm:$0xff] %vm1594_vm0, %v1592_v32 }
 0x28c   : > { %v8046_v33 = vpop.f32.mrb[64].mxu0 }
 0x28d   : > { %v8094_v34 = vpop.f32.mrb[64].mxu1  ;;  %v1805_v35 = vpop.f32.mrb[65].mxu0 }
 0x28e   : > { %v2014_v36 = vpop.f32.mrb[65].mxu1  ;;  %v8047_v37 = vpop.f32.mrb[66].mxu0 }
 0x28f   : > { %v2560_v38 = vpack.c.bf16 %v8047_v37, %v8046_v33  ;;  %v8095_v39 = vpop.f32.mrb[66].mxu1  ;;  %v1808_v40 = vpop.f32.mrb[67].mxu0 }
 0x290   : > { %v2576_v31 = vpack.c.bf16 %v8095_v39, %v8094_v34  ;;  %v2559_v41 = vpack.c.bf16 %v1808_v40, %v1805_v35  ;;  %v2017_v42 = vpop.f32.mrb[67].mxu1 }
 0x291   : > { %2624 = vst.msk [vmem:[#allocation3 + $0x8] sm:$0xff] %vm1594_vm0, %v2560_v38  ;;  %v2575_v43 = vpack.c.bf16 %v2017_v42, %v2014_v36 }
 0x292   : > { %2640 = vst.msk [vmem:[#allocation3 + $0x88] sm:$0xff] %vm1594_vm0, %v2576_v31  ;;  %2623 = vst.msk [vmem:[#allocation3] sm:$0xff] %vm1594_vm0, %v2559_v41 }
 0x293   : > { %2639 = vst.msk [vmem:[#allocation3 + $0x80] sm:$0xff] %vm1594_vm0, %v2575_v43 }
 0x294   : > { %v8050_v44 = vpop.f32.mrb[68].mxu0 }
 0x295   : > { %v8098_v45 = vpop.f32.mrb[68].mxu1  ;;  %v1821_v46 = vpop.f32.mrb[69].mxu0 }
 0x296   : > { %v2030_v47 = vpop.f32.mrb[69].mxu1  ;;  %v8051_v48 = vpop.f32.mrb[70].mxu0 }
 0x297   : > { %v2562_v49 = vpack.c.bf16 %v8051_v48, %v8050_v44  ;;  %v8099_v50 = vpop.f32.mrb[70].mxu1  ;;  %v1824_v51 = vpop.f32.mrb[71].mxu0 }
 0x298   : > { %v2578_v52 = vpack.c.bf16 %v8099_v50, %v8098_v45  ;;  %v2561_v53 = vpack.c.bf16 %v1824_v51, %v1821_v46  ;;  %v2033_v54 = vpop.f32.mrb[71].mxu1 }
 0x299   : > { %2626 = vst.msk [vmem:[#allocation3 + $0x18] sm:$0xff] %vm1594_vm0, %v2562_v49  ;;  %v2577_v55 = vpack.c.bf16 %v2033_v54, %v2030_v47 }
 0x29a   : > { %2642 = vst.msk [vmem:[#allocation3 + $0x98] sm:$0xff] %vm1594_vm0, %v2578_v52  ;;  %2625 = vst.msk [vmem:[#allocation3 + $0x10] sm:$0xff] %vm1594_vm0, %v2561_v53 }
 0x29b   : > { %2641 = vst.msk [vmem:[#allocation3 + $0x90] sm:$0xff] %vm1594_vm0, %v2577_v55 }
 0x29c   : > { %v8054_v56 = vpop.f32.mrb[72].mxu0 }
 0x29d   : > { %v8102_v57 = vpop.f32.mrb[72].mxu1  ;;  %v1837_v58 = vpop.f32.mrb[73].mxu0 }
 0x29e   : > { %v2046_v59 = vpop.f32.mrb[73].mxu1  ;;  %v8055_v60 = vpop.f32.mrb[74].mxu0 }
 0x29f   : > { %v2564_v61 = vpack.c.bf16 %v8055_v60, %v8054_v56  ;;  %v8103_v62 = vpop.f32.mrb[74].mxu1  ;;  %v1840_v63 = vpop.f32.mrb[75].mxu0 }
 0x2a0   : > { %v2580_v0 = vpack.c.bf16 %v8103_v62, %v8102_v57  ;;  %v2563_v1 = vpack.c.bf16 %v1840_v63, %v1837_v58  ;;  %v2049_v2 = vpop.f32.mrb[75].mxu1 }
 0x2a1   : > { %2628 = vst.msk [vmem:[#allocation3 + $0x28] sm:$0xff] %vm1594_vm0, %v2564_v61  ;;  %v2579_v3 = vpack.c.bf16 %v2049_v2, %v2046_v59 }
 0x2a2   : > { %2644 = vst.msk [vmem:[#allocation3 + $0xa8] sm:$0xff] %vm1594_vm0, %v2580_v0  ;;  %2627 = vst.msk [vmem:[#allocation3 + $0x20] sm:$0xff] %vm1594_vm0, %v2563_v1 }
 0x2a3   : > { %2643 = vst.msk [vmem:[#allocation3 + $0xa0] sm:$0xff] %vm1594_vm0, %v2579_v3 }
 0x2a4   : > { %v8058_v4 = vpop.f32.mrb[76].mxu0 }
 0x2a5   : > { %v8106_v5 = vpop.f32.mrb[76].mxu1  ;;  %v1853_v6 = vpop.f32.mrb[77].mxu0 }
 0x2a6   : > { %v2062_v7 = vpop.f32.mrb[77].mxu1  ;;  %v8059_v8 = vpop.f32.mrb[78].mxu0 }
 0x2a7   : > { %v2566_v9 = vpack.c.bf16 %v8059_v8, %v8058_v4  ;;  %v8107_v10 = vpop.f32.mrb[78].mxu1  ;;  %v1856_v11 = vpop.f32.mrb[79].mxu0 }
 0x2a8   : > { %v2582_v12 = vpack.c.bf16 %v8107_v10, %v8106_v5  ;;  %v2565_v13 = vpack.c.bf16 %v1856_v11, %v1853_v6  ;;  %v2065_v15 = vpop.f32.mrb[79].mxu1 }
 0x2a9   : > { %2630 = vst.msk [vmem:[#allocation3 + $0x38] sm:$0xff] %vm1594_vm0, %v2566_v9  ;;  %v2581_v16 = vpack.c.bf16 %v2065_v15, %v2062_v7 }
 0x2aa   : > { %2646 = vst.msk [vmem:[#allocation3 + $0xb8] sm:$0xff] %vm1594_vm0, %v2582_v12  ;;  %2629 = vst.msk [vmem:[#allocation3 + $0x30] sm:$0xff] %vm1594_vm0, %v2565_v13 }
 0x2ab   : > { %2645 = vst.msk [vmem:[#allocation3 + $0xb0] sm:$0xff] %vm1594_vm0, %v2581_v16 }
 0x2ac   : > { %v8062_v17 = vpop.f32.mrb[80].mxu0 }
 0x2ad   : > { %v8110_v18 = vpop.f32.mrb[80].mxu1  ;;  %v1869_v19 = vpop.f32.mrb[81].mxu0 }
 0x2ae   : > { %v2078_v20 = vpop.f32.mrb[81].mxu1  ;;  %v8063_v14 = vpop.f32.mrb[82].mxu0 }
 0x2af   : > { %v2568_v21 = vpack.c.bf16 %v8063_v14, %v8062_v17  ;;  %v8111_v22 = vpop.f32.mrb[82].mxu1  ;;  %v1872_v23 = vpop.f32.mrb[83].mxu0 }
 0x2b0   : > { %v2584_v24 = vpack.c.bf16 %v8111_v22, %v8110_v18  ;;  %v2567_v25 = vpack.c.bf16 %v1872_v23, %v1869_v19  ;;  %v2081_v26 = vpop.f32.mrb[83].mxu1 }
 0x2b1   : > { %2632 = vst.msk [vmem:[#allocation3 + $0x48] sm:$0xff] %vm1594_vm0, %v2568_v21  ;;  %v2583_v27 = vpack.c.bf16 %v2081_v26, %v2078_v20 }
 0x2b2   : > { %2648 = vst.msk [vmem:[#allocation3 + $0xc8] sm:$0xff] %vm1594_vm0, %v2584_v24  ;;  %2631 = vst.msk [vmem:[#allocation3 + $0x40] sm:$0xff] %vm1594_vm0, %v2567_v25 }
 0x2b3   : > { %2647 = vst.msk [vmem:[#allocation3 + $0xc0] sm:$0xff] %vm1594_vm0, %v2583_v27 }
 0x2b4   : > { %v8066_v28 = vpop.f32.mrb[84].mxu0 }
 0x2b5   : > { %v8114_v29 = vpop.f32.mrb[84].mxu1  ;;  %v1885_v30 = vpop.f32.mrb[85].mxu0 }
 0x2b6   : > { %v2094_v32 = vpop.f32.mrb[85].mxu1  ;;  %v8067_v33 = vpop.f32.mrb[86].mxu0 }
 0x2b7   : > { %v2570_v34 = vpack.c.bf16 %v8067_v33, %v8066_v28  ;;  %v8115_v35 = vpop.f32.mrb[86].mxu1  ;;  %v1888_v36 = vpop.f32.mrb[87].mxu0 }
 0x2b8   : > { %v2586_v37 = vpack.c.bf16 %v8115_v35, %v8114_v29  ;;  %v2569_v38 = vpack.c.bf16 %v1888_v36, %v1885_v30  ;;  %v2097_v39 = vpop.f32.mrb[87].mxu1 }
 0x2b9   : > { %2634 = vst.msk [vmem:[#allocation3 + $0x58] sm:$0xff] %vm1594_vm0, %v2570_v34  ;;  %v2585_v40 = vpack.c.bf16 %v2097_v39, %v2094_v32 }
 0x2ba   : > { %2650 = vst.msk [vmem:[#allocation3 + $0xd8] sm:$0xff] %vm1594_vm0, %v2586_v37  ;;  %2633 = vst.msk [vmem:[#allocation3 + $0x50] sm:$0xff] %vm1594_vm0, %v2569_v38 }
 0x2bb   : > { %2649 = vst.msk [vmem:[#allocation3 + $0xd0] sm:$0xff] %vm1594_vm0, %v2585_v40 }
 0x2bc   : > { %v8070_v31 = vpop.f32.mrb[88].mxu0 }
 0x2bd   : > { %v8118_v41 = vpop.f32.mrb[88].mxu1  ;;  %v1901_v42 = vpop.f32.mrb[89].mxu0 }
 0x2be   : > { %v2110_v43 = vpop.f32.mrb[89].mxu1  ;;  %v8071_v44 = vpop.f32.mrb[90].mxu0 }
 0x2bf   : > { %v2572_v45 = vpack.c.bf16 %v8071_v44, %v8070_v31  ;;  %v8119_v46 = vpop.f32.mrb[90].mxu1  ;;  %v1904_v47 = vpop.f32.mrb[91].mxu0 }
 0x2c0   : > { %v2588_v48 = vpack.c.bf16 %v8119_v46, %v8118_v41  ;;  %v2571_v49 = vpack.c.bf16 %v1904_v47, %v1901_v42  ;;  %v2113_v50 = vpop.f32.mrb[91].mxu1 }
 0x2c1   : > { %2636 = vst.msk [vmem:[#allocation3 + $0x68] sm:$0xff] %vm1594_vm0, %v2572_v45  ;;  %v2587_v51 = vpack.c.bf16 %v2113_v50, %v2110_v43 }
 0x2c2   : > { %2652 = vst.msk [vmem:[#allocation3 + $0xe8] sm:$0xff] %vm1594_vm0, %v2588_v48  ;;  %2635 = vst.msk [vmem:[#allocation3 + $0x60] sm:$0xff] %vm1594_vm0, %v2571_v49 }
 0x2c3   : > { %2651 = vst.msk [vmem:[#allocation3 + $0xe0] sm:$0xff] %vm1594_vm0, %v2587_v51 }
 0x2c4   : > { %v8074_v52 = vpop.f32.mrb[92].mxu0 }
 0x2c5   : > { %v8122_v53 = vpop.f32.mrb[92].mxu1  ;;  %v1917_v54 = vpop.f32.mrb[93].mxu0 }
 0x2c6   : > { %v2126_v55 = vpop.f32.mrb[93].mxu1  ;;  %v8075_v56 = vpop.f32.mrb[94].mxu0 }
 0x2c7   : > { %v2574_v57 = vpack.c.bf16 %v8075_v56, %v8074_v52  ;;  %v8123_v58 = vpop.f32.mrb[94].mxu1  ;;  %v1920_v59 = vpop.f32.mrb[95].mxu0 }
 0x2c8   : > { %v2590_v60 = vpack.c.bf16 %v8123_v58, %v8122_v53  ;;  %v2573_v61 = vpack.c.bf16 %v1920_v59, %v1917_v54  ;;  %v2129_v62 = vpop.f32.mrb[95].mxu1 }
 0x2c9   : > { %2638 = vst.msk [vmem:[#allocation3 + $0x78] sm:$0xff] %vm1594_vm0, %v2574_v57  ;;  %v2589_v63 = vpack.c.bf16 %v2129_v62, %v2126_v55 }
 0x2ca   : > { %2654 = vst.msk [vmem:[#allocation3 + $0xf8] sm:$0xff] %vm1594_vm0, %v2590_v60  ;;  %2637 = vst.msk [vmem:[#allocation3 + $0x70] sm:$0xff] %vm1594_vm0, %v2573_v61 }
 0x2cb   : > { %2653 = vst.msk [vmem:[#allocation3 + $0xf0] sm:$0xff] %vm1594_vm0, %v2589_v63 }
 0x2cc   : > { %v8142_v0 = vpop.f32.mrb[96].mxu0 }
 0x2cd   : > { %v8190_v1 = vpop.f32.mrb[96].mxu1  ;;  %v2223_v2 = vpop.f32.mrb[97].mxu0 }
 0x2ce   : > { %v2432_v3 = vpop.f32.mrb[97].mxu1  ;;  %v8143_v4 = vpop.f32.mrb[98].mxu0 }
 0x2cf   : > { %v2592_v5 = vpack.c.bf16 %v8143_v4, %v8142_v0  ;;  %v8191_v6 = vpop.f32.mrb[98].mxu1  ;;  %v2226_v7 = vpop.f32.mrb[99].mxu0 }
 0x2d0   : > { %v2608_v8 = vpack.c.bf16 %v8191_v6, %v8190_v1  ;;  %v2591_v9 = vpack.c.bf16 %v2226_v7, %v2223_v2  ;;  %v2435_v10 = vpop.f32.mrb[99].mxu1 }
 0x2d1   : > { %2656 = vst.msk [vmem:[#allocation3 + $0x108] sm:$0xff] %vm1594_vm0, %v2592_v5  ;;  %v2607_v11 = vpack.c.bf16 %v2435_v10, %v2432_v3 }
 0x2d2   : > { %2672 = vst.msk [vmem:[#allocation3 + $0x188] sm:$0xff] %vm1594_vm0, %v2608_v8  ;;  %2655 = vst.msk [vmem:[#allocation3 + $0x100] sm:$0xff] %vm1594_vm0, %v2591_v9 }
 0x2d3   : > { %2671 = vst.msk [vmem:[#allocation3 + $0x180] sm:$0xff] %vm1594_vm0, %v2607_v11 }
 0x2d4   : > { %v8146_v12 = vpop.f32.mrb[100].mxu0 }
 0x2d5   : > { %v8194_v13 = vpop.f32.mrb[100].mxu1  ;;  %v2239_v15 = vpop.f32.mrb[101].mxu0 }
 0x2d6   : > { %v2448_v16 = vpop.f32.mrb[101].mxu1  ;;  %v8147_v17 = vpop.f32.mrb[102].mxu0 }
 0x2d7   : > { %v2594_v18 = vpack.c.bf16 %v8147_v17, %v8146_v12  ;;  %v8195_v19 = vpop.f32.mrb[102].mxu1  ;;  %v2242_v20 = vpop.f32.mrb[103].mxu0 }
 0x2d8   : > { %v2610_v14 = vpack.c.bf16 %v8195_v19, %v8194_v13  ;;  %v2593_v21 = vpack.c.bf16 %v2242_v20, %v2239_v15  ;;  %v2451_v22 = vpop.f32.mrb[103].mxu1 }
 0x2d9   : > { %2658 = vst.msk [vmem:[#allocation3 + $0x118] sm:$0xff] %vm1594_vm0, %v2594_v18  ;;  %v2609_v23 = vpack.c.bf16 %v2451_v22, %v2448_v16 }
 0x2da   : > { %2674 = vst.msk [vmem:[#allocation3 + $0x198] sm:$0xff] %vm1594_vm0, %v2610_v14  ;;  %2657 = vst.msk [vmem:[#allocation3 + $0x110] sm:$0xff] %vm1594_vm0, %v2593_v21 }
 0x2db   : > { %2673 = vst.msk [vmem:[#allocation3 + $0x190] sm:$0xff] %vm1594_vm0, %v2609_v23 }
 0x2dc   : > { %v8150_v24 = vpop.f32.mrb[104].mxu0 }
 0x2dd   : > { %v8198_v25 = vpop.f32.mrb[104].mxu1  ;;  %v2255_v26 = vpop.f32.mrb[105].mxu0 }
 0x2de   : > { %v2464_v27 = vpop.f32.mrb[105].mxu1  ;;  %v8151_v28 = vpop.f32.mrb[106].mxu0 }
 0x2df   : > { %v2596_v29 = vpack.c.bf16 %v8151_v28, %v8150_v24  ;;  %v8199_v30 = vpop.f32.mrb[106].mxu1  ;;  %v2258_v32 = vpop.f32.mrb[107].mxu0 }
 0x2e0   : > { %v2612_v33 = vpack.c.bf16 %v8199_v30, %v8198_v25  ;;  %v2595_v34 = vpack.c.bf16 %v2258_v32, %v2255_v26  ;;  %v2467_v35 = vpop.f32.mrb[107].mxu1 }
 0x2e1   : > { %2660 = vst.msk [vmem:[#allocation3 + $0x128] sm:$0xff] %vm1594_vm0, %v2596_v29  ;;  %v2611_v36 = vpack.c.bf16 %v2467_v35, %v2464_v27 }
 0x2e2   : > { %2676 = vst.msk [vmem:[#allocation3 + $0x1a8] sm:$0xff] %vm1594_vm0, %v2612_v33  ;;  %2659 = vst.msk [vmem:[#allocation3 + $0x120] sm:$0xff] %vm1594_vm0, %v2595_v34 }
 0x2e3   : > { %2675 = vst.msk [vmem:[#allocation3 + $0x1a0] sm:$0xff] %vm1594_vm0, %v2611_v36 }
 0x2e4   : > { %v8154_v37 = vpop.f32.mrb[108].mxu0 }
 0x2e5   : > { %v8202_v38 = vpop.f32.mrb[108].mxu1  ;;  %v2271_v39 = vpop.f32.mrb[109].mxu0 }
 0x2e6   : > { %v2480_v40 = vpop.f32.mrb[109].mxu1  ;;  %v8155_v31 = vpop.f32.mrb[110].mxu0 }
 0x2e7   : > { %v2598_v41 = vpack.c.bf16 %v8155_v31, %v8154_v37  ;;  %v8203_v42 = vpop.f32.mrb[110].mxu1  ;;  %v2274_v43 = vpop.f32.mrb[111].mxu0 }
 0x2e8   : > { %v2614_v44 = vpack.c.bf16 %v8203_v42, %v8202_v38  ;;  %v2597_v45 = vpack.c.bf16 %v2274_v43, %v2271_v39  ;;  %v2483_v46 = vpop.f32.mrb[111].mxu1 }
 0x2e9   : > { %2662 = vst.msk [vmem:[#allocation3 + $0x138] sm:$0xff] %vm1594_vm0, %v2598_v41  ;;  %v2613_v47 = vpack.c.bf16 %v2483_v46, %v2480_v40 }
 0x2ea   : > { %2678 = vst.msk [vmem:[#allocation3 + $0x1b8] sm:$0xff] %vm1594_vm0, %v2614_v44  ;;  %2661 = vst.msk [vmem:[#allocation3 + $0x130] sm:$0xff] %vm1594_vm0, %v2597_v45 }
 0x2eb   : > { %2677 = vst.msk [vmem:[#allocation3 + $0x1b0] sm:$0xff] %vm1594_vm0, %v2613_v47 }
 0x2ec   : > { %v8158_v48 = vpop.f32.mrb[112].mxu0 }
 0x2ed   : > { %v8206_v49 = vpop.f32.mrb[112].mxu1  ;;  %v2287_v50 = vpop.f32.mrb[113].mxu0 }
 0x2ee   : > { %v2496_v51 = vpop.f32.mrb[113].mxu1  ;;  %v8159_v52 = vpop.f32.mrb[114].mxu0 }
 0x2ef   : > { %v2600_v53 = vpack.c.bf16 %v8159_v52, %v8158_v48  ;;  %v8207_v54 = vpop.f32.mrb[114].mxu1  ;;  %v2290_v55 = vpop.f32.mrb[115].mxu0 }
 0x2f0   : > { %v2616_v56 = vpack.c.bf16 %v8207_v54, %v8206_v49  ;;  %v2599_v57 = vpack.c.bf16 %v2290_v55, %v2287_v50  ;;  %v2499_v58 = vpop.f32.mrb[115].mxu1 }
 0x2f1   : > { %2664 = vst.msk [vmem:[#allocation3 + $0x148] sm:$0xff] %vm1594_vm0, %v2600_v53  ;;  %v2615_v59 = vpack.c.bf16 %v2499_v58, %v2496_v51 }
 0x2f2   : > { %2680 = vst.msk [vmem:[#allocation3 + $0x1c8] sm:$0xff] %vm1594_vm0, %v2616_v56  ;;  %2663 = vst.msk [vmem:[#allocation3 + $0x140] sm:$0xff] %vm1594_vm0, %v2599_v57 }
 0x2f3   : > { %2679 = vst.msk [vmem:[#allocation3 + $0x1c0] sm:$0xff] %vm1594_vm0, %v2615_v59 }
 0x2f4   : > { %v8162_v60 = vpop.f32.mrb[116].mxu0 }
 0x2f5   : > { %v8210_v61 = vpop.f32.mrb[116].mxu1  ;;  %v2303_v62 = vpop.f32.mrb[117].mxu0 }
 0x2f6   : > { %v2512_v63 = vpop.f32.mrb[117].mxu1  ;;  %v8163_v0 = vpop.f32.mrb[118].mxu0 }
 0x2f7   : > { %v2602_v1 = vpack.c.bf16 %v8163_v0, %v8162_v60  ;;  %v8211_v2 = vpop.f32.mrb[118].mxu1  ;;  %v2306_v3 = vpop.f32.mrb[119].mxu0 }
 0x2f8   : > { %v2618_v4 = vpack.c.bf16 %v8211_v2, %v8210_v61  ;;  %v2601_v5 = vpack.c.bf16 %v2306_v3, %v2303_v62  ;;  %v2515_v6 = vpop.f32.mrb[119].mxu1 }
 0x2f9   : > { %2666 = vst.msk [vmem:[#allocation3 + $0x158] sm:$0xff] %vm1594_vm0, %v2602_v1  ;;  %v2617_v7 = vpack.c.bf16 %v2515_v6, %v2512_v63 }
 0x2fa   : > { %2682 = vst.msk [vmem:[#allocation3 + $0x1d8] sm:$0xff] %vm1594_vm0, %v2618_v4  ;;  %2665 = vst.msk [vmem:[#allocation3 + $0x150] sm:$0xff] %vm1594_vm0, %v2601_v5 }
 0x2fb   : > { %2681 = vst.msk [vmem:[#allocation3 + $0x1d0] sm:$0xff] %vm1594_vm0, %v2617_v7 }
 0x2fc   : > { %v8166_v8 = vpop.f32.mrb[120].mxu0 }
 0x2fd   : > { %v8214_v9 = vpop.f32.mrb[120].mxu1  ;;  %v2319_v10 = vpop.f32.mrb[121].mxu0 }
 0x2fe   : > { %v2528_v11 = vpop.f32.mrb[121].mxu1  ;;  %v8167_v12 = vpop.f32.mrb[122].mxu0 }
 0x2ff   : > { %v2604_v13 = vpack.c.bf16 %v8167_v12, %v8166_v8  ;;  %v8215_v15 = vpop.f32.mrb[122].mxu1  ;;  %v2322_v16 = vpop.f32.mrb[123].mxu0 }
 0x300   : > { %v2620_v17 = vpack.c.bf16 %v8215_v15, %v8214_v9  ;;  %v2603_v18 = vpack.c.bf16 %v2322_v16, %v2319_v10  ;;  %v2531_v19 = vpop.f32.mrb[123].mxu1 }
 0x301   : > { %2668 = vst.msk [vmem:[#allocation3 + $0x168] sm:$0xff] %vm1594_vm0, %v2604_v13  ;;  %v2619_v20 = vpack.c.bf16 %v2531_v19, %v2528_v11 }
 0x302   : > { %2684 = vst.msk [vmem:[#allocation3 + $0x1e8] sm:$0xff] %vm1594_vm0, %v2620_v17  ;;  %2667 = vst.msk [vmem:[#allocation3 + $0x160] sm:$0xff] %vm1594_vm0, %v2603_v18 }
 0x303   : > { %2683 = vst.msk [vmem:[#allocation3 + $0x1e0] sm:$0xff] %vm1594_vm0, %v2619_v20 }
 0x304   : > { %v8170_v14 = vpop.f32.mrb[124].mxu0 }
 0x305   : > { %v8218_v21 = vpop.f32.mrb[124].mxu1  ;;  %v2335_v22 = vpop.f32.mrb[125].mxu0 }
 0x306   : > { %v2544_v23 = vpop.f32.mrb[125].mxu1  ;;  %v8171_v24 = vpop.f32.mrb[126].mxu0 }
 0x307   : > { %v2606_v25 = vpack.c.bf16 %v8171_v24, %v8170_v14  ;;  %v8219_v26 = vpop.f32.mrb[126].mxu1  ;;  %v2338_v27 = vpop.f32.mrb[127].mxu0 }
 0x308   : > { %v2622_v28 = vpack.c.bf16 %v8219_v26, %v8218_v21  ;;  %v2605_v29 = vpack.c.bf16 %v2338_v27, %v2335_v22  ;;  %v2547_v30 = vpop.f32.mrb[127].mxu1 }
 0x309   : > { %2670 = vst.msk [vmem:[#allocation3 + $0x178] sm:$0xff] %vm1594_vm0, %v2606_v25  ;;  %v2621_v32 = vpack.c.bf16 %v2547_v30, %v2544_v23 }
 0x30a   : > { %2686 = vst.msk [vmem:[#allocation3 + $0x1f8] sm:$0xff] %vm1594_vm0, %v2622_v28  ;;  %2669 = vst.msk [vmem:[#allocation3 + $0x170] sm:$0xff] %vm1594_vm0, %v2605_v29 }
 0x30b   : > { %2685 = vst.msk [vmem:[#allocation3 + $0x1f0] sm:$0xff] %vm1594_vm0, %v2621_v32 }
 0x30c PF: > { %s12747_s24 = sld [smem:[#allocation129_spill]]  ;;  %v2687_v37 = vld [vmem:[%s9938_s3] sm:$0xff]  ;;  %v2688_v38 = vld [vmem:[%s9938_s3 + $0x8] sm:$0xff]  ;;  %v2689_v45 = vld [vmem:[%s9938_s3 + $0x10] sm:$0xff]  ;;  %vm3451_vm1 = vcmask 261120   ;;  %s13037_s19 = sld [smem:[#allocation29_spill]] }
 0x30d   : > { %v10558_v39 = vpack.c.bf16 %v2688_v38, %v2687_v37  ;;  %v2690_v46 = vld [vmem:[%s9938_s3 + $0x18] sm:$0xff]  ;;  %v2691_v49 = vld [vmem:[%s9938_s3 + $0x20] sm:$0xff]  ;;  %v2692_v50 = vld [vmem:[%s9938_s3 + $0x28] sm:$0xff]  ;;  %s13038_s6 = sld [smem:[#allocation36_spill]]  ;;  %s6700_s12 = sshll.u32 %s9963_s21, 4  ;;  %s12408_s12 = int_to_ptr.vmem [resolvable:$true] %s6700_s12 }
 0x30e   : > { %v10590_v51 = vpack.c.bf16 %v2690_v46, %v2689_v45  ;;  %v10595_v53 = vpack.c.bf16 %v2692_v50, %v2691_v49  ;;  %v2693_v55 = vld [vmem:[%s9938_s3 + $0x30] sm:$0xff]  ;;  %v2694_v56 = vld [vmem:[%s9938_s3 + $0x38] sm:$0xff]  ;;  %v2695_v59 = vld [vmem:[%s9938_s3 + $0x40] sm:$0xff]  ;;  %s13039_s29 = sld [smem:[#allocation135_spill]]  ;;  %s6680_s1 = scalar_lea.sflag [#allocation6], %s9934_s11 }
 0x30f   : > { %8236 = vmatprep.mubr.bf16.mxu0 %v10558_v39  ;;  %8268 = vmatprep.mubr.bf16.mxu1 %v10558_v39  ;;  %v2696_v60 = vld [vmem:[%s9938_s3 + $0x48] sm:$0xff]  ;;  %v10612_v61 = vpack.c.bf16 %v2694_v56, %v2693_v55  ;;  %v2697_v2 = vld [vmem:[%s9938_s3 + $0x50] sm:$0xff]  ;;  %v2698_v3 = vld [vmem:[%s9938_s3 + $0x58] sm:$0xff]  ;;  %s9384_s10 = scalar_lea.vmem %s12408_s12, 2048  ;;  %s9534_s14 = smov [#allocation15]  }
 0x310   : > { %v10617_v63 = vpack.c.bf16 %v2696_v60, %v2695_v59  ;;  %v2699_v5 = vld [vmem:[%s9938_s3 + $0x60] sm:$0xff]  ;;  %v2700_v6 = vld [vmem:[%s9938_s3 + $0x68] sm:$0xff]  ;;  %v10637_v8 = vpack.c.bf16 %v2698_v3, %v2697_v2  ;;  %v2701_v12 = vld [vmem:[%s9938_s3 + $0x70] sm:$0xff]  ;;  %p9385_p12 = scmp.ne.s32.totalorder %s12408_s12, %s9384_s10 }
 0x311   : > { %v10642_v10 = vpack.c.bf16 %v2700_v6, %v2699_v5  ;;  %v2702_v13 = vld [vmem:[%s9938_s3 + $0x78] sm:$0xff]  ;;  %v3427_v20 = vld [vmem:[#allocation2 + $0x140] sm:$0xff]  ;;  %v3428_v25 = vld [vmem:[#allocation2 + $0x148] sm:$0xff] }
 0x312   : > { %v8738_v33 = vld [vmem:[%s12747_s24] sm:$0xff]   ;;  %v8739_v34 = vld [vmem:[%s12747_s24 + $0x8] sm:$0xff]   ;;  %v8740_v35 = vld [vmem:[%s12747_s24 + $0x10] sm:$0xff]   ;;  %v10654_v16 = vpack.c.bf16 %v2702_v13, %v2701_v12  ;;  %s7145_s27 = sshll.u32 %s13037_s19, 5 }
 0x313   : > { %8220 = vmatprep.subr.bf16.mxu0 %v8738_v33  ;;  %v8741_v36 = vld [vmem:[%s12747_s24 + $0x18] sm:$0xff]   ;;  %v8742_v40 = vld [vmem:[%s12747_s24 + $0x20] sm:$0xff]   ;;  %v8743_v31 = vld [vmem:[%s12747_s24 + $0x28] sm:$0xff]   ;;  %p13040_p4 = scmp.ne.s32.totalorder %s13038_s6, 0 }
 0x314   : > { %8221 = vmatpush3.bf16.msra.mxu0 %v8738_v33  ;;  %v8744_v41 = vld [vmem:[%s12747_s24 + $0x30] sm:$0xff]   ;;  %v8754_v42 = vld [vmem:[%s12747_s24 + $0x40] sm:$0xff]   ;;  %v8755_v43 = vld [vmem:[%s12747_s24 + $0x48] sm:$0xff]  }
 0x315   : > { %8222 = vmatprep.subr.bf16.mxu0 %v8739_v34  ;;  %v8745_v44 = vld [vmem:[%s12747_s24 + $0x38] sm:$0xff]   ;;  %8252 = vmatprep.subr.bf16.mxu1 %v8754_v42  ;;  %v8746_v47 = vld [vmem:[%s12747_s24 + $0x80] sm:$0xff]   ;;  %v8756_v48 = vld [vmem:[%s12747_s24 + $0x50] sm:$0xff]   ;;  %p9386_p5 = pnand %p9385_p12, %p13040_p4 }
 0x316   : > { %8253 = vmatpush3.bf16.msra.mxu1 %v8754_v42  ;;  %v8757_v52 = vld [vmem:[%s12747_s24 + $0x58] sm:$0xff]   ;;  %v8747_v54 = vld [vmem:[%s12747_s24 + $0x88] sm:$0xff]   ;;  %v8748_v57 = vld [vmem:[%s12747_s24 + $0x90] sm:$0xff]  }
 0x317   : > { %8254 = vmatprep.subr.bf16.mxu1 %v8755_v43  ;;  %v8758_v58 = vld [vmem:[%s12747_s24 + $0x60] sm:$0xff]   ;;  %v8759_v62 = vld [vmem:[%s12747_s24 + $0x68] sm:$0xff]   ;;  %v8749_v0 = vld [vmem:[%s12747_s24 + $0x98] sm:$0xff]   ;;  %p9387_p13 = pneg %p9386_p5 }
 0x318   : > { %8223 = vmatpush3.bf16.msra.mxu0 %v8739_v34  ;;  %v8760_v1 = vld [vmem:[%s12747_s24 + $0x70] sm:$0xff]   ;;  %v8750_v4 = vld [vmem:[%s12747_s24 + $0xa0] sm:$0xff]   ;;  %v8761_v7 = vld [vmem:[%s12747_s24 + $0x78] sm:$0xff]  }
 0x319   : > { %8224 = vmatprep.subr.bf16.mxu0 %v8740_v35  ;;  %v8751_v9 = vld [vmem:[%s12747_s24 + $0xa8] sm:$0xff]   ;;  %v8762_v11 = vld [vmem:[%s12747_s24 + $0xc0] sm:$0xff]   ;;  %v8752_v15 = vld [vmem:[%s12747_s24 + $0xb0] sm:$0xff]  }
 0x31a   : > { %8255 = vmatpush3.bf16.msra.mxu1 %v8755_v43  ;;  %v8763_v17 = vld [vmem:[%s12747_s24 + $0xc8] sm:$0xff]   ;;  %v8753_v18 = vld [vmem:[%s12747_s24 + $0xb8] sm:$0xff]   ;;  %v8764_v19 = vld [vmem:[%s12747_s24 + $0xd0] sm:$0xff]  }
 0x31b   : > { %8256 = vmatprep.subr.bf16.mxu1 %v8756_v48  ;;  %v8765_v14 = vld [vmem:[%s12747_s24 + $0xd8] sm:$0xff]   ;;  %v8766_v21 = vld [vmem:[%s12747_s24 + $0xe0] sm:$0xff]   ;;  %v8767_v24 = vld [vmem:[%s12747_s24 + $0xe8] sm:$0xff]  }
 0x31c   : > { %8225 = vmatpush3.bf16.msra.mxu0 %v8740_v35  ;;  %v3419_v22 = vld [vmem:[#allocation2 + $0x100] sm:$0xff]  ;;  %v8768_v26 = vld [vmem:[%s12747_s24 + $0xf0] sm:$0xff]   ;;  %v3420_v27 = vld [vmem:[#allocation2 + $0x108] sm:$0xff] }
 0x31d   : > { %8226 = vmatprep.subr.bf16.mxu0 %v8741_v36  ;;  %v3847_v23 = vsel %vm3451_vm1, %v3419_v22, 0  ;;  %v3850_v28 = vsel %vm3451_vm1, %v3420_v27, 0  ;;  %v8769_v29 = vld [vmem:[%s12747_s24 + $0xf8] sm:$0xff]   ;;  %v3429_v30 = vld [vmem:[#allocation2 + $0x150] sm:$0xff]  ;;  %v3395_v33 = vld [vmem:[#allocation2 + $0x40] sm:$0xff] }
 0x31e   : > { %8257 = vmatpush3.bf16.msra.mxu1 %v8756_v48  ;;  %v3421_v32 = vld [vmem:[#allocation2 + $0x110] sm:$0xff]  ;;  %v3430_v35 = vld [vmem:[#allocation2 + $0x158] sm:$0xff]  ;;  %v3396_v38 = vld [vmem:[#allocation2 + $0x48] sm:$0xff] }
 0x31f   : > { %8258 = vmatprep.subr.bf16.mxu1 %v8757_v52  ;;  %v3853_v34 = vsel %vm3451_vm1, %v3421_v32, 0  ;;  %v3398_v43 = vld [vmem:[#allocation2 + $0x58] sm:$0xff]  ;;  %v3391_v49 = vld [vmem:[#allocation2 + $0x20] sm:$0xff]  ;;  %v3392_v55 = vld [vmem:[#allocation2 + $0x28] sm:$0xff] }
 0x320   : > { %8227 = vmatpush3.bf16.msra.mxu0 %v8741_v36  ;;  %v3387_v36 = vld [vmem:[#allocation2] sm:$0xff]  ;;  %v3422_v46 = vld [vmem:[#allocation2 + $0x118] sm:$0xff]  ;;  %v3489_v50 = vsel %vm3451_vm1, %v3391_v49, 0  ;;  %v3492_v56 = vsel %vm3451_vm1, %v3392_v55, 0  ;;  %v3401_v59 = vld [vmem:[#allocation2 + $0x70] sm:$0xff] }
 0x321   : > { %8228 = vmatprep.subr.bf16.mxu0 %v8742_v40  ;;  %v3477_v37 = vsel %vm3451_vm1, %v3387_v36, 0  ;;  %v3856_v48 = vsel %vm3451_vm1, %v3422_v46, 0  ;;  %v3394_v3 = vld [vmem:[#allocation2 + $0x38] sm:$0xff]  ;;  %v3403_v12 = vld [vmem:[#allocation2 + $0x80] sm:$0xff] }
 0x322   : > { %8259 = vmatpush3.bf16.msra.mxu1 %v8757_v52  ;;  %v3400_v52 = vld [vmem:[#allocation2 + $0x68] sm:$0xff]  ;;  %v3434_v5 = vld [vmem:[#allocation2 + $0x178] sm:$0xff] }
 0x323   : > { %8260 = vmatprep.subr.bf16.mxu1 %v8758_v58  ;;  %v3426_v6 = vld [vmem:[#allocation2 + $0x138] sm:$0xff] }
 0x324   : > { %8229 = vmatpush3.bf16.msra.mxu0 %v8742_v40  ;;  %v3414_v36 = vld [vmem:[#allocation2 + $0xd8] sm:$0xff] }
 0x325   : > { %8230 = vmatprep.subr.bf16.mxu0 %v8743_v31 }
 0x326   : > { %8261 = vmatpush3.bf16.msra.mxu1 %v8758_v58  ;;  %v3424_v58 = vld [vmem:[#allocation2 + $0x128] sm:$0xff] }
 0x327   : > { %8262 = vmatprep.subr.bf16.mxu1 %v8759_v62  ;;  %v3862_v60 = vsel %vm3451_vm1, %v3424_v58, 0 }
 0x328   : > { %8231 = vmatpush3.bf16.msra.mxu0 %v8743_v31  ;;  %v3397_v31 = vld [vmem:[#allocation2 + $0x50] sm:$0xff] }
 0x329   : > { %8232 = vmatprep.subr.bf16.mxu0 %v8744_v41 }
 0x32a   : > { %8263 = vmatpush3.bf16.msra.mxu1 %v8759_v62 }
 0x32b   : > { %8264 = vmatprep.subr.bf16.mxu1 %v8760_v1 }
 0x32c   : > { %8233 = vmatpush3.bf16.msra.mxu0 %v8744_v41  ;;  %v3389_v41 = vld [vmem:[#allocation2 + $0x10] sm:$0xff] }
 0x32d   : > { %8234 = vmatprep.subr.bf16.mxu0 %v8745_v44  ;;  %v3483_v42 = vsel %vm3451_vm1, %v3389_v41, 0 }
 0x32e   : > { %8265 = vmatpush3.bf16.msra.mxu1 %v8760_v1  ;;  %v3402_v1 = vld [vmem:[#allocation2 + $0x78] sm:$0xff] }
 0x32f   : > { %8266 = vmatprep.subr.bf16.mxu1 %v8761_v7 }
 0x330   : > { %8235 = vmatpush3.bf16.msra.mxu0 %v8745_v44  ;;  %v3390_v44 = vld [vmem:[#allocation2 + $0x18] sm:$0xff] }
 0x331   : > { %8284 = vmatprep.subr.bf16.mxu0 %v8746_v47  ;;  %v3486_v45 = vsel %vm3451_vm1, %v3390_v44, 0  ;;  %v3406_v44 = vld [vmem:[#allocation2 + $0x98] sm:$0xff] }
 0x332   : > { %8267 = vmatpush3.bf16.msra.mxu1 %v8761_v7  ;;  %v3411_v7 = vld [vmem:[#allocation2 + $0xc0] sm:$0xff]  ;;  %v3671_v49 = vsel %vm3451_vm1, %v3406_v44, 0 }
 0x333   : > { %8237 = vmatmul.mubr.bf16.vlgmr.msra.gmra.mrb[0].mxu0 %v10590_v51  ;;  %8316 = vmatprep.subr.bf16.mxu1 %v8762_v11 }
 0x334   : > { %8285 = vmatpush3.bf16.msra.mxu0 %v8746_v47  ;;  %8240 = vmatprep.mubr.bf16.mxu0 %v10595_v53  ;;  %v3399_v47 = vld [vmem:[#allocation2 + $0x60] sm:$0xff] }
 0x335   : > { %8286 = vmatprep.subr.bf16.mxu0 %v8747_v54  ;;  %8269 = vmatmul.mubr.bf16.vlgmr.msra.gmra.mrb[0].mxu1 %v10590_v51 }
 0x336   : > { %8272 = vmatprep.mubr.bf16.mxu1 %v10595_v53  ;;  %8317 = vmatpush3.bf16.msra.mxu1 %v8762_v11 }
 0x337   : > { %8318 = vmatprep.subr.bf16.mxu1 %v8763_v17 }
 0x338   : > { %8287 = vmatpush3.bf16.msra.mxu0 %v8747_v54 }
 0x339   : > { %8288 = vmatprep.subr.bf16.mxu0 %v8748_v57 }
 0x33a   : > { %8319 = vmatpush3.bf16.msra.mxu1 %v8763_v17  ;;  %v3662_v17 = vsel %vm3451_vm1, %v3403_v12, 0 }
 0x33b   : > { %8241 = vmatmul.mubr.bf16.gmra.mrb[4].mxu0 %v10612_v61  ;;  %8320 = vmatprep.subr.bf16.mxu1 %v8764_v19 }
 0x33c   : > { %8289 = vmatpush3.bf16.msra.mxu0 %v8748_v57  ;;  %8244 = vmatprep.mubr.bf16.mxu0 %v10617_v63  ;;  %v3432_v57 = vld [vmem:[#allocation2 + $0x168] sm:$0xff] }
 0x33d   : > { %8290 = vmatprep.subr.bf16.mxu0 %v8749_v0  ;;  %8273 = vmatmul.mubr.bf16.gmra.mrb[4].mxu1 %v10612_v61 }
 0x33e   : > { %8276 = vmatprep.mubr.bf16.mxu1 %v10617_v63  ;;  %8321 = vmatpush3.bf16.msra.mxu1 %v8764_v19 }
 0x33f   : > { %8322 = vmatprep.subr.bf16.mxu1 %v8765_v14 }
 0x340   : > { %8291 = vmatpush3.bf16.msra.mxu0 %v8749_v0  ;;  %v3425_v0 = vld [vmem:[#allocation2 + $0x130] sm:$0xff] }
 0x341   : > { %8292 = vmatprep.subr.bf16.mxu0 %v8750_v4  ;;  %v3865_v2 = vsel %vm3451_vm1, %v3425_v0, 0 }
 0x342   : > { %8323 = vmatpush3.bf16.msra.mxu1 %v8765_v14 }
 0x343   : > { %8245 = vmatmul.mubr.bf16.gmra.mrb[8].mxu0 %v10637_v8  ;;  %8324 = vmatprep.subr.bf16.mxu1 %v8766_v21 }
 0x344   : > { %8293 = vmatpush3.bf16.msra.mxu0 %v8750_v4  ;;  %8248 = vmatprep.mubr.bf16.mxu0 %v10642_v10  ;;  %v3498_v4 = vsel %vm3451_vm1, %v3394_v3, 0 }
 0x345   : > { %8294 = vmatprep.subr.bf16.mxu0 %v8751_v9  ;;  %8277 = vmatmul.mubr.bf16.gmra.mrb[8].mxu1 %v10637_v8 }
 0x346   : > { %8280 = vmatprep.mubr.bf16.mxu1 %v10642_v10  ;;  %8325 = vmatpush3.bf16.msra.mxu1 %v8766_v21  ;;  %v3404_v21 = vld [vmem:[#allocation2 + $0x88] sm:$0xff] }
 0x347   : > { %8326 = vmatprep.subr.bf16.mxu1 %v8767_v24 }
 0x348   : > { %8295 = vmatpush3.bf16.msra.mxu0 %v8751_v9 }
 0x349   : > { %8296 = vmatprep.subr.bf16.mxu0 %v8752_v15 }
 0x34a   : > { %8327 = vmatpush3.bf16.msra.mxu1 %v8767_v24 }
 0x34b   : > { %8249 = vmatmul.mubr.bf16.gmra.mrb[12].mxu0 %v10654_v16  ;;  %8328 = vmatprep.subr.bf16.mxu1 %v8768_v26 }
 0x34c   : > { %8297 = vmatpush3.bf16.msra.mxu0 %v8752_v15  ;;  %8300 = vmatprep.mubr.bf16.mxu0 %v10558_v39 }
 0x34d   : > { %8298 = vmatprep.subr.bf16.mxu0 %v8753_v18  ;;  %8281 = vmatmul.mubr.bf16.gmra.mrb[12].mxu1 %v10654_v16 }
 0x34e   : > { %8329 = vmatpush3.bf16.msra.mxu1 %v8768_v26  ;;  %8332 = vmatprep.mubr.bf16.mxu1 %v10558_v39  ;;  %v3388_v39 = vld [vmem:[#allocation2 + $0x8] sm:$0xff]  ;;  %v3413_v26 = vld [vmem:[#allocation2 + $0xd0] sm:$0xff] }
 0x34f   : > { %8330 = vmatprep.subr.bf16.mxu1 %v8769_v29  ;;  %v3480_v40 = vsel %vm3451_vm1, %v3388_v39, 0 }
 0x350   : > { %8299 = vmatpush3.bf16.msra.mxu0 %v8753_v18  ;;  %v3412_v18 = vld [vmem:[#allocation2 + $0xc8] sm:$0xff] }
 0x351   : > { %8492 = vmatprep.subr.msk.bf16.mxu0 %vm3451_vm1, %v3427_v20 }
 0x352   : > { %8331 = vmatpush3.bf16.msra.mxu1 %v8769_v29 }
 0x353   : > { %8301 = vmatmul.mubr.bf16.vlgmr.msra.gmra.mrb[16].mxu0 %v10590_v51  ;;  %8476 = vmatprep.subr.msk.bf16.mxu1 %vm3451_vm1, %v3395_v33 }
 0x354   : > { %8304 = vmatprep.mubr.bf16.mxu0 %v10595_v53 }
 0x355   : > { %8333 = vmatmul.mubr.bf16.vlgmr.msra.gmra.mrb[16].mxu1 %v10590_v51  ;;  %v3431_v51 = vld [vmem:[#allocation2 + $0x160] sm:$0xff] }
 0x356   : > { %8336 = vmatprep.mubr.bf16.mxu1 %v10595_v53  ;;  %v3423_v53 = vld [vmem:[#allocation2 + $0x120] sm:$0xff] }
 0x357   : > { %v3859_v54 = vsel %vm3451_vm1, %v3423_v53, 0 }
 0x359   : > { %7477 = vmatpush3.bf16.xpose.msra.mxu0 %v3847_v23 }
 0x35a   : > { %8493 = vmatprep.subr.msk.bf16.mxu0 %vm3451_vm1, %v3428_v25  ;;  %v3665_v25 = vsel %vm3451_vm1, %v3404_v21, 0 }
 0x35b   : > { %8305 = vmatmul.mubr.bf16.gmra.mrb[20].mxu0 %v10612_v61  ;;  %7413 = vmatpush3.bf16.xpose.msra.mxu1 %v3477_v37 }
 0x35c   : > { %8308 = vmatprep.mubr.bf16.mxu0 %v10617_v63  ;;  %8477 = vmatprep.subr.msk.bf16.mxu1 %vm3451_vm1, %v3396_v38 }
 0x35d   : > { %8337 = vmatmul.mubr.bf16.gmra.mrb[20].mxu1 %v10612_v61  ;;  %v3393_v61 = vld [vmem:[#allocation2 + $0x30] sm:$0xff] }
 0x35e   : > { %8340 = vmatprep.mubr.bf16.mxu1 %v10617_v63  ;;  %v3495_v62 = vsel %vm3451_vm1, %v3393_v61, 0  ;;  %v3433_v63 = vld [vmem:[#allocation2 + $0x170] sm:$0xff] }
 0x361   : > { %7479 = vmatpush3.bf16.xpose.msra.mxu0 %v3850_v28 }
 0x362   : > { %8494 = vmatprep.subr.msk.bf16.mxu0 %vm3451_vm1, %v3429_v30  ;;  %v3405_v30 = vld [vmem:[#allocation2 + $0x90] sm:$0xff] }
 0x363   : > { %8309 = vmatmul.mubr.bf16.gmra.mrb[24].mxu0 %v10637_v8  ;;  %7415 = vmatpush3.bf16.xpose.msra.mxu1 %v3480_v40 }
 0x364   : > { %8312 = vmatprep.mubr.bf16.mxu0 %v10642_v10  ;;  %8478 = vmatprep.subr.msk.bf16.mxu1 %vm3451_vm1, %v3397_v31 }
 0x365   : > { %8341 = vmatmul.mubr.bf16.gmra.mrb[24].mxu1 %v10637_v8  ;;  %v3868_v8 = vsel %vm3451_vm1, %v3426_v6, 0 }
 0x366   : > { %8344 = vmatprep.mubr.bf16.mxu1 %v10642_v10 }
 0x369   : > { %7481 = vmatpush3.bf16.xpose.msra.mxu0 %v3853_v34 }
 0x36a   : > { %8495 = vmatprep.subr.msk.bf16.mxu0 %vm3451_vm1, %v3430_v35  ;;  %v3668_v35 = vsel %vm3451_vm1, %v3405_v30, 0 }
 0x36b   : > { %8313 = vmatmul.mubr.bf16.gmra.mrb[28].mxu0 %v10654_v16  ;;  %7417 = vmatpush3.bf16.xpose.msra.mxu1 %v3483_v42 }
 0x36c   : > { %8479 = vmatprep.subr.msk.bf16.mxu1 %vm3451_vm1, %v3398_v43 }
 0x36d   : > { %8345 = vmatmul.mubr.bf16.gmra.mrb[28].mxu1 %v10654_v16 }
 0x371   : > { %7483 = vmatpush3.bf16.xpose.msra.mxu0 %v3856_v48 }
 0x372   : > { %8496 = vmatprep.subr.msk.bf16.mxu0 %vm3451_vm1, %v3431_v51 }
 0x373   : > { %7419 = vmatpush3.bf16.xpose.msra.mxu1 %v3486_v45 }
 0x374   : > { %8480 = vmatprep.subr.msk.bf16.mxu1 %vm3451_vm1, %v3399_v47 }
 0x379   : > { %7485 = vmatpush3.bf16.xpose.msra.mxu0 %v3859_v54 }
 0x37a   : > { %8497 = vmatprep.subr.msk.bf16.mxu0 %vm3451_vm1, %v3432_v57 }
 0x37b   : > { %7421 = vmatpush3.bf16.xpose.msra.mxu1 %v3489_v50  ;;  %v3415_v50 = vld [vmem:[#allocation2 + $0xe0] sm:$0xff] }
 0x37c   : > { %8481 = vmatprep.subr.msk.bf16.mxu1 %vm3451_vm1, %v3400_v52 }
 0x381   : > { %7487 = vmatpush3.bf16.xpose.msra.mxu0 %v3862_v60 }
 0x382   : > { %8498 = vmatprep.subr.msk.bf16.mxu0 %vm3451_vm1, %v3433_v63 }
 0x383   : > { %7423 = vmatpush3.bf16.xpose.msra.mxu1 %v3492_v56 }
 0x384   : > { %8482 = vmatprep.subr.msk.bf16.mxu1 %vm3451_vm1, %v3401_v59  ;;  %v3407_v59 = vld [vmem:[#allocation2 + $0xa0] sm:$0xff] }
 0x385   : > { %v3674_v0 = vsel %vm3451_vm1, %v3407_v59, 0  ;;  %v3444_v59 = vld [vmem:[#allocation2 + $0x1c8] sm:$0xff] }
 0x389   : > { %7489 = vmatpush3.bf16.xpose.msra.mxu0 %v3865_v2 }
 0x38a   : > { %8499 = vmatprep.subr.msk.bf16.mxu0 %vm3451_vm1, %v3434_v5 }
 0x38b   : > { %7425 = vmatpush3.bf16.xpose.msra.mxu1 %v3495_v62 }
 0x38c   : > { %8483 = vmatprep.subr.msk.bf16.mxu1 %vm3451_vm1, %v3402_v1  ;;  %v3416_v1 = vld [vmem:[#allocation2 + $0xe8] sm:$0xff] }
 0x391   : > { %7491 = vmatpush3.bf16.xpose.msra.mxu0 %v3868_v8 }
 0x393   : > { %7427 = vmatpush3.bf16.xpose.msra.mxu1 %v3498_v4 }
 0x394   : > { %8484 = vmatprep.subr.msk.bf16.mxu1 %vm3451_vm1, %v3411_v7 }
 0x406   : > { %v8238_v9 = vpop.f32.mrb[0].mxu0 }
 0x407   : > { %v2857_v10 = vpop.f32.mrb[1].mxu0 }
 0x408   : > { %v8239_v11 = vpop.f32.mrb[2].mxu0  ;;  %v8270_v37 = vpop.f32.mrb[0].mxu1 }
 0x409   : > { %v3356_v13 = vpack.c.bf16 %v8239_v11, %v8238_v9  ;;  %v2860_v15 = vpop.f32.mrb[3].mxu0  ;;  %v3002_v38 = vpop.f32.mrb[1].mxu1  ;;  %v3408_v9 = vld [vmem:[#allocation2 + $0xa8] sm:$0xff] }
 0x40a   : > { %v3355_v16 = vpack.c.bf16 %v2860_v15, %v2857_v10  ;;  %v8271_v40 = vpop.f32.mrb[2].mxu1 }
 0x40b   : > { %v10752_v41 = vpack.c.bf16 %v8271_v40, %v8270_v37  ;;  %v3005_v42 = vpop.f32.mrb[3].mxu1  ;;  %v3410_v40 = vld [vmem:[#allocation2 + $0xb8] sm:$0xff] }
 0x40c   : > { %7428 = vmatprep.mubr.msk.bf16.mxu1 %vm3451_vm1, %v3355_v16  ;;  %v10754_v45 = vpack.c.bf16 %v3005_v42, %v3002_v38 }
 0x40d   : > { %7429 = vmatmul.mubr.msk.bf16.vlgmr.msra.gmra.mrb[32].mxu1 %vm3451_vm1, %v3355_v16  ;;  %v3677_v16 = vsel %vm3451_vm1, %v3408_v9, 0 }
 0x40e   : > { %7445 = vmatpush3.bf16.xpose.msra.mxu1 %v3662_v17  ;;  %7430 = vmatprep.mubr.msk.bf16.mxu1 %vm3451_vm1, %v3356_v13  ;;  %v8242_v19 = vpop.f32.mrb[4].mxu0  ;;  %v3417_v17 = vld [vmem:[#allocation2 + $0xf0] sm:$0xff] }
 0x40f   : > { %v2873_v20 = vpop.f32.mrb[5].mxu0  ;;  %8485 = vmatprep.subr.msk.bf16.mxu1 %vm3451_vm1, %v3412_v18 }
 0x410   : > { %v8243_v14 = vpop.f32.mrb[6].mxu0  ;;  %v8274_v51 = vpop.f32.mrb[4].mxu1 }
 0x411   : > { %v3358_v22 = vpack.c.bf16 %v8243_v14, %v8242_v19  ;;  %v2876_v23 = vpop.f32.mrb[7].mxu0  ;;  %v3018_v52 = vpop.f32.mrb[5].mxu1 }
 0x412   : > { %v3357_v24 = vpack.c.bf16 %v2876_v23, %v2873_v20  ;;  %v8275_v54 = vpop.f32.mrb[6].mxu1 }
 0x413   : > { %v10764_v56 = vpack.c.bf16 %v8275_v54, %v8274_v51  ;;  %v3021_v57 = vpop.f32.mrb[7].mxu1 }
 0x414   : > { %v10766_v60 = vpack.c.bf16 %v3021_v57, %v3018_v52  ;;  %v3435_v57 = vld [vmem:[#allocation2 + $0x180] sm:$0xff] }
 0x415   : > { %7431 = vmatmul.mubr.msk.bf16.gmra.mrb[36].mxu1 %vm3451_vm1, %v3356_v13 }
 0x416   : > { %7447 = vmatpush3.bf16.xpose.msra.mxu1 %v3665_v25  ;;  %7432 = vmatprep.mubr.msk.bf16.mxu1 %vm3451_vm1, %v3357_v24  ;;  %v8246_v27 = vpop.f32.mrb[8].mxu0 }
 0x417   : > { %v2889_v28 = vpop.f32.mrb[9].mxu0  ;;  %8486 = vmatprep.subr.msk.bf16.mxu1 %vm3451_vm1, %v3413_v26 }
 0x418   : > { %v8247_v29 = vpop.f32.mrb[10].mxu0  ;;  %v8278_v2 = vpop.f32.mrb[8].mxu1 }
 0x419   : > { %v10746_v32 = vpack.c.bf16 %v8247_v29, %v8246_v27  ;;  %v2892_v33 = vpop.f32.mrb[11].mxu0  ;;  %v3034_v3 = vpop.f32.mrb[9].mxu1 }
 0x41a   : > { %v3359_v34 = vpack.c.bf16 %v2892_v33, %v2889_v28  ;;  %v8279_v5 = vpop.f32.mrb[10].mxu1 }
 0x41b   : > { %v10776_v7 = vpack.c.bf16 %v8279_v5, %v8278_v2  ;;  %v3037_v8 = vpop.f32.mrb[11].mxu1  ;;  %v3436_v2 = vld [vmem:[#allocation2 + $0x188] sm:$0xff] }
 0x41c   : > { %v10778_v11 = vpack.c.bf16 %v3037_v8, %v3034_v3 }
 0x41d   : > { %7433 = vmatmul.mubr.msk.bf16.gmra.mrb[40].mxu1 %vm3451_vm1, %v3357_v24  ;;  %v3409_v24 = vld [vmem:[#allocation2 + $0xb0] sm:$0xff] }
 0x41e   : > { %7449 = vmatpush3.bf16.xpose.msra.mxu1 %v3668_v35  ;;  %7434 = vmatprep.mubr.msk.bf16.mxu1 %vm3451_vm1, %v3358_v22  ;;  %v8250_v39 = vpop.f32.mrb[12].mxu0  ;;  %v3680_v30 = vsel %vm3451_vm1, %v3409_v24, 0 }
 0x41f   : > { %v2905_v31 = vpop.f32.mrb[13].mxu0  ;;  %8487 = vmatprep.subr.msk.bf16.mxu1 %vm3451_vm1, %v3414_v36 }
 0x420   : > { %v8251_v43 = vpop.f32.mrb[14].mxu0  ;;  %v8282_v18 = vpop.f32.mrb[12].mxu1 }
 0x421   : > { %v10756_v46 = vpack.c.bf16 %v8251_v43, %v8250_v39  ;;  %v2908_v47 = vpop.f32.mrb[15].mxu0  ;;  %v3050_v19 = vpop.f32.mrb[13].mxu1 }
 0x422   : > { %v10758_v48 = vpack.c.bf16 %v2908_v47, %v2905_v31  ;;  %v8283_v14 = vpop.f32.mrb[14].mxu1 }
 0x423   : > { %v3053_v23 = vpop.f32.mrb[15].mxu1 }
 0x424   : > { %v10790_v26 = vpack.c.bf16 %v3053_v23, %v3050_v19  ;;  %v3448_v19 = vld [vmem:[#allocation2 + $0x1e8] sm:$0xff]  ;;  %v3450_v23 = vld [vmem:[#allocation2 + $0x1f8] sm:$0xff] }
 0x425   : > { %7435 = vmatmul.mubr.msk.bf16.gmra.mrb[44].mxu1 %vm3451_vm1, %v3358_v22  ;;  %v10788_v22 = vpack.c.bf16 %v8283_v14, %v8282_v18  ;;  %v3449_v14 = vld [vmem:[#allocation2 + $0x1f0] sm:$0xff] }
 0x426   : > { %7451 = vmatpush3.bf16.xpose.msra.mxu1 %v3671_v49  ;;  %v8302_v53 = vpop.f32.mrb[16].mxu0  ;;  %7436 = vmatprep.mubr.msk.bf16.mxu1 %vm3451_vm1, %v3359_v34  ;;  %v3443_v49 = vld [vmem:[#allocation2 + $0x1c0] sm:$0xff] }
 0x427   : > { %v3147_v55 = vpop.f32.mrb[17].mxu0  ;;  %8488 = vmatprep.subr.msk.bf16.mxu1 %vm3451_vm1, %v3415_v50 }
 0x428   : > { %v8303_v58 = vpop.f32.mrb[18].mxu0  ;;  %v8334_v33 = vpop.f32.mrb[16].mxu1 }
 0x429   : > { %v3372_v61 = vpack.c.bf16 %v8303_v58, %v8302_v53  ;;  %v3150_v62 = vpop.f32.mrb[19].mxu0 }
 0x42a   : > { %v3371_v63 = vpack.c.bf16 %v3150_v62, %v3147_v55 }
 0x42c   : > { %7492 = vmatprep.mubr.msk.bf16.mxu0 %vm3451_vm1, %v3371_v63 }
 0x42d   : > { %7437 = vmatmul.mubr.msk.bf16.gmra.mrb[48].mxu1 %vm3451_vm1, %v3359_v34  ;;  %7493 = vmatmul.mubr.msk.bf16.vlgmr.msra.gmra.mrb[32].mxu0 %vm3451_vm1, %v3371_v63  ;;  %v3292_v34 = vpop.f32.mrb[17].mxu1 }
 0x42e   : > { %7453 = vmatpush3.bf16.xpose.msra.mxu1 %v3674_v0  ;;  %7438 = vmatprep.mubr.msk.bf16.mxu1 %vm3451_vm1, %v10746_v32  ;;  %v8306_v4 = vpop.f32.mrb[20].mxu0  ;;  %v8335_v36 = vpop.f32.mrb[18].mxu1 }
 0x42f   : > { %7494 = vmatprep.mubr.msk.bf16.mxu0 %vm3451_vm1, %v3372_v61  ;;  %8489 = vmatprep.subr.msk.bf16.mxu1 %vm3451_vm1, %v3416_v1  ;;  %v3163_v6 = vpop.f32.mrb[21].mxu0  ;;  %v10800_v38 = vpack.c.bf16 %v8335_v36, %v8334_v33  ;;  %v3295_v39 = vpop.f32.mrb[19].mxu1 }
 0x430   : > { %v8307_v10 = vpop.f32.mrb[22].mxu0  ;;  %v10802_v42 = vpack.c.bf16 %v3295_v39, %v3292_v34  ;;  %v8338_v50 = vpop.f32.mrb[20].mxu1 }
 0x431   : > { %v3374_v12 = vpack.c.bf16 %v8307_v10, %v8306_v4  ;;  %v3166_v13 = vpop.f32.mrb[23].mxu0  ;;  %v3308_v51 = vpop.f32.mrb[21].mxu1  ;;  %v3445_v4 = vld [vmem:[#allocation2 + $0x1d0] sm:$0xff] }
 0x432   : > { %v3373_v15 = vpack.c.bf16 %v3166_v13, %v3163_v6  ;;  %v8339_v52 = vpop.f32.mrb[22].mxu1 }
 0x433   : > { %v10812_v53 = vpack.c.bf16 %v8339_v52, %v8338_v50  ;;  %v3311_v54 = vpop.f32.mrb[23].mxu1 }
 0x434   : > { %v10814_v55 = vpack.c.bf16 %v3311_v54, %v3308_v51 }
 0x435   : > { %7439 = vmatmul.mubr.msk.bf16.gmra.mrb[52].mxu1 %vm3451_vm1, %v10746_v32  ;;  %7495 = vmatmul.mubr.msk.bf16.gmra.mrb[36].mxu0 %vm3451_vm1, %v3372_v61  ;;  %v3418_v32 = vld [vmem:[#allocation2 + $0xf8] sm:$0xff] }
 0x436   : > { %7455 = vmatpush3.bf16.xpose.msra.mxu1 %v3677_v16  ;;  %7440 = vmatprep.mubr.msk.bf16.mxu1 %vm3451_vm1, %v10758_v48  ;;  %v8310_v20 = vpop.f32.mrb[24].mxu0 }
 0x437   : > { %8490 = vmatprep.subr.msk.bf16.mxu1 %vm3451_vm1, %v3417_v17  ;;  %7496 = vmatprep.mubr.msk.bf16.mxu0 %vm3451_vm1, %v3373_v15  ;;  %v3179_v21 = vpop.f32.mrb[25].mxu0  ;;  %v3439_v17 = vld [vmem:[#allocation2 + $0x1a0] sm:$0xff] }
 0x438   : > { %v8311_v25 = vpop.f32.mrb[26].mxu0  ;;  %v8342_v58 = vpop.f32.mrb[24].mxu1  ;;  %v4044_v18 = vsel %vm3451_vm1, %v3439_v17, 0 }
 0x439   : > { %v3376_v27 = vpack.c.bf16 %v8311_v25, %v8310_v20  ;;  %v3182_v28 = vpop.f32.mrb[27].mxu0  ;;  %v3324_v61 = vpop.f32.mrb[25].mxu1 }
 0x43a   : > { %v3375_v29 = vpack.c.bf16 %v3182_v28, %v3179_v21  ;;  %v8343_v62 = vpop.f32.mrb[26].mxu1 }
 0x43b   : > { %v10823_v63 = vpack.c.bf16 %v8343_v62, %v8342_v58  ;;  %v3327_v0 = vpop.f32.mrb[27].mxu1 }
 0x43c   : > { %v10826_v1 = vpack.c.bf16 %v3327_v0, %v3324_v61 }
 0x43d   : > { %7441 = vmatmul.mubr.msk.bf16.gmra.mrb[56].mxu1 %vm3451_vm1, %v10758_v48  ;;  %7497 = vmatmul.mubr.msk.bf16.gmra.mrb[40].mxu0 %vm3451_vm1, %v3373_v15  ;;  %v3683_v48 = vsel %vm3451_vm1, %v3410_v40, 0  ;;  %v3438_v15 = vld [vmem:[#allocation2 + $0x198] sm:$0xff] }
 0x43e   : > { %7457 = vmatpush3.bf16.xpose.msra.mxu1 %v3680_v30  ;;  %7442 = vmatprep.mubr.msk.bf16.mxu1 %vm3451_vm1, %v10756_v46  ;;  %v8314_v35 = vpop.f32.mrb[28].mxu0  ;;  %v4041_v16 = vsel %vm3451_vm1, %v3438_v15, 0 }
 0x43f   : > { %7498 = vmatprep.mubr.msk.bf16.mxu0 %vm3451_vm1, %v3374_v12  ;;  %8491 = vmatprep.subr.msk.bf16.mxu1 %vm3451_vm1, %v3418_v32  ;;  %v3195_v37 = vpop.f32.mrb[29].mxu0 }
 0x440   : > { %v8315_v31 = vpop.f32.mrb[30].mxu0  ;;  %v8346_v3 = vpop.f32.mrb[28].mxu1 }
 0x441   : > { %v3378_v43 = vpack.c.bf16 %v8315_v31, %v8314_v35  ;;  %v3198_v44 = vpop.f32.mrb[31].mxu0  ;;  %v3340_v5 = vpop.f32.mrb[29].mxu1 }
 0x442   : > { %v3377_v47 = vpack.c.bf16 %v3198_v44, %v3195_v37  ;;  %v8347_v6 = vpop.f32.mrb[30].mxu1 }
 0x443   : > { %v3386_v8 = vpack.c.bf16 %v8347_v6, %v8346_v3  ;;  %v3343_v9 = vpop.f32.mrb[31].mxu1 }
 0x444   : > { %v3385_v10 = vpack.c.bf16 %v3343_v9, %v3340_v5 }
 0x445   : > { %7443 = vmatmul.mubr.msk.bf16.gmra.mrb[60].mxu1 %vm3451_vm1, %v10756_v46  ;;  %7499 = vmatmul.mubr.msk.bf16.gmra.mrb[44].mxu0 %vm3451_vm1, %v3374_v12  ;;  %v4032_v46 = vsel %vm3451_vm1, %v3435_v57, 0  ;;  %v3437_v12 = vld [vmem:[#allocation2 + $0x190] sm:$0xff] }
 0x446   : > { %7459 = vmatpush3.bf16.xpose.msra.mxu1 %v3683_v48  ;;  %7460 = vmatprep.mubr.msk.bf16.mxu1 %vm3451_vm1, %v10754_v45  ;;  %v4038_v13 = vsel %vm3451_vm1, %v3437_v12, 0 }
 0x447   : > { %7500 = vmatprep.mubr.msk.bf16.mxu0 %vm3451_vm1, %v3375_v29  ;;  %8500 = vmatprep.subr.msk.bf16.mxu1 %vm3451_vm1, %v3443_v49 }
 0x44d   : > { %7461 = vmatmul.mubr.msk.bf16.vlgmr.msra.gmra.mrb[64].mxu1 %vm3451_vm1, %v10754_v45  ;;  %7501 = vmatmul.mubr.msk.bf16.gmra.mrb[48].mxu0 %vm3451_vm1, %v3375_v29  ;;  %v4035_v45 = vsel %vm3451_vm1, %v3436_v2, 0 }
 0x44e   : > { %7462 = vmatprep.mubr.msk.bf16.mxu1 %vm3451_vm1, %v10752_v41  ;;  %7502 = vmatprep.mubr.msk.bf16.mxu0 %vm3451_vm1, %v3376_v27 }
 0x44f   : > { %7509 = vmatpush3.bf16.xpose.msra.mxu1 %v4032_v46 }
 0x450   : > { %8501 = vmatprep.subr.msk.bf16.mxu1 %vm3451_vm1, %v3444_v59 }
 0x455   : > { %7463 = vmatmul.mubr.msk.bf16.gmra.mrb[68].mxu1 %vm3451_vm1, %v10752_v41  ;;  %7503 = vmatmul.mubr.msk.bf16.gmra.mrb[52].mxu0 %vm3451_vm1, %v3376_v27  ;;  %v3446_v41 = vld [vmem:[#allocation2 + $0x1d8] sm:$0xff] }
 0x456   : > { %7464 = vmatprep.mubr.msk.bf16.mxu1 %vm3451_vm1, %v10766_v60  ;;  %7504 = vmatprep.mubr.msk.bf16.mxu0 %vm3451_vm1, %v3377_v47 }
 0x457   : > { %7511 = vmatpush3.bf16.xpose.msra.mxu1 %v4035_v45 }
 0x458   : > { %8502 = vmatprep.subr.msk.bf16.mxu1 %vm3451_vm1, %v3445_v4 }
 0x45d   : > { %7465 = vmatmul.mubr.msk.bf16.gmra.mrb[72].mxu1 %vm3451_vm1, %v10766_v60  ;;  %7505 = vmatmul.mubr.msk.bf16.gmra.mrb[56].mxu0 %vm3451_vm1, %v3377_v47  ;;  %v3447_v60 = vld [vmem:[#allocation2 + $0x1e0] sm:$0xff] }
 0x45e   : > { %7466 = vmatprep.mubr.msk.bf16.mxu1 %vm3451_vm1, %v10764_v56  ;;  %7506 = vmatprep.mubr.msk.bf16.mxu0 %vm3451_vm1, %v3378_v43 }
 0x45f   : > { %7513 = vmatpush3.bf16.xpose.msra.mxu1 %v4038_v13 }
 0x460   : > { %8503 = vmatprep.subr.msk.bf16.mxu1 %vm3451_vm1, %v3446_v41 }
 0x465   : > { %7467 = vmatmul.mubr.msk.bf16.gmra.mrb[76].mxu1 %vm3451_vm1, %v10764_v56  ;;  %7507 = vmatmul.mubr.msk.bf16.gmra.mrb[60].mxu0 %vm3451_vm1, %v3378_v43  ;;  %v3440_v56 = vld [vmem:[#allocation2 + $0x1a8] sm:$0xff] }
 0x466   : > { %7468 = vmatprep.mubr.msk.bf16.mxu1 %vm3451_vm1, %v10778_v11  ;;  %v4047_v20 = vsel %vm3451_vm1, %v3440_v56, 0 }
 0x467   : > { %7515 = vmatpush3.bf16.xpose.msra.mxu1 %v4041_v16 }
 0x468   : > { %8504 = vmatprep.subr.msk.bf16.mxu1 %vm3451_vm1, %v3447_v60 }
 0x46d   : > { %7469 = vmatmul.mubr.msk.bf16.gmra.mrb[80].mxu1 %vm3451_vm1, %v10778_v11  ;;  %v3441_v11 = vld [vmem:[#allocation2 + $0x1b0] sm:$0xff] }
 0x46e   : > { %7470 = vmatprep.mubr.msk.bf16.mxu1 %vm3451_vm1, %v10776_v7  ;;  %v4050_v21 = vsel %vm3451_vm1, %v3441_v11, 0 }
 0x46f   : > { %7517 = vmatpush3.bf16.xpose.msra.mxu1 %v4044_v18 }
 0x470   : > { %8505 = vmatprep.subr.msk.bf16.mxu1 %vm3451_vm1, %v3448_v19 }
 0x475   : > { %7471 = vmatmul.mubr.msk.bf16.gmra.mrb[84].mxu1 %vm3451_vm1, %v10776_v7  ;;  %v3442_v7 = vld [vmem:[#allocation2 + $0x1b8] sm:$0xff] }
 0x476   : > { %7472 = vmatprep.mubr.msk.bf16.mxu1 %vm3451_vm1, %v10790_v26  ;;  %v4053_v24 = vsel %vm3451_vm1, %v3442_v7, 0 }
 0x477   : > { %7519 = vmatpush3.bf16.xpose.msra.mxu1 %v4047_v20 }
 0x478   : > { %8506 = vmatprep.subr.msk.bf16.mxu1 %vm3451_vm1, %v3449_v14 }
 0x47d   : > { %7473 = vmatmul.mubr.msk.bf16.gmra.mrb[88].mxu1 %vm3451_vm1, %v10790_v26 }
 0x47e   : > { %7474 = vmatprep.mubr.msk.bf16.mxu1 %vm3451_vm1, %v10788_v22 }
 0x47f   : > { %7521 = vmatpush3.bf16.xpose.msra.mxu1 %v4050_v21 }
 0x480   : > { %8507 = vmatprep.subr.msk.bf16.mxu1 %vm3451_vm1, %v3450_v23 }
 0x485   : > { %7475 = vmatmul.mubr.msk.bf16.gmra.mrb[92].mxu1 %vm3451_vm1, %v10788_v22 }
 0x486   : > { %7524 = vmatprep.mubr.msk.bf16.mxu1 %vm3451_vm1, %v10802_v42 }
 0x487   : > { %7523 = vmatpush3.bf16.xpose.msra.mxu1 %v4053_v24 }
 0x48e   : > { %7525 = vmatmul.mubr.msk.bf16.vlgmr.msra.gmra.mrb[96].mxu1 %vm3451_vm1, %v10802_v42 }
 0x48f   : > { %7526 = vmatprep.mubr.msk.bf16.mxu1 %vm3451_vm1, %v10800_v38 }
 0x496   : > { %7527 = vmatmul.mubr.msk.bf16.gmra.mrb[100].mxu1 %vm3451_vm1, %v10800_v38 }
 0x497   : > { %7528 = vmatprep.mubr.msk.bf16.mxu1 %vm3451_vm1, %v10814_v55 }
 0x49e   : > { %7529 = vmatmul.mubr.msk.bf16.gmra.mrb[104].mxu1 %vm3451_vm1, %v10814_v55 }
 0x49f   : > { %7530 = vmatprep.mubr.msk.bf16.mxu1 %vm3451_vm1, %v10812_v53 }
 0x4a6   : > { %7531 = vmatmul.mubr.msk.bf16.gmra.mrb[108].mxu1 %vm3451_vm1, %v10812_v53 }
 0x4a7   : > { %7532 = vmatprep.mubr.msk.bf16.mxu1 %vm3451_vm1, %v10826_v1 }
 0x4ae   : > { %7533 = vmatmul.mubr.msk.bf16.gmra.mrb[112].mxu1 %vm3451_vm1, %v10826_v1 }
 0x4af   : > { %7534 = vmatprep.mubr.msk.bf16.mxu1 %vm3451_vm1, %v10823_v63 }
 0x4b6   : > { %7535 = vmatmul.mubr.msk.bf16.gmra.mrb[116].mxu1 %vm3451_vm1, %v10823_v63 }
 0x4b7   : > { %7536 = vmatprep.mubr.msk.bf16.mxu1 %vm3451_vm1, %v3385_v10 }
 0x4be   : > { %7537 = vmatmul.mubr.msk.bf16.gmra.mrb[120].mxu1 %vm3451_vm1, %v3385_v10 }
 0x4bf   : > { %7538 = vmatprep.mubr.msk.bf16.mxu1 %vm3451_vm1, %v3386_v8 }
 0x4c6   : > { %7539 = vmatmul.mubr.msk.bf16.gmra.mrb[124].mxu1 %vm3451_vm1, %v3386_v8 }
 0x4e0   : > { %v10900_v22 = vpop.f32.mrb[32].mxu1 }
 0x4e1   : > { %v10902_v25 = vpop.f32.mrb[33].mxu1 }
 0x4e2   : > { %v10904_v26 = vpop.f32.mrb[34].mxu1  ;;  %v4192_v27 = vmax.f32 %v10900_v22, %v10902_v25 }
 0x4e3   : > { %v10908_v28 = vpop.f32.mrb[35].mxu1 }
 0x4e4   : > { %4193 = vmax.xlane.f32.xlu0 %v4192_v27  ;;  %v4195_v29 = vmax.f32 %v10904_v26, %v10908_v28 }
 0x4e8   : > { %4196 = vmax.xlane.f32.xlu0 %v4195_v29  ;;  %v10912_v30 = vpop.f32.mrb[36].mxu1 }
 0x4e9   : > { %v10914_v32 = vpop.f32.mrb[37].mxu1 }
 0x4ea   : > { %v10916_v33 = vpop.f32.mrb[38].mxu1  ;;  %v4198_v34 = vmax.f32 %v10912_v30, %v10914_v32 }
 0x4eb   : > { %v10920_v35 = vpop.f32.mrb[39].mxu1 }
 0x4ec   : > { %4199 = vmax.xlane.f32.xlu1 %v4198_v34  ;;  %v4201_v36 = vmax.f32 %v10916_v33, %v10920_v35 }
 0x4f0   : > { %4202 = vmax.xlane.f32.xlu1 %v4201_v36  ;;  %v10924_v37 = vpop.f32.mrb[40].mxu1 }
 0x4f1   : > { %v10926_v38 = vpop.f32.mrb[41].mxu1 }
 0x4f2   : > { %v10928_v39 = vpop.f32.mrb[42].mxu1  ;;  %v4204_v40 = vmax.f32 %v10924_v37, %v10926_v38 }
 0x4f3   : > { %v10932_v31 = vpop.f32.mrb[43].mxu1 }
 0x4f4   : > { %4205 = vmax.xlane.f32.xlu0 %v4204_v40  ;;  %v4207_v42 = vmax.f32 %v10928_v39, %v10932_v31 }
 0x4f6   : > { %4208 = vmax.xlane.f32.xlu1 %v4207_v42 }
 0x4f8   : > { %v10936_v43 = vpop.f32.mrb[44].mxu1 }
 0x4f9   : > { %v10938_v44 = vpop.f32.mrb[45].mxu1 }
 0x4fa   : > { %v10940_v47 = vpop.f32.mrb[46].mxu1  ;;  %v4210_v48 = vmax.f32 %v10936_v43, %v10938_v44 }
 0x4fb   : > { %v10944_v49 = vpop.f32.mrb[47].mxu1 }
 0x4fc   : > { %4211 = vmax.xlane.f32.xlu0 %v4210_v48  ;;  %v4213_v50 = vmax.f32 %v10940_v47, %v10944_v49 }
 0x4fe   : > { %4214 = vmax.xlane.f32.xlu1 %v4213_v50 }
 0x500   : > { %v10948_v51 = vpop.f32.mrb[48].mxu1  ;;  %v10950_v52 = vpop.f32.mrb[32].mxu0 }
 0x501   : > { %v10952_v53 = vpop.f32.mrb[49].mxu1  ;;  %v10954_v54 = vpop.f32.mrb[33].mxu0 }
 0x502   : > { %v10956_v55 = vpop.f32.mrb[50].mxu1  ;;  %v10958_v57 = vpop.f32.mrb[34].mxu0  ;;  %v4216_v46 = vmax.f32 %v10948_v51, %v10952_v53  ;;  %v4288_v58 = vmax.f32 %v10950_v52, %v10954_v54 }
 0x503   : > { %v10964_v59 = vpop.f32.mrb[51].mxu1  ;;  %v10966_v61 = vpop.f32.mrb[35].mxu0 }
 0x504   : > { %4217 = vmax.xlane.f32.xlu0 %v4216_v46  ;;  %v4219_v62 = vmax.f32 %v10956_v55, %v10964_v59  ;;  %v4291_v63 = vmax.f32 %v10958_v57, %v10966_v61 }
 0x506   : > { %4220 = vmax.xlane.f32.xlu1 %v4219_v62 }
 0x508   : > { %v10972_v0 = vpop.f32.mrb[52].mxu1  ;;  %4289 = vmax.xlane.f32.xlu0 %v4288_v58  ;;  %v10974_v1 = vpop.f32.mrb[36].mxu0 }
 0x509   : > { %v10976_v2 = vpop.f32.mrb[53].mxu1  ;;  %v10978_v45 = vpop.f32.mrb[37].mxu0 }
 0x50a   : > { %v10980_v3 = vpop.f32.mrb[54].mxu1  ;;  %4292 = vmax.xlane.f32.xlu1 %v4291_v63  ;;  %v10982_v4 = vpop.f32.mrb[38].mxu0  ;;  %v4222_v5 = vmax.f32 %v10972_v0, %v10976_v2  ;;  %v4294_v6 = vmax.f32 %v10974_v1, %v10978_v45 }
 0x50b   : > { %v10988_v8 = vpop.f32.mrb[55].mxu1  ;;  %v10990_v9 = vpop.f32.mrb[39].mxu0 }
 0x50c   : > { %4223 = vmax.xlane.f32.xlu0 %v4222_v5  ;;  %v4225_v10 = vmax.f32 %v10980_v3, %v10988_v8  ;;  %v4297_v12 = vmax.f32 %v10982_v4, %v10990_v9 }
 0x50e   : > { %4226 = vmax.xlane.f32.xlu1 %v4225_v10 }
 0x510   : > { %v10996_v13 = vpop.f32.mrb[56].mxu1  ;;  %4295 = vmax.xlane.f32.xlu0 %v4294_v6  ;;  %v10998_v41 = vpop.f32.mrb[40].mxu0 }
 0x511   : > { %v11000_v15 = vpop.f32.mrb[57].mxu1  ;;  %v11002_v16 = vpop.f32.mrb[41].mxu0 }
 0x512   : > { %12748 = vst [vmem:[#allocation37_spill] sm:$0xff] %v11002_v16  ;;  %v11004_v60 = vpop.f32.mrb[58].mxu1  ;;  %4298 = vmax.xlane.f32.xlu1 %v4297_v12  ;;  %v11006_v17 = vpop.f32.mrb[42].mxu0  ;;  %v4228_v18 = vmax.f32 %v10996_v13, %v11000_v15  ;;  %v4300_v19 = vmax.f32 %v10998_v41, %v11002_v16 }
 0x513   : > { %12749 = vst [vmem:[#allocation38_spill] sm:$0xff] %v11006_v17  ;;  %v11012_v56 = vpop.f32.mrb[59].mxu1  ;;  %v11014_v20 = vpop.f32.mrb[43].mxu0 }
 0x514   : > { %12750 = vst [vmem:[#allocation39_spill] sm:$0xff] %v11014_v20  ;;  %4229 = vmax.xlane.f32.xlu0 %v4228_v18  ;;  %v4231_v14 = vmax.f32 %v11004_v60, %v11012_v56  ;;  %v4303_v11 = vmax.f32 %v11006_v17, %v11014_v20 }
 0x516   : > { %4232 = vmax.xlane.f32.xlu1 %v4231_v14 }
 0x518   : > { %v11020_v21 = vpop.f32.mrb[60].mxu1  ;;  %4301 = vmax.xlane.f32.xlu0 %v4300_v19  ;;  %v11022_v23 = vpop.f32.mrb[44].mxu0 }
 0x519   : > { %12751 = vst [vmem:[#allocation40_spill] sm:$0xff] %v11022_v23  ;;  %v11024_v7 = vpop.f32.mrb[61].mxu1  ;;  %v11026_v24 = vpop.f32.mrb[45].mxu0 }
 0x51a   : > { %12752 = vst [vmem:[#allocation41_spill] sm:$0xff] %v11026_v24  ;;  %v11028_v27 = vpop.f32.mrb[62].mxu1  ;;  %4304 = vmax.xlane.f32.xlu1 %v4303_v11  ;;  %v11030_v29 = vpop.f32.mrb[46].mxu0  ;;  %v4234_v34 = vmax.f32 %v11020_v21, %v11024_v7  ;;  %v4306_v36 = vmax.f32 %v11022_v23, %v11026_v24 }
 0x51b   : > { %12753 = vst [vmem:[#allocation42_spill] sm:$0xff] %v11030_v29  ;;  %v11036_v40 = vpop.f32.mrb[63].mxu1  ;;  %v11038_v42 = vpop.f32.mrb[47].mxu0 }
 0x51c   : > { %12754 = vst [vmem:[#allocation43_spill] sm:$0xff] %v11038_v42  ;;  %4235 = vmax.xlane.f32.xlu0 %v4234_v34  ;;  %v4237_v48 = vmax.f32 %v11028_v27, %v11036_v40  ;;  %v4309_v50 = vmax.f32 %v11030_v29, %v11038_v42 }
 0x51e   : > { %4238 = vmax.xlane.f32.xlu1 %v4237_v48 }
 0x520   : > { %v11044_v46 = vpop.f32.mrb[64].mxu1  ;;  %4307 = vmax.xlane.f32.xlu0 %v4306_v36  ;;  %v11046_v58 = vpop.f32.mrb[48].mxu0 }
 0x521   : > { %12755 = vst [vmem:[#allocation44_spill] sm:$0xff] %v11046_v58  ;;  %v11048_v62 = vpop.f32.mrb[65].mxu1  ;;  %v11050_v63 = vpop.f32.mrb[49].mxu0 }
 0x522   : > { %12756 = vst [vmem:[#allocation45_spill] sm:$0xff] %v11050_v63  ;;  %v11052_v5 = vpop.f32.mrb[66].mxu1  ;;  %4310 = vmax.xlane.f32.xlu1 %v4309_v50  ;;  %v11054_v6 = vpop.f32.mrb[50].mxu0  ;;  %v4240_v10 = vmax.f32 %v11044_v46, %v11048_v62  ;;  %v4312_v12 = vmax.f32 %v11046_v58, %v11050_v63 }
 0x523   : > { %12757 = vst [vmem:[#allocation46_spill] sm:$0xff] %v11054_v6  ;;  %v11060_v18 = vpop.f32.mrb[67].mxu1  ;;  %v11062_v19 = vpop.f32.mrb[51].mxu0 }
 0x524   : > { %12758 = vst [vmem:[#allocation47_spill] sm:$0xff] %v11062_v19  ;;  %4241 = vmax.xlane.f32.xlu0 %v4240_v10  ;;  %v4243_v14 = vmax.f32 %v11052_v5, %v11060_v18  ;;  %v4315_v11 = vmax.f32 %v11054_v6, %v11062_v19 }
 0x526   : > { %4244 = vmax.xlane.f32.xlu1 %v4243_v14 }
 0x528   : > { %v11068_v34 = vpop.f32.mrb[68].mxu1  ;;  %4313 = vmax.xlane.f32.xlu0 %v4312_v12  ;;  %v11070_v36 = vpop.f32.mrb[52].mxu0 }
 0x529   : > { %12759 = vst [vmem:[#allocation48_spill] sm:$0xff] %v11070_v36  ;;  %v11072_v48 = vpop.f32.mrb[69].mxu1  ;;  %v11074_v50 = vpop.f32.mrb[53].mxu0 }
 0x52a   : > { %12760 = vst [vmem:[#allocation49_spill] sm:$0xff] %v11074_v50  ;;  %v11076_v63 = vpop.f32.mrb[70].mxu1  ;;  %4316 = vmax.xlane.f32.xlu1 %v4315_v11  ;;  %v11078_v10 = vpop.f32.mrb[54].mxu0  ;;  %v4246_v58 = vmax.f32 %v11068_v34, %v11072_v48  ;;  %v4318_v14 = vmax.f32 %v11070_v36, %v11074_v50 }
 0x52b   : > { %12761 = vst [vmem:[#allocation50_spill] sm:$0xff] %v11078_v10  ;;  %v11084_v19 = vpop.f32.mrb[71].mxu1  ;;  %v11086_v12 = vpop.f32.mrb[55].mxu0 }
 0x52c   : > { %12762 = vst [vmem:[#allocation51_spill] sm:$0xff] %v11086_v12  ;;  %4247 = vmax.xlane.f32.xlu0 %v4246_v58  ;;  %v4249_v6 = vmax.f32 %v11076_v63, %v11084_v19  ;;  %v4321_v42 = vmax.f32 %v11078_v10, %v11086_v12 }
 0x52e   : > { %4250 = vmax.xlane.f32.xlu1 %v4249_v6 }
 0x530   : > { %v11092_v11 = vpop.f32.mrb[72].mxu1  ;;  %4319 = vmax.xlane.f32.xlu0 %v4318_v14  ;;  %v11094_v29 = vpop.f32.mrb[56].mxu0 }
 0x531   : > { %12763 = vst [vmem:[#allocation52_spill] sm:$0xff] %v11094_v29  ;;  %v11096_v24 = vpop.f32.mrb[73].mxu1  ;;  %v11098_v50 = vpop.f32.mrb[57].mxu0 }
 0x532   : > { %12764 = vst [vmem:[#allocation53_spill] sm:$0xff] %v11096_v24  ;;  %12765 = vst [vmem:[#allocation54_spill] sm:$0xff] %v11098_v50  ;;  %v11100_v36 = vpop.f32.mrb[74].mxu1  ;;  %4322 = vmax.xlane.f32.xlu1 %v4321_v42  ;;  %v4252_v58 = vmax.f32 %v11092_v11, %v11096_v24  ;;  %v11104_v23 = vpop.f32.mrb[58].mxu0  ;;  %v4324_v6 = vmax.f32 %v11094_v29, %v11098_v50 }
 0x533   : > { %12766 = vst [vmem:[#allocation55_spill] sm:$0xff] %v11100_v36  ;;  %12767 = vst [vmem:[#allocation56_spill] sm:$0xff] %v11104_v23  ;;  %v11108_v12 = vpop.f32.mrb[75].mxu1  ;;  %v11110_v14 = vpop.f32.mrb[59].mxu0 }
 0x534   : > { %12768 = vst [vmem:[#allocation57_spill] sm:$0xff] %v11108_v12  ;;  %12769 = vst [vmem:[#allocation58_spill] sm:$0xff] %v11110_v14  ;;  %4253 = vmax.xlane.f32.xlu0 %v4252_v58  ;;  %v4255_v10 = vmax.f32 %v11100_v36, %v11108_v12  ;;  %v4327_v20 = vmax.f32 %v11104_v23, %v11110_v14 }
 0x536   : > { %4256 = vmax.xlane.f32.xlu1 %v4255_v10 }
 0x538   : > { %v11116_v42 = vpop.f32.mrb[76].mxu1  ;;  %4325 = vmax.xlane.f32.xlu0 %v4324_v6  ;;  %v11118_v17 = vpop.f32.mrb[60].mxu0 }
 0x539   : > { %12770 = vst [vmem:[#allocation59_spill] sm:$0xff] %v11116_v42  ;;  %12771 = vst [vmem:[#allocation60_spill] sm:$0xff] %v11118_v17  ;;  %v11120_v16 = vpop.f32.mrb[77].mxu1  ;;  %v11122_v50 = vpop.f32.mrb[61].mxu0 }
 0x53a   : > { %12772 = vst [vmem:[#allocation61_spill] sm:$0xff] %v11120_v16  ;;  %12773 = vst [vmem:[#allocation62_spill] sm:$0xff] %v11122_v50  ;;  %v11124_v29 = vpop.f32.mrb[78].mxu1  ;;  %4328 = vmax.xlane.f32.xlu1 %v4327_v20  ;;  %v4258_v58 = vmax.f32 %v11116_v42, %v11120_v16  ;;  %v11128_v12 = vpop.f32.mrb[62].mxu0  ;;  %v4330_v10 = vmax.f32 %v11118_v17, %v11122_v50 }
 0x53b   : > { %12774 = vst [vmem:[#allocation63_spill] sm:$0xff] %v11124_v29  ;;  %12775 = vst [vmem:[#allocation64_spill] sm:$0xff] %v11128_v12  ;;  %v11132_v14 = vpop.f32.mrb[79].mxu1  ;;  %v11134_v6 = vpop.f32.mrb[63].mxu0 }
 0x53c   : > { %12776 = vst [vmem:[#allocation65_spill] sm:$0xff] %v11132_v14  ;;  %12777 = vst [vmem:[#allocation66_spill] sm:$0xff] %v11134_v6  ;;  %4259 = vmax.xlane.f32.xlu0 %v4258_v58  ;;  %v4261_v23 = vmax.f32 %v11124_v29, %v11132_v14  ;;  %v4333_v36 = vmax.f32 %v11128_v12, %v11134_v6 }
 0x53e   : > { %4262 = vmax.xlane.f32.xlu1 %v4261_v23 }
 0x540   : > { %v11140_v20 = vpop.f32.mrb[80].mxu1  ;;  %4331 = vmax.xlane.f32.xlu0 %v4330_v10 }
 0x541   : > { %12778 = vst [vmem:[#allocation67_spill] sm:$0xff] %v11140_v20  ;;  %v11142_v16 = vpop.f32.mrb[81].mxu1 }
 0x542   : > { %12779 = vst [vmem:[#allocation68_spill] sm:$0xff] %v11142_v16  ;;  %v11144_v42 = vpop.f32.mrb[82].mxu1  ;;  %4334 = vmax.xlane.f32.xlu1 %v4333_v36  ;;  %v4264_v50 = vmax.f32 %v11140_v20, %v11142_v16 }
 0x543   : > { %12780 = vst [vmem:[#allocation69_spill] sm:$0xff] %v11144_v42  ;;  %v11148_v17 = vpop.f32.mrb[83].mxu1 }
 0x544   : > { %12781 = vst [vmem:[#allocation70_spill] sm:$0xff] %v11148_v17  ;;  %4265 = vmax.xlane.f32.xlu0 %v4264_v50  ;;  %v4267_v58 = vmax.f32 %v11144_v42, %v11148_v17 }
 0x546   : > { %4268 = vmax.xlane.f32.xlu1 %v4267_v58 }
 0x548   : > { %v11152_v6 = vpop.f32.mrb[84].mxu1 }
 0x549   : > { %12782 = vst [vmem:[#allocation71_spill] sm:$0xff] %v11152_v6  ;;  %v11154_v23 = vpop.f32.mrb[85].mxu1 }
 0x54a   : > { %12783 = vst [vmem:[#allocation72_spill] sm:$0xff] %v11154_v23  ;;  %v11156_v10 = vpop.f32.mrb[86].mxu1  ;;  %v4270_v12 = vmax.f32 %v11152_v6, %v11154_v23 }
 0x54b   : > { %12784 = vst [vmem:[#allocation73_spill] sm:$0xff] %v11156_v10  ;;  %v11160_v36 = vpop.f32.mrb[87].mxu1 }
 0x54c   : > { %12785 = vst [vmem:[#allocation74_spill] sm:$0xff] %v11160_v36  ;;  %4271 = vmax.xlane.f32.xlu0 %v4270_v12  ;;  %v4273_v16 = vmax.f32 %v11156_v10, %v11160_v36 }
 0x54e   : > { %4274 = vmax.xlane.f32.xlu1 %v4273_v16 }
 0x550   : > { %v11164_v50 = vpop.f32.mrb[88].mxu1 }
 0x551   : > { %12786 = vst [vmem:[#allocation75_spill] sm:$0xff] %v11164_v50  ;;  %v11166_v17 = vpop.f32.mrb[89].mxu1 }
 0x552   : > { %12787 = vst [vmem:[#allocation76_spill] sm:$0xff] %v11166_v17  ;;  %v11168_v58 = vpop.f32.mrb[90].mxu1  ;;  %v4276_v42 = vmax.f32 %v11164_v50, %v11166_v17 }
 0x553   : > { %12788 = vst [vmem:[#allocation77_spill] sm:$0xff] %v11168_v58  ;;  %v11172_v20 = vpop.f32.mrb[91].mxu1 }
 0x554   : > { %12789 = vst [vmem:[#allocation78_spill] sm:$0xff] %v11172_v20  ;;  %4277 = vmax.xlane.f32.xlu0 %v4276_v42  ;;  %v4279_v23 = vmax.f32 %v11168_v58, %v11172_v20 }
 0x556   : > { %4280 = vmax.xlane.f32.xlu1 %v4279_v23 }
 0x558   : > { %v11176_v12 = vpop.f32.mrb[92].mxu1 }
 0x559   : > { %12790 = vst [vmem:[#allocation79_spill] sm:$0xff] %v11176_v12  ;;  %v11178_v36 = vpop.f32.mrb[93].mxu1 }
 0x55a   : > { %12791 = vst [vmem:[#allocation80_spill] sm:$0xff] %v11178_v36  ;;  %v11180_v16 = vpop.f32.mrb[94].mxu1  ;;  %v4282_v10 = vmax.f32 %v11176_v12, %v11178_v36 }
 0x55b   : > { %12792 = vst [vmem:[#allocation81_spill] sm:$0xff] %v11180_v16  ;;  %v11184_v6 = vpop.f32.mrb[95].mxu1 }
 0x55c   : > { %12793 = vst [vmem:[#allocation82_spill] sm:$0xff] %v11184_v6  ;;  %4283 = vmax.xlane.f32.xlu0 %v4282_v10  ;;  %v4285_v17 = vmax.f32 %v11180_v16, %v11184_v6 }
 0x55e   : > { %4286 = vmax.xlane.f32.xlu1 %v4285_v17 }
 0x561   : > { %v11188_v42 = vpop.f32.mrb[96].mxu1 }
 0x562   : > { %12794 = vst [vmem:[#allocation83_spill] sm:$0xff] %v11188_v42  ;;  %v11190_v20 = vpop.f32.mrb[97].mxu1 }
 0x563   : > { %12795 = vst [vmem:[#allocation84_spill] sm:$0xff] %v11190_v20  ;;  %v11192_v23 = vpop.f32.mrb[98].mxu1  ;;  %v4336_v58 = vmax.f32 %v11188_v42, %v11190_v20 }
 0x564   : > { %12796 = vst [vmem:[#allocation85_spill] sm:$0xff] %v11192_v23  ;;  %v11196_v50 = vpop.f32.mrb[99].mxu1 }
 0x565   : > { %12797 = vst [vmem:[#allocation86_spill] sm:$0xff] %v11196_v50  ;;  %4337 = vmax.xlane.f32.xlu0 %v4336_v58  ;;  %v4339_v36 = vmax.f32 %v11192_v23, %v11196_v50 }
 0x567   : > { %4340 = vmax.xlane.f32.xlu1 %v4339_v36 }
 0x569   : > { %v11200_v10 = vpop.f32.mrb[100].mxu1 }
 0x56a   : > { %12798 = vst [vmem:[#allocation87_spill] sm:$0xff] %v11200_v10  ;;  %v11202_v6 = vpop.f32.mrb[101].mxu1 }
 0x56b   : > { %12799 = vst [vmem:[#allocation88_spill] sm:$0xff] %v11202_v6  ;;  %v11204_v17 = vpop.f32.mrb[102].mxu1  ;;  %v4342_v16 = vmax.f32 %v11200_v10, %v11202_v6 }
 0x56c   : > { %12800 = vst [vmem:[#allocation89_spill] sm:$0xff] %v11204_v17  ;;  %v11208_v12 = vpop.f32.mrb[103].mxu1 }
 0x56d   : > { %12801 = vst [vmem:[#allocation90_spill] sm:$0xff] %v11208_v12  ;;  %4343 = vmax.xlane.f32.xlu0 %v4342_v16  ;;  %v4345_v20 = vmax.f32 %v11204_v17, %v11208_v12 }
 0x56f   : > { %4346 = vmax.xlane.f32.xlu1 %v4345_v20 }
 0x571   : > { %v11212_v58 = vpop.f32.mrb[104].mxu1  ;;  %v4194_v50 = vpop.xlane.xlu0 %4193 }
 0x572   : > { %v4384_v36 = vsub.f32 %v10900_v22, %v4194_v50  ;;  %v4385_v23 = vsub.f32 %v10902_v25, %v4194_v50  ;;  %v11216_v42 = vpop.f32.mrb[105].mxu1 }
 0x573   : > { %12802 = vst [vmem:[#allocation91_spill] sm:$0xff] %v11216_v42  ;;  %v11218_v14 = vpop.f32.mrb[106].mxu1  ;;  %v4348_v6 = vmax.f32 %v11212_v58, %v11216_v42 }
 0x574   : > { %v4512_v10 = vmul.f32 1.442695, %v4384_v36  ;;  %v4514_v16 = vmul.f32 1.442695, %v4385_v23  ;;  %v11222_v29 = vpop.f32.mrb[107].mxu1 }
 0x575   : > { %4349 = vmax.xlane.f32.xlu0 %v4348_v6  ;;  %v4197_v20 = vpop.xlane.xlu0 %4196  ;;  %v4351_v12 = vmax.f32 %v11218_v14, %v11222_v29 }
 0x576   : > { %8778 = vpow2.f32 %v4512_v10  ;;  %v4386_v22 = vsub.f32 %v10904_v26, %v4197_v20  ;;  %v4387_v25 = vsub.f32 %v10908_v28, %v4197_v20 }
 0x577   : > { %8780 = vpow2.f32 %v4514_v16  ;;  %4352 = vmax.xlane.f32.xlu1 %v4351_v12 }
 0x578   : > { %v4516_v50 = vmul.f32 1.442695, %v4386_v22  ;;  %v4518_v17 = vmul.f32 1.442695, %v4387_v25 }
 0x579   : > { %v11228_v24 = vpop.f32.mrb[108].mxu1  ;;  %v4200_v36 = vpop.xlane.xlu1 %4199 }
 0x57a   : > { %8782 = vpow2.f32 %v4516_v50  ;;  %v4388_v23 = vsub.f32 %v10912_v30, %v4200_v36  ;;  %v4389_v6 = vsub.f32 %v10914_v32, %v4200_v36  ;;  %v11232_v42 = vpop.f32.mrb[109].mxu1 }
 0x57b   : > { %8784 = vpow2.f32 %v4518_v17  ;;  %v11234_v10 = vpop.f32.mrb[110].mxu1  ;;  %v4354_v26 = vmax.f32 %v11228_v24, %v11232_v42 }
 0x57c   : > { %v4520_v28 = vmul.f32 1.442695, %v4388_v23  ;;  %v4522_v12 = vmul.f32 1.442695, %v4389_v6  ;;  %v11238_v16 = vpop.f32.mrb[111].mxu1 }
 0x57d   : > { %12803 = vst [vmem:[#allocation92_spill] sm:$0xff] %v11238_v16  ;;  %4355 = vmax.xlane.f32.xlu0 %v4354_v26  ;;  %v4203_v20 = vpop.xlane.xlu1 %4202  ;;  %v4357_v22 = vmax.f32 %v11234_v10, %v11238_v16 }
 0x57e   : > { %8786 = vpow2.f32 %v4520_v28  ;;  %v4390_v30 = vsub.f32 %v10916_v33, %v4203_v20  ;;  %v4391_v32 = vsub.f32 %v10920_v35, %v4203_v20 }
 0x57f   : > { %8788 = vpow2.f32 %v4522_v12  ;;  %4358 = vmax.xlane.f32.xlu1 %v4357_v22 }
 0x580   : > { %v11244_v17 = vpop.eup %8778  ;;  %v4524_v25 = vmul.f32 1.442695, %v4390_v30  ;;  %v4526_v50 = vmul.f32 1.442695, %v4391_v32 }
 0x581   : > { %12804 = vst [vmem:[#allocation93_spill] sm:$0xff] %v11244_v17  ;;  %v11246_v36 = vpop.eup %8780  ;;  %v4206_v23 = vpop.xlane.xlu0 %4205 }
 0x582   : > { %12805 = vst [vmem:[#allocation94_spill] sm:$0xff] %v11246_v36  ;;  %v11248_v6 = vpop.f32.mrb[112].mxu1  ;;  %8790 = vpow2.f32 %v4524_v25  ;;  %v4392_v26 = vsub.f32 %v10924_v37, %v4206_v23  ;;  %v4393_v28 = vsub.f32 %v10926_v38, %v4206_v23  ;;  %v4768_v33 = vadd.f32 %v11246_v36, %v11244_v17 }
 0x583   : > { %v11254_v35 = vpop.f32.mrb[113].mxu1  ;;  %8792 = vpow2.f32 %v4526_v50  ;;  %v4209_v12 = vpop.xlane.xlu1 %4208 }
 0x584   : > { %12806 = vst [vmem:[#allocation95_spill] sm:$0xff] %v11254_v35  ;;  %v11256_v20 = vpop.f32.mrb[114].mxu1  ;;  %v4360_v22 = vmax.f32 %v11248_v6, %v11254_v35  ;;  %v11260_v30 = vpop.eup %8782  ;;  %v4528_v32 = vmul.f32 1.442695, %v4392_v26  ;;  %v4530_v25 = vmul.f32 1.442695, %v4393_v28  ;;  %v4394_v37 = vsub.f32 %v10928_v39, %v4209_v12  ;;  %4769 = vadd.xlane.f32.xlu0 %v4768_v33 }
 0x585   : > { %12807 = vst [vmem:[#allocation96_spill] sm:$0xff] %v11260_v30  ;;  %v4395_v38 = vsub.f32 %v10932_v31, %v4209_v12  ;;  %v11264_v23 = vpop.f32.mrb[115].mxu1  ;;  %v11266_v36 = vpop.eup %8784  ;;  %v5352_v26 = vld [vmem:[#allocation3 + $0x40] sm:$0xff] }
 0x586   : > { %12808 = vst [vmem:[#allocation97_spill] sm:$0xff] %v11266_v36  ;;  %v4363_v50 = vmax.f32 %v11256_v20, %v11264_v23  ;;  %8794 = vpow2.f32 %v4528_v32  ;;  %v4532_v17 = vmul.f32 1.442695, %v4394_v37  ;;  %v4771_v35 = vadd.f32 %v11266_v36, %v11260_v30  ;;  %7540 = vmatprep.subr.bf16.mxu0 %v5352_v26  ;;  %v5344_v31 = vld [vmem:[#allocation3] sm:$0xff] }
 0x587   : > { %v4534_v16 = vmul.f32 1.442695, %v4395_v38  ;;  %8796 = vpow2.f32 %v4530_v25  ;;  %7541 = vmatpush3.bf16.msra.mxu0 %v5344_v31 }
 0x588   : > { %v11272_v39 = vpop.eup %8786  ;;  %8798 = vpow2.f32 %v4532_v17  ;;  %4361 = vmax.xlane.f32.xlu0 %v4360_v22  ;;  %4772 = vadd.xlane.f32.xlu1 %v4771_v35  ;;  %v5353_v17 = vld [vmem:[#allocation3 + $0x48] sm:$0xff] }
 0x589   : > { %12809 = vst [vmem:[#allocation98_spill] sm:$0xff] %v11272_v39  ;;  %v11274_v28 = vpop.eup %8788  ;;  %8800 = vpow2.f32 %v4534_v16  ;;  %v4212_v33 = vpop.xlane.xlu0 %4211  ;;  %7542 = vmatprep.subr.bf16.mxu0 %v5353_v17 }
 0x58a   : > { %12810 = vst [vmem:[#allocation99_spill] sm:$0xff] %v11274_v28  ;;  %v11276_v12 = vpop.f32.mrb[116].mxu1  ;;  %v4396_v32 = vsub.f32 %v10936_v43, %v4212_v33  ;;  %v4397_v37 = vsub.f32 %v10938_v44, %v4212_v33  ;;  %v4774_v25 = vadd.f32 %v11274_v28, %v11272_v39  ;;  %v5345_v39 = vld [vmem:[#allocation3 + $0x8] sm:$0xff] }
 0x58b   : > { %v11282_v38 = vpop.f32.mrb[117].mxu1  ;;  %v4215_v22 = vpop.xlane.xlu1 %4214  ;;  %7543 = vmatpush3.bf16.msra.mxu0 %v5345_v39 }
 0x58c   : > { %12811 = vst [vmem:[#allocation100_spill] sm:$0xff] %v11282_v38  ;;  %v11284_v35 = vpop.f32.mrb[118].mxu1  ;;  %v4366_v16 = vmax.f32 %v11276_v12, %v11282_v38  ;;  %v11288_v26 = vpop.eup %8790  ;;  %v4536_v31 = vmul.f32 1.442695, %v4396_v32  ;;  %v4538_v36 = vmul.f32 1.442695, %v4397_v37  ;;  %v4398_v43 = vsub.f32 %v10940_v47, %v4215_v22  ;;  %4775 = vadd.xlane.f32.xlu0 %v4774_v25  ;;  %4364 = vmax.xlane.f32.xlu1 %v4363_v50 }
 0x58d   : > { %12812 = vst [vmem:[#allocation101_spill] sm:$0xff] %v11284_v35  ;;  %12813 = vst [vmem:[#allocation102_spill] sm:$0xff] %v11288_v26  ;;  %v4399_v44 = vsub.f32 %v10944_v49, %v4215_v22  ;;  %v11292_v33 = vpop.f32.mrb[119].mxu1  ;;  %v11294_v28 = vpop.eup %8792  ;;  %v5354_v47 = vld [vmem:[#allocation3 + $0x50] sm:$0xff] }
 0x58e   : > { %12814 = vst [vmem:[#allocation103_spill] sm:$0xff] %v11292_v33  ;;  %12815 = vst [vmem:[#allocation104_spill] sm:$0xff] %v11294_v28  ;;  %v4369_v30 = vmax.f32 %v11284_v35, %v11292_v33  ;;  %8802 = vpow2.f32 %v4536_v31  ;;  %v4540_v17 = vmul.f32 1.442695, %v4398_v43  ;;  %v4777_v32 = vadd.f32 %v11294_v28, %v11288_v26  ;;  %v5346_v50 = vld [vmem:[#allocation3 + $0x10] sm:$0xff]  ;;  %7544 = vmatprep.subr.bf16.mxu0 %v5354_v47  ;;  %v5355_v47 = vld [vmem:[#allocation3 + $0x58] sm:$0xff] }
 0x58f   : > { %v4542_v38 = vmul.f32 1.442695, %v4399_v44  ;;  %8804 = vpow2.f32 %v4538_v36  ;;  %7545 = vmatpush3.bf16.msra.mxu0 %v5346_v50  ;;  %v5347_v50 = vld [vmem:[#allocation3 + $0x18] sm:$0xff]  ;;  %v5349_v35 = vld [vmem:[#allocation3 + $0x28] sm:$0xff] }
 0x590   : > { %v11300_v49 = vpop.eup %8794  ;;  %8806 = vpow2.f32 %v4540_v17  ;;  %4367 = vmax.xlane.f32.xlu0 %v4366_v16  ;;  %4778 = vadd.xlane.f32.xlu1 %v4777_v32 }
 0x591   : > { %12816 = vst [vmem:[#allocation105_spill] sm:$0xff] %v11300_v49  ;;  %v11302_v37 = vpop.eup %8796  ;;  %8808 = vpow2.f32 %v4542_v38  ;;  %v4218_v25 = vpop.xlane.xlu0 %4217  ;;  %7546 = vmatprep.subr.bf16.mxu0 %v5355_v47 }
 0x592   : > { %12817 = vst [vmem:[#allocation106_spill] sm:$0xff] %v11302_v37  ;;  %v11304_v22 = vpop.f32.mrb[120].mxu1  ;;  %v11306_v39 = vpop.eup %8798  ;;  %v4400_v31 = vsub.f32 %v10948_v51, %v4218_v25  ;;  %v4401_v36 = vsub.f32 %v10952_v53, %v4218_v25  ;;  %v4780_v43 = vadd.f32 %v11302_v37, %v11300_v49  ;;  %v5357_v37 = vld [vmem:[#allocation3 + $0x68] sm:$0xff] }
 0x593   : > { %12818 = vst [vmem:[#allocation107_spill] sm:$0xff] %v11306_v39  ;;  %v11312_v44 = vpop.f32.mrb[121].mxu1  ;;  %v11314_v16 = vpop.eup %8800  ;;  %7547 = vmatpush3.bf16.msra.mxu0 %v5347_v50 }
 0x594   : > { %12819 = vst [vmem:[#allocation108_spill] sm:$0xff] %v11314_v16  ;;  %v4221_v17 = vpop.xlane.xlu1 %4220  ;;  %v11316_v38 = vpop.f32.mrb[122].mxu1  ;;  %v4544_v26 = vmul.f32 1.442695, %v4400_v31  ;;  %v4546_v28 = vmul.f32 1.442695, %v4401_v36  ;;  %4781 = vadd.xlane.f32.xlu0 %v4780_v43  ;;  %4370 = vmax.xlane.f32.xlu1 %v4369_v30  ;;  %v4783_v31 = vadd.f32 %v11314_v16, %v11306_v39 }
 0x595   : > { %v4402_v51 = vsub.f32 %v10956_v55, %v4221_v17  ;;  %v4403_v53 = vsub.f32 %v10964_v59, %v4221_v17  ;;  %v11322_v25 = vpop.f32.mrb[123].mxu1  ;;  %v11324_v49 = vpop.xlane.xlu0 %4289  ;;  %v5356_v59 = vld [vmem:[#allocation3 + $0x60] sm:$0xff] }
 0x596   : > { %8810 = vpow2.f32 %v4544_v26  ;;  %7548 = vmatprep.subr.bf16.mxu0 %v5356_v59  ;;  %v5348_v36 = vld [vmem:[#allocation3 + $0x20] sm:$0xff] }
 0x597   : > { %v4548_v32 = vmul.f32 1.442695, %v4402_v51  ;;  %v4550_v33 = vmul.f32 1.442695, %v4403_v53  ;;  %8812 = vpow2.f32 %v4546_v28  ;;  %7549 = vmatpush3.bf16.msra.mxu0 %v5348_v36 }
 0x598   : > { %v11330_v55 = vpop.xlane.xlu1 %4292  ;;  %v11332_v30 = vpop.eup %8802  ;;  %4784 = vadd.xlane.f32.xlu1 %v4783_v31  ;;  %7550 = vmatprep.subr.bf16.mxu0 %v5357_v37 }
 0x599   : > { %12820 = vst [vmem:[#allocation109_spill] sm:$0xff] %v11332_v30  ;;  %8814 = vpow2.f32 %v4548_v32  ;;  %v11334_v43 = vpop.eup %8804  ;;  %v4224_v26 = vpop.xlane.xlu0 %4223 }
 0x59a   : > { %12821 = vst [vmem:[#allocation110_spill] sm:$0xff] %v11334_v43  ;;  %8816 = vpow2.f32 %v4550_v33  ;;  %v11336_v17 = vpop.f32.mrb[124].mxu1  ;;  %v11338_v47 = vpop.eup %8806  ;;  %v4404_v51 = vsub.f32 %v10972_v0, %v4224_v26  ;;  %v4405_v32 = vsub.f32 %v10976_v2, %v4224_v26  ;;  %v4786_v31 = vadd.f32 %v11334_v43, %v11332_v30  ;;  %v5351_v33 = vld [vmem:[#allocation3 + $0x38] sm:$0xff] }
 0x59b   : > { %12822 = vst [vmem:[#allocation111_spill] sm:$0xff] %v11338_v47  ;;  %v11341_v28 = vpop.f32.mrb[125].mxu1  ;;  %v11343_v53 = vpop.eup %8808  ;;  %7551 = vmatpush3.bf16.msra.mxu0 %v5349_v35 }
 0x59c   : > { %12823 = vst [vmem:[#allocation112_spill] sm:$0xff] %v11343_v53  ;;  %v4227_v50 = vpop.xlane.xlu1 %4226  ;;  %v11348_v59 = vpop.f32.mrb[126].mxu1  ;;  %v4552_v39 = vmul.f32 1.442695, %v4404_v51  ;;  %v4554_v2 = vmul.f32 1.442695, %v4405_v32  ;;  %4787 = vadd.xlane.f32.xlu0 %v4786_v31  ;;  %v4789_v30 = vadd.f32 %v11343_v53, %v11338_v47 }
 0x59d   : > { %v4406_v0 = vsub.f32 %v10980_v3, %v4227_v50  ;;  %v4407_v16 = vsub.f32 %v10988_v8, %v4227_v50  ;;  %v11354_v36 = vpop.f32.mrb[127].mxu1  ;;  %v11356_v26 = vpop.xlane.xlu0 %4295  ;;  %v5358_v8 = vld [vmem:[#allocation3 + $0x70] sm:$0xff] }
 0x59e   : > { %8818 = vpow2.f32 %v4552_v39  ;;  %4790 = vadd.xlane.f32.xlu1 %v4789_v30  ;;  %7552 = vmatprep.subr.bf16.mxu0 %v5358_v8  ;;  %v5350_v32 = vld [vmem:[#allocation3 + $0x30] sm:$0xff] }
 0x59f   : > { %v4556_v51 = vmul.f32 1.442695, %v4406_v0  ;;  %v4558_v43 = vmul.f32 1.442695, %v4407_v16  ;;  %8820 = vpow2.f32 %v4554_v2  ;;  %7553 = vmatpush3.bf16.msra.mxu0 %v5350_v32  ;;  %v5359_v2 = vld [vmem:[#allocation3 + $0x78] sm:$0xff] }
 0x5a0   : > { %v11362_v3 = vpop.xlane.xlu1 %4298  ;;  %v11364_v37 = vpop.eup %8810  ;;  %7554 = vmatprep.subr.bf16.mxu0 %v5359_v2  ;;  %v4448_v2 = vsub.f32 %v10950_v52, %v11324_v49 }
 0x5a1   : > { %8822 = vpow2.f32 %v4556_v51  ;;  %v11366_v50 = vpop.eup %8812  ;;  %v4230_v31 = vpop.xlane.xlu0 %4229 }
 0x5a2   : > { %8824 = vpow2.f32 %v4558_v43  ;;  %v4408_v39 = vsub.f32 %v10996_v13, %v4230_v31  ;;  %v4409_v16 = vsub.f32 %v11000_v15, %v4230_v31  ;;  %v4792_v0 = vadd.f32 %v11366_v50, %v11364_v37 }
 0x5a3   : > { %v11368_v47 = vpop.eup %8814  ;;  %7555 = vmatpush3.bf16.msra.mxu0 %v5351_v33 }
 0x5a4   : > { %12824 = vst [vmem:[#allocation113_spill] sm:$0xff] %v11368_v47  ;;  %v11371_v35 = vpop.eup %8816  ;;  %v4233_v30 = vpop.xlane.xlu1 %4232  ;;  %v4560_v51 = vmul.f32 1.442695, %v4408_v39  ;;  %v4562_v53 = vmul.f32 1.442695, %v4409_v16  ;;  %4793 = vadd.xlane.f32.xlu0 %v4792_v0 }
 0x5a5   : > { %12825 = vst [vmem:[#allocation114_spill] sm:$0xff] %v11371_v35  ;;  %v4410_v8 = vsub.f32 %v11004_v60, %v4233_v30  ;;  %v4411_v43 = vsub.f32 %v11012_v56, %v4233_v30  ;;  %v11378_v13 = vpop.xlane.xlu0 %4301  ;;  %v4795_v32 = vadd.f32 %v11371_v35, %v11368_v47 }
 0x5a6   : > { %8826 = vpow2.f32 %v4560_v51  ;;  %v4449_v51 = vsub.f32 %v10954_v54, %v11324_v49 }
 0x5a7   : > { %v4564_v15 = vmul.f32 1.442695, %v4410_v8  ;;  %v4566_v31 = vmul.f32 1.442695, %v4411_v43  ;;  %8828 = vpow2.f32 %v4562_v53  ;;  %4796 = vadd.xlane.f32.xlu1 %v4795_v32  ;;  %v4450_v8 = vsub.f32 %v10958_v57, %v11330_v55 }
 0x5a8   : > { %v11382_v39 = vpop.xlane.xlu1 %4304  ;;  %v11384_v60 = vpop.eup %8818  ;;  %v4642_v47 = vmul.f32 1.442695, %v4449_v51  ;;  %v4451_v57 = vsub.f32 %v10966_v61, %v11330_v55 }
 0x5a9   : > { %12826 = vst [vmem:[#allocation115_spill] sm:$0xff] %v11384_v60  ;;  %8830 = vpow2.f32 %v4564_v15  ;;  %v11386_v56 = vpop.eup %8820  ;;  %v11388_v16 = vpop.xlane.xlu0 %4235  ;;  %v4640_v15 = vmul.f32 1.442695, %v4448_v2  ;;  %v4452_v2 = vsub.f32 %v10974_v1, %v11356_v26 }
 0x5aa   : > { %12827 = vst [vmem:[#allocation116_spill] sm:$0xff] %v11386_v56  ;;  %8832 = vpow2.f32 %v4566_v31  ;;  %v4798_v53 = vadd.f32 %v11386_v56, %v11384_v60  ;;  %v4644_v56 = vmul.f32 1.442695, %v4450_v8 }
 0x5ab   : > { %v11390_v30 = vpop.eup %8822  ;;  %8834 = vpow2.f32 %v4640_v15 }
 0x5ac   : > { %12828 = vst [vmem:[#allocation117_spill] sm:$0xff] %v11390_v30  ;;  %v11392_v0 = vpop.eup %8824  ;;  %v11396_v33 = vpop.xlane.xlu1 %4238  ;;  %4799 = vadd.xlane.f32.xlu0 %v4798_v53  ;;  %8836 = vpow2.f32 %v4642_v47 }
 0x5ad   : > { %12829 = vst [vmem:[#allocation118_spill] sm:$0xff] %v11392_v0  ;;  %v11404_v43 = vpop.xlane.xlu0 %4307  ;;  %v4801_v32 = vadd.f32 %v11392_v0, %v11390_v30  ;;  %8838 = vpow2.f32 %v4644_v56  ;;  %v4413_v56 = vsub.f32 %v11024_v7, %v11388_v16  ;;  %v4453_v7 = vsub.f32 %v10978_v45, %v11356_v26 }
 0x5af   : > { %4802 = vadd.xlane.f32.xlu1 %v4801_v32  ;;  %v4650_v26 = vmul.f32 1.442695, %v4453_v7 }
 0x5b0   : > { %v11408_v52 = vpop.xlane.xlu1 %4310  ;;  %v11410_v31 = vpop.eup %8826 }
 0x5b1   : > { %v11412_v60 = vpop.eup %8828  ;;  %v4242_v54 = vpop.xlane.xlu0 %4241 }
 0x5b2   : > { %v4416_v53 = vsub.f32 %v11044_v46, %v4242_v54  ;;  %v4417_v32 = vsub.f32 %v11048_v62, %v4242_v54  ;;  %v4804_v8 = vadd.f32 %v11412_v60, %v11410_v31  ;;  %v4412_v46 = vsub.f32 %v11020_v21, %v11388_v16 }
 0x5b3   : > { %v11414_v49 = vpop.eup %8830  ;;  %v4646_v62 = vmul.f32 1.442695, %v4451_v57 }
 0x5b4   : > { %v11419_v35 = vpop.eup %8832  ;;  %v4245_v51 = vpop.xlane.xlu1 %4244  ;;  %v4576_v30 = vmul.f32 1.442695, %v4416_v53  ;;  %v4578_v55 = vmul.f32 1.442695, %v4417_v32  ;;  %4805 = vadd.xlane.f32.xlu0 %v4804_v8  ;;  %v4648_v53 = vmul.f32 1.442695, %v4452_v2  ;;  %v4415_v2 = vsub.f32 %v11036_v40, %v11396_v33 }
 0x5b5   : > { %v4418_v0 = vsub.f32 %v11052_v5, %v4245_v51  ;;  %v4419_v61 = vsub.f32 %v11060_v18, %v4245_v51  ;;  %v11430_v15 = vpop.xlane.xlu0 %4313  ;;  %v4807_v1 = vadd.f32 %v11419_v35, %v11414_v49  ;;  %v4568_v18 = vmul.f32 1.442695, %v4412_v46  ;;  %v11446_v46 = vpop.eup %8834 }
 0x5b6   : > { %8840 = vpow2.f32 %v4576_v30  ;;  %v4414_v30 = vsub.f32 %v11028_v27, %v11396_v33  ;;  %12830 = vst [vmem:[#allocation119_spill] sm:$0xff] %v11446_v46  ;;  %v11452_v27 = vpop.eup %8836 }
 0x5b7   : > { %v4580_v54 = vmul.f32 1.442695, %v4418_v0  ;;  %v4582_v47 = vmul.f32 1.442695, %v4419_v61  ;;  %8842 = vpow2.f32 %v4578_v55  ;;  %4808 = vadd.xlane.f32.xlu1 %v4807_v1  ;;  %12831 = vst [vmem:[#allocation120_spill] sm:$0xff] %v11452_v27  ;;  %v11454_v33 = vpop.eup %8838 }
 0x5b8   : > { %v11434_v5 = vpop.xlane.xlu1 %4316  ;;  %12832 = vst [vmem:[#allocation121_spill] sm:$0xff] %v11454_v33 }
 0x5b9   : > { %8844 = vpow2.f32 %v4580_v54  ;;  %v4248_v21 = vpop.xlane.xlu0 %4247 }
 0x5ba   : > { %8846 = vpow2.f32 %v4582_v47  ;;  %v4420_v32 = vsub.f32 %v11068_v34, %v4248_v21  ;;  %v4421_v0 = vsub.f32 %v11072_v48, %v4248_v21  ;;  %v4570_v48 = vmul.f32 1.442695, %v4413_v56 }
 0x5bb   : > { %8848 = vpow2.f32 %v4646_v62  ;;  %v4574_v62 = vmul.f32 1.442695, %v4415_v2 }
 0x5bc   : > { %8850 = vpow2.f32 %v4648_v53  ;;  %v4251_v57 = vpop.xlane.xlu1 %4250  ;;  %v4584_v51 = vmul.f32 1.442695, %v4420_v32  ;;  %v4586_v34 = vmul.f32 1.442695, %v4421_v0  ;;  %v4454_v53 = vsub.f32 %v10982_v4, %v11362_v3 }
 0x5bd   : > { %v4422_v8 = vsub.f32 %v11076_v63, %v4251_v57  ;;  %v4423_v61 = vsub.f32 %v11084_v19, %v4251_v57  ;;  %8852 = vpow2.f32 %v4568_v18  ;;  %v11450_v16 = vpop.xlane.xlu0 %4319  ;;  %v4572_v63 = vmul.f32 1.442695, %v4414_v30  ;;  %v12837_v30 = vld [vmem:[#allocation53_spill] sm:$0xff] }
 0x5be   : > { %8854 = vpow2.f32 %v4584_v51  ;;  %v4455_v18 = vsub.f32 %v10990_v9, %v11362_v3  ;;  %v4456_v32 = vsub.f32 %v10998_v41, %v11378_v13  ;;  %v12839_v9 = vld [vmem:[#allocation55_spill] sm:$0xff]  ;;  %v12841_v41 = vld [vmem:[#allocation37_spill] sm:$0xff] }
 0x5bf   : > { %v4588_v55 = vmul.f32 1.442695, %v4422_v8  ;;  %v4590_v40 = vmul.f32 1.442695, %v4423_v61  ;;  %8856 = vpow2.f32 %v4586_v34  ;;  %v12840_v8 = vld [vmem:[#allocation57_spill] sm:$0xff]  ;;  %v4457_v7 = vsub.f32 %v12841_v41, %v11378_v13 }
 0x5c0   : > { %v11456_v19 = vpop.xlane.xlu1 %4322  ;;  %v11458_v1 = vpop.eup %8840 }
 0x5c1   : > { %12833 = vst [vmem:[#allocation122_spill] sm:$0xff] %v11458_v1  ;;  %8858 = vpow2.f32 %v4588_v55  ;;  %v11460_v45 = vpop.eup %8842  ;;  %v4254_v54 = vpop.xlane.xlu0 %4253 }
 0x5c2   : > { %12834 = vst [vmem:[#allocation123_spill] sm:$0xff] %v11460_v45  ;;  %8860 = vpow2.f32 %v4590_v40  ;;  %v4424_v21 = vsub.f32 %v11092_v11, %v4254_v54  ;;  %v4425_v0 = vsub.f32 %v12837_v30, %v4254_v54  ;;  %v4816_v2 = vadd.f32 %v11460_v45, %v11458_v1  ;;  %v5368_v40 = vld [vmem:[#allocation3 + $0xc0] sm:$0xff] }
 0x5c3   : > { %v11462_v47 = vpop.eup %8844  ;;  %8862 = vpow2.f32 %v4570_v48  ;;  %7604 = vmatprep.subr.bf16.mxu1 %v5368_v40 }
 0x5c4   : > { %12835 = vst [vmem:[#allocation124_spill] sm:$0xff] %v11462_v47  ;;  %v11469_v56 = vpop.eup %8846  ;;  %8864 = vpow2.f32 %v4572_v63  ;;  %v4257_v57 = vpop.xlane.xlu1 %4256  ;;  %v4592_v4 = vmul.f32 1.442695, %v4424_v21  ;;  %v4594_v34 = vmul.f32 1.442695, %v4425_v0  ;;  %4817 = vadd.xlane.f32.xlu0 %v4816_v2  ;;  %v5360_v63 = vld [vmem:[#allocation3 + $0x80] sm:$0xff] }
 0x5c5   : > { %12836 = vst [vmem:[#allocation125_spill] sm:$0xff] %v11469_v56  ;;  %v11476_v51 = vpop.eup %8848  ;;  %8866 = vpow2.f32 %v4574_v62  ;;  %v4426_v3 = vsub.f32 %v12839_v9, %v4257_v57  ;;  %v4427_v11 = vsub.f32 %v12840_v8, %v4257_v57  ;;  %v11484_v48 = vpop.xlane.xlu0 %4325  ;;  %v4819_v55 = vadd.f32 %v11469_v56, %v11462_v47  ;;  %7605 = vmatpush3.bf16.msra.mxu1 %v5360_v63  ;;  %v5369_v2 = vld [vmem:[#allocation3 + $0xc8] sm:$0xff] }
 0x5c6   : > { %12838 = vst [vmem:[#allocation53_spill] sm:$0xff] %v11476_v51  ;;  %v11480_v61 = vpop.eup %8850  ;;  %8868 = vpow2.f32 %v4650_v26  ;;  %v4652_v62 = vmul.f32 1.442695, %v4454_v53  ;;  %v4654_v26 = vmul.f32 1.442695, %v4455_v18  ;;  %v5361_v9 = vld [vmem:[#allocation3 + $0x88] sm:$0xff]  ;;  %7606 = vmatprep.subr.bf16.mxu1 %v5369_v2 }
 0x5c7   : > { %8870 = vpow2.f32 %v4592_v4  ;;  %v4596_v54 = vmul.f32 1.442695, %v4426_v3  ;;  %v4598_v21 = vmul.f32 1.442695, %v4427_v11  ;;  %v11488_v30 = vpop.eup %8852  ;;  %4820 = vadd.xlane.f32.xlu1 %v4819_v55  ;;  %v4656_v57 = vmul.f32 1.442695, %v4456_v32 }
 0x5c8   : > { %12842 = vst [vmem:[#allocation55_spill] sm:$0xff] %v11488_v30  ;;  %8872 = vpow2.f32 %v4594_v34  ;;  %v11490_v13 = vpop.xlane.xlu1 %4328  ;;  %v11492_v0 = vpop.eup %8854  ;;  %v4658_v53 = vmul.f32 1.442695, %v4457_v7  ;;  %v12845_v4 = vmax.f32 %v11304_v22, %v11312_v44  ;;  %v12847_v11 = vld [vmem:[#allocation38_spill] sm:$0xff]  ;;  %v12848_v32 = vld [vmem:[#allocation59_spill] sm:$0xff]  ;;  %v12851_v63 = vld [vmem:[#allocation61_spill] sm:$0xff] }
 0x5c9   : > { %12843 = vst [vmem:[#allocation57_spill] sm:$0xff] %v11492_v0  ;;  %8874 = vpow2.f32 %v4596_v54  ;;  %v11494_v8 = vpop.eup %8856  ;;  %v4260_v18 = vpop.xlane.xlu0 %4259  ;;  %v4458_v41 = vsub.f32 %v12847_v11, %v11382_v39  ;;  %v12850_v7 = vld [vmem:[#allocation39_spill] sm:$0xff]  ;;  %7607 = vmatpush3.bf16.msra.mxu1 %v5361_v9  ;;  %v12855_v56 = vld [vmem:[#allocation65_spill] sm:$0xff] }
 0x5ca   : > { %12844 = vst [vmem:[#allocation37_spill] sm:$0xff] %v11494_v8  ;;  %8876 = vpow2.f32 %v4598_v21  ;;  %4373 = vmax.xlane.f32.xlu0 %v12845_v4  ;;  %v4428_v34 = vsub.f32 %v12848_v32, %v4260_v18  ;;  %v4459_v40 = vsub.f32 %v12850_v7, %v11382_v39  ;;  %v4429_v54 = vsub.f32 %v12851_v63, %v4260_v18  ;;  %v12854_v32 = vld [vmem:[#allocation63_spill] sm:$0xff]  ;;  %v12857_v63 = vld [vmem:[#allocation40_spill] sm:$0xff] }
 0x5cb   : > { %v11499_v3 = vpop.eup %8858  ;;  %8878 = vpow2.f32 %v4652_v62  ;;  %v12852_v21 = vmax.f32 %v11316_v38, %v11322_v25  ;;  %v4822_v62 = vadd.f32 %v11494_v8, %v11492_v0  ;;  %v5370_v39 = vld [vmem:[#allocation3 + $0xd0] sm:$0xff] }
 0x5cc   : > { %12846 = vst [vmem:[#allocation126_spill] sm:$0xff] %v11499_v3  ;;  %v11504_v55 = vpop.eup %8860  ;;  %8880 = vpow2.f32 %v4654_v26  ;;  %v4263_v2 = vpop.xlane.xlu1 %4262  ;;  %v4600_v11 = vmul.f32 1.442695, %v4428_v34  ;;  %v5362_v7 = vld [vmem:[#allocation3 + $0x90] sm:$0xff]  ;;  %v4602_v45 = vmul.f32 1.442695, %v4429_v54  ;;  %7608 = vmatprep.subr.bf16.mxu1 %v5370_v39 }
 0x5cd   : > { %12849 = vst [vmem:[#allocation38_spill] sm:$0xff] %v11504_v55  ;;  %4376 = vmax.xlane.f32.xlu1 %v12852_v21  ;;  %v11514_v4 = vpop.eup %8862  ;;  %8882 = vpow2.f32 %v4656_v57  ;;  %v4430_v26 = vsub.f32 %v12854_v32, %v4263_v2  ;;  %v4431_v47 = vsub.f32 %v12855_v56, %v4263_v2  ;;  %v4460_v21 = vsub.f32 %v12857_v63, %v11404_v43  ;;  %v11522_v0 = vpop.xlane.xlu0 %4331  ;;  %v5371_v39 = vld [vmem:[#allocation3 + $0xd8] sm:$0xff] }
 0x5ce   : > { %12853 = vst [vmem:[#allocation59_spill] sm:$0xff] %v11514_v4  ;;  %v11518_v18 = vpop.eup %8864  ;;  %8884 = vpow2.f32 %v4658_v53  ;;  %4823 = vadd.xlane.f32.xlu0 %v4822_v62  ;;  %v4825_v57 = vadd.f32 %v11504_v55, %v11499_v3  ;;  %v4660_v34 = vmul.f32 1.442695, %v4458_v41  ;;  %v4662_v53 = vmul.f32 1.442695, %v4459_v40  ;;  %7609 = vmatpush3.bf16.msra.mxu1 %v5362_v7  ;;  %v5363_v3 = vld [vmem:[#allocation3 + $0x98] sm:$0xff] }
 0x5cf   : > { %12856 = vst [vmem:[#allocation39_spill] sm:$0xff] %v11518_v18  ;;  %v11526_v9 = vpop.eup %8866  ;;  %8886 = vpow2.f32 %v4600_v11  ;;  %v4604_v56 = vmul.f32 1.442695, %v4430_v26  ;;  %v4606_v2 = vmul.f32 1.442695, %v4431_v47  ;;  %v4810_v54 = vadd.f32 %v11514_v4, %v11488_v30  ;;  %v12861_v47 = vld [vmem:[#allocation41_spill] sm:$0xff]  ;;  %7610 = vmatprep.subr.bf16.mxu1 %v5371_v39 }
 0x5d0   : > { %12858 = vst [vmem:[#allocation61_spill] sm:$0xff] %v11526_v9  ;;  %v11528_v32 = vpop.eup %8868  ;;  %8888 = vpow2.f32 %v4602_v45  ;;  %v11532_v62 = vpop.xlane.xlu1 %4334  ;;  %v4461_v11 = vsub.f32 %v12861_v47, %v11404_v43  ;;  %v4664_v26 = vmul.f32 1.442695, %v4460_v21  ;;  %v4813_v40 = vadd.f32 %v11526_v9, %v11518_v18  ;;  %v12863_v7 = vld [vmem:[#allocation67_spill] sm:$0xff]  ;;  %v12865_v4 = vld [vmem:[#allocation42_spill] sm:$0xff]  ;;  %v12866_v43 = vld [vmem:[#allocation68_spill] sm:$0xff] }
 0x5d1   : > { %4826 = vadd.xlane.f32.xlu1 %v4825_v57  ;;  %v11534_v63 = vpop.eup %8870  ;;  %8890 = vpow2.f32 %v4604_v56  ;;  %v4266_v45 = vpop.xlane.xlu0 %4265  ;;  %v4462_v55 = vsub.f32 %v12865_v4, %v11408_v52  ;;  %v12869_v18 = vld [vmem:[#allocation69_spill] sm:$0xff] }
 0x5d2   : > { %12859 = vst [vmem:[#allocation63_spill] sm:$0xff] %v11534_v63  ;;  %v11536_v41 = vpop.eup %8872  ;;  %8892 = vpow2.f32 %v4606_v2  ;;  %4811 = vadd.xlane.f32.xlu0 %v4810_v54  ;;  %v4432_v56 = vsub.f32 %v12863_v7, %v4266_v45  ;;  %v4433_v21 = vsub.f32 %v12866_v43, %v4266_v45  ;;  %7611 = vmatpush3.bf16.msra.mxu1 %v5363_v3  ;;  %v4666_v4 = vmul.f32 1.442695, %v4461_v11  ;;  %v5372_v3 = vld [vmem:[#allocation3 + $0xe0] sm:$0xff] }
 0x5d3   : > { %12860 = vst [vmem:[#allocation65_spill] sm:$0xff] %v11536_v41  ;;  %v11542_v57 = vpop.eup %8874  ;;  %8894 = vpow2.f32 %v4660_v34  ;;  %v4828_v2 = vadd.f32 %v11536_v41, %v11534_v63  ;;  %v12868_v34 = vld [vmem:[#allocation43_spill] sm:$0xff]  ;;  %7612 = vmatprep.subr.bf16.mxu1 %v5372_v3  ;;  %v12879_v3 = vld [vmem:[#allocation44_spill] sm:$0xff] }
 0x5d4   : > { %12862 = vst [vmem:[#allocation40_spill] sm:$0xff] %v11542_v57  ;;  %v11545_v30 = vpop.eup %8876  ;;  %8896 = vpow2.f32 %v4662_v53  ;;  %v4269_v54 = vpop.xlane.xlu1 %4268  ;;  %v4463_v47 = vsub.f32 %v12868_v34, %v11408_v52  ;;  %v4608_v7 = vmul.f32 1.442695, %v4432_v56  ;;  %v12870_v53 = vld [vmem:[#allocation70_spill] sm:$0xff]  ;;  %v4610_v45 = vmul.f32 1.442695, %v4433_v21 }
 0x5d5   : > { %12864 = vst [vmem:[#allocation41_spill] sm:$0xff] %v11545_v30  ;;  %4814 = vadd.xlane.f32.xlu1 %v4813_v40  ;;  %v11552_v39 = vpop.eup %8878  ;;  %v4434_v9 = vsub.f32 %v12869_v18, %v4269_v54  ;;  %v4435_v8 = vsub.f32 %v12870_v53, %v4269_v54  ;;  %8898 = vpow2.f32 %v4664_v26  ;;  %v4831_v40 = vadd.f32 %v11545_v30, %v11542_v57  ;;  %v5364_v56 = vld [vmem:[#allocation3 + $0xa0] sm:$0xff] }
 0x5d6   : > { %12867 = vst [vmem:[#allocation67_spill] sm:$0xff] %v11552_v39  ;;  %v11558_v1 = vpop.eup %8880  ;;  %4829 = vadd.xlane.f32.xlu0 %v4828_v2  ;;  %8900 = vpow2.f32 %v4608_v7  ;;  %v4668_v54 = vmul.f32 1.442695, %v4462_v55  ;;  %7613 = vmatpush3.bf16.msra.mxu1 %v5364_v56  ;;  %v4670_v21 = vmul.f32 1.442695, %v4463_v47  ;;  %v12874_v2 = vmax.f32 %v11336_v17, %v11341_v28  ;;  %v12876_v55 = vld [vmem:[#allocation71_spill] sm:$0xff] }
 0x5d7   : > { %12871 = vst [vmem:[#allocation42_spill] sm:$0xff] %v11558_v1  ;;  %v11562_v43 = vpop.eup %8882  ;;  %v4612_v63 = vmul.f32 1.442695, %v4434_v9  ;;  %v4614_v52 = vmul.f32 1.442695, %v4435_v8  ;;  %8902 = vpow2.f32 %v4610_v45  ;;  %v5373_v9 = vld [vmem:[#allocation3 + $0xe8] sm:$0xff]  ;;  %v12880_v56 = vmax.f32 %v11348_v59, %v11354_v36 }
 0x5d8   : > { %v11564_v18 = vpop.eup %8884  ;;  %v12877_v53 = vld [vmem:[#allocation72_spill] sm:$0xff]  ;;  %7614 = vmatprep.subr.bf16.mxu1 %v5373_v9  ;;  %v12883_v9 = vld [vmem:[#allocation74_spill] sm:$0xff] }
 0x5d9   : > { %4832 = vadd.xlane.f32.xlu1 %v4831_v40  ;;  %v11566_v11 = vpop.eup %8886  ;;  %8904 = vpow2.f32 %v4612_v63  ;;  %v4272_v8 = vpop.xlane.xlu0 %4271  ;;  %v5365_v40 = vld [vmem:[#allocation3 + $0xa8] sm:$0xff] }
 0x5da   : > { %12872 = vst [vmem:[#allocation68_spill] sm:$0xff] %v11566_v11  ;;  %v11568_v26 = vpop.eup %8888  ;;  %8906 = vpow2.f32 %v4614_v52  ;;  %4379 = vmax.xlane.f32.xlu0 %v12874_v2  ;;  %v4436_v7 = vsub.f32 %v12876_v55, %v4272_v8  ;;  %v4437_v45 = vsub.f32 %v12877_v53, %v4272_v8  ;;  %v4464_v52 = vsub.f32 %v12879_v3, %v11430_v15  ;;  %v12882_v53 = vld [vmem:[#allocation73_spill] sm:$0xff] }
 0x5db   : > { %12873 = vst [vmem:[#allocation43_spill] sm:$0xff] %v11568_v26  ;;  %v11573_v34 = vpop.eup %8890  ;;  %8908 = vpow2.f32 %v4666_v4  ;;  %v4834_v63 = vadd.f32 %v11568_v26, %v11566_v11  ;;  %v4275_v4 = vpop.xlane.xlu1 %4274  ;;  %7615 = vmatpush3.bf16.msra.mxu1 %v5365_v40 }
 0x5dc   : > { %12875 = vst [vmem:[#allocation69_spill] sm:$0xff] %v11573_v34  ;;  %v11579_v47 = vpop.eup %8892  ;;  %8910 = vpow2.f32 %v4668_v54  ;;  %v4616_v8 = vmul.f32 1.442695, %v4436_v7  ;;  %v4618_v55 = vmul.f32 1.442695, %v4437_v45  ;;  %v4438_v11 = vsub.f32 %v12882_v53, %v4275_v4  ;;  %v12885_v54 = vld [vmem:[#allocation45_spill] sm:$0xff] }
 0x5dd   : > { %12878 = vst [vmem:[#allocation70_spill] sm:$0xff] %v11579_v47  ;;  %4382 = vmax.xlane.f32.xlu1 %v12880_v56  ;;  %v11586_v2 = vpop.eup %8894  ;;  %v4439_v26 = vsub.f32 %v12883_v9, %v4275_v4  ;;  %8912 = vpow2.f32 %v4670_v21  ;;  %v4465_v3 = vsub.f32 %v12885_v54, %v11430_v15  ;;  %v4837_v56 = vadd.f32 %v11579_v47, %v11573_v34  ;;  %v5374_v21 = vld [vmem:[#allocation3 + $0xf0] sm:$0xff] }
 0x5de   : > { %12881 = vst [vmem:[#allocation71_spill] sm:$0xff] %v11586_v2  ;;  %v11590_v57 = vpop.eup %8896  ;;  %4835 = vadd.xlane.f32.xlu0 %v4834_v63  ;;  %8914 = vpow2.f32 %v4616_v8  ;;  %v4620_v40 = vmul.f32 1.442695, %v4438_v11  ;;  %v4672_v7 = vmul.f32 1.442695, %v4464_v52  ;;  %v4864_v45 = vadd.f32 %v11452_v27, %v11446_v46  ;;  %7616 = vmatprep.subr.bf16.mxu1 %v5374_v21  ;;  %v12889_v9 = vld [vmem:[#allocation75_spill] sm:$0xff] }
 0x5df   : > { %12884 = vst [vmem:[#allocation72_spill] sm:$0xff] %v11590_v57  ;;  %v4622_v30 = vmul.f32 1.442695, %v4439_v26  ;;  %v11596_v41 = vpop.eup %8898  ;;  %8916 = vpow2.f32 %v4618_v55  ;;  %v4674_v63 = vmul.f32 1.442695, %v4465_v3  ;;  %v4867_v11 = vadd.f32 %v11476_v51, %v11454_v33  ;;  %v5366_v26 = vld [vmem:[#allocation3 + $0xb0] sm:$0xff] }
 0x5e0   : > { %v11600_v4 = vpop.eup %8900  ;;  %8918 = vpow2.f32 %v4620_v40  ;;  %v12888_v55 = vld [vmem:[#allocation46_spill] sm:$0xff]  ;;  %7617 = vmatpush3.bf16.msra.mxu1 %v5366_v26  ;;  %v12891_v21 = vld [vmem:[#allocation47_spill] sm:$0xff] }
 0x5e1   : > { %4838 = vadd.xlane.f32.xlu1 %v4837_v56  ;;  %12886 = vst [vmem:[#allocation44_spill] sm:$0xff] %v11600_v4  ;;  %v11602_v15 = vpop.eup %8902  ;;  %8920 = vpow2.f32 %v4622_v30  ;;  %v4278_v8 = vpop.xlane.xlu0 %4277  ;;  %v4466_v53 = vsub.f32 %v12888_v55, %v11434_v5  ;;  %v12890_v56 = vld [vmem:[#allocation76_spill] sm:$0xff]  ;;  %v4467_v51 = vsub.f32 %v12891_v21, %v11434_v5 }
 0x5e2   : > { %12887 = vst [vmem:[#allocation73_spill] sm:$0xff] %v11602_v15  ;;  %4865 = vadd.xlane.f32.xlu0 %v4864_v45  ;;  %v4440_v54 = vsub.f32 %v12889_v9, %v4278_v8  ;;  %v4441_v40 = vsub.f32 %v12890_v56, %v4278_v8  ;;  %v4840_v3 = vadd.f32 %v11602_v15, %v11600_v4  ;;  %v5375_v30 = vld [vmem:[#allocation3 + $0xf8] sm:$0xff]  ;;  %v5384_v45 = vld [vmem:[#allocation3 + $0x140] sm:$0xff]  ;;  %8922 = vpow2.f32 %v4672_v7  ;;  %v12893_v4 = vld [vmem:[#allocation78_spill] sm:$0xff] }
 0x5e3   : > { %v11606_v52 = vpop.eup %8904  ;;  %v4281_v33 = vpop.xlane.xlu1 %4280  ;;  %7618 = vmatprep.subr.bf16.mxu1 %v5375_v30  ;;  %v5367_v55 = vld [vmem:[#allocation3 + $0xb8] sm:$0xff]  ;;  %v12892_v56 = vld [vmem:[#allocation77_spill] sm:$0xff]  ;;  %7668 = vmatprep.subr.bf16.mxu0 %v5384_v45  ;;  %8924 = vpow2.f32 %v4674_v63  ;;  %v4678_v21 = vmul.f32 1.442695, %v4467_v51  ;;  %v4873_v51 = vadd.f32 %v11558_v1, %v11552_v39  ;;  %v12904_v1 = vld [vmem:[#allocation82_spill] sm:$0xff] }
 0x5e4   : > { %v11614_v27 = vpop.eup %8906  ;;  %v4624_v9 = vmul.f32 1.442695, %v4440_v54  ;;  %v4626_v8 = vmul.f32 1.442695, %v4441_v40  ;;  %v4442_v34 = vsub.f32 %v12892_v56, %v4281_v33  ;;  %v4443_v26 = vsub.f32 %v12893_v4, %v4281_v33  ;;  %v12895_v7 = vld [vmem:[#allocation48_spill] sm:$0xff]  ;;  %7619 = vmatpush3.bf16.msra.mxu1 %v5367_v55  ;;  %v12903_v39 = vld [vmem:[#allocation81_spill] sm:$0xff] }
 0x5e5   : > { %4868 = vadd.xlane.f32.xlu1 %v4867_v11  ;;  %v11618_v46 = vpop.eup %8908  ;;  %v4468_v47 = vsub.f32 %v12895_v7, %v11450_v16  ;;  %v4843_v5 = vadd.f32 %v11614_v27, %v11606_v52  ;;  %v4676_v11 = vmul.f32 1.442695, %v4466_v53  ;;  %v4870_v33 = vadd.f32 %v11528_v32, %v11480_v61  ;;  %v12900_v56 = vld [vmem:[#allocation80_spill] sm:$0xff] }
 0x5e6   : > { %v11622_v15 = vpop.eup %8910  ;;  %4841 = vadd.xlane.f32.xlu0 %v4840_v3  ;;  %8926 = vpow2.f32 %v4624_v9  ;;  %v4628_v30 = vmul.f32 1.442695, %v4442_v34  ;;  %v4630_v54 = vmul.f32 1.442695, %v4443_v26  ;;  %v12898_v3 = vld [vmem:[#allocation49_spill] sm:$0xff]  ;;  %v12899_v9 = vld [vmem:[#allocation79_spill] sm:$0xff] }
 0x5e7   : > { %12894 = vst [vmem:[#allocation74_spill] sm:$0xff] %v11622_v15  ;;  %v11628_v40 = vpop.eup %8912  ;;  %8928 = vpow2.f32 %v4626_v8  ;;  %v4469_v53 = vsub.f32 %v12898_v3, %v11450_v16  ;;  %v4680_v45 = vmul.f32 1.442695, %v4468_v47  ;;  %v12901_v16 = vld [vmem:[#allocation50_spill] sm:$0xff] }
 0x5e8   : > { %v11632_v4 = vpop.eup %8914  ;;  %8930 = vpow2.f32 %v4628_v30  ;;  %v4470_v47 = vsub.f32 %v12901_v16, %v11456_v19  ;;  %v12902_v30 = vld [vmem:[#allocation51_spill] sm:$0xff]  ;;  %v12905_v16 = vld [vmem:[#allocation52_spill] sm:$0xff] }
 0x5e9   : > { %4844 = vadd.xlane.f32.xlu1 %v4843_v5  ;;  %12896 = vst [vmem:[#allocation45_spill] sm:$0xff] %v11632_v4  ;;  %v11634_v63 = vpop.eup %8916  ;;  %8932 = vpow2.f32 %v4630_v54  ;;  %v4284_v34 = vpop.xlane.xlu0 %4283  ;;  %v4471_v54 = vsub.f32 %v12902_v30, %v11456_v19 }
 0x5ea   : > { %12897 = vst [vmem:[#allocation46_spill] sm:$0xff] %v11634_v63  ;;  %4871 = vadd.xlane.f32.xlu0 %v4870_v33  ;;  %v11640_v55 = vpop.eup %8918  ;;  %8934 = vpow2.f32 %v4676_v11  ;;  %v4444_v8 = vsub.f32 %v12899_v9, %v4284_v34  ;;  %v4445_v26 = vsub.f32 %v12900_v56, %v4284_v34  ;;  %v4846_v7 = vadd.f32 %v11634_v63, %v11632_v4 }
 0x5eb   : > { %v11646_v5 = vpop.eup %8920  ;;  %8936 = vpow2.f32 %v4678_v21  ;;  %v4287_v33 = vpop.xlane.xlu1 %4286  ;;  %v4682_v4 = vmul.f32 1.442695, %v4469_v53  ;;  %v4472_v63 = vsub.f32 %v12905_v16, %v11484_v48  ;;  %v4686_v53 = vmul.f32 1.442695, %v4471_v54  ;;  %v12910_v54 = vld [vmem:[#allocation54_spill] sm:$0xff]  ;;  %v12912_v16 = vld [vmem:[#allocation84_spill] sm:$0xff] }
 0x5ec   : > { %v4632_v3 = vmul.f32 1.442695, %v4444_v8  ;;  %v4634_v11 = vmul.f32 1.442695, %v4445_v26  ;;  %v4446_v9 = vsub.f32 %v12903_v39, %v4287_v33  ;;  %v4447_v34 = vsub.f32 %v12904_v1, %v4287_v33  ;;  %v11654_v56 = vpop.eup %8922 }
 0x5ed   : > { %4874 = vadd.xlane.f32.xlu1 %v4873_v51  ;;  %8938 = vpow2.f32 %v4680_v45  ;;  %v4849_v21 = vadd.f32 %v11646_v5, %v11640_v55  ;;  %v11660_v8 = vpop.eup %8924  ;;  %v4684_v26 = vmul.f32 1.442695, %v4470_v47  ;;  %v4876_v1 = vadd.f32 %v11564_v18, %v11562_v43 }
 0x5ee   : > { %4847 = vadd.xlane.f32.xlu0 %v4846_v7  ;;  %8940 = vpow2.f32 %v4632_v3  ;;  %v4636_v19 = vmul.f32 1.442695, %v4446_v9  ;;  %v4638_v51 = vmul.f32 1.442695, %v4447_v34  ;;  %v4879_v7 = vadd.f32 %v11590_v57, %v11586_v2  ;;  %v12911_v34 = vld [vmem:[#allocation83_spill] sm:$0xff] }
 0x5ef   : > { %8942 = vpow2.f32 %v4634_v11  ;;  %v4688_v47 = vmul.f32 1.442695, %v4472_v63  ;;  %v4473_v9 = vsub.f32 %v12910_v54, %v11484_v48  ;;  %v12916_v48 = vld [vmem:[#allocation85_spill] sm:$0xff] }
 0x5f0   : > { %v11664_v39 = vpop.eup %8926  ;;  %8944 = vpow2.f32 %v4636_v19 }
 0x5f1   : > { %4850 = vadd.xlane.f32.xlu1 %v4849_v21  ;;  %12906 = vst [vmem:[#allocation75_spill] sm:$0xff] %v11664_v39  ;;  %v11666_v45 = vpop.eup %8928  ;;  %8946 = vpow2.f32 %v4638_v51  ;;  %v4690_v57 = vmul.f32 1.442695, %v4473_v9 }
 0x5f2   : > { %12907 = vst [vmem:[#allocation76_spill] sm:$0xff] %v11666_v45  ;;  %4877 = vadd.xlane.f32.xlu0 %v4876_v1  ;;  %v11670_v30 = vpop.eup %8930  ;;  %8948 = vpow2.f32 %v4682_v4  ;;  %v4338_v33 = vpop.xlane.xlu0 %4337  ;;  %v4852_v3 = vadd.f32 %v11666_v45, %v11664_v39  ;;  %v12914_v4 = vld [vmem:[#allocation56_spill] sm:$0xff] }
 0x5f3   : > { %12908 = vst [vmem:[#allocation47_spill] sm:$0xff] %v11670_v30  ;;  %v11674_v11 = vpop.eup %8932  ;;  %8950 = vpow2.f32 %v4684_v26  ;;  %v4480_v21 = vsub.f32 %v12911_v34, %v4338_v33  ;;  %v4481_v19 = vsub.f32 %v12912_v16, %v4338_v33  ;;  %v4474_v63 = vsub.f32 %v12914_v4, %v11490_v13  ;;  %v12917_v34 = vld [vmem:[#allocation86_spill] sm:$0xff] }
 0x5f4   : > { %12909 = vst [vmem:[#allocation77_spill] sm:$0xff] %v11674_v11  ;;  %v11680_v51 = vpop.eup %8934  ;;  %8952 = vpow2.f32 %v4686_v53  ;;  %v4341_v1 = vpop.xlane.xlu1 %4340  ;;  %v4855_v39 = vadd.f32 %v11674_v11, %v11670_v30  ;;  %v4882_v16 = vadd.f32 %v11618_v46, %v11596_v41 }
 0x5f5   : > { %4880 = vadd.xlane.f32.xlu1 %v4879_v7  ;;  %12913 = vst [vmem:[#allocation78_spill] sm:$0xff] %v11680_v51  ;;  %v11686_v45 = vpop.eup %8936  ;;  %v4704_v26 = vmul.f32 1.442695, %v4480_v21  ;;  %v4706_v2 = vmul.f32 1.442695, %v4481_v19  ;;  %v4482_v54 = vsub.f32 %v12916_v48, %v4341_v1  ;;  %v4483_v33 = vsub.f32 %v12917_v34, %v4341_v1  ;;  %v12918_v7 = vld [vmem:[#allocation58_spill] sm:$0xff] }
 0x5f6   : > { %12915 = vst [vmem:[#allocation48_spill] sm:$0xff] %v11686_v45  ;;  %4853 = vadd.xlane.f32.xlu0 %v4852_v3  ;;  %8954 = vpow2.f32 %v4688_v47  ;;  %v4475_v53 = vsub.f32 %v12918_v7, %v11490_v13  ;;  %v4692_v3 = vmul.f32 1.442695, %v4474_v63  ;;  %v4885_v13 = vadd.f32 %v11628_v40, %v11622_v15  ;;  %v12922_v63 = vld [vmem:[#allocation87_spill] sm:$0xff]  ;;  %v12923_v48 = vld [vmem:[#allocation88_spill] sm:$0xff] }
 0x5f7   : > { %v11694_v4 = vpop.eup %8938  ;;  %8956 = vpow2.f32 %v4704_v26  ;;  %v4708_v30 = vmul.f32 1.442695, %v4482_v54  ;;  %v4710_v11 = vmul.f32 1.442695, %v4483_v33  ;;  %v12924_v34 = vld [vmem:[#allocation60_spill] sm:$0xff] }
 0x5f8   : > { %v11696_v21 = vpop.eup %8940  ;;  %8958 = vpow2.f32 %v4706_v2  ;;  %v4694_v1 = vmul.f32 1.442695, %v4475_v53  ;;  %v4476_v33 = vsub.f32 %v12924_v34, %v11522_v0 }
 0x5f9   : > { %4856 = vadd.xlane.f32.xlu1 %v4855_v39  ;;  %12919 = vst [vmem:[#allocation49_spill] sm:$0xff] %v11696_v21  ;;  %v11698_v19 = vpop.eup %8942  ;;  %8960 = vpow2.f32 %v4708_v30 }
 0x5fa   : > { %12920 = vst [vmem:[#allocation79_spill] sm:$0xff] %v11698_v19  ;;  %4883 = vadd.xlane.f32.xlu0 %v4882_v16  ;;  %v11702_v47 = vpop.eup %8944  ;;  %8962 = vpow2.f32 %v4710_v11  ;;  %v4344_v9 = vpop.xlane.xlu0 %4343  ;;  %v4858_v26 = vadd.f32 %v11698_v19, %v11696_v21  ;;  %v12926_v19 = vld [vmem:[#allocation90_spill] sm:$0xff] }
 0x5fb   : > { %12921 = vst [vmem:[#allocation80_spill] sm:$0xff] %v11702_v47  ;;  %v11706_v39 = vpop.eup %8946  ;;  %8964 = vpow2.f32 %v4690_v57  ;;  %v4484_v2 = vsub.f32 %v12922_v63, %v4344_v9  ;;  %v4485_v54 = vsub.f32 %v12923_v48, %v4344_v9  ;;  %v12925_v57 = vld [vmem:[#allocation89_spill] sm:$0xff] }
 0x5fc   : > { %v11710_v30 = vpop.eup %8948  ;;  %8966 = vpow2.f32 %v4692_v3  ;;  %v4347_v7 = vpop.xlane.xlu1 %4346  ;;  %v4861_v11 = vadd.f32 %v11706_v39, %v11702_v47  ;;  %v12927_v3 = vld [vmem:[#allocation62_spill] sm:$0xff]  ;;  %v4888_v47 = vadd.f32 %v11660_v8, %v11654_v56 }
 0x5fd   : > { %4886 = vadd.xlane.f32.xlu1 %v4885_v13  ;;  %v11716_v53 = vpop.eup %8950  ;;  %v4712_v16 = vmul.f32 1.442695, %v4484_v2  ;;  %v4714_v21 = vmul.f32 1.442695, %v4485_v54  ;;  %v4486_v63 = vsub.f32 %v12925_v57, %v4347_v7  ;;  %v4487_v9 = vsub.f32 %v12926_v19, %v4347_v7 }
 0x5fe   : > { %4859 = vadd.xlane.f32.xlu0 %v4858_v26  ;;  %v11720_v13 = vpop.eup %8952  ;;  %8968 = vpow2.f32 %v4694_v1  ;;  %v4477_v48 = vsub.f32 %v12927_v3, %v11522_v0  ;;  %v4696_v26 = vmul.f32 1.442695, %v4476_v33  ;;  %v4891_v19 = vadd.f32 %v11686_v45, %v11680_v51  ;;  %v12931_v3 = vld [vmem:[#allocation66_spill] sm:$0xff] }
 0x5ff   : > { %8970 = vpow2.f32 %v4712_v16  ;;  %v4716_v34 = vmul.f32 1.442695, %v4486_v63  ;;  %v4718_v15 = vmul.f32 1.442695, %v4487_v9  ;;  %v12929_v16 = vld [vmem:[#allocation64_spill] sm:$0xff] }
 0x600   : > { %v11726_v2 = vpop.eup %8954  ;;  %8972 = vpow2.f32 %v4714_v21  ;;  %v4698_v0 = vmul.f32 1.442695, %v4477_v48  ;;  %v4478_v57 = vsub.f32 %v12929_v16, %v11532_v62  ;;  %v12930_v21 = vld [vmem:[#allocation91_spill] sm:$0xff] }
 0x601   : > { %4862 = vadd.xlane.f32.xlu1 %v4861_v11  ;;  %12928 = vst [vmem:[#allocation50_spill] sm:$0xff] %v11726_v2  ;;  %v11728_v54 = vpop.eup %8956  ;;  %8974 = vpow2.f32 %v4716_v34 }
 0x602   : > { %4889 = vadd.xlane.f32.xlu0 %v4888_v47  ;;  %v11732_v1 = vpop.eup %8958  ;;  %8976 = vpow2.f32 %v4718_v15  ;;  %v4350_v7 = vpop.xlane.xlu0 %4349  ;;  %v4479_v15 = vsub.f32 %v12931_v3, %v11532_v62  ;;  %v4700_v62 = vmul.f32 1.442695, %v4478_v57 }
 0x603   : > { %v11734_v11 = vpop.eup %8960  ;;  %v4488_v33 = vsub.f32 %v11212_v58, %v4350_v7  ;;  %v4489_v63 = vsub.f32 %v12930_v21, %v4350_v7  ;;  %v4912_v47 = vadd.f32 %v11732_v1, %v11728_v54  ;;  %8978 = vpow2.f32 %v4696_v26 }
 0x604   : > { %v11742_v9 = vpop.eup %8962  ;;  %v4353_v48 = vpop.xlane.xlu1 %4352  ;;  %8980 = vpow2.f32 %v4698_v0  ;;  %v4894_v26 = vadd.f32 %v11710_v30, %v11694_v4 }
 0x605   : > { %4892 = vadd.xlane.f32.xlu1 %v4891_v19  ;;  %v11746_v34 = vpop.eup %8964  ;;  %v4720_v51 = vmul.f32 1.442695, %v4488_v33  ;;  %v4722_v45 = vmul.f32 1.442695, %v4489_v63  ;;  %v4490_v58 = vsub.f32 %v11218_v14, %v4353_v48  ;;  %v4491_v7 = vsub.f32 %v11222_v29, %v4353_v48  ;;  %v5400_v14 = vld [vmem:[#allocation3 + $0x1c0] sm:$0xff] }
 0x606   : > { %4913 = vadd.xlane.f32.xlu0 %v4912_v47  ;;  %v11750_v19 = vpop.eup %8966  ;;  %v4915_v16 = vadd.f32 %v11742_v9, %v11734_v11  ;;  %v4702_v63 = vmul.f32 1.442695, %v4479_v15  ;;  %7732 = vmatprep.subr.bf16.mxu1 %v5400_v14 }
 0x607   : > { %12932 = vst [vmem:[#allocation51_spill] sm:$0xff] %v11750_v19  ;;  %8982 = vpow2.f32 %v4720_v51  ;;  %v4724_v21 = vmul.f32 1.442695, %v4490_v58  ;;  %v4726_v3 = vmul.f32 1.442695, %v4491_v7  ;;  %v4897_v51 = vadd.f32 %v11720_v13, %v11716_v53 }
 0x608   : > { %v11756_v33 = vpop.eup %8968  ;;  %8984 = vpow2.f32 %v4722_v45 }
 0x609   : > { %12933 = vst [vmem:[#allocation81_spill] sm:$0xff] %v11756_v33  ;;  %4916 = vadd.xlane.f32.xlu1 %v4915_v16  ;;  %v11758_v29 = vpop.eup %8970  ;;  %8986 = vpow2.f32 %v4724_v21 }
 0x60a   : > { %4895 = vadd.xlane.f32.xlu0 %v4894_v26  ;;  %v11760_v0 = vpop.eup %8972  ;;  %8988 = vpow2.f32 %v4726_v3  ;;  %v4356_v47 = vpop.xlane.xlu0 %4355  ;;  %v12934_v3 = vld [vmem:[#allocation92_spill] sm:$0xff] }
 0x60b   : > { %v11764_v57 = vpop.eup %8974  ;;  %8990 = vpow2.f32 %v4700_v62  ;;  %v4492_v15 = vsub.f32 %v11228_v24, %v4356_v47  ;;  %v4493_v45 = vsub.f32 %v11232_v42, %v4356_v47  ;;  %v4918_v48 = vadd.f32 %v11760_v0, %v11758_v29 }
 0x60c   : > { %v11770_v58 = vpop.eup %8976  ;;  %8992 = vpow2.f32 %v4702_v63  ;;  %v4359_v7 = vpop.xlane.xlu1 %4358  ;;  %v4900_v63 = vadd.f32 %v11746_v34, %v11726_v2 }
 0x60d   : > { %4898 = vadd.xlane.f32.xlu1 %v4897_v51  ;;  %v4728_v16 = vmul.f32 1.442695, %v4492_v15  ;;  %v4730_v26 = vmul.f32 1.442695, %v4493_v45  ;;  %v4494_v21 = vsub.f32 %v11234_v10, %v4359_v7  ;;  %v4495_v14 = vsub.f32 %v12934_v3, %v4359_v7  ;;  %v11774_v62 = vpop.eup %8978 }
 0x60e   : > { %4919 = vadd.xlane.f32.xlu0 %v4918_v48  ;;  %12935 = vst [vmem:[#allocation82_spill] sm:$0xff] %v11774_v62  ;;  %v4921_v24 = vadd.f32 %v11770_v58, %v11764_v57  ;;  %v11780_v51 = vpop.eup %8980  ;;  %v4903_v48 = vadd.f32 %v11756_v33, %v11750_v19 }
 0x60f   : > { %8994 = vpow2.f32 %v4728_v16  ;;  %v4732_v42 = vmul.f32 1.442695, %v4494_v21  ;;  %v4734_v47 = vmul.f32 1.442695, %v4495_v14 }
 0x610   : > { %8996 = vpow2.f32 %v4730_v26 }
 0x611   : > { %4922 = vadd.xlane.f32.xlu1 %v4921_v24  ;;  %v11782_v15 = vpop.eup %8982  ;;  %8998 = vpow2.f32 %v4732_v42  ;;  %v4770_v10 = vpop.xlane.xlu0 %4769 }
 0x612   : > { %12936 = vst [vmem:[#allocation52_spill] sm:$0xff] %v11782_v15  ;;  %4901 = vadd.xlane.f32.xlu0 %v4900_v63  ;;  %v11784_v45 = vpop.eup %8984  ;;  %9000 = vpow2.f32 %v4734_v47  ;;  %v12941_v63 = vld [vmem:[#allocation95_spill] sm:$0xff] }
 0x613   : > { %12937 = vst [vmem:[#allocation54_spill] sm:$0xff] %v11784_v45  ;;  %v11788_v7 = vpop.eup %8986  ;;  %9002 = vrcp.f32 %v4770_v10  ;;  %v4924_v16 = vadd.f32 %v11784_v45, %v11782_v15  ;;  %v4906_v15 = vadd.f32 %v11780_v51, %v11774_v62 }
 0x614   : > { %12938 = vst [vmem:[#allocation83_spill] sm:$0xff] %v11788_v7  ;;  %v11792_v21 = vpop.eup %8988 }
 0x615   : > { %4904 = vadd.xlane.f32.xlu1 %v4903_v48  ;;  %v11794_v26 = vpop.eup %8990  ;;  %v4362_v3 = vpop.xlane.xlu0 %4361  ;;  %v4927_v24 = vadd.f32 %v11792_v21, %v11788_v7 }
 0x616   : > { %12939 = vst [vmem:[#allocation84_spill] sm:$0xff] %v11794_v26  ;;  %4925 = vadd.xlane.f32.xlu0 %v4924_v16  ;;  %v4773_v14 = vpop.xlane.xlu1 %4772  ;;  %v11798_v42 = vpop.eup %8992  ;;  %v4496_v47 = vsub.f32 %v11248_v6, %v4362_v3  ;;  %v4497_v10 = vsub.f32 %v12941_v63, %v4362_v3 }
 0x617   : > { %12940 = vst [vmem:[#allocation56_spill] sm:$0xff] %v11798_v42  ;;  %9004 = vrcp.f32 %v4773_v14  ;;  %v4909_v3 = vadd.f32 %v11798_v42, %v11794_v26 }
 0x618   : > { %v4736_v45 = vmul.f32 1.442695, %v4496_v47  ;;  %v4738_v48 = vmul.f32 1.442695, %v4497_v10  ;;  %v12946_v10 = vld [vmem:[#allocation93_spill] sm:$0xff] }
 0x619   : > { %4928 = vadd.xlane.f32.xlu1 %v4927_v24  ;;  %v11804_v19 = vpop.eup %8994  ;;  %v4776_v16 = vpop.xlane.xlu0 %4775 }
 0x61a   : > { %12942 = vst [vmem:[#allocation85_spill] sm:$0xff] %v11804_v19  ;;  %4907 = vadd.xlane.f32.xlu0 %v4906_v15  ;;  %v4365_v33 = vpop.xlane.xlu1 %4364  ;;  %v11806_v2 = vpop.eup %8996  ;;  %9006 = vpow2.f32 %v4736_v45 }
 0x61b   : > { %12943 = vst [vmem:[#allocation86_spill] sm:$0xff] %v11806_v2  ;;  %v4498_v7 = vsub.f32 %v11256_v20, %v4365_v33  ;;  %v4499_v6 = vsub.f32 %v11264_v23, %v4365_v33  ;;  %v11812_v14 = vpop.eup %8998  ;;  %9008 = vpow2.f32 %v4738_v48  ;;  %v4930_v24 = vadd.f32 %v11806_v2, %v11804_v19  ;;  %v12947_v19 = vld [vmem:[#allocation100_spill] sm:$0xff] }
 0x61c   : > { %12944 = vst [vmem:[#allocation58_spill] sm:$0xff] %v11812_v14  ;;  %v11816_v47 = vpop.eup %9000  ;;  %9010 = vrcp.f32 %v4776_v16  ;;  %v12948_v16 = vld [vmem:[#allocation94_spill] sm:$0xff] }
 0x61d   : > { %12945 = vst [vmem:[#allocation87_spill] sm:$0xff] %v11816_v47  ;;  %v4740_v15 = vmul.f32 1.442695, %v4498_v7  ;;  %v4742_v63 = vmul.f32 1.442695, %v4499_v6  ;;  %4910 = vadd.xlane.f32.xlu1 %v4909_v3  ;;  %v9003_v45 = vpop.eup %9002  ;;  %v4368_v20 = vpop.xlane.xlu0 %4367  ;;  %v4933_v33 = vadd.f32 %v11816_v47, %v11812_v14  ;;  %v12949_v14 = vld [vmem:[#allocation96_spill] sm:$0xff] }
 0x61e   : > { %4931 = vadd.xlane.f32.xlu0 %v4930_v24  ;;  %v4779_v23 = vpop.xlane.xlu1 %4778  ;;  %v5024_v26 = vmul.f32 %v9003_v45, %v12946_v10  ;;  %v4500_v48 = vsub.f32 %v11276_v12, %v4368_v20  ;;  %v4501_v2 = vsub.f32 %v12947_v19, %v4368_v20  ;;  %v5025_v7 = vmul.f32 %v9003_v45, %v12948_v16  ;;  %v12951_v12 = vld [vmem:[#allocation101_spill] sm:$0xff] }
 0x61f   : > { %9012 = vpow2.f32 %v4740_v15  ;;  %v12950_v15 = vld [vmem:[#allocation97_spill] sm:$0xff] }
 0x620   : > { %9014 = vpow2.f32 %v4742_v63  ;;  %5152 = vst [vmem:[%s9965_s4] sm:$0xff] %v5024_v26  ;;  %v4744_v3 = vmul.f32 1.442695, %v4500_v48  ;;  %v4746_v24 = vmul.f32 1.442695, %v4501_v2  ;;  %5153 = vst [vmem:[%s9965_s4 + $0x8] sm:$0xff] %v5025_v7  ;;  %v12952_v63 = vld [vmem:[#allocation103_spill] sm:$0xff] }
 0x621   : > { %v9005_v6 = vpop.eup %9004  ;;  %9016 = vrcp.f32 %v4779_v23  ;;  %4934 = vadd.xlane.f32.xlu1 %v4933_v33  ;;  %v4782_v10 = vpop.xlane.xlu0 %4781  ;;  %v5376_v33 = vld [vmem:[#allocation3 + $0x100] sm:$0xff] }
 0x622   : > { %v5026_v47 = vmul.f32 %v9005_v6, %v12949_v14  ;;  %v4371_v42 = vpop.xlane.xlu1 %4370  ;;  %v5027_v62 = vmul.f32 %v9005_v6, %v12950_v15  ;;  %9018 = vpow2.f32 %v4744_v3  ;;  %v5385_v3 = vld [vmem:[#allocation3 + $0x148] sm:$0xff] }
 0x623   : > { %v4502_v19 = vsub.f32 %v12951_v12, %v4371_v42  ;;  %v4503_v20 = vsub.f32 %v12952_v63, %v4371_v42  ;;  %9020 = vpow2.f32 %v4746_v24 }
 0x624   : > { %5154 = vst [vmem:[%s9965_s4 + $0x10] sm:$0xff] %v5026_v47  ;;  %5155 = vst [vmem:[%s9965_s4 + $0x18] sm:$0xff] %v5027_v62  ;;  %v5281_v45 = vpack.c.bf16 %v5027_v62, %v5025_v7  ;;  %v5280_v48 = vpack.c.bf16 %v5026_v47, %v5024_v26  ;;  %v11832_v2 = vpop.eup %9006  ;;  %9022 = vrcp.f32 %v4782_v10  ;;  %v12953_v26 = vld [vmem:[#allocation99_spill] sm:$0xff]  ;;  %v12954_v47 = vld [vmem:[#allocation98_spill] sm:$0xff] }
 0x625   : > { %v4748_v23 = vmul.f32 1.442695, %v4502_v19  ;;  %v4750_v14 = vmul.f32 1.442695, %v4503_v20  ;;  %v11834_v16 = vpop.eup %9008  ;;  %v5377_v10 = vld [vmem:[#allocation3 + $0x108] sm:$0xff]  ;;  %v5386_v19 = vld [vmem:[#allocation3 + $0x150] sm:$0xff] }
 0x626   : > { %5440 = vmatprep.mubr.bf16.mxu0 %v5281_v45  ;;  %v4785_v6 = vpop.xlane.xlu1 %4784  ;;  %v9011_v15 = vpop.eup %9010  ;;  %v4936_v62 = vadd.f32 %v11834_v16, %v11832_v2 }
 0x627   : > { %9024 = vpow2.f32 %v4748_v23  ;;  %5441 = vmatmul.mubr.bf16.vlgmr.msra.gmra.mrb[64].mxu0 %v5280_v48  ;;  %v5029_v42 = vmul.f32 %v9011_v15, %v12953_v26  ;;  %v5028_v7 = vmul.f32 %v9011_v15, %v12954_v47  ;;  %v12956_v48 = vld [vmem:[#allocation104_spill] sm:$0xff]  ;;  %v5378_v15 = vld [vmem:[#allocation3 + $0x110] sm:$0xff] }
 0x628   : > { %9026 = vpow2.f32 %v4750_v14  ;;  %7669 = vmatpush3.bf16.msra.mxu0 %v5376_v33  ;;  %4937 = vadd.xlane.f32.xlu0 %v4936_v62  ;;  %v12957_v14 = vld [vmem:[#allocation102_spill] sm:$0xff] }
 0x629   : > { %v11840_v24 = vpop.eup %9012  ;;  %9028 = vrcp.f32 %v4785_v6  ;;  %7670 = vmatprep.subr.bf16.mxu0 %v5385_v3  ;;  %5157 = vst [vmem:[%s9965_s4 + $0x28] sm:$0xff] %v5029_v42  ;;  %5156 = vst [vmem:[%s9965_s4 + $0x20] sm:$0xff] %v5028_v7  ;;  %v4788_v20 = vpop.xlane.xlu0 %4787 }
 0x62a   : > { %12955 = vst [vmem:[#allocation88_spill] sm:$0xff] %v11840_v24  ;;  %v11842_v12 = vpop.eup %9014  ;;  %9030 = vrcp.f32 %v4788_v20 }
 0x62b   : > { %v9017_v63 = vpop.eup %9016  ;;  %v4939_v45 = vadd.f32 %v11842_v12, %v11840_v24  ;;  %v4791_v3 = vpop.xlane.xlu1 %4790 }
 0x62c   : > { %v5031_v23 = vmul.f32 %v9017_v63, %v12956_v48  ;;  %v5030_v33 = vmul.f32 %v9017_v63, %v12957_v14  ;;  %7671 = vmatpush3.bf16.msra.mxu0 %v5377_v10  ;;  %v11850_v6 = vpop.eup %9018  ;;  %9032 = vrcp.f32 %v4791_v3  ;;  %v5387_v10 = vld [vmem:[#allocation3 + $0x158] sm:$0xff]  ;;  %v12960_v48 = vld [vmem:[#allocation106_spill] sm:$0xff]  ;;  %v12961_v14 = vld [vmem:[#allocation105_spill] sm:$0xff] }
 0x62d   : > { %12958 = vst [vmem:[#allocation60_spill] sm:$0xff] %v11850_v6  ;;  %4940 = vadd.xlane.f32.xlu1 %v4939_v45  ;;  %7672 = vmatprep.subr.bf16.mxu0 %v5386_v19  ;;  %v11852_v62 = vpop.eup %9020  ;;  %v5379_v3 = vld [vmem:[#allocation3 + $0x118] sm:$0xff] }
 0x62e   : > { %12959 = vst [vmem:[#allocation89_spill] sm:$0xff] %v11852_v62  ;;  %5159 = vst [vmem:[%s9965_s4 + $0x38] sm:$0xff] %v5031_v23  ;;  %v5283_v26 = vpack.c.bf16 %v5031_v23, %v5029_v42  ;;  %v5282_v47 = vpack.c.bf16 %v5030_v33, %v5028_v7  ;;  %v9023_v20 = vpop.eup %9022  ;;  %v4942_v63 = vadd.f32 %v11852_v62, %v11850_v6  ;;  %v5388_v7 = vld [vmem:[#allocation3 + $0x160] sm:$0xff] }
 0x62f   : > { %5158 = vst [vmem:[%s9965_s4 + $0x30] sm:$0xff] %v5030_v33  ;;  %v5033_v45 = vmul.f32 %v9023_v20, %v12960_v48  ;;  %v5032_v19 = vmul.f32 %v9023_v20, %v12961_v14  ;;  %v12965_v48 = vld [vmem:[#allocation107_spill] sm:$0xff]  ;;  %v5380_v14 = vld [vmem:[#allocation3 + $0x120] sm:$0xff] }
 0x630   : > { %5448 = vmatprep.mubr.bf16.mxu0 %v5283_v26  ;;  %7673 = vmatpush3.bf16.msra.mxu0 %v5378_v15  ;;  %v12964_v15 = vld [vmem:[#allocation108_spill] sm:$0xff] }
 0x631   : > { %v11860_v24 = vpop.eup %9024  ;;  %5449 = vmatmul.mubr.bf16.gmra.mrb[68].mxu0 %v5282_v47  ;;  %4943 = vadd.xlane.f32.xlu0 %v4942_v63  ;;  %5161 = vst [vmem:[%s9965_s4 + $0x48] sm:$0xff] %v5033_v45  ;;  %5160 = vst [vmem:[%s9965_s4 + $0x40] sm:$0xff] %v5032_v19  ;;  %v4794_v33 = vpop.xlane.xlu0 %4793 }
 0x632   : > { %12962 = vst [vmem:[#allocation90_spill] sm:$0xff] %v11860_v24  ;;  %v11862_v42 = vpop.eup %9026  ;;  %7674 = vmatprep.subr.bf16.mxu0 %v5387_v10  ;;  %9034 = vrcp.f32 %v4794_v33  ;;  %v12966_v33 = vld [vmem:[#allocation110_spill] sm:$0xff] }
 0x633   : > { %12963 = vst [vmem:[#allocation62_spill] sm:$0xff] %v11862_v42  ;;  %v9029_v23 = vpop.eup %9028  ;;  %v4945_v26 = vadd.f32 %v11862_v42, %v11860_v24  ;;  %v5389_v24 = vld [vmem:[#allocation3 + $0x168] sm:$0xff] }
 0x634   : > { %v5035_v20 = vmul.f32 %v9029_v23, %v12964_v15  ;;  %v5034_v47 = vmul.f32 %v9029_v23, %v12965_v48  ;;  %7675 = vmatpush3.bf16.msra.mxu0 %v5379_v3  ;;  %v4797_v63 = vpop.xlane.xlu1 %4796  ;;  %v9031_v6 = vpop.eup %9030  ;;  %v12967_v15 = vld [vmem:[#allocation109_spill] sm:$0xff]  ;;  %v12969_v48 = vld [vmem:[#allocation111_spill] sm:$0xff] }
 0x635   : > { %4946 = vadd.xlane.f32.xlu1 %v4945_v26  ;;  %7676 = vmatprep.subr.bf16.mxu0 %v5388_v7  ;;  %9036 = vrcp.f32 %v4797_v63  ;;  %v5037_v42 = vmul.f32 %v9031_v6, %v12966_v33  ;;  %v5036_v23 = vmul.f32 %v9031_v6, %v12967_v15  ;;  %v12968_v7 = vld [vmem:[#allocation112_spill] sm:$0xff] }
 0x636   : > { %5163 = vst [vmem:[%s9965_s4 + $0x58] sm:$0xff] %v5035_v20  ;;  %v5285_v10 = vpack.c.bf16 %v5035_v20, %v5033_v45  ;;  %5162 = vst [vmem:[%s9965_s4 + $0x50] sm:$0xff] %v5034_v47  ;;  %v5284_v62 = vpack.c.bf16 %v5034_v47, %v5032_v19  ;;  %v9033_v3 = vpop.eup %9032  ;;  %v5381_v45 = vld [vmem:[#allocation3 + $0x128] sm:$0xff]  ;;  %v5390_v19 = vld [vmem:[#allocation3 + $0x170] sm:$0xff] }
 0x637   : > { %v5039_v26 = vmul.f32 %v9033_v3, %v12968_v7  ;;  %5165 = vst [vmem:[%s9965_s4 + $0x68] sm:$0xff] %v5037_v42  ;;  %v5038_v63 = vmul.f32 %v9033_v3, %v12969_v48  ;;  %5164 = vst [vmem:[%s9965_s4 + $0x60] sm:$0xff] %v5036_v23  ;;  %v12970_v3 = vld [vmem:[#allocation114_spill] sm:$0xff] }
 0x638   : > { %5456 = vmatprep.mubr.bf16.mxu0 %v5285_v10  ;;  %7677 = vmatpush3.bf16.msra.mxu0 %v5380_v14  ;;  %v5391_v10 = vld [vmem:[#allocation3 + $0x178] sm:$0xff] }
 0x639   : > { %5457 = vmatmul.mubr.bf16.gmra.mrb[72].mxu0 %v5284_v62  ;;  %7678 = vmatprep.subr.bf16.mxu0 %v5389_v24  ;;  %v4800_v20 = vpop.xlane.xlu0 %4799  ;;  %5167 = vst [vmem:[%s9965_s4 + $0x78] sm:$0xff] %v5039_v26  ;;  %v5287_v47 = vpack.c.bf16 %v5039_v26, %v5037_v42  ;;  %5166 = vst [vmem:[%s9965_s4 + $0x70] sm:$0xff] %v5038_v63  ;;  %v5382_v62 = vld [vmem:[#allocation3 + $0x130] sm:$0xff]  ;;  %v5286_v24 = vpack.c.bf16 %v5038_v63, %v5036_v23  ;;  %v12971_v26 = vld [vmem:[#allocation113_spill] sm:$0xff] }
 0x63a   : > { %9038 = vrcp.f32 %v4800_v20  ;;  %v12972_v63 = vld [vmem:[#allocation116_spill] sm:$0xff] }
 0x63b   : > { %5464 = vmatprep.mubr.bf16.mxu0 %v5287_v47 }
 0x63c   : > { %7679 = vmatpush3.bf16.msra.mxu0 %v5381_v45  ;;  %v4803_v6 = vpop.xlane.xlu1 %4802  ;;  %v9035_v14 = vpop.eup %9034  ;;  %v5383_v45 = vld [vmem:[#allocation3 + $0x138] sm:$0xff] }
 0x63d   : > { %7680 = vmatprep.subr.bf16.mxu0 %v5390_v19  ;;  %9040 = vrcp.f32 %v4803_v6  ;;  %v5041_v33 = vmul.f32 %v9035_v14, %v11366_v50  ;;  %v5040_v15 = vmul.f32 %v9035_v14, %v11364_v37  ;;  %v12973_v6 = vld [vmem:[#allocation115_spill] sm:$0xff] }
 0x63f   : > { %v9037_v42 = vpop.eup %9036  ;;  %5169 = vst [vmem:[%s9965_s4 + $0x88] sm:$0xff] %v5041_v33  ;;  %5168 = vst [vmem:[%s9965_s4 + $0x80] sm:$0xff] %v5040_v15 }
 0x640   : > { %7681 = vmatpush3.bf16.msra.mxu0 %v5382_v62  ;;  %v5043_v7 = vmul.f32 %v9037_v42, %v12970_v3  ;;  %v5042_v48 = vmul.f32 %v9037_v42, %v12971_v26 }
 0x641   : > { %5465 = vmatmul.mubr.bf16.gmra.mrb[76].mxu0 %v5286_v24  ;;  %7682 = vmatprep.subr.bf16.mxu0 %v5391_v10  ;;  %v4806_v19 = vpop.xlane.xlu0 %4805  ;;  %v12974_v10 = vld [vmem:[#allocation118_spill] sm:$0xff] }
 0x642   : > { %5171 = vst [vmem:[%s9965_s4 + $0x98] sm:$0xff] %v5043_v7  ;;  %v5289_v20 = vpack.c.bf16 %v5043_v7, %v5041_v33  ;;  %5170 = vst [vmem:[%s9965_s4 + $0x90] sm:$0xff] %v5042_v48  ;;  %9042 = vrcp.f32 %v4806_v19  ;;  %v5288_v23 = vpack.c.bf16 %v5042_v48, %v5040_v15  ;;  %v12975_v33 = vld [vmem:[#allocation117_spill] sm:$0xff] }
 0x644   : > { %7683 = vmatpush3.bf16.msra.mxu0 %v5383_v45  ;;  %5472 = vmatprep.mubr.bf16.mxu0 %v5289_v20  ;;  %v4809_v37 = vpop.xlane.xlu1 %4808  ;;  %v9039_v50 = vpop.eup %9038 }
 0x645   : > { %9044 = vrcp.f32 %v4809_v37  ;;  %v5045_v47 = vmul.f32 %v9039_v50, %v12972_v63  ;;  %v5044_v62 = vmul.f32 %v9039_v50, %v12973_v6 }
 0x647   : > { %v9041_v14 = vpop.eup %9040  ;;  %5173 = vst [vmem:[%s9965_s4 + $0xa8] sm:$0xff] %v5045_v47  ;;  %5172 = vst [vmem:[%s9965_s4 + $0xa0] sm:$0xff] %v5044_v62 }
 0x648   : > { %v5047_v24 = vmul.f32 %v9041_v14, %v12974_v10  ;;  %v5046_v42 = vmul.f32 %v9041_v14, %v12975_v33 }
 0x649   : > { %5473 = vmatmul.mubr.bf16.gmra.mrb[80].mxu0 %v5288_v23 }
 0x64a   : > { %5175 = vst [vmem:[%s9965_s4 + $0xb8] sm:$0xff] %v5047_v24  ;;  %v5291_v3 = vpack.c.bf16 %v5047_v24, %v5045_v47  ;;  %5174 = vst [vmem:[%s9965_s4 + $0xb0] sm:$0xff] %v5046_v42  ;;  %v5290_v7 = vpack.c.bf16 %v5046_v42, %v5044_v62 }
 0x64c   : > { %5480 = vmatprep.mubr.bf16.mxu0 %v5291_v3  ;;  %v9043_v15 = vpop.eup %9042 }
 0x64d   : > { %v5049_v26 = vmul.f32 %v9043_v15, %v11412_v60  ;;  %v5048_v48 = vmul.f32 %v9043_v15, %v11410_v31 }
 0x64f   : > { %v9045_v45 = vpop.eup %9044  ;;  %5177 = vst [vmem:[%s9965_s4 + $0xc8] sm:$0xff] %v5049_v26  ;;  %5176 = vst [vmem:[%s9965_s4 + $0xc0] sm:$0xff] %v5048_v48 }
 0x650   : > { %v5051_v19 = vmul.f32 %v9045_v45, %v11419_v35  ;;  %v5050_v20 = vmul.f32 %v9045_v45, %v11414_v49 }
 0x651   : > { %5481 = vmatmul.mubr.bf16.gmra.mrb[84].mxu0 %v5290_v7  ;;  %v4818_v37 = vpop.xlane.xlu0 %4817  ;;  %v12977_v7 = vld [vmem:[#allocation123_spill] sm:$0xff] }
 0x652   : > { %5179 = vst [vmem:[%s9965_s4 + $0xd8] sm:$0xff] %v5051_v19  ;;  %v5293_v50 = vpack.c.bf16 %v5051_v19, %v5049_v26  ;;  %5178 = vst [vmem:[%s9965_s4 + $0xd0] sm:$0xff] %v5050_v20  ;;  %9046 = vrcp.f32 %v4818_v37  ;;  %v5292_v60 = vpack.c.bf16 %v5050_v20, %v5048_v48  ;;  %v12979_v19 = vld [vmem:[#allocation125_spill] sm:$0xff] }
 0x654   : > { %5488 = vmatprep.mubr.bf16.mxu0 %v5293_v50  ;;  %v4821_v23 = vpop.xlane.xlu1 %4820 }
 0x655   : > { %9048 = vrcp.f32 %v4821_v23 }
 0x657   : > { %v4374_v63 = vpop.xlane.xlu0 %4373 }
 0x658   : > { %v4504_v31 = vsub.f32 %v11304_v22, %v4374_v63  ;;  %v4505_v47 = vsub.f32 %v11312_v44, %v4374_v63  ;;  %v12976_v44 = vld [vmem:[#allocation122_spill] sm:$0xff]  ;;  %v5392_v63 = vld [vmem:[#allocation3 + $0x180] sm:$0xff] }
 0x659   : > { %5489 = vmatmul.mubr.bf16.gmra.mrb[88].mxu0 %v5292_v60 }
 0x65a   : > { %v4377_v35 = vpop.xlane.xlu1 %4376  ;;  %v4752_v6 = vmul.f32 1.442695, %v4504_v31  ;;  %v4754_v62 = vmul.f32 1.442695, %v4505_v47  ;;  %v5401_v31 = vld [vmem:[#allocation3 + $0x1c8] sm:$0xff] }
 0x65b   : > { %v4506_v49 = vsub.f32 %v11316_v38, %v4377_v35  ;;  %v4507_v14 = vsub.f32 %v11322_v25, %v4377_v35  ;;  %v4824_v10 = vpop.xlane.xlu0 %4823  ;;  %v12978_v25 = vld [vmem:[#allocation124_spill] sm:$0xff] }
 0x65c   : > { %9050 = vpow2.f32 %v4752_v6  ;;  %v9047_v22 = vpop.eup %9046 }
 0x65d   : > { %v4756_v24 = vmul.f32 1.442695, %v4506_v49  ;;  %v4758_v33 = vmul.f32 1.442695, %v4507_v14  ;;  %9052 = vpow2.f32 %v4754_v62  ;;  %v5056_v3 = vmul.f32 %v9047_v22, %v12976_v44 }
 0x65e   : > { %v4827_v42 = vpop.xlane.xlu1 %4826  ;;  %v5057_v38 = vmul.f32 %v9047_v22, %v12977_v7  ;;  %v5402_v22 = vld [vmem:[#allocation3 + $0x1d0] sm:$0xff] }
 0x65f   : > { %9054 = vpow2.f32 %v4756_v24  ;;  %v4812_v15 = vpop.xlane.xlu0 %4811  ;;  %v9049_v26 = vpop.eup %9048  ;;  %5184 = vst [vmem:[%s9965_s4 + $0x100] sm:$0xff] %v5056_v3  ;;  %v5393_v24 = vld [vmem:[#allocation3 + $0x188] sm:$0xff] }
 0x660   : > { %9056 = vpow2.f32 %v4758_v33  ;;  %v5058_v48 = vmul.f32 %v9049_v26, %v12978_v25  ;;  %v5059_v20 = vmul.f32 %v9049_v26, %v12979_v19  ;;  %5185 = vst [vmem:[%s9965_s4 + $0x108] sm:$0xff] %v5057_v38  ;;  %v12980_v25 = vld [vmem:[#allocation37_spill] sm:$0xff] }
 0x661   : > { %9058 = vrcp.f32 %v4824_v10 }
 0x662   : > { %9060 = vrcp.f32 %v4827_v42  ;;  %v4815_v45 = vpop.xlane.xlu1 %4814  ;;  %5186 = vst [vmem:[%s9965_s4 + $0x110] sm:$0xff] %v5058_v48  ;;  %5187 = vst [vmem:[%s9965_s4 + $0x118] sm:$0xff] %v5059_v20  ;;  %v5297_v50 = vpack.c.bf16 %v5059_v20, %v5057_v38  ;;  %v5296_v23 = vpack.c.bf16 %v5058_v48, %v5056_v3 }
 0x663   : > { %9062 = vrcp.f32 %v4812_v15  ;;  %v4830_v37 = vpop.xlane.xlu0 %4829 }
 0x664   : > { %9064 = vrcp.f32 %v4815_v45  ;;  %5537 = vmatprep.mubr.bf16.mxu1 %v5297_v50  ;;  %v12981_v45 = vld [vmem:[#allocation57_spill] sm:$0xff] }
 0x665   : > { %9066 = vrcp.f32 %v4830_v37  ;;  %5538 = vmatmul.mubr.bf16.vlgmr.msra.gmra.mrb[128].mxu1 %v5296_v23  ;;  %v12982_v23 = vld [vmem:[#allocation38_spill] sm:$0xff] }
 0x666   : > { %v4833_v60 = vpop.xlane.xlu1 %4832  ;;  %v11916_v47 = vpop.eup %9050  ;;  %7733 = vmatpush3.bf16.msra.mxu1 %v5392_v63 }
 0x667   : > { %9068 = vrcp.f32 %v4833_v60  ;;  %v11918_v35 = vpop.eup %9052  ;;  %v4380_v6 = vpop.xlane.xlu0 %4379  ;;  %7734 = vmatprep.subr.bf16.mxu1 %v5401_v31  ;;  %v12983_v31 = vld [vmem:[#allocation126_spill] sm:$0xff] }
 0x668   : > { %v4508_v49 = vsub.f32 %v11336_v17, %v4380_v6  ;;  %v4509_v14 = vsub.f32 %v11341_v28, %v4380_v6  ;;  %v4948_v10 = vadd.f32 %v11918_v35, %v11916_v47 }
 0x669   : > { %v11920_v62 = vpop.eup %9054 }
 0x66a   : > { %v11926_v33 = vpop.eup %9056  ;;  %v4383_v42 = vpop.xlane.xlu1 %4382  ;;  %v4760_v3 = vmul.f32 1.442695, %v4508_v49  ;;  %v4762_v15 = vmul.f32 1.442695, %v4509_v14  ;;  %4949 = vadd.xlane.f32.xlu0 %v4948_v10  ;;  %7735 = vmatpush3.bf16.msra.mxu1 %v5393_v24  ;;  %v12984_v49 = vld [vmem:[#allocation59_spill] sm:$0xff] }
 0x66b   : > { %v9059_v44 = vpop.eup %9058  ;;  %v4510_v7 = vsub.f32 %v11348_v59, %v4383_v42  ;;  %v4511_v38 = vsub.f32 %v11354_v36, %v4383_v42  ;;  %v4836_v28 = vpop.xlane.xlu0 %4835  ;;  %v4951_v26 = vadd.f32 %v11926_v33, %v11920_v62  ;;  %7736 = vmatprep.subr.bf16.mxu1 %v5402_v22  ;;  %v5394_v36 = vld [vmem:[#allocation3 + $0x190] sm:$0xff]  ;;  %v5403_v42 = vld [vmem:[#allocation3 + $0x1d8] sm:$0xff] }
 0x66c   : > { %v9061_v17 = vpop.eup %9060  ;;  %v5061_v48 = vmul.f32 %v9059_v44, %v12980_v25  ;;  %v5060_v19 = vmul.f32 %v9059_v44, %v12981_v45  ;;  %9070 = vpow2.f32 %v4760_v3  ;;  %v12985_v10 = vld [vmem:[#allocation55_spill] sm:$0xff]  ;;  %v12986_v3 = vld [vmem:[#allocation61_spill] sm:$0xff] }
 0x66d   : > { %v9063_v20 = vpop.eup %9062  ;;  %v4764_v37 = vmul.f32 1.442695, %v4510_v7  ;;  %v4766_v50 = vmul.f32 1.442695, %v4511_v38  ;;  %v5063_v59 = vmul.f32 %v9061_v17, %v12982_v23  ;;  %9072 = vpow2.f32 %v4762_v15  ;;  %4952 = vadd.xlane.f32.xlu1 %v4951_v26  ;;  %v12987_v7 = vld [vmem:[#allocation39_spill] sm:$0xff]  ;;  %v12988_v25 = vld [vmem:[#allocation65_spill] sm:$0xff] }
 0x66e   : > { %v9065_v63 = vpop.eup %9064  ;;  %5189 = vst [vmem:[%s9965_s4 + $0x128] sm:$0xff] %v5061_v48  ;;  %v4839_v60 = vpop.xlane.xlu1 %4838  ;;  %v5062_v6 = vmul.f32 %v9061_v17, %v12983_v31  ;;  %5188 = vst [vmem:[%s9965_s4 + $0x120] sm:$0xff] %v5060_v19  ;;  %v5053_v14 = vmul.f32 %v9063_v20, %v12984_v49  ;;  %v5052_v24 = vmul.f32 %v9063_v20, %v12985_v10  ;;  %v12989_v20 = vld [vmem:[#allocation63_spill] sm:$0xff]  ;;  %7737 = vmatpush3.bf16.msra.mxu1 %v5394_v36  ;;  %v5404_v49 = vld [vmem:[#allocation3 + $0x1e0] sm:$0xff] }
 0x66f   : > { %v9067_v44 = vpop.eup %9066  ;;  %9074 = vpow2.f32 %v4764_v37  ;;  %5191 = vst [vmem:[%s9965_s4 + $0x138] sm:$0xff] %v5063_v59  ;;  %v5299_v22 = vpack.c.bf16 %v5063_v59, %v5061_v48  ;;  %v5055_v15 = vmul.f32 %v9065_v63, %v12986_v3  ;;  %v5054_v38 = vmul.f32 %v9065_v63, %v12987_v7  ;;  %v4866_v26 = vpop.xlane.xlu0 %4865  ;;  %7738 = vmatprep.subr.bf16.mxu1 %v5403_v42  ;;  %v12990_v63 = vld [vmem:[#allocation41_spill] sm:$0xff] }
 0x670   : > { %9076 = vpow2.f32 %v4766_v50  ;;  %5190 = vst [vmem:[%s9965_s4 + $0x130] sm:$0xff] %v5062_v6  ;;  %v5298_v17 = vpack.c.bf16 %v5062_v6, %v5060_v19  ;;  %5181 = vst [vmem:[%s9965_s4 + $0xe8] sm:$0xff] %v5053_v14  ;;  %v5065_v45 = vmul.f32 %v9067_v44, %v12988_v25  ;;  %v5064_v23 = vmul.f32 %v9067_v44, %v12989_v20  ;;  %v5395_v19 = vld [vmem:[#allocation3 + $0x198] sm:$0xff]  ;;  %v5405_v42 = vld [vmem:[#allocation3 + $0x1e8] sm:$0xff] }
 0x671   : > { %5180 = vst [vmem:[%s9965_s4 + $0xe0] sm:$0xff] %v5052_v24  ;;  %v9069_v37 = vpop.eup %9068  ;;  %9078 = vrcp.f32 %v4836_v28  ;;  %5545 = vmatprep.mubr.bf16.mxu1 %v5299_v22  ;;  %5183 = vst [vmem:[%s9965_s4 + $0xf8] sm:$0xff] %v5055_v15  ;;  %v5295_v48 = vpack.c.bf16 %v5055_v15, %v5053_v14  ;;  %v5294_v59 = vpack.c.bf16 %v5054_v38, %v5052_v24  ;;  %v12991_v6 = vld [vmem:[#allocation40_spill] sm:$0xff]  ;;  %v5406_v25 = vld [vmem:[#allocation3 + $0x1f0] sm:$0xff] }
 0x672   : > { %5182 = vst [vmem:[%s9965_s4 + $0xf0] sm:$0xff] %v5054_v38  ;;  %9080 = vrcp.f32 %v4839_v60  ;;  %5546 = vmatmul.mubr.bf16.gmra.mrb[132].mxu1 %v5298_v17  ;;  %v4869_v50 = vpop.xlane.xlu1 %4868  ;;  %v5067_v31 = vmul.f32 %v9069_v37, %v12990_v63  ;;  %5193 = vst [vmem:[%s9965_s4 + $0x148] sm:$0xff] %v5065_v45  ;;  %v5066_v36 = vmul.f32 %v9069_v37, %v12991_v6  ;;  %v5396_v60 = vld [vmem:[#allocation3 + $0x1a0] sm:$0xff]  ;;  %v5397_v38 = vld [vmem:[#allocation3 + $0x1a8] sm:$0xff] }
 0x673   : > { %5192 = vst [vmem:[%s9965_s4 + $0x140] sm:$0xff] %v5064_v23  ;;  %9082 = vrcp.f32 %v4866_v26  ;;  %5496 = vmatprep.mubr.bf16.mxu0 %v5295_v48  ;;  %v4842_v28 = vpop.xlane.xlu0 %4841  ;;  %7739 = vmatpush3.bf16.msra.mxu1 %v5395_v19  ;;  %v12992_v48 = vld [vmem:[#allocation43_spill] sm:$0xff]  ;;  %v12993_v19 = vld [vmem:[#allocation68_spill] sm:$0xff] }
 0x674   : > { %9084 = vrcp.f32 %v4869_v50  ;;  %5497 = vmatmul.mubr.bf16.gmra.mrb[92].mxu0 %v5294_v59  ;;  %5195 = vst [vmem:[%s9965_s4 + $0x158] sm:$0xff] %v5067_v31  ;;  %v5301_v14 = vpack.c.bf16 %v5067_v31, %v5065_v45  ;;  %5194 = vst [vmem:[%s9965_s4 + $0x150] sm:$0xff] %v5066_v36  ;;  %7740 = vmatprep.subr.bf16.mxu1 %v5404_v49  ;;  %v5300_v24 = vpack.c.bf16 %v5066_v36, %v5064_v23  ;;  %v12994_v31 = vld [vmem:[#allocation70_spill] sm:$0xff]  ;;  %v12995_v36 = vld [vmem:[#allocation69_spill] sm:$0xff] }
 0x675   : > { %9086 = vrcp.f32 %v4842_v28  ;;  %v5398_v28 = vld [vmem:[#allocation3 + $0x1b0] sm:$0xff] }
 0x676   : > { %5553 = vmatprep.mubr.bf16.mxu1 %v5301_v14  ;;  %v4845_v10 = vpop.xlane.xlu1 %4844  ;;  %v11956_v44 = vpop.eup %9070 }
 0x677   : > { %9088 = vrcp.f32 %v4845_v10  ;;  %v11958_v22 = vpop.eup %9072  ;;  %v4872_v3 = vpop.xlane.xlu0 %4871  ;;  %7741 = vmatpush3.bf16.msra.mxu1 %v5396_v60  ;;  %v12996_v60 = vld [vmem:[#allocation119_spill] sm:$0xff] }
 0x678   : > { %9090 = vrcp.f32 %v4872_v3  ;;  %v4954_v7 = vadd.f32 %v11958_v22, %v11956_v44  ;;  %7742 = vmatprep.subr.bf16.mxu1 %v5405_v42  ;;  %v12997_v42 = vld [vmem:[#allocation120_spill] sm:$0xff] }
 0x679   : > { %v11960_v15 = vpop.eup %9074 }
 0x67a   : > { %v11964_v17 = vpop.eup %9076  ;;  %5554 = vmatmul.mubr.bf16.gmra.mrb[136].mxu1 %v5300_v24  ;;  %v4875_v26 = vpop.xlane.xlu1 %4874  ;;  %4955 = vadd.xlane.f32.xlu0 %v4954_v7  ;;  %v5407_v7 = vld [vmem:[#allocation3 + $0x1f8] sm:$0xff] }
 0x67b   : > { %v9079_v45 = vpop.eup %9078  ;;  %9092 = vrcp.f32 %v4875_v26  ;;  %v4957_v20 = vadd.f32 %v11964_v17, %v11960_v15  ;;  %v4848_v37 = vpop.xlane.xlu0 %4847  ;;  %7743 = vmatpush3.bf16.msra.mxu1 %v5397_v38  ;;  %v12998_v26 = vld [vmem:[#allocation121_spill] sm:$0xff] }
 0x67c   : > { %v9081_v23 = vpop.eup %9080  ;;  %v5069_v59 = vmul.f32 %v9079_v45, %v12992_v48  ;;  %v5068_v50 = vmul.f32 %v9079_v45, %v12993_v19  ;;  %9094 = vrcp.f32 %v4848_v37  ;;  %7744 = vmatprep.subr.bf16.mxu1 %v5406_v25  ;;  %v12999_v37 = vld [vmem:[#allocation53_spill] sm:$0xff] }
 0x67d   : > { %v9083_v63 = vpop.eup %9082  ;;  %4958 = vadd.xlane.f32.xlu1 %v4957_v20  ;;  %v5071_v6 = vmul.f32 %v9081_v23, %v12994_v31  ;;  %v5070_v49 = vmul.f32 %v9081_v23, %v12995_v36  ;;  %v13000_v19 = vld [vmem:[#allocation73_spill] sm:$0xff] }
 0x67e   : > { %v9085_v14 = vpop.eup %9084  ;;  %v5088_v10 = vmul.f32 %v9083_v63, %v12996_v60  ;;  %5197 = vst [vmem:[%s9965_s4 + $0x168] sm:$0xff] %v5069_v59  ;;  %v4851_v24 = vpop.xlane.xlu1 %4850  ;;  %5196 = vst [vmem:[%s9965_s4 + $0x160] sm:$0xff] %v5068_v50  ;;  %v5089_v3 = vmul.f32 %v9083_v63, %v12997_v42  ;;  %v13001_v63 = vld [vmem:[#allocation44_spill] sm:$0xff] }
 0x67f   : > { %v9087_v38 = vpop.eup %9086  ;;  %v5090_v45 = vmul.f32 %v9085_v14, %v12998_v26  ;;  %5199 = vst [vmem:[%s9965_s4 + $0x178] sm:$0xff] %v5071_v6  ;;  %v5303_v20 = vpack.c.bf16 %v5071_v6, %v5069_v59  ;;  %9096 = vrcp.f32 %v4851_v24  ;;  %5198 = vst [vmem:[%s9965_s4 + $0x170] sm:$0xff] %v5070_v49  ;;  %v5302_v25 = vpack.c.bf16 %v5070_v49, %v5068_v50  ;;  %v4878_v23 = vpop.xlane.xlu0 %4877  ;;  %v5399_v24 = vld [vmem:[#allocation3 + $0x1b8] sm:$0xff] }
 0x680   : > { %5216 = vst [vmem:[%s9965_s4 + $0x200] sm:$0xff] %v5088_v10  ;;  %v5091_v48 = vmul.f32 %v9085_v14, %v12999_v37  ;;  %5217 = vst [vmem:[%s9965_s4 + $0x208] sm:$0xff] %v5089_v3  ;;  %v5073_v31 = vmul.f32 %v9087_v38, %v13000_v19  ;;  %v5072_v36 = vmul.f32 %v9087_v38, %v13001_v63  ;;  %7745 = vmatpush3.bf16.msra.mxu1 %v5398_v28 }
 0x681   : > { %v9089_v60 = vpop.eup %9088  ;;  %5218 = vst [vmem:[%s9965_s4 + $0x210] sm:$0xff] %v5090_v45  ;;  %5561 = vmatprep.mubr.bf16.mxu1 %v5303_v20  ;;  %9098 = vrcp.f32 %v4878_v23  ;;  %v5312_v59 = vpack.c.bf16 %v5090_v45, %v5088_v10  ;;  %7746 = vmatprep.subr.bf16.mxu1 %v5407_v7  ;;  %v13002_v45 = vld [vmem:[#allocation42_spill] sm:$0xff] }
 0x682   : > { %5562 = vmatmul.mubr.bf16.gmra.mrb[140].mxu1 %v5302_v25  ;;  %5219 = vst [vmem:[%s9965_s4 + $0x218] sm:$0xff] %v5091_v48  ;;  %v5313_v50 = vpack.c.bf16 %v5091_v48, %v5089_v3  ;;  %v4881_v6 = vpop.xlane.xlu1 %4880  ;;  %v5075_v49 = vmul.f32 %v9089_v60, %v11614_v27  ;;  %5201 = vst [vmem:[%s9965_s4 + $0x188] sm:$0xff] %v5073_v31  ;;  %v5074_v14 = vmul.f32 %v9089_v60, %v11606_v52  ;;  %v9091_v28 = vpop.eup %9090  ;;  %v8770_v27 = vld [vmem:[#allocation10] sm:$0xff]   ;;  %v13003_v25 = vld [vmem:[#allocation67_spill] sm:$0xff] }
 0x683   : > { %5200 = vst [vmem:[%s9965_s4 + $0x180] sm:$0xff] %v5072_v36  ;;  %9100 = vrcp.f32 %v4881_v6  ;;  %v4854_v42 = vpop.xlane.xlu0 %4853  ;;  %v5093_v7 = vmul.f32 %v9091_v28, %v11528_v32  ;;  %v5092_v3 = vmul.f32 %v9091_v28, %v11480_v61  ;;  %8348 = vmatprep.subr.bf16.mxu0 %v8770_v27  ;;  %v13004_v48 = vld [vmem:[#allocation46_spill] sm:$0xff] }
 0x684   : > { %5634 = vmatprep.mubr.bf16.mxu0 %v5313_v50  ;;  %5203 = vst [vmem:[%s9965_s4 + $0x198] sm:$0xff] %v5075_v49  ;;  %v5305_v10 = vpack.c.bf16 %v5075_v49, %v5073_v31  ;;  %5202 = vst [vmem:[%s9965_s4 + $0x190] sm:$0xff] %v5074_v14  ;;  %9102 = vrcp.f32 %v4854_v42  ;;  %7747 = vmatpush3.bf16.msra.mxu1 %v5399_v24  ;;  %v5304_v26 = vpack.c.bf16 %v5074_v14, %v5072_v36  ;;  %v13005_v31 = vld [vmem:[#allocation45_spill] sm:$0xff] }
 0x685   : > { %v9093_v38 = vpop.eup %9092  ;;  %5635 = vmatmul.mubr.bf16.vlgmr.msra.gmra.mrb[96].mxu0 %v5312_v59  ;;  %5221 = vst [vmem:[%s9965_s4 + $0x228] sm:$0xff] %v5093_v7  ;;  %5220 = vst [vmem:[%s9965_s4 + $0x220] sm:$0xff] %v5092_v3  ;;  %v8771_v49 = vld [vmem:[#allocation10 + $0x8] sm:$0xff]  }
 0x686   : > { %5569 = vmatprep.mubr.bf16.mxu1 %v5305_v10  ;;  %v4857_v52 = vpop.xlane.xlu1 %4856  ;;  %v5095_v20 = vmul.f32 %v9093_v38, %v13002_v45  ;;  %v5094_v23 = vmul.f32 %v9093_v38, %v13003_v25  ;;  %v9095_v37 = vpop.eup %9094  ;;  %8349 = vmatpush3.bf16.msra.mxu0 %v8770_v27  ;;  %v13007_v27 = vld [vmem:[#allocation71_spill] sm:$0xff]  ;;  %v13008_v45 = vld [vmem:[#allocation76_spill] sm:$0xff] }
 0x687   : > { %9104 = vrcp.f32 %v4857_v52  ;;  %v4884_v61 = vpop.xlane.xlu0 %4883  ;;  %v5077_v19 = vmul.f32 %v9095_v37, %v13004_v48  ;;  %v5076_v63 = vmul.f32 %v9095_v37, %v13005_v31  ;;  %8350 = vmatprep.subr.bf16.mxu0 %v8771_v49  ;;  %v13009_v25 = vld [vmem:[#allocation75_spill] sm:$0xff]  ;;  %v13010_v48 = vld [vmem:[#allocation77_spill] sm:$0xff] }
 0x688   : > { %5223 = vst [vmem:[%s9965_s4 + $0x238] sm:$0xff] %v5095_v20  ;;  %v5315_v32 = vpack.c.bf16 %v5095_v20, %v5093_v7  ;;  %5222 = vst [vmem:[%s9965_s4 + $0x230] sm:$0xff] %v5094_v23  ;;  %9106 = vrcp.f32 %v4884_v61  ;;  %v5314_v60 = vpack.c.bf16 %v5094_v23, %v5092_v3  ;;  %v13006_v3 = vld [vmem:[#allocation72_spill] sm:$0xff]  ;;  %v13011_v31 = vld [vmem:[#allocation47_spill] sm:$0xff] }
 0x689   : > { %v9097_v36 = vpop.eup %9096  ;;  %5205 = vst [vmem:[%s9965_s4 + $0x1a8] sm:$0xff] %v5077_v19  ;;  %5204 = vst [vmem:[%s9965_s4 + $0x1a0] sm:$0xff] %v5076_v63 }
 0x68a   : > { %5570 = vmatmul.mubr.bf16.gmra.mrb[144].mxu1 %v5304_v26  ;;  %5642 = vmatprep.mubr.bf16.mxu0 %v5315_v32  ;;  %v4887_v59 = vpop.xlane.xlu1 %4886  ;;  %v5079_v50 = vmul.f32 %v9097_v36, %v11646_v5  ;;  %v5078_v6 = vmul.f32 %v9097_v36, %v11640_v55 }
 0x68b   : > { %v9099_v14 = vpop.eup %9098  ;;  %9108 = vrcp.f32 %v4887_v59  ;;  %v4860_v24 = vpop.xlane.xlu0 %4859  ;;  %8351 = vmatpush3.bf16.msra.mxu0 %v8771_v49 }
 0x68c   : > { %5207 = vst [vmem:[%s9965_s4 + $0x1b8] sm:$0xff] %v5079_v50  ;;  %v5307_v28 = vpack.c.bf16 %v5079_v50, %v5077_v19  ;;  %5206 = vst [vmem:[%s9965_s4 + $0x1b0] sm:$0xff] %v5078_v6  ;;  %v5097_v42 = vmul.f32 %v9099_v14, %v11564_v18  ;;  %v5096_v10 = vmul.f32 %v9099_v14, %v11562_v43  ;;  %9110 = vrcp.f32 %v4860_v24 }
 0x68d   : > { %v9101_v5 = vpop.eup %9100  ;;  %5643 = vmatmul.mubr.bf16.gmra.mrb[100].mxu0 %v5314_v60  ;;  %v5306_v7 = vpack.c.bf16 %v5078_v6, %v5076_v63 }
 0x68e   : > { %5577 = vmatprep.mubr.bf16.mxu1 %v5307_v28  ;;  %v4863_v55 = vpop.xlane.xlu1 %4862  ;;  %v5099_v38 = vmul.f32 %v9101_v5, %v13006_v3  ;;  %5225 = vst [vmem:[%s9965_s4 + $0x248] sm:$0xff] %v5097_v42  ;;  %v5098_v52 = vmul.f32 %v9101_v5, %v13007_v27  ;;  %5224 = vst [vmem:[%s9965_s4 + $0x240] sm:$0xff] %v5096_v10  ;;  %v9103_v18 = vpop.eup %9102  ;;  %v13012_v28 = vld [vmem:[#allocation74_spill] sm:$0xff] }
 0x68f   : > { %9112 = vrcp.f32 %v4863_v55  ;;  %v4890_v43 = vpop.xlane.xlu0 %4889  ;;  %v5081_v20 = vmul.f32 %v9103_v18, %v13008_v45  ;;  %v5080_v23 = vmul.f32 %v9103_v18, %v13009_v25  ;;  %v13015_v18 = vld [vmem:[#allocation80_spill] sm:$0xff] }
 0x690   : > { %5227 = vst [vmem:[%s9965_s4 + $0x258] sm:$0xff] %v5099_v38  ;;  %v5317_v26 = vpack.c.bf16 %v5099_v38, %v5097_v42  ;;  %5226 = vst [vmem:[%s9965_s4 + $0x250] sm:$0xff] %v5098_v52  ;;  %9114 = vrcp.f32 %v4890_v43  ;;  %v5316_v61 = vpack.c.bf16 %v5098_v52, %v5096_v10  ;;  %v13014_v38 = vld [vmem:[#allocation49_spill] sm:$0xff] }
 0x691   : > { %v9105_v37 = vpop.eup %9104  ;;  %5209 = vst [vmem:[%s9965_s4 + $0x1c8] sm:$0xff] %v5081_v20  ;;  %5208 = vst [vmem:[%s9965_s4 + $0x1c0] sm:$0xff] %v5080_v23 }
 0x692   : > { %5578 = vmatmul.mubr.bf16.gmra.mrb[148].mxu1 %v5306_v7  ;;  %5650 = vmatprep.mubr.bf16.mxu0 %v5317_v26  ;;  %v4893_v32 = vpop.xlane.xlu1 %4892  ;;  %v5083_v19 = vmul.f32 %v9105_v37, %v13010_v48  ;;  %v5082_v63 = vmul.f32 %v9105_v37, %v13011_v31  ;;  %v9107_v36 = vpop.eup %9106 }
 0x693   : > { %9116 = vrcp.f32 %v4893_v32  ;;  %v4914_v60 = vpop.xlane.xlu0 %4913  ;;  %v5101_v50 = vmul.f32 %v9107_v36, %v11618_v46  ;;  %v5100_v6 = vmul.f32 %v9107_v36, %v11596_v41  ;;  %v13013_v41 = vld [vmem:[#allocation79_spill] sm:$0xff]  ;;  %v13016_v32 = vld [vmem:[#allocation48_spill] sm:$0xff] }
 0x694   : > { %5211 = vst [vmem:[%s9965_s4 + $0x1d8] sm:$0xff] %v5083_v19  ;;  %v5309_v59 = vpack.c.bf16 %v5083_v19, %v5081_v20  ;;  %5210 = vst [vmem:[%s9965_s4 + $0x1d0] sm:$0xff] %v5082_v63  ;;  %9118 = vrcp.f32 %v4914_v60  ;;  %v5308_v14 = vpack.c.bf16 %v5082_v63, %v5080_v23  ;;  %v13017_v19 = vld [vmem:[#allocation78_spill] sm:$0xff] }
 0x695   : > { %v9109_v49 = vpop.eup %9108  ;;  %5651 = vmatmul.mubr.bf16.gmra.mrb[104].mxu0 %v5316_v61  ;;  %5229 = vst [vmem:[%s9965_s4 + $0x268] sm:$0xff] %v5101_v50  ;;  %5228 = vst [vmem:[%s9965_s4 + $0x260] sm:$0xff] %v5100_v6 }
 0x696   : > { %5585 = vmatprep.mubr.bf16.mxu1 %v5309_v59  ;;  %v5103_v24 = vmul.f32 %v9109_v49, %v11628_v40  ;;  %v5102_v42 = vmul.f32 %v9109_v49, %v13012_v28  ;;  %v9111_v10 = vpop.eup %9110  ;;  %v4917_v5 = vpop.xlane.xlu1 %4916 }
 0x697   : > { %9120 = vrcp.f32 %v4917_v5  ;;  %v4896_v55 = vpop.xlane.xlu0 %4895  ;;  %v5085_v7 = vmul.f32 %v9111_v10, %v13013_v41  ;;  %v5084_v27 = vmul.f32 %v9111_v10, %v13014_v38 }
 0x698   : > { %5231 = vst [vmem:[%s9965_s4 + $0x278] sm:$0xff] %v5103_v24  ;;  %v5319_v46 = vpack.c.bf16 %v5103_v24, %v5101_v50  ;;  %5230 = vst [vmem:[%s9965_s4 + $0x270] sm:$0xff] %v5102_v42  ;;  %9122 = vrcp.f32 %v4896_v55  ;;  %v5318_v40 = vpack.c.bf16 %v5102_v42, %v5100_v6 }
 0x699   : > { %v9113_v3 = vpop.eup %9112  ;;  %5213 = vst [vmem:[%s9965_s4 + $0x1e8] sm:$0xff] %v5085_v7  ;;  %5212 = vst [vmem:[%s9965_s4 + $0x1e0] sm:$0xff] %v5084_v27 }
 0x69a   : > { %5586 = vmatmul.mubr.bf16.gmra.mrb[152].mxu1 %v5308_v14  ;;  %5658 = vmatprep.mubr.bf16.mxu0 %v5319_v46  ;;  %v5087_v52 = vmul.f32 %v9113_v3, %v11706_v39  ;;  %v5086_v43 = vmul.f32 %v9113_v3, %v13015_v18  ;;  %v9115_v26 = vpop.eup %9114  ;;  %v4899_v45 = vpop.xlane.xlu1 %4898  ;;  %v13018_v18 = vld [vmem:[#allocation50_spill] sm:$0xff] }
 0x69b   : > { %9124 = vrcp.f32 %v4899_v45  ;;  %v4920_v20 = vpop.xlane.xlu0 %4919  ;;  %v5105_v23 = vmul.f32 %v9115_v26, %v11660_v8  ;;  %v5104_v39 = vmul.f32 %v9115_v26, %v11654_v56 }
 0x69c   : > { %5215 = vst [vmem:[%s9965_s4 + $0x1f8] sm:$0xff] %v5087_v52  ;;  %v5311_v25 = vpack.c.bf16 %v5087_v52, %v5085_v7  ;;  %5214 = vst [vmem:[%s9965_s4 + $0x1f0] sm:$0xff] %v5086_v43  ;;  %9126 = vrcp.f32 %v4920_v20  ;;  %v5310_v61 = vpack.c.bf16 %v5086_v43, %v5084_v27 }
 0x69d   : > { %v9117_v37 = vpop.eup %9116  ;;  %5659 = vmatmul.mubr.bf16.gmra.mrb[108].mxu0 %v5318_v40  ;;  %5233 = vst [vmem:[%s9965_s4 + $0x288] sm:$0xff] %v5105_v23  ;;  %5232 = vst [vmem:[%s9965_s4 + $0x280] sm:$0xff] %v5104_v39 }
 0x69e   : > { %5593 = vmatprep.mubr.bf16.mxu1 %v5311_v25  ;;  %v5107_v48 = vmul.f32 %v9117_v37, %v13016_v32  ;;  %v5106_v31 = vmul.f32 %v9117_v37, %v13017_v19  ;;  %v9119_v63 = vpop.eup %9118  ;;  %v4923_v36 = vpop.xlane.xlu1 %4922  ;;  %v13019_v25 = vld [vmem:[#allocation81_spill] sm:$0xff]  ;;  %v13022_v32 = vld [vmem:[#allocation52_spill] sm:$0xff] }
 0x69f   : > { %v5120_v8 = vmul.f32 %v9119_v63, %v11728_v54  ;;  %9128 = vrcp.f32 %v4923_v36  ;;  %v4902_v60 = vpop.xlane.xlu0 %4901  ;;  %v5121_v50 = vmul.f32 %v9119_v63, %v11732_v1 }
 0x6a0   : > { %5235 = vst [vmem:[%s9965_s4 + $0x298] sm:$0xff] %v5107_v48  ;;  %v5321_v59 = vpack.c.bf16 %v5107_v48, %v5105_v23  ;;  %5234 = vst [vmem:[%s9965_s4 + $0x290] sm:$0xff] %v5106_v31  ;;  %9130 = vrcp.f32 %v4902_v60  ;;  %v5320_v56 = vpack.c.bf16 %v5106_v31, %v5104_v39  ;;  %v13020_v23 = vld [vmem:[#allocation51_spill] sm:$0xff]  ;;  %v13021_v39 = vld [vmem:[#allocation54_spill] sm:$0xff] }
 0x6a1   : > { %v9121_v6 = vpop.eup %9120  ;;  %5248 = vst [vmem:[%s9965_s4 + $0x300] sm:$0xff] %v5120_v8  ;;  %5249 = vst [vmem:[%s9965_s4 + $0x308] sm:$0xff] %v5121_v50  ;;  %v13023_v60 = vld [vmem:[#allocation83_spill] sm:$0xff] }
 0x6a2   : > { %5594 = vmatmul.mubr.bf16.gmra.mrb[156].mxu1 %v5310_v61  ;;  %5666 = vmatprep.mubr.bf16.mxu0 %v5321_v59  ;;  %v9123_v49 = vpop.eup %9122  ;;  %v5122_v54 = vmul.f32 %v9121_v6, %v11734_v11  ;;  %v4905_v14 = vpop.xlane.xlu1 %4904  ;;  %v5123_v24 = vmul.f32 %v9121_v6, %v11742_v9 }
 0x6a3   : > { %9132 = vrcp.f32 %v4905_v14  ;;  %v4926_v28 = vpop.xlane.xlu0 %4925  ;;  %v5109_v42 = vmul.f32 %v9123_v49, %v11710_v30  ;;  %v5108_v1 = vmul.f32 %v9123_v49, %v11694_v4 }
 0x6a4   : > { %5250 = vst [vmem:[%s9965_s4 + $0x310] sm:$0xff] %v5122_v54  ;;  %9134 = vrcp.f32 %v4926_v28  ;;  %5251 = vst [vmem:[%s9965_s4 + $0x318] sm:$0xff] %v5123_v24  ;;  %v5329_v10 = vpack.c.bf16 %v5123_v24, %v5121_v50  ;;  %v5328_v11 = vpack.c.bf16 %v5122_v54, %v5120_v8  ;;  %v13024_v50 = vld [vmem:[#allocation82_spill] sm:$0xff]  ;;  %v13025_v28 = vld [vmem:[#allocation56_spill] sm:$0xff] }
 0x6a5   : > { %5667 = vmatmul.mubr.bf16.gmra.mrb[112].mxu0 %v5320_v56  ;;  %v9125_v5 = vpop.eup %9124  ;;  %5237 = vst [vmem:[%s9965_s4 + $0x2a8] sm:$0xff] %v5109_v42  ;;  %5236 = vst [vmem:[%s9965_s4 + $0x2a0] sm:$0xff] %v5108_v1 }
 0x6a6   : > { %v9127_v55 = vpop.eup %9126  ;;  %5731 = vmatprep.mubr.bf16.mxu1 %v5329_v10  ;;  %v4929_v9 = vpop.xlane.xlu1 %4928  ;;  %v5111_v30 = vmul.f32 %v9125_v5, %v11720_v13  ;;  %v5110_v4 = vmul.f32 %v9125_v5, %v11716_v53  ;;  %v13027_v10 = vld [vmem:[#allocation86_spill] sm:$0xff] }
 0x6a7   : > { %9136 = vrcp.f32 %v4929_v9  ;;  %v4908_v46 = vpop.xlane.xlu0 %4907  ;;  %v5125_v41 = vmul.f32 %v9127_v55, %v11760_v0  ;;  %v5124_v7 = vmul.f32 %v9127_v55, %v11758_v29 }
 0x6a8   : > { %9138 = vrcp.f32 %v4908_v46  ;;  %5239 = vst [vmem:[%s9965_s4 + $0x2b8] sm:$0xff] %v5111_v30  ;;  %v5323_v3 = vpack.c.bf16 %v5111_v30, %v5109_v42  ;;  %5238 = vst [vmem:[%s9965_s4 + $0x2b0] sm:$0xff] %v5110_v4  ;;  %v5322_v40 = vpack.c.bf16 %v5110_v4, %v5108_v1 }
 0x6a9   : > { %v9129_v38 = vpop.eup %9128  ;;  %5253 = vst [vmem:[%s9965_s4 + $0x328] sm:$0xff] %v5125_v41  ;;  %5252 = vst [vmem:[%s9965_s4 + $0x320] sm:$0xff] %v5124_v7 }
 0x6aa   : > { %5732 = vmatmul.mubr.bf16.vlgmr.msra.gmra.mrb[160].mxu1 %v5328_v11  ;;  %v9131_v13 = vpop.eup %9130  ;;  %5674 = vmatprep.mubr.bf16.mxu0 %v5323_v3  ;;  %v4911_v53 = vpop.xlane.xlu1 %4910  ;;  %v5127_v0 = vmul.f32 %v9129_v38, %v11770_v58  ;;  %v5126_v29 = vmul.f32 %v9129_v38, %v11764_v57  ;;  %v13028_v11 = vld [vmem:[#allocation85_spill] sm:$0xff]  ;;  %v13030_v3 = vld [vmem:[#allocation58_spill] sm:$0xff] }
 0x6ab   : > { %9140 = vrcp.f32 %v4911_v53  ;;  %v4932_v27 = vpop.xlane.xlu0 %4931  ;;  %v5113_v52 = vmul.f32 %v9131_v13, %v11746_v34  ;;  %v5112_v43 = vmul.f32 %v9131_v13, %v13018_v18 }
 0x6ac   : > { %9142 = vrcp.f32 %v4932_v27  ;;  %5255 = vst [vmem:[%s9965_s4 + $0x338] sm:$0xff] %v5127_v0  ;;  %v5331_v26 = vpack.c.bf16 %v5127_v0, %v5125_v41  ;;  %5254 = vst [vmem:[%s9965_s4 + $0x330] sm:$0xff] %v5126_v29  ;;  %v5330_v20 = vpack.c.bf16 %v5126_v29, %v5124_v7  ;;  %v13029_v41 = vld [vmem:[#allocation87_spill] sm:$0xff] }
 0x6ad   : > { %5675 = vmatmul.mubr.bf16.gmra.mrb[116].mxu0 %v5322_v40  ;;  %v9133_v45 = vpop.eup %9132  ;;  %5241 = vst [vmem:[%s9965_s4 + $0x2c8] sm:$0xff] %v5113_v52  ;;  %5240 = vst [vmem:[%s9965_s4 + $0x2c0] sm:$0xff] %v5112_v43 }
 0x6ae   : > { %v9135_v57 = vpop.eup %9134  ;;  %5739 = vmatprep.mubr.bf16.mxu1 %v5331_v26  ;;  %v4935_v58 = vpop.xlane.xlu1 %4934  ;;  %v5115_v34 = vmul.f32 %v9133_v45, %v13019_v25  ;;  %v5114_v37 = vmul.f32 %v9133_v45, %v13020_v23  ;;  %v13031_v26 = vld [vmem:[#allocation88_spill] sm:$0xff] }
 0x6af   : > { %9144 = vrcp.f32 %v4935_v58  ;;  %v5129_v61 = vmul.f32 %v9135_v57, %v13021_v39  ;;  %v5128_v48 = vmul.f32 %v9135_v57, %v13022_v32  ;;  %v13033_v25 = vld [vmem:[#allocation60_spill] sm:$0xff]  ;;  %v13035_v39 = vld [vmem:[#allocation90_spill] sm:$0xff] }
 0x6b0   : > { %5243 = vst [vmem:[%s9965_s4 + $0x2d8] sm:$0xff] %v5115_v34  ;;  %v5325_v19 = vpack.c.bf16 %v5115_v34, %v5113_v52  ;;  %5242 = vst [vmem:[%s9965_s4 + $0x2d0] sm:$0xff] %v5114_v37  ;;  %v5324_v31 = vpack.c.bf16 %v5114_v37, %v5112_v43  ;;  %v13034_v37 = vld [vmem:[#allocation62_spill] sm:$0xff] }
 0x6b1   : > { %v9137_v63 = vpop.eup %9136  ;;  %5257 = vst [vmem:[%s9965_s4 + $0x348] sm:$0xff] %v5129_v61  ;;  %5256 = vst [vmem:[%s9965_s4 + $0x340] sm:$0xff] %v5128_v48  ;;  %v8772_v32 = vld [vmem:[#allocation10 + $0x10] sm:$0xff]  }
 0x6b2   : > { %5740 = vmatmul.mubr.bf16.gmra.mrb[164].mxu1 %v5330_v20  ;;  %v9139_v36 = vpop.eup %9138  ;;  %5682 = vmatprep.mubr.bf16.mxu0 %v5325_v19  ;;  %v5131_v8 = vmul.f32 %v9137_v63, %v11792_v21  ;;  %v5130_v59 = vmul.f32 %v9137_v63, %v13023_v60 }
 0x6b3   : > { %v5117_v56 = vmul.f32 %v9139_v36, %v11780_v51  ;;  %v5116_v6 = vmul.f32 %v9139_v36, %v13024_v50  ;;  %v13026_v51 = vld [vmem:[#allocation84_spill] sm:$0xff]  ;;  %8368 = vmatprep.subr.bf16.mxu0 %v8772_v32 }
 0x6b4   : > { %5259 = vst [vmem:[%s9965_s4 + $0x358] sm:$0xff] %v5131_v8  ;;  %v5333_v49 = vpack.c.bf16 %v5131_v8, %v5129_v61  ;;  %5258 = vst [vmem:[%s9965_s4 + $0x350] sm:$0xff] %v5130_v59  ;;  %v5332_v14 = vpack.c.bf16 %v5130_v59, %v5128_v48 }
 0x6b5   : > { %5683 = vmatmul.mubr.bf16.gmra.mrb[120].mxu0 %v5324_v31  ;;  %v9141_v54 = vpop.eup %9140  ;;  %5245 = vst [vmem:[%s9965_s4 + $0x2e8] sm:$0xff] %v5117_v56  ;;  %5244 = vst [vmem:[%s9965_s4 + $0x2e0] sm:$0xff] %v5116_v6  ;;  %v4938_v21 = vpop.xlane.xlu0 %4937 }
 0x6b6   : > { %v9143_v24 = vpop.eup %9142  ;;  %5747 = vmatprep.mubr.bf16.mxu1 %v5333_v49  ;;  %v5119_v42 = vmul.f32 %v9141_v54, %v13025_v28  ;;  %v5118_v1 = vmul.f32 %v9141_v54, %v13026_v51  ;;  %9146 = vrcp.f32 %v4938_v21 }
 0x6b7   : > { %v5133_v5 = vmul.f32 %v9143_v24, %v13027_v10  ;;  %v5132_v55 = vmul.f32 %v9143_v24, %v13028_v11 }
 0x6b8   : > { %5247 = vst [vmem:[%s9965_s4 + $0x2f8] sm:$0xff] %v5119_v42  ;;  %v5327_v9 = vpack.c.bf16 %v5119_v42, %v5117_v56  ;;  %5246 = vst [vmem:[%s9965_s4 + $0x2f0] sm:$0xff] %v5118_v1  ;;  %v5326_v30 = vpack.c.bf16 %v5118_v1, %v5116_v6 }
 0x6b9   : > { %v9145_v4 = vpop.eup %9144  ;;  %5261 = vst [vmem:[%s9965_s4 + $0x368] sm:$0xff] %v5133_v5  ;;  %5260 = vst [vmem:[%s9965_s4 + $0x360] sm:$0xff] %v5132_v55 }
 0x6ba   : > { %5748 = vmatmul.mubr.bf16.gmra.mrb[168].mxu1 %v5332_v14  ;;  %5690 = vmatprep.mubr.bf16.mxu0 %v5327_v9  ;;  %v4941_v46 = vpop.xlane.xlu1 %4940  ;;  %v5135_v7 = vmul.f32 %v9145_v4, %v13029_v41  ;;  %v5134_v40 = vmul.f32 %v9145_v4, %v13030_v3  ;;  %v8773_v4 = vld [vmem:[#allocation10 + $0x18] sm:$0xff]  }
 0x6bb   : > { %9148 = vrcp.f32 %v4941_v46 }
 0x6bc   : > { %5263 = vst [vmem:[%s9965_s4 + $0x378] sm:$0xff] %v5135_v7  ;;  %v5335_v38 = vpack.c.bf16 %v5135_v7, %v5133_v5  ;;  %5262 = vst [vmem:[%s9965_s4 + $0x370] sm:$0xff] %v5134_v40  ;;  %v5334_v13 = vpack.c.bf16 %v5134_v40, %v5132_v55  ;;  %v12130_v7 = vld [vmem:[#allocation10 + $0x20] sm:$0xff]  }
 0x6bd   : > { %5691 = vmatmul.mubr.bf16.gmra.mrb[124].mxu0 %v5326_v30 }
 0x6be   : > { %5755 = vmatprep.mubr.bf16.mxu1 %v5335_v38  ;;  %v4944_v53 = vpop.xlane.xlu0 %4943 }
 0x6bf   : > { %9150 = vrcp.f32 %v4944_v53 }
 0x6c0   : > { %v9147_v0 = vpop.eup %9146 }
 0x6c1   : > { %v5137_v27 = vmul.f32 %v9147_v0, %v11834_v16  ;;  %v5136_v52 = vmul.f32 %v9147_v0, %v11832_v2  ;;  %v13032_v16 = vld [vmem:[#allocation89_spill] sm:$0xff] }
 0x6c2   : > { %5756 = vmatmul.mubr.bf16.gmra.mrb[172].mxu1 %v5334_v13  ;;  %v4947_v29 = vpop.xlane.xlu1 %4946 }
 0x6c3   : > { %9152 = vrcp.f32 %v4947_v29  ;;  %5265 = vst [vmem:[%s9965_s4 + $0x388] sm:$0xff] %v5137_v27  ;;  %5264 = vst [vmem:[%s9965_s4 + $0x380] sm:$0xff] %v5136_v52 }
 0x6c5   : > { %v9149_v18 = vpop.eup %9148 }
 0x6c6   : > { %v5139_v43 = vmul.f32 %v9149_v18, %v11842_v12  ;;  %v5138_v45 = vmul.f32 %v9149_v18, %v13031_v26 }
 0x6c8   : > { %5267 = vst [vmem:[%s9965_s4 + $0x398] sm:$0xff] %v5139_v43  ;;  %v5337_v20 = vpack.c.bf16 %v5139_v43, %v5137_v27  ;;  %5266 = vst [vmem:[%s9965_s4 + $0x390] sm:$0xff] %v5138_v45  ;;  %v5336_v57 = vpack.c.bf16 %v5138_v45, %v5136_v52 }
 0x6c9   : > { %v9151_v58 = vpop.eup %9150 }
 0x6ca   : > { %5763 = vmatprep.mubr.bf16.mxu1 %v5337_v20  ;;  %v5141_v2 = vmul.f32 %v9151_v58, %v13032_v16  ;;  %v5140_v34 = vmul.f32 %v9151_v58, %v13033_v25 }
 0x6cb   : > { %5764 = vmatmul.mubr.bf16.gmra.mrb[176].mxu1 %v5336_v57 }
 0x6cc   : > { %5269 = vst [vmem:[%s9965_s4 + $0x3a8] sm:$0xff] %v5141_v2  ;;  %5268 = vst [vmem:[%s9965_s4 + $0x3a0] sm:$0xff] %v5140_v34 }
 0x6cd   : > { %v9153_v23 = vpop.eup %9152 }
 0x6ce   : > { %v5143_v12 = vmul.f32 %v9153_v23, %v13034_v37  ;;  %v5142_v61 = vmul.f32 %v9153_v23, %v13035_v39 }
 0x6d0   : > { %5271 = vst [vmem:[%s9965_s4 + $0x3b8] sm:$0xff] %v5143_v12  ;;  %v5339_v48 = vpack.c.bf16 %v5143_v12, %v5141_v2  ;;  %5270 = vst [vmem:[%s9965_s4 + $0x3b0] sm:$0xff] %v5142_v61  ;;  %v5338_v19 = vpack.c.bf16 %v5142_v61, %v5140_v34 }
 0x6d2   : > { %5771 = vmatprep.mubr.bf16.mxu1 %v5339_v48 }
 0x6d3   : > { %5772 = vmatmul.mubr.bf16.gmra.mrb[180].mxu1 %v5338_v19 }
 0x6f7   : > { %v4950_v31 = vpop.xlane.xlu0 %4949 }
 0x6f8   : > { %9154 = vrcp.f32 %v4950_v31 }
 0x6fa   : > { %v4953_v63 = vpop.xlane.xlu1 %4952  ;;  %v7556_v36 = vpop.f32.mrb[64].mxu0 }
 0x6fb   : > { %9156 = vrcp.f32 %v4953_v63  ;;  %v7557_v8 = vpop.f32.mrb[65].mxu0 }
 0x6fc   : > { %v7558_v60 = vadd.f32 %v7557_v8, %v7556_v36  ;;  %v7559_v59 = vpop.f32.mrb[66].mxu0 }
 0x6fd   : > { %v7560_v56 = vpop.f32.mrb[67].mxu0 }
 0x6fe   : > { %v7561_v50 = vadd.f32 %v7560_v56, %v7559_v59 }
 0x700   : > { %v5796_v6 = vpack.c.bf16 %v7561_v50, %v7558_v60 }
 0x702   : > { %v9155_v49 = vpop.eup %9154  ;;  %8352 = vmatprep.mubr.msk.bf16.mxu0 %vm3451_vm1, %v5796_v6 }
 0x703   : > { %v5145_v54 = vmul.f32 %v9155_v49, %v11918_v35  ;;  %v5144_v14 = vmul.f32 %v9155_v49, %v11916_v47 }
 0x704   : > { %v7562_v24 = vpop.f32.mrb[68].mxu0 }
 0x705   : > { %v9157_v21 = vpop.eup %9156  ;;  %v7563_v28 = vpop.f32.mrb[69].mxu0  ;;  %5273 = vst [vmem:[%s9965_s4 + $0x3c8] sm:$0xff] %v5145_v54  ;;  %5272 = vst [vmem:[%s9965_s4 + $0x3c0] sm:$0xff] %v5144_v14 }
 0x706   : > { %v7564_v42 = vadd.f32 %v7563_v28, %v7562_v24  ;;  %v7565_v51 = vpop.f32.mrb[70].mxu0  ;;  %v5147_v1 = vmul.f32 %v9157_v21, %v11926_v33  ;;  %v5146_v10 = vmul.f32 %v9157_v21, %v11920_v62 }
 0x707   : > { %v4956_v5 = vpop.xlane.xlu0 %4955  ;;  %v7566_v11 = vpop.f32.mrb[71].mxu0 }
 0x708   : > { %9158 = vrcp.f32 %v4956_v5  ;;  %v7567_v55 = vadd.f32 %v7566_v11, %v7565_v51  ;;  %5275 = vst [vmem:[%s9965_s4 + $0x3d8] sm:$0xff] %v5147_v1  ;;  %v5341_v35 = vpack.c.bf16 %v5147_v1, %v5145_v54  ;;  %5274 = vst [vmem:[%s9965_s4 + $0x3d0] sm:$0xff] %v5146_v10  ;;  %v5340_v47 = vpack.c.bf16 %v5146_v10, %v5144_v14 }
 0x70a   : > { %v4959_v9 = vpop.xlane.xlu1 %4958  ;;  %v5797_v30 = vpack.c.bf16 %v7567_v55, %v7564_v42  ;;  %5779 = vmatprep.mubr.bf16.mxu1 %v5341_v35 }
 0x70b   : > { %9160 = vrcp.f32 %v4959_v9  ;;  %5780 = vmatmul.mubr.bf16.gmra.mrb[184].mxu1 %v5340_v47 }
 0x70c   : > { %v7568_v46 = vpop.f32.mrb[72].mxu0  ;;  %8353 = vmatmul.mubr.msk.bf16.vlgmr.msra.gmra.mrb[128].mxu0 %vm3451_vm1, %v5797_v30 }
 0x70d   : > { %v7569_v33 = vpop.f32.mrb[73].mxu0  ;;  %8369 = vmatpush3.bf16.msra.mxu0 %v8772_v32 }
 0x70e   : > { %v7570_v62 = vadd.f32 %v7569_v33, %v7568_v46  ;;  %v7571_v41 = vpop.f32.mrb[74].mxu0  ;;  %8370 = vmatprep.subr.bf16.mxu0 %v8773_v4 }
 0x70f   : > { %v7572_v3 = vpop.f32.mrb[75].mxu0 }
 0x710   : > { %v7573_v40 = vadd.f32 %v7572_v3, %v7571_v41 }
 0x711   : > { %8371 = vmatpush3.bf16.msra.mxu0 %v8773_v4 }
 0x712   : > { %v9159_v38 = vpop.eup %9158  ;;  %v5798_v13 = vpack.c.bf16 %v7573_v40, %v7570_v62  ;;  %8388 = vmatprep.subr.bf16.mxu0 %v12130_v7 }
 0x713   : > { %v5149_v53 = vmul.f32 %v9159_v38, %v11958_v22  ;;  %v5148_v0 = vmul.f32 %v9159_v38, %v11956_v44 }
 0x714   : > { %v7574_v27 = vpop.f32.mrb[76].mxu0  ;;  %8356 = vmatprep.mubr.msk.bf16.mxu0 %vm3451_vm1, %v5798_v13 }
 0x715   : > { %v9161_v29 = vpop.eup %9160  ;;  %v7575_v52 = vpop.f32.mrb[77].mxu0  ;;  %5277 = vst [vmem:[%s9965_s4 + $0x3e8] sm:$0xff] %v5149_v53  ;;  %5276 = vst [vmem:[%s9965_s4 + $0x3e0] sm:$0xff] %v5148_v0 }
 0x716   : > { %v5151_v18 = vmul.f32 %v9161_v29, %v11964_v17  ;;  %v5150_v43 = vmul.f32 %v9161_v29, %v11960_v15  ;;  %v7576_v26 = vadd.f32 %v7575_v52, %v7574_v27  ;;  %v7577_v45 = vpop.f32.mrb[78].mxu0 }
 0x717   : > { %v7578_v20 = vpop.f32.mrb[79].mxu0 }
 0x718   : > { %5279 = vst [vmem:[%s9965_s4 + $0x3f8] sm:$0xff] %v5151_v18  ;;  %v5343_v57 = vpack.c.bf16 %v5151_v18, %v5149_v53  ;;  %5278 = vst [vmem:[%s9965_s4 + $0x3f0] sm:$0xff] %v5150_v43  ;;  %v5342_v22 = vpack.c.bf16 %v5150_v43, %v5148_v0  ;;  %v7579_v58 = vadd.f32 %v7578_v20, %v7577_v45  ;;  %v8775_v0 = vld [vmem:[#allocation10 + $0x28] sm:$0xff]   ;;  %v12151_v20 = vld [vmem:[#allocation10 + $0x30] sm:$0xff]  }
 0x71a   : > { %5787 = vmatprep.mubr.bf16.mxu1 %v5343_v57  ;;  %v5799_v44 = vpack.c.bf16 %v7579_v58, %v7576_v26 }
 0x71b   : > { %5788 = vmatmul.mubr.bf16.gmra.mrb[188].mxu1 %v5342_v22 }
 0x71c   : > { %v7580_v16 = vpop.f32.mrb[80].mxu0  ;;  %8357 = vmatmul.mubr.msk.bf16.gmra.mrb[132].mxu0 %vm3451_vm1, %v5799_v44 }
 0x71d   : > { %v7581_v2 = vpop.f32.mrb[81].mxu0 }
 0x71e   : > { %v7582_v17 = vadd.f32 %v7581_v2, %v7580_v16  ;;  %v7583_v25 = vpop.f32.mrb[82].mxu0 }
 0x71f   : > { %v7584_v34 = vpop.f32.mrb[83].mxu0 }
 0x720   : > { %v7585_v15 = vadd.f32 %v7584_v34, %v7583_v25 }
 0x722   : > { %v5800_v23 = vpack.c.bf16 %v7585_v15, %v7582_v17 }
 0x724   : > { %v7586_v37 = vpop.f32.mrb[84].mxu0  ;;  %8360 = vmatprep.mubr.msk.bf16.mxu0 %vm3451_vm1, %v5800_v23 }
 0x725   : > { %v7587_v12 = vpop.f32.mrb[85].mxu0 }
 0x726   : > { %v7588_v39 = vadd.f32 %v7587_v12, %v7586_v37  ;;  %v7589_v61 = vpop.f32.mrb[86].mxu0 }
 0x727   : > { %v7590_v32 = vpop.f32.mrb[87].mxu0 }
 0x728   : > { %v7591_v48 = vadd.f32 %v7590_v32, %v7589_v61 }
 0x72a   : > { %v5801_v19 = vpack.c.bf16 %v7591_v48, %v7588_v39 }
 0x72c   : > { %v7592_v31 = vpop.f32.mrb[88].mxu0  ;;  %8361 = vmatmul.mubr.msk.bf16.gmra.mrb[136].mxu0 %vm3451_vm1, %v5801_v19 }
 0x72d   : > { %v7593_v63 = vpop.f32.mrb[89].mxu0 }
 0x72e   : > { %v7594_v36 = vadd.f32 %v7593_v63, %v7592_v31  ;;  %v7595_v8 = vpop.f32.mrb[90].mxu0 }
 0x72f   : > { %v7596_v60 = vpop.f32.mrb[91].mxu0 }
 0x730   : > { %v7597_v59 = vadd.f32 %v7596_v60, %v7595_v8 }
 0x732   : > { %v5802_v56 = vpack.c.bf16 %v7597_v59, %v7594_v36 }
 0x734   : > { %8364 = vmatprep.mubr.msk.bf16.mxu0 %vm3451_vm1, %v5802_v56 }
 0x738   : > { %v7620_v50 = vpop.f32.mrb[128].mxu1 }
 0x739   : > { %v7621_v6 = vpop.f32.mrb[129].mxu1 }
 0x73a   : > { %v7622_v49 = vadd.f32 %v7621_v6, %v7620_v50  ;;  %v7623_v54 = vpop.f32.mrb[130].mxu1 }
 0x73b   : > { %v7624_v14 = vpop.f32.mrb[131].mxu1 }
 0x73c   : > { %v7625_v24 = vadd.f32 %v7624_v14, %v7623_v54 }
 0x73e   : > { %v5804_v21 = vpack.c.bf16 %v7625_v24, %v7622_v49 }
 0x745   : > { %v7626_v28 = vpop.f32.mrb[132].mxu1 }
 0x746   : > { %v7627_v42 = vpop.f32.mrb[133].mxu1 }
 0x747   : > { %v7628_v51 = vadd.f32 %v7627_v42, %v7626_v28  ;;  %v7629_v1 = vpop.f32.mrb[134].mxu1  ;;  %v7598_v10 = vpop.f32.mrb[92].mxu0 }
 0x748   : > { %v7630_v5 = vpop.f32.mrb[135].mxu1  ;;  %v7599_v11 = vpop.f32.mrb[93].mxu0 }
 0x749   : > { %v7631_v55 = vadd.f32 %v7630_v5, %v7629_v1  ;;  %v7600_v35 = vadd.f32 %v7599_v11, %v7598_v10  ;;  %v7601_v47 = vpop.f32.mrb[94].mxu0 }
 0x74a   : > { %v7602_v9 = vpop.f32.mrb[95].mxu0 }
 0x74b   : > { %v5805_v30 = vpack.c.bf16 %v7631_v55, %v7628_v51  ;;  %v7603_v4 = vadd.f32 %v7602_v9, %v7601_v47 }
 0x74d   : > { %v5803_v46 = vpack.c.bf16 %v7603_v4, %v7600_v35  ;;  %v7632_v33 = vpop.f32.mrb[136].mxu1 }
 0x74e   : > { %v7633_v62 = vpop.f32.mrb[137].mxu1 }
 0x74f   : > { %v7634_v41 = vadd.f32 %v7633_v62, %v7632_v33  ;;  %v7635_v3 = vpop.f32.mrb[138].mxu1  ;;  %8365 = vmatmul.mubr.msk.bf16.gmra.mrb[140].mxu0 %vm3451_vm1, %v5803_v46 }
 0x750   : > { %v7636_v40 = vpop.f32.mrb[139].mxu1  ;;  %8372 = vmatprep.mubr.msk.bf16.mxu0 %vm3451_vm1, %v5804_v21 }
 0x751   : > { %v7637_v38 = vadd.f32 %v7636_v40, %v7635_v3 }
 0x753   : > { %v5806_v13 = vpack.c.bf16 %v7637_v38, %v7634_v41 }
 0x755   : > { %v7638_v53 = vpop.f32.mrb[140].mxu1 }
 0x756   : > { %v7639_v29 = vpop.f32.mrb[141].mxu1 }
 0x757   : > { %v7640_v27 = vadd.f32 %v7639_v29, %v7638_v53  ;;  %v7641_v52 = vpop.f32.mrb[142].mxu1  ;;  %8373 = vmatmul.mubr.msk.bf16.vlgmr.msra.gmra.mrb[128].mxu0 %vm3451_vm1, %v5805_v30 }
 0x758   : > { %v7642_v18 = vpop.f32.mrb[143].mxu1  ;;  %v7684_v43 = vpop.f32.mrb[96].mxu0  ;;  %8376 = vmatprep.mubr.msk.bf16.mxu0 %vm3451_vm1, %v5806_v13  ;;  %8389 = vmatpush3.bf16.msra.mxu0 %v12130_v7 }
 0x759   : > { %v7643_v26 = vadd.f32 %v7642_v18, %v7641_v52  ;;  %v7685_v45 = vpop.f32.mrb[97].mxu0  ;;  %8390 = vmatprep.subr.bf16.mxu0 %v8775_v0 }
 0x75a   : > { %v12153_v57 = vadd.f32 %v7685_v45, %v7684_v43  ;;  %v7687_v22 = vpop.f32.mrb[98].mxu0 }
 0x75b   : > { %v5807_v58 = vpack.c.bf16 %v7643_v26, %v7640_v27  ;;  %v7688_v44 = vpop.f32.mrb[99].mxu0 }
 0x75c   : > { %v12155_v16 = vadd.f32 %v7688_v44, %v7687_v22  ;;  %8391 = vmatpush3.bf16.msra.mxu0 %v8775_v0 }
 0x75d   : > { %v7644_v2 = vpop.f32.mrb[144].mxu1  ;;  %8408 = vmatprep.subr.bf16.mxu0 %v12151_v20 }
 0x75e   : > { %v5812_v17 = vpack.c.bf16 %v12155_v16, %v12153_v57  ;;  %v7645_v7 = vpop.f32.mrb[145].mxu1 }
 0x75f   : > { %v7646_v25 = vadd.f32 %v7645_v7, %v7644_v2  ;;  %v7647_v34 = vpop.f32.mrb[146].mxu1  ;;  %8377 = vmatmul.mubr.msk.bf16.gmra.mrb[132].mxu0 %vm3451_vm1, %v5807_v58 }
 0x760   : > { %v7648_v15 = vpop.f32.mrb[147].mxu1  ;;  %v7690_v23 = vpop.f32.mrb[100].mxu0 }
 0x761   : > { %v7649_v37 = vadd.f32 %v7648_v15, %v7647_v34  ;;  %v7691_v12 = vpop.f32.mrb[101].mxu0 }
 0x762   : > { %v12161_v39 = vadd.f32 %v7691_v12, %v7690_v23  ;;  %v7693_v61 = vpop.f32.mrb[102].mxu0 }
 0x763   : > { %v5808_v32 = vpack.c.bf16 %v7649_v37, %v7646_v25  ;;  %v7694_v48 = vpop.f32.mrb[103].mxu0 }
 0x764   : > { %v12163_v19 = vadd.f32 %v7694_v48, %v7693_v61 }
 0x765   : > { %v7650_v31 = vpop.f32.mrb[148].mxu1  ;;  %8380 = vmatprep.mubr.msk.bf16.mxu0 %vm3451_vm1, %v5808_v32 }
 0x766   : > { %v5813_v63 = vpack.c.bf16 %v12163_v19, %v12161_v39  ;;  %v7651_v36 = vpop.f32.mrb[149].mxu1  ;;  %v8777_v39 = vld [vmem:[#allocation10 + $0x38] sm:$0xff]  }
 0x767   : > { %v7652_v8 = vadd.f32 %v7651_v36, %v7650_v31  ;;  %v7653_v60 = vpop.f32.mrb[150].mxu1 }
 0x768   : > { %v7654_v59 = vpop.f32.mrb[151].mxu1  ;;  %v7696_v56 = vpop.f32.mrb[104].mxu0 }
 0x769   : > { %v7655_v50 = vadd.f32 %v7654_v59, %v7653_v60  ;;  %v7697_v6 = vpop.f32.mrb[105].mxu0 }
 0x76a   : > { %v7698_v49 = vadd.f32 %v7697_v6, %v7696_v56  ;;  %v7699_v54 = vpop.f32.mrb[106].mxu0 }
 0x76b   : > { %v5809_v14 = vpack.c.bf16 %v7655_v50, %v7652_v8  ;;  %v7700_v24 = vpop.f32.mrb[107].mxu0 }
 0x76c   : > { %v7701_v21 = vadd.f32 %v7700_v24, %v7699_v54 }
 0x76d   : > { %v7656_v28 = vpop.f32.mrb[152].mxu1  ;;  %8381 = vmatmul.mubr.msk.bf16.gmra.mrb[136].mxu0 %vm3451_vm1, %v5809_v14 }
 0x76e   : > { %v5814_v42 = vpack.c.bf16 %v7701_v21, %v7698_v49  ;;  %v7657_v51 = vpop.f32.mrb[153].mxu1 }
 0x76f   : > { %v7658_v1 = vadd.f32 %v7657_v51, %v7656_v28  ;;  %v7659_v10 = vpop.f32.mrb[154].mxu1 }
 0x770   : > { %v7660_v5 = vpop.f32.mrb[155].mxu1  ;;  %v7702_v11 = vpop.f32.mrb[108].mxu0 }
 0x771   : > { %v7661_v55 = vadd.f32 %v7660_v5, %v7659_v10  ;;  %v7703_v35 = vpop.f32.mrb[109].mxu0 }
 0x772   : > { %v7704_v47 = vadd.f32 %v7703_v35, %v7702_v11  ;;  %v7705_v9 = vpop.f32.mrb[110].mxu0 }
 0x773   : > { %v5810_v30 = vpack.c.bf16 %v7661_v55, %v7658_v1  ;;  %v7706_v4 = vpop.f32.mrb[111].mxu0 }
 0x774   : > { %v7707_v46 = vadd.f32 %v7706_v4, %v7705_v9 }
 0x775   : > { %v7662_v33 = vpop.f32.mrb[156].mxu1  ;;  %8384 = vmatprep.mubr.msk.bf16.mxu0 %vm3451_vm1, %v5810_v30 }
 0x776   : > { %v5815_v62 = vpack.c.bf16 %v7707_v46, %v7704_v47  ;;  %v7663_v41 = vpop.f32.mrb[157].mxu1 }
 0x777   : > { %v7664_v3 = vadd.f32 %v7663_v41, %v7662_v33  ;;  %v7665_v40 = vpop.f32.mrb[158].mxu1 }
 0x778   : > { %v7666_v38 = vpop.f32.mrb[159].mxu1  ;;  %v7708_v13 = vpop.f32.mrb[112].mxu0 }
 0x779   : > { %v7667_v53 = vadd.f32 %v7666_v38, %v7665_v40  ;;  %v7709_v0 = vpop.f32.mrb[113].mxu0 }
 0x77a   : > { %v7710_v29 = vadd.f32 %v7709_v0, %v7708_v13  ;;  %v7711_v27 = vpop.f32.mrb[114].mxu0 }
 0x77b   : > { %v5811_v52 = vpack.c.bf16 %v7667_v53, %v7664_v3  ;;  %v7712_v18 = vpop.f32.mrb[115].mxu0 }
 0x77c   : > { %v7713_v43 = vadd.f32 %v7712_v18, %v7711_v27 }
 0x77d   : > { %v7748_v26 = vpop.f32.mrb[160].mxu1  ;;  %8385 = vmatmul.mubr.msk.bf16.gmra.mrb[140].mxu0 %vm3451_vm1, %v5811_v52 }
 0x77e   : > { %v5816_v45 = vpack.c.bf16 %v7713_v43, %v7710_v29  ;;  %v7749_v22 = vpop.f32.mrb[161].mxu1  ;;  %8392 = vmatprep.mubr.msk.bf16.mxu0 %vm3451_vm1, %v5812_v17 }
 0x77f   : > { %v7750_v58 = vadd.f32 %v7749_v22, %v7748_v26  ;;  %v7751_v44 = vpop.f32.mrb[162].mxu1 }
 0x780   : > { %v7752_v2 = vpop.f32.mrb[163].mxu1  ;;  %v7714_v7 = vpop.f32.mrb[116].mxu0 }
 0x781   : > { %v7753_v25 = vadd.f32 %v7752_v2, %v7751_v44  ;;  %v7715_v34 = vpop.f32.mrb[117].mxu0 }
 0x782   : > { %v7716_v15 = vadd.f32 %v7715_v34, %v7714_v7  ;;  %v7717_v23 = vpop.f32.mrb[118].mxu0 }
 0x783   : > { %v5820_v37 = vpack.c.bf16 %v7753_v25, %v7750_v58  ;;  %v7718_v12 = vpop.f32.mrb[119].mxu0 }
 0x784   : > { %v7719_v61 = vadd.f32 %v7718_v12, %v7717_v23 }
 0x785   : > { %v7754_v32 = vpop.f32.mrb[164].mxu1  ;;  %8393 = vmatmul.mubr.msk.bf16.vlgmr.msra.gmra.mrb[128].mxu0 %vm3451_vm1, %v5813_v63 }
 0x786   : > { %v5817_v48 = vpack.c.bf16 %v7719_v61, %v7716_v15  ;;  %v7755_v19 = vpop.f32.mrb[165].mxu1  ;;  %8396 = vmatprep.mubr.msk.bf16.mxu0 %vm3451_vm1, %v5814_v42  ;;  %8409 = vmatpush3.bf16.msra.mxu0 %v12151_v20 }
 0x787   : > { %v7756_v57 = vadd.f32 %v7755_v19, %v7754_v32  ;;  %v7757_v16 = vpop.f32.mrb[166].mxu1  ;;  %8410 = vmatprep.subr.bf16.mxu0 %v8777_v39 }
 0x788   : > { %v7758_v17 = vpop.f32.mrb[167].mxu1  ;;  %v7720_v31 = vpop.f32.mrb[120].mxu0 }
 0x789   : > { %v7759_v36 = vadd.f32 %v7758_v17, %v7757_v16  ;;  %v7721_v8 = vpop.f32.mrb[121].mxu0  ;;  %v9195_v17 = vld [vmem:[%s9938_s3 + $0x18] sm:$0xff] }
 0x78a   : > { %v7722_v60 = vadd.f32 %v7721_v8, %v7720_v31  ;;  %v7723_v59 = vpop.f32.mrb[122].mxu0  ;;  %8411 = vmatpush3.bf16.msra.mxu0 %v8777_v39  ;;  %v9196_v8 = vld [vmem:[%s9938_s3] sm:$0xff] }
 0x78b   : > { %v5821_v56 = vpack.c.bf16 %v7759_v36, %v7756_v57  ;;  %v7724_v50 = vpop.f32.mrb[123].mxu0 }
 0x78c   : > { %v7725_v6 = vadd.f32 %v7724_v50, %v7723_v59  ;;  %v9197_v59 = vld [vmem:[%s9938_s3 + $0x8] sm:$0xff] }
 0x78d   : > { %v7760_v63 = vpop.f32.mrb[168].mxu1  ;;  %8397 = vmatmul.mubr.msk.bf16.gmra.mrb[132].mxu0 %vm3451_vm1, %v5815_v62 }
 0x78e   : > { %v5818_v49 = vpack.c.bf16 %v7725_v6, %v7722_v60  ;;  %v7761_v54 = vpop.f32.mrb[169].mxu1  ;;  %8400 = vmatprep.mubr.msk.bf16.mxu0 %vm3451_vm1, %v5816_v45  ;;  %v9198_v6 = vld [vmem:[%s9938_s3 + $0x30] sm:$0xff] }
 0x78f   : > { %v7762_v20 = vadd.f32 %v7761_v54, %v7760_v63  ;;  %v7763_v14 = vpop.f32.mrb[170].mxu1 }
 0x790   : > { %v7764_v24 = vpop.f32.mrb[171].mxu1  ;;  %v7726_v21 = vpop.f32.mrb[124].mxu0 }
 0x791   : > { %v7765_v28 = vadd.f32 %v7764_v24, %v7763_v14  ;;  %v7727_v42 = vpop.f32.mrb[125].mxu0 }
 0x792   : > { %v7728_v51 = vadd.f32 %v7727_v42, %v7726_v21  ;;  %v7729_v1 = vpop.f32.mrb[126].mxu0  ;;  %v9200_v21 = vld [vmem:[%s9938_s3 + $0x20] sm:$0xff]  ;;  %v9201_v42 = vld [vmem:[%s9938_s3 + $0x28] sm:$0xff] }
 0x793   : > { %v5822_v10 = vpack.c.bf16 %v7765_v28, %v7762_v20  ;;  %v7730_v5 = vpop.f32.mrb[127].mxu0  ;;  %v9199_v20 = vld [vmem:[%s9938_s3 + $0x38] sm:$0xff] }
 0x794   : > { %v7731_v11 = vadd.f32 %v7730_v5, %v7729_v1 }
 0x795   : > { %v7766_v55 = vpop.f32.mrb[172].mxu1  ;;  %8401 = vmatmul.mubr.msk.bf16.gmra.mrb[136].mxu0 %vm3451_vm1, %v5817_v48  ;;  %v9194_v48 = vld [vmem:[%s9938_s3 + $0x10] sm:$0xff] }
 0x796   : > { %v5819_v35 = vpack.c.bf16 %v7731_v11, %v7728_v51  ;;  %v7767_v47 = vpop.f32.mrb[173].mxu1  ;;  %8404 = vmatprep.mubr.msk.bf16.mxu0 %vm3451_vm1, %v5818_v49 }
 0x797   : > { %v7768_v9 = vadd.f32 %v7767_v47, %v7766_v55  ;;  %v7769_v30 = vpop.f32.mrb[174].mxu1 }
 0x798   : > { %v7770_v4 = vpop.f32.mrb[175].mxu1 }
 0x799   : > { %v7771_v46 = vadd.f32 %v7770_v4, %v7769_v30  ;;  %v9204_v30 = vld [vmem:[%s9938_s3 + $0x40] sm:$0xff] }
 0x79b   : > { %v5823_v33 = vpack.c.bf16 %v7771_v46, %v7768_v9  ;;  %v9205_v46 = vld [vmem:[%s9938_s3 + $0x48] sm:$0xff] }
 0x79d   : > { %8405 = vmatmul.mubr.msk.bf16.gmra.mrb[140].mxu0 %vm3451_vm1, %v5819_v35  ;;  %v9203_v35 = vld [vmem:[%s9938_s3 + $0x58] sm:$0xff] }
 0x79e   : > { %8412 = vmatprep.mubr.msk.bf16.mxu0 %vm3451_vm1, %v5820_v37  ;;  %v7772_v62 = vpop.f32.mrb[176].mxu1 }
 0x79f   : > { %v7773_v41 = vpop.f32.mrb[177].mxu1 }
 0x7a0   : > { %v7774_v3 = vadd.f32 %v7773_v41, %v7772_v62  ;;  %v7775_v40 = vpop.f32.mrb[178].mxu1 }
 0x7a1   : > { %v7776_v38 = vpop.f32.mrb[179].mxu1 }
 0x7a2   : > { %v7777_v13 = vadd.f32 %v7776_v38, %v7775_v40 }
 0x7a4   : > { %v5824_v53 = vpack.c.bf16 %v7777_v13, %v7774_v3  ;;  %v9206_v3 = vld [vmem:[%s9938_s3 + $0x60] sm:$0xff] }
 0x7a5   : > { %8413 = vmatmul.mubr.msk.bf16.vlgmr.msra.gmra.mrb[128].mxu0 %vm3451_vm1, %v5821_v56 }
 0x7a6   : > { %8416 = vmatprep.mubr.msk.bf16.mxu0 %vm3451_vm1, %v5822_v10  ;;  %v7778_v0 = vpop.f32.mrb[180].mxu1  ;;  %v9202_v10 = vld [vmem:[%s9938_s3 + $0x50] sm:$0xff] }
 0x7a7   : > { %v7779_v29 = vpop.f32.mrb[181].mxu1 }
 0x7a8   : > { %v7780_v27 = vadd.f32 %v7779_v29, %v7778_v0  ;;  %v7781_v52 = vpop.f32.mrb[182].mxu1  ;;  %v9208_v29 = vld [vmem:[%s9938_s3 + $0x70] sm:$0xff] }
 0x7a9   : > { %v7782_v18 = vpop.f32.mrb[183].mxu1 }
 0x7aa   : > { %v7783_v43 = vadd.f32 %v7782_v18, %v7781_v52  ;;  %v9209_v52 = vld [vmem:[%s9938_s3 + $0x78] sm:$0xff] }
 0x7ac   : > { %v5825_v26 = vpack.c.bf16 %v7783_v43, %v7780_v27 }
 0x7ad   : > { %8417 = vmatmul.mubr.msk.bf16.gmra.mrb[132].mxu0 %vm3451_vm1, %v5823_v33 }
 0x7ae   : > { %8420 = vmatprep.mubr.msk.bf16.mxu0 %vm3451_vm1, %v5824_v53  ;;  %v9207_v53 = vld [vmem:[%s9938_s3 + $0x68] sm:$0xff]  ;;  %s13036_s3 = sld [smem:[#allocation28_spill]] }
 0x7b4   : > { %s7144_s16 = sshll.u32 %s13036_s3, 4 }
 0x7b5   : > { %8421 = vmatmul.mubr.msk.bf16.gmra.mrb[136].mxu0 %vm3451_vm1, %v5825_v26  ;;  %s6697_s13 = sadd.s32 %s7145_s27, %s7144_s16  ;;  %s9388_s16 = sshll.u32 %s9534_s14, 4  ;;  %s9389_s16 = int_to_ptr.vmem [resolvable:$false] %s9388_s16 }
 0x7b6   : > { %s7146_s8 = sshll.u32 %s6697_s13, 7  ;;  %s9390_s27 = scalar_lea.vmem %s9389_s16, 4096 }
 0x7b7   : > { %s12406_s20 = scalar_lea.hbm %s13039_s29, %s7146_s8  ;;  %p9391_p6 = scmp.lt.s32.totalorder %s12408_s12, %s9389_s16 }
 0x7b8   : > { %p9392_p9 = scmp.lt.s32.totalorder %s9390_s27, %s9384_s10 }
 0x7ba   : > { %p9393_p8 = por %p9392_p9, %p9391_p6 }
 0x7bc   : > { %p9394_p3 = pnand %p9393_p8, %p9387_p13 }
 0x7de   : > { %v7784_v45 = vpop.f32.mrb[184].mxu1 }
 0x7df   : > { %v7785_v22 = vpop.f32.mrb[185].mxu1 }
 0x7e0   : > { %v7786_v58 = vadd.f32 %v7785_v22, %v7784_v45  ;;  %v7787_v44 = vpop.f32.mrb[186].mxu1 }
 0x7e1   : > { %v7788_v2 = vpop.f32.mrb[187].mxu1 }
 0x7e2   : > { %v7789_v7 = vadd.f32 %v7788_v2, %v7787_v44 }
 0x7e4   : > { %v5826_v25 = vpack.c.bf16 %v7789_v7, %v7786_v58 }
 0x7e6   : > { %8424 = vmatprep.mubr.msk.bf16.mxu0 %vm3451_vm1, %v5826_v25 }
 0x7ee   : > { %v7790_v34 = vpop.f32.mrb[188].mxu1 }
 0x7ef   : > { %v7791_v15 = vpop.f32.mrb[189].mxu1 }
 0x7f0   : > { %v7792_v23 = vadd.f32 %v7791_v15, %v7790_v34  ;;  %v7793_v37 = vpop.f32.mrb[190].mxu1 }
 0x7f1   : > { %v7794_v12 = vpop.f32.mrb[191].mxu1 }
 0x7f2   : > { %v7795_v39 = vadd.f32 %v7794_v12, %v7793_v37 }
 0x7f4   : > { %v5827_v61 = vpack.c.bf16 %v7795_v39, %v7792_v23 }
 0x7f6   : > { %8425 = vmatmul.mubr.msk.bf16.gmra.mrb[140].mxu0 %vm3451_vm1, %v5827_v61 }
 0x878   : > { %v8414_v32 = vpop.f32.mrb[128].mxu0 }
 0x879   : > { %v12192_v19 = vadd.f32 %v9194_v48, %v8414_v32  ;;  %v6313_v57 = vpop.f32.mrb[129].mxu0 }
 0x87a   : > { %v8415_v16 = vpop.f32.mrb[130].mxu0  ;;  %v12199_v60 = vadd.f32 %v9196_v8, %v6313_v57 }
 0x87b   : > { %v12195_v31 = vadd.f32 %v9195_v17, %v8415_v16  ;;  %6444 = vadd.xlane.f32.xlu0 %v12192_v19  ;;  %v6316_v36 = vpop.f32.mrb[131].mxu0 }
 0x87c   : > { %v12203_v56 = vadd.f32 %v9197_v59, %v6316_v36 }
 0x87d   : > { %6446 = vadd.xlane.f32.xlu1 %v12195_v31 }
 0x87f   : > { %6440 = vadd.xlane.f32.xlu0 %v12199_v60 }
 0x880   : > { %v8418_v50 = vpop.f32.mrb[132].mxu0 }
 0x881   : > { %v12207_v63 = vadd.f32 %v9198_v6, %v8418_v50  ;;  %6442 = vadd.xlane.f32.xlu1 %v12203_v56  ;;  %v6329_v49 = vpop.f32.mrb[133].mxu0 }
 0x882   : > { %v8419_v54 = vpop.f32.mrb[134].mxu0  ;;  %v12215_v28 = vadd.f32 %v9200_v21, %v6329_v49 }
 0x883   : > { %v12211_v14 = vadd.f32 %v9199_v20, %v8419_v54  ;;  %6452 = vadd.xlane.f32.xlu0 %v12207_v63  ;;  %v6332_v24 = vpop.f32.mrb[135].mxu0 }
 0x884   : > { %v12219_v51 = vadd.f32 %v9201_v42, %v6332_v24 }
 0x885   : > { %6454 = vadd.xlane.f32.xlu1 %v12211_v14 }
 0x887   : > { %6448 = vadd.xlane.f32.xlu0 %v12215_v28 }
 0x888   : > { %v8422_v1 = vpop.f32.mrb[136].mxu0 }
 0x889   : > { %v12223_v5 = vadd.f32 %v9202_v10, %v8422_v1  ;;  %6450 = vadd.xlane.f32.xlu1 %v12219_v51  ;;  %v6345_v11 = vpop.f32.mrb[137].mxu0 }
 0x88a   : > { %v8423_v55 = vpop.f32.mrb[138].mxu0  ;;  %v12231_v4 = vadd.f32 %v9204_v30, %v6345_v11 }
 0x88b   : > { %v12227_v47 = vadd.f32 %v9203_v35, %v8423_v55  ;;  %6460 = vadd.xlane.f32.xlu0 %v12223_v5  ;;  %v6348_v9 = vpop.f32.mrb[139].mxu0 }
 0x88c   : > { %v12235_v33 = vadd.f32 %v9205_v46, %v6348_v9 }
 0x88d   : > { %6462 = vadd.xlane.f32.xlu1 %v12227_v47 }
 0x88f   : > { %6456 = vadd.xlane.f32.xlu0 %v12231_v4 }
 0x891   : > { %6458 = vadd.xlane.f32.xlu1 %v12235_v33 }
 0x8c9   : > { %v8426_v62 = vpop.f32.mrb[140].mxu0 }
 0x8ca   : > { %v6361_v41 = vpop.f32.mrb[141].mxu0  ;;  %v12247_v27 = vadd.f32 %v9208_v29, %v8426_v62 }
 0x8cb   : > { %v12240_v40 = vadd.f32 %v9206_v3, %v6361_v41  ;;  %v8427_v38 = vpop.f32.mrb[142].mxu0 }
 0x8cc   : > { %v6364_v13 = vpop.f32.mrb[143].mxu0  ;;  %v12251_v18 = vadd.f32 %v9209_v52, %v8427_v38 }
 0x8cd   : > { %v12243_v0 = vadd.f32 %v9207_v53, %v6364_v13  ;;  %6464 = vadd.xlane.f32.xlu0 %v12240_v40 }
 0x8cf   : > { %6466 = vadd.xlane.f32.xlu1 %v12243_v0 }
 0x8d1   : > { %6468 = vadd.xlane.f32.xlu0 %v12247_v27 }
 0x8d3   : > { %6470 = vadd.xlane.f32.xlu1 %v12251_v18 }
 0x908   : > { %v6445_v43 = vpop.xlane.xlu0 %6444 }
 0x909   : > { %v6475_v26 = vmul.f32 0.0078125, %v6445_v43 }
 0x90a   : > { %v6447_v45 = vpop.xlane.xlu1 %6446 }
 0x90b   : > { %v12256_v22 = vsub.f32 %v12192_v19, %v6475_v26  ;;  %v6476_v58 = vmul.f32 0.0078125, %v6447_v45 }
 0x90c   : > { %v6441_v44 = vpop.xlane.xlu0 %6440 }
 0x90d   : > { %v12259_v2 = vsub.f32 %v12195_v31, %v6476_v58  ;;  %v6473_v7 = vmul.f32 0.0078125, %v6441_v44  ;;  %v6507_v25 = vmul.f32 %v12256_v22, %v12256_v22 }
 0x90e   : > { %v6443_v34 = vpop.xlane.xlu1 %6442 }
 0x90f   : > { %v12264_v15 = vsub.f32 %v12199_v60, %v6473_v7  ;;  %v6474_v23 = vmul.f32 0.0078125, %v6443_v34  ;;  %6525 = vadd.xlane.f32.xlu0 %v6507_v25  ;;  %v6508_v37 = vmul.f32 %v12259_v2, %v12259_v2 }
 0x910   : > { %v6453_v12 = vpop.xlane.xlu0 %6452 }
 0x911   : > { %v12269_v39 = vsub.f32 %v12203_v56, %v6474_v23  ;;  %v6479_v61 = vmul.f32 0.0078125, %v6453_v12  ;;  %6527 = vadd.xlane.f32.xlu1 %v6508_v37  ;;  %v6505_v32 = vmul.f32 %v12264_v15, %v12264_v15 }
 0x912   : > { %v6455_v48 = vpop.xlane.xlu1 %6454 }
 0x913   : > { %v12274_v19 = vsub.f32 %v12207_v63, %v6479_v61  ;;  %v6480_v57 = vmul.f32 0.0078125, %v6455_v48  ;;  %6521 = vadd.xlane.f32.xlu0 %v6505_v32  ;;  %v6506_v16 = vmul.f32 %v12269_v39, %v12269_v39 }
 0x914   : > { %v6449_v17 = vpop.xlane.xlu0 %6448 }
 0x915   : > { %v12279_v31 = vsub.f32 %v12211_v14, %v6480_v57  ;;  %v6477_v36 = vmul.f32 0.0078125, %v6449_v17  ;;  %6523 = vadd.xlane.f32.xlu1 %v6506_v16  ;;  %v6511_v8 = vmul.f32 %v12274_v19, %v12274_v19 }
 0x916   : > { %v6451_v60 = vpop.xlane.xlu1 %6450 }
 0x917   : > { %v12284_v59 = vsub.f32 %v12215_v28, %v6477_v36  ;;  %v6478_v56 = vmul.f32 0.0078125, %v6451_v60  ;;  %6533 = vadd.xlane.f32.xlu0 %v6511_v8  ;;  %v6512_v50 = vmul.f32 %v12279_v31, %v12279_v31 }
 0x918   : > { %v6461_v6 = vpop.xlane.xlu0 %6460 }
 0x919   : > { %v12289_v63 = vsub.f32 %v12219_v51, %v6478_v56  ;;  %v6483_v49 = vmul.f32 0.0078125, %v6461_v6  ;;  %6535 = vadd.xlane.f32.xlu1 %v6512_v50  ;;  %v6509_v54 = vmul.f32 %v12284_v59, %v12284_v59  ;;  %v12335_v6 = vld [vmem:[#allocation12] ss:$0 sm:$0xff] }
 0x91a   : > { %v6463_v20 = vpop.xlane.xlu1 %6462 }
 0x91b   : > { %v12294_v14 = vsub.f32 %v12223_v5, %v6483_v49  ;;  %v6484_v24 = vmul.f32 0.0078125, %v6463_v20  ;;  %6529 = vadd.xlane.f32.xlu0 %v6509_v54  ;;  %v6510_v21 = vmul.f32 %v12289_v63, %v12289_v63 }
 0x91c   : > { %v6457_v28 = vpop.xlane.xlu0 %6456 }
 0x91d   : > { %v12299_v42 = vsub.f32 %v12227_v47, %v6484_v24  ;;  %v6481_v51 = vmul.f32 0.0078125, %v6457_v28  ;;  %6531 = vadd.xlane.f32.xlu1 %v6510_v21  ;;  %v6515_v1 = vmul.f32 %v12294_v14, %v12294_v14  ;;  %v12338_v28 = vld [vmem:[#allocation13] ss:$0 sm:$0xff] }
 0x91e   : > { %v6459_v10 = vpop.xlane.xlu1 %6458 }
 0x91f   : > { %v12304_v11 = vsub.f32 %v12231_v4, %v6481_v51  ;;  %v6482_v5 = vmul.f32 0.0078125, %v6459_v10  ;;  %6541 = vadd.xlane.f32.xlu0 %v6515_v1  ;;  %v6516_v55 = vmul.f32 %v12299_v42, %v12299_v42 }
 0x921   : > { %v12309_v35 = vsub.f32 %v12235_v33, %v6482_v5  ;;  %6543 = vadd.xlane.f32.xlu1 %v6516_v55  ;;  %v6513_v47 = vmul.f32 %v12304_v11, %v12304_v11 }
 0x923   : > { %6537 = vadd.xlane.f32.xlu0 %v6513_v47  ;;  %v6514_v9 = vmul.f32 %v12309_v35, %v12309_v35 }
 0x925   : > { %6539 = vadd.xlane.f32.xlu1 %v6514_v9 }
 0x95a   : > { %v6465_v30 = vpop.xlane.xlu0 %6464 }
 0x95b   : > { %v6485_v4 = vmul.f32 0.0078125, %v6465_v30 }
 0x95c   : > { %v6467_v46 = vpop.xlane.xlu1 %6466 }
 0x95d   : > { %v12316_v62 = vsub.f32 %v12240_v40, %v6485_v4  ;;  %v6486_v41 = vmul.f32 0.0078125, %v6467_v46 }
 0x95e   : > { %v6469_v3 = vpop.xlane.xlu0 %6468 }
 0x95f   : > { %v12319_v33 = vsub.f32 %v12243_v0, %v6486_v41  ;;  %v6487_v38 = vmul.f32 0.0078125, %v6469_v3  ;;  %v6517_v13 = vmul.f32 %v12316_v62, %v12316_v62 }
 0x960   : > { %v6471_v53 = vpop.xlane.xlu1 %6470 }
 0x961   : > { %v12324_v29 = vsub.f32 %v12247_v27, %v6487_v38  ;;  %v6488_v52 = vmul.f32 0.0078125, %v6471_v53  ;;  %6545 = vadd.xlane.f32.xlu0 %v6517_v13  ;;  %v6518_v43 = vmul.f32 %v12319_v33, %v12319_v33 }
 0x963   : > { %v12329_v40 = vsub.f32 %v12251_v18, %v6488_v52  ;;  %6547 = vadd.xlane.f32.xlu1 %v6518_v43  ;;  %v6519_v0 = vmul.f32 %v12324_v29, %v12324_v29 }
 0x965   : > { %6549 = vadd.xlane.f32.xlu0 %v6519_v0  ;;  %v6520_v26 = vmul.f32 %v12329_v40, %v12329_v40 }
 0x967   : > { %6551 = vadd.xlane.f32.xlu1 %v6520_v26 }
 0x99c   : > { %v6526_v45 = vpop.xlane.xlu0 %6525 }
 0x99d   : > { %v6555_v27 = vmul.f32 0.0078125, %v6526_v45 }
 0x99e   : > { %v6528_v58 = vpop.xlane.xlu1 %6527 }
 0x99f   : > { %v6571_v44 = vadd.f32 1e-06, %v6555_v27  ;;  %v6556_v7 = vmul.f32 0.0078125, %v6528_v58 }
 0x9a0   : > { %v6522_v25 = vpop.xlane.xlu0 %6521 }
 0x9a1   : > { %9162 = vrsqrt.f32 %v6571_v44  ;;  %v6572_v34 = vadd.f32 1e-06, %v6556_v7  ;;  %v6553_v23 = vmul.f32 0.0078125, %v6522_v25 }
 0x9a2   : > { %v6524_v18 = vpop.xlane.xlu1 %6523 }
 0x9a3   : > { %9164 = vrsqrt.f32 %v6572_v34  ;;  %v6569_v37 = vadd.f32 1e-06, %v6553_v23  ;;  %v6554_v12 = vmul.f32 0.0078125, %v6524_v18 }
 0x9a4   : > { %v6534_v61 = vpop.xlane.xlu0 %6533 }
 0x9a5   : > { %9166 = vrsqrt.f32 %v6569_v37  ;;  %v6570_v32 = vadd.f32 1e-06, %v6554_v12  ;;  %v6559_v48 = vmul.f32 0.0078125, %v6534_v61 }
 0x9a6   : > { %v6536_v57 = vpop.xlane.xlu1 %6535 }
 0x9a7   : > { %9168 = vrsqrt.f32 %v6570_v32  ;;  %v6575_v16 = vadd.f32 1e-06, %v6559_v48  ;;  %v6560_v17 = vmul.f32 0.0078125, %v6536_v57 }
 0x9a8   : > { %v6530_v36 = vpop.xlane.xlu0 %6529 }
 0x9a9   : > { %9170 = vrsqrt.f32 %v6575_v16  ;;  %v6576_v8 = vadd.f32 1e-06, %v6560_v17  ;;  %v6557_v60 = vmul.f32 0.0078125, %v6530_v36 }
 0x9aa   : > { %v6532_v56 = vpop.xlane.xlu1 %6531 }
 0x9ab   : > { %v9163_v50 = vpop.eup %9162  ;;  %9172 = vrsqrt.f32 %v6576_v8  ;;  %v6573_v49 = vadd.f32 1e-06, %v6557_v60  ;;  %v6558_v54 = vmul.f32 0.0078125, %v6532_v56 }
 0x9ac   : > { %v6603_v20 = vmul.f32 %v9163_v50, %v12256_v22  ;;  %v6542_v24 = vpop.xlane.xlu0 %6541 }
 0x9ad   : > { %v9165_v21 = vpop.eup %9164  ;;  %9174 = vrsqrt.f32 %v6573_v49  ;;  %v6574_v51 = vadd.f32 1e-06, %v6558_v54  ;;  %v6563_v1 = vmul.f32 0.0078125, %v6542_v24 }
 0x9ae   : > { %v6626_v10 = vmul.f32 %v12335_v6, %v6603_v20  ;;  %v6604_v5 = vmul.f32 %v9165_v21, %v12259_v2  ;;  %v6544_v55 = vpop.xlane.xlu1 %6543 }
 0x9af   : > { %v9167_v47 = vpop.eup %9166  ;;  %9176 = vrsqrt.f32 %v6574_v51  ;;  %v6579_v9 = vadd.f32 1e-06, %v6563_v1  ;;  %v6564_v30 = vmul.f32 0.0078125, %v6544_v55 }
 0x9b0   : > { %v6649_v4 = vadd.f32 %v12338_v28, %v6626_v10  ;;  %v6627_v22 = vmul.f32 %v12335_v6, %v6604_v5  ;;  %v6601_v46 = vmul.f32 %v9167_v47, %v12264_v15  ;;  %v6538_v41 = vpop.xlane.xlu0 %6537 }
 0x9b1   : > { %v9169_v3 = vpop.eup %9168  ;;  %9178 = vrsqrt.f32 %v6579_v9  ;;  %v6580_v38 = vadd.f32 1e-06, %v6564_v30  ;;  %v6561_v13 = vmul.f32 0.0078125, %v6538_v41 }
 0x9b2   : > { %6665 = vst [vmem:[%s9963_s21 + $0x10] sm:$0xff] %v6649_v4  ;;  %v6650_v2 = vadd.f32 %v12338_v28, %v6627_v22  ;;  %v6624_v53 = vmul.f32 %v12335_v6, %v6601_v46  ;;  %v6602_v52 = vmul.f32 %v9169_v3, %v12269_v39  ;;  %v6540_v43 = vpop.xlane.xlu1 %6539 }
 0x9b3   : > { %v9171_v0 = vpop.eup %9170  ;;  %9180 = vrsqrt.f32 %v6580_v38  ;;  %v6577_v26 = vadd.f32 1e-06, %v6561_v13  ;;  %v6562_v45 = vmul.f32 0.0078125, %v6540_v43 }
 0x9b4   : > { %6666 = vst [vmem:[%s9963_s21 + $0x18] sm:$0xff] %v6650_v2  ;;  %v6647_v15 = vadd.f32 %v12338_v28, %v6624_v53  ;;  %v6625_v27 = vmul.f32 %v12335_v6, %v6602_v52  ;;  %v6607_v58 = vmul.f32 %v9171_v0, %v12274_v19 }
 0x9b5   : > { %v9173_v44 = vpop.eup %9172  ;;  %9182 = vrsqrt.f32 %v6577_v26  ;;  %v6578_v7 = vadd.f32 1e-06, %v6562_v45 }
 0x9b6   : > { %6663 = vst [vmem:[%s9963_s21] sm:$0xff] %v6647_v15  ;;  %v6648_v39 = vadd.f32 %v12338_v28, %v6625_v27  ;;  %v6630_v25 = vmul.f32 %v12335_v6, %v6607_v58  ;;  %v6608_v34 = vmul.f32 %v9173_v44, %v12279_v31 }
 0x9b7   : > { %v9175_v23 = vpop.eup %9174  ;;  %9184 = vrsqrt.f32 %v6578_v7 }
 0x9b8   : > { %6664 = vst [vmem:[%s9963_s21 + $0x8] sm:$0xff] %v6648_v39  ;;  %v6653_v18 = vadd.f32 %v12338_v28, %v6630_v25  ;;  %v6631_v37 = vmul.f32 %v12335_v6, %v6608_v34  ;;  %v6605_v19 = vmul.f32 %v9175_v23, %v12284_v59 }
 0x9b9   : > { %v9177_v12 = vpop.eup %9176 }
 0x9ba   : > { %6669 = vst [vmem:[%s9963_s21 + $0x30] sm:$0xff] %v6653_v18  ;;  %v6654_v61 = vadd.f32 %v12338_v28, %v6631_v37  ;;  %v6628_v32 = vmul.f32 %v12335_v6, %v6605_v19  ;;  %v6606_v48 = vmul.f32 %v9177_v12, %v12289_v63 }
 0x9bb   : > { %v9179_v31 = vpop.eup %9178 }
 0x9bc   : > { %6670 = vst [vmem:[%s9963_s21 + $0x38] sm:$0xff] %v6654_v61  ;;  %v6651_v57 = vadd.f32 %v12338_v28, %v6628_v32  ;;  %v6629_v16 = vmul.f32 %v12335_v6, %v6606_v48  ;;  %v6611_v17 = vmul.f32 %v9179_v31, %v12294_v14 }
 0x9bd   : > { %v9181_v59 = vpop.eup %9180 }
 0x9be   : > { %6667 = vst [vmem:[%s9963_s21 + $0x20] sm:$0xff] %v6651_v57  ;;  %v6652_v36 = vadd.f32 %v12338_v28, %v6629_v16  ;;  %v6634_v8 = vmul.f32 %v12335_v6, %v6611_v17  ;;  %v6612_v60 = vmul.f32 %v9181_v59, %v12299_v42 }
 0x9bf   : > { %v9183_v63 = vpop.eup %9182 }
 0x9c0   : > { %6668 = vst [vmem:[%s9963_s21 + $0x28] sm:$0xff] %v6652_v36  ;;  %v6657_v56 = vadd.f32 %v12338_v28, %v6634_v8  ;;  %v6635_v50 = vmul.f32 %v12335_v6, %v6612_v60  ;;  %v6609_v49 = vmul.f32 %v9183_v63, %v12304_v11 }
 0x9c1   : > { %v9185_v14 = vpop.eup %9184 }
 0x9c2   : > { %6673 = vst [vmem:[%s9963_s21 + $0x50] sm:$0xff] %v6657_v56  ;;  %v6658_v54 = vadd.f32 %v12338_v28, %v6635_v50  ;;  %v6632_v20 = vmul.f32 %v12335_v6, %v6609_v49  ;;  %v6610_v24 = vmul.f32 %v9185_v14, %v12309_v35 }
 0x9c4   : > { %6674 = vst [vmem:[%s9963_s21 + $0x58] sm:$0xff] %v6658_v54  ;;  %v6655_v42 = vadd.f32 %v12338_v28, %v6632_v20  ;;  %v6633_v21 = vmul.f32 %v12335_v6, %v6610_v24 }
 0x9c6   : > { %6671 = vst [vmem:[%s9963_s21 + $0x40] sm:$0xff] %v6655_v42  ;;  %v6656_v51 = vadd.f32 %v12338_v28, %v6633_v21 }
 0x9c8   : > { %6672 = vst [vmem:[%s9963_s21 + $0x48] sm:$0xff] %v6656_v51 }
 0x9ee   : > { %v6546_v1 = vpop.xlane.xlu0 %6545 }
 0x9ef   : > { %v6565_v10 = vmul.f32 0.0078125, %v6546_v1 }
 0x9f0   : > { %v6548_v11 = vpop.xlane.xlu1 %6547 }
 0x9f1   : > { %v6581_v5 = vadd.f32 1e-06, %v6565_v10  ;;  %v6566_v55 = vmul.f32 0.0078125, %v6548_v11 }
 0x9f2   : > { %v6550_v47 = vpop.xlane.xlu0 %6549 }
 0x9f3   : > { %9186 = vrsqrt.f32 %v6581_v5  ;;  %v6582_v9 = vadd.f32 1e-06, %v6566_v55  ;;  %v6567_v35 = vmul.f32 0.0078125, %v6550_v47 }
 0x9f4   : > { %v6552_v30 = vpop.xlane.xlu1 %6551 }
 0x9f5   : > { %9188 = vrsqrt.f32 %v6582_v9  ;;  %v6583_v4 = vadd.f32 1e-06, %v6567_v35  ;;  %v6568_v22 = vmul.f32 0.0078125, %v6552_v30 }
 0x9f7   : > { %9190 = vrsqrt.f32 %v6583_v4  ;;  %v6584_v46 = vadd.f32 1e-06, %v6568_v22 }
 0x9f9   : > { %9192 = vrsqrt.f32 %v6584_v46 }
 0x9fd   : > { %v9187_v41 = vpop.eup %9186 }
 0x9fe   : > { %v6613_v3 = vmul.f32 %v9187_v41, %v12316_v62 }
 0x9ff   : > { %v9189_v38 = vpop.eup %9188 }
 0xa00   : > { %v6636_v13 = vmul.f32 %v12335_v6, %v6613_v3  ;;  %v6614_v2 = vmul.f32 %v9189_v38, %v12319_v33 }
 0xa01   : > { %v9191_v53 = vpop.eup %9190 }
 0xa02   : > { %v6659_v52 = vadd.f32 %v12338_v28, %v6636_v13  ;;  %v6637_v43 = vmul.f32 %v12335_v6, %v6614_v2  ;;  %v6615_v0 = vmul.f32 %v9191_v53, %v12324_v29 }
 0xa03   : > { %v9193_v62 = vpop.eup %9192 }
 0xa04   : > { %6675 = vst [vmem:[%s9963_s21 + $0x60] sm:$0xff] %v6659_v52  ;;  %v6660_v26 = vadd.f32 %v12338_v28, %v6637_v43  ;;  %v6638_v45 = vmul.f32 %v12335_v6, %v6615_v0  ;;  %v6616_v33 = vmul.f32 %v9193_v62, %v12329_v40 }
 0xa06   : > { %6676 = vst [vmem:[%s9963_s21 + $0x68] sm:$0xff] %v6660_v26  ;;  %v6661_v15 = vadd.f32 %v12338_v28, %v6638_v45  ;;  %v6639_v27 = vmul.f32 %v12335_v6, %v6616_v33 }
 0xa08   : > { %6677 = vst [vmem:[%s9963_s21 + $0x70] sm:$0xff] %v6661_v15  ;;  %v6662_v29 = vadd.f32 %v12338_v28, %v6639_v27 }
 0xa0a   : > { %6678 = vst [vmem:[%s9963_s21 + $0x78] sm:$0xff] %v6662_v29 }
 0xa0b   : > { %9397 = shalt.err (!%p9394_p3)
}
 0xa0c   : > { %s9398_s21 = scalar_lea.hbm %s12406_s20, 2048  ;;  %s9402_s30 = scalar_lea.hbm %s13039_s29, 8192 }
 0xa0d   : > { %p9399_p2 = scmp.ne.s32.totalorder %s12406_s20, %s9398_s21  ;;  %p9403_p11 = scmp.lt.u32.totalorder %s12406_s20, %s13039_s29 }
 0xa0e   : > { %p9404_p0 = scmp.lt.u32.totalorder %s9402_s30, %s9398_s21  ;;  %p9406_p12 = scmp.lt.u32.totalorder %s9398_s21, %s12406_s20 }
 0xa0f   : > { %p9400_p10 = pnand %p9399_p2, %p13040_p4 }
 0xa10   : > { %p9405_p1 = por %p9404_p0, %p9403_p11 }
 0xa11   : > { %p9401_p7 = pneg %p9400_p10 }
 0xa12   : > { %p9407_p5 = por %p9406_p12, %p9405_p1 }
 0xa14   : > { %p9408_p13 = pnand %p9407_p5, %p9401_p7 }
 0xa16   : > { %9411 = shalt.err (!%p9408_p13)
}
 0xa17   : > { %s9535_s10 = smov 128   ;;  %s9536_s16 = smov 8  }
 0xa18   : > { %8526 = dma.vmem_to_hbm [thread:$0]  (%p13040_p4), %s12408_s12, 2048, %s12406_s20, %s6680_s1, %s9535_s10, %s9535_s10, %s9536_s16  }
 0xa19   : > { %s6685_s27 = scalar_lea.sflag [#allocation17], %s9934_s11 }
 0xa1a   : > { %s7155_s21 = sshll.u32 %s13036_s3, 5  ;;  %s7149_s13 = sshll.u32 %s13037_s19, 8 }
 0xa1b   : > { %s6716_s8 = sadd.s32 %s7155_s21, %s7149_s13  ;;  %s6735_s30 = sshll.u32 %s9965_s4, 4  ;;  %s6736_s30 = int_to_ptr.vmem [resolvable:$true] %s6735_s30 }
 0xa1c   : > { %s7150_s28 = sshll.u32 %s6716_s8, 7  ;;  %s13041_s12 = sld [smem:[#allocation136_spill]] }
 0xa1d   : > { %s9537_s20 = smov 4096   ;;  %s9538_s1 = smov 8192  }
 0xa1e   : > { %8527 = sst [smem:[#allocation19]] (%p13040_p4), %s9537_s20  ;;  %s9539_s10 = smov 16  }
 0xa1f   : > { %8528 = sst [smem:[#allocation19 + $0x1]] (%p13040_p4), %s9538_s1  ;;  %s9540_s3 = smov 256  }
 0xa20   : > { %8529 = sst [smem:[#allocation19 + $0x2]] (%p13040_p4), %s9539_s10  ;;  %s9541_s4 = smov [#allocation18]  }
 0xa21   : > { %8530 = sst [smem:[#allocation19 + $0x3]] (%p13040_p4), %s9540_s3  ;;  %s9542_s19 = smov 0  }
 0xa22   : > { %s6718_s11 = scalar_lea.hbm %s13041_s12, %s7150_s28  ;;  %8531 = sst [smem:[#allocation19 + $0x4]] (%p13040_p4), %s9540_s3 }
 0xa23   : > { %8532 = sst [smem:[#allocation19 + $0x5]] (%p13040_p4), %s9539_s10 }
 0xa24   : > { %8533 = dma.general (%p13040_p4), %s6736_s30, 16384, %s6718_s11, %s6685_s27, %s9541_s4, [#allocation19], %s9542_s19, 0  }
 0xa25 PF: > { %s13042_s0 = sld [smem:[#allocation27_spill]]  ;;  %s13043_s16 = sld [smem:[#allocation33_spill]] }
 0xa26   : > { %p8570_p6 = scmp.ge.s32.totalorder %s9522_s23, 2 }
 0xa2b   : > { %s6763_s21 = sand.u32 1, %s13042_s0   ;;  %p13044_p9 = scmp.ne.s32.totalorder %s13043_s16, 0 }
 0xa2c   : > { %s6764_s13 = scalar_lea.sflag [#allocation6], %s6763_s21 }
 0xa2d   : > { %p8557_p8 = pnand %p8570_p6, %p13044_p9 }
 0xa2f   : > { %9473 = dma.done.wait (!%p8557_p8), %s6764_s13, 2048  }
 0xa30   : > { %9475 = vsyncadd (!%p8557_p8), %s6764_s13, 4294965248  ;;  %s6773_s8 = scalar_lea.sflag [#allocation17], %s6763_s21 }
 0xa31   : > { %9477 = dma.done.wait (!%p8557_p8), %s6773_s8, 16384  }
 0xa32   : > { %9479 = vsyncadd (!%p8557_p8), %s6773_s8, 4294950912  ;;  %s35_s23 = sadd.s32 1, %s9522_s23   ;;  %s13045_s13 = sld [smem:[#allocation26_spill]] }
 0xa33   : > { %p32_p3 = scmp.ge.s32.totalorder %s35_s23, 6   ;;  %s13046_s19 = sld [smem:[#allocation30_spill]] }
 0xa34   : > { %s13047_s21 = sld [smem:[#allocation35_spill]]  ;;  %s13048_s14 = smov %s9490_s15 }
 0xa35   : > { %s13049_s15 = smov %s9851_s26  ;;  %s13050_s16 = smov %s9498_s17 }
 0xa36   : > { %s13051_s17 = smov %s9502_s18  ;;  %s13052_s18 = smov %s9854_s7 }
 0xa37   : > { %s13053_s20 = smov %s9518_s22  ;;  %s13054_s22 = smov %s13060_s25 }
 0xa38   :  { %34 = sbr.rel (!%p32_p3) target bundleno = 26 (0x1a), region = 163 }
 0xa3f   :  { %6778 = vsyncpa [#allocation5], 1 }
 0xa40   :  { %6780 = vsyncpa [#allocation5 + $0x1], 1 }
 0xa41   :  { %6781 = vsyncpa [#allocation8], 1 }
 0xa42   :  { %6783 = vsyncpa [#allocation8 + $0x1], 1 }
 0xa43   :  { %6784 = vsyncpa [#allocation11], 1 }
 0xa44   :  { %6785 = vsyncpa [#allocation14], 1 }
 0xa45   :  { %6786 = vsyncpa [#allocation6], 1 }
 0xa46   :  { %6788 = vsyncpa [#allocation6 + $0x1], 1 }
 0xa47   :  { %6789 = vsyncpa [#allocation17], 1 }
 0xa48   :  { %6791 = vsyncpa [#allocation17 + $0x1], 1 }

</bundles_post_ra>
